<compile_context>
chip_gen: v7x
topology: tpu7x:2x2x1
jax: 0.10.0
libtpu: 0.0.40
codegen_flags: <defaults>
</compile_context>

<pallas_src>
import math

import jax
import jax.numpy as jnp
from jax.experimental import pallas as pl
from jax.experimental.pallas import tpu as pltpu


# ---------------------------------------------------------------------------
# Fused FFN kernels
#   out[i-block, :] = sum_f relu(x @ W1 + b1)[:, f-block] @ W2[f-block, :] + b2
# ---------------------------------------------------------------------------
def _ffn_kernel_accum_out(x_ref, w1_ref, b1_ref, w2_ref, b2_ref, o_ref):
    """f32-output path: accumulate directly into the VMEM-resident output."""
    f = pl.program_id(1)

    @pl.when(f == 0)
    def _():
        o_ref[...] = jnp.zeros_like(o_ref)

    # Hidden block  h = relu(x @ W1[:, f-block] + b1[f-block])  -> (bm, bf) f32
    h = jnp.dot(x_ref[...], w1_ref[...], preferred_element_type=jnp.float32)
    h = jnp.maximum(h + b1_ref[...], 0.0)

    # Contribution to the output block:  h @ W2[f-block, :]  -> (bm, D) f32
    o_ref[...] += jnp.dot(h.astype(w2_ref.dtype), w2_ref[...],
                          preferred_element_type=jnp.float32)

    @pl.when(f == pl.num_programs(1) - 1)
    def _():
        o_ref[...] += b2_ref[...]


def _ffn_kernel_scratch(x_ref, w1_ref, b1_ref, w2_ref, b2_ref, o_ref, acc_ref):
    """Non-f32-output path: f32 accumulator scratch, cast on the last f step."""
    f = pl.program_id(1)

    @pl.when(f == 0)
    def _():
        acc_ref[...] = jnp.zeros_like(acc_ref)

    h = jnp.dot(x_ref[...], w1_ref[...], preferred_element_type=jnp.float32)
    h = jnp.maximum(h + b1_ref[...], 0.0)
    acc_ref[...] += jnp.dot(h.astype(w2_ref.dtype), w2_ref[...],
                            preferred_element_type=jnp.float32)

    @pl.when(f == pl.num_programs(1) - 1)
    def _():
        o_ref[...] = (acc_ref[...] + b2_ref[...]).astype(o_ref.dtype)


# ---------------------------------------------------------------------------
# Tile selection: D-aware, MXU-aligned, budgeted against per-TC VMEM.
# ---------------------------------------------------------------------------
_VMEM_TILE_BUDGET = 40 << 20     # safe under v7x 64 MiB/TC; plenty on v5e/v6e
_VMEM_LIMIT_BYTES = 48 << 20     # above v5e/v6e default scoped limits


def _block_candidates(dim, cap):
    """Divisors of `dim` <= cap, preferring 256/128/16-aligned, descending."""
    cap = min(dim, cap)
    for align in (256, 128, 16, 8):
        cands = [c for c in range(cap, 0, -1) if dim % c == 0 and c % align == 0]
        if cands:
            return cands
    return [dim]


def _pick_blocks(M, D, F, compute_itemsize, out_itemsize, use_scratch, budget):
    bm_cands = _block_candidates(M, 1024)
    bf_cands = _block_candidates(F, F)

    def ws(bm, bf):
        s = 2 * bm * D * compute_itemsize     # x block (double-buffered)
        s += 2 * D * bf * compute_itemsize    # W1 block
        s += 2 * bf * D * compute_itemsize    # W2 block
        s += 2 * (bf + D) * 4                 # bias slices
        s += 2 * bm * D * out_itemsize        # output block
        s += bm * bf * 4                      # hidden intermediate (f32)
        if use_scratch:
            s += bm * D * 4                   # f32 accumulator scratch
        return s

    # 1) Prefer full-d_ff hidden block: weights become VMEM-resident and are
    #    fetched from HBM exactly once for the whole kernel.
    for bm in bm_cands:
        if ws(bm, F) <= budget:
            return bm, F
    # 2) Otherwise maximize the row block (amortizes weight re-streaming),
    #    then grow the hidden block within the remaining budget.
    bf_min = bf_cands[-1]
    for bm in bm_cands:
        if ws(bm, bf_min) <= budget:
            for bf in bf_cands:
                if ws(bm, bf) <= budget:
                    return bm, bf
            return bm, bf_min
    return bm_cands[-1], bf_min


# ---------------------------------------------------------------------------
# Wrapper
# ---------------------------------------------------------------------------
def position_wise_feed_forward(x, params, *, block_m=None, block_f=None,
                               compute_dtype=jnp.bfloat16):
    """x: (B, S, d_model) -> (B, S, d_model)."""
    B, S, D = x.shape
    w1, b1 = params["w1"], params["b1"]      # (D, F), (F,)
    w2, b2 = params["w2"], params["b2"]      # (F, D), (D,)
    F = w1.shape[1]
    assert w1.shape == (D, F) and w2.shape == (F, D)
    assert b1.shape == (F,) and b2.shape == (D,)

    M = B * S
    out_dtype = x.dtype
    use_scratch = (jnp.dtype(out_dtype) != jnp.dtype(jnp.float32))

    ci = jnp.dtype(compute_dtype).itemsize
    oi = jnp.dtype(out_dtype).itemsize

    # Tile sizes.
    auto_bm, auto_bf = _pick_blocks(M, D, F, ci, oi, use_scratch,
                                    _VMEM_TILE_BUDGET)
    bm = block_m if block_m is not None else auto_bm
    bf = block_f if block_f is not None else auto_bf
    assert M % bm == 0 and (bm % 8 == 0 or bm == M), "bad row block"
    assert F % bf == 0 and (bf % 128 == 0 or bf == F), "bad hidden block"
    grid = (M // bm, F // bf)

    # Cast matmul operands to the compute dtype at the boundary (biases stay
    # f32 and are added to the f32 accumulator).
    x2 = x.reshape(M, D).astype(compute_dtype)
    w1c = w1.astype(compute_dtype)
    w2c = w2.astype(compute_dtype)
    b1f = b1.astype(jnp.float32).reshape(1, F)
    b2f = b2.astype(jnp.float32).reshape(1, D)

    weight_fetches = 1 if bf == F else M // bm
    cost = pl.CostEstimate(
        flops=4 * M * D * F,                  # two (M, D/F)-contraction matmuls
        transcendentals=0,
        bytes_accessed=int(
            M * D * ci                        # x (read once per row block)
            + M * D * oi                      # output
            + weight_fetches * 2 * D * F * ci # W1 + W2 (per row block if not resident)
            + (F + D) * 4),                   # biases
    )

    if use_scratch:
        kernel = _ffn_kernel_scratch
        scratch_shapes = [pltpu.VMEM((bm, D), jnp.float32)]
    else:
        kernel = _ffn_kernel_accum_out
        scratch_shapes = []

    out2 = pl.pallas_call(
        kernel,
        out_shape=jax.ShapeDtypeStruct((M, D), out_dtype),
        grid_spec=pltpu.PrefetchScalarGridSpec(
            num_scalar_prefetch=0,
            grid=grid,
            in_specs=[
                pl.BlockSpec((bm, D), lambda i, f: (i, 0)),   # x row-block
                pl.BlockSpec((D, bf), lambda i, f: (0, f)),   # W1 column-block
                pl.BlockSpec((1, bf), lambda i, f: (0, f)),   # b1 slice
                pl.BlockSpec((bf, D), lambda i, f: (f, 0)),   # W2 row-block
                pl.BlockSpec((1, D), lambda i, f: (0, 0)),    # b2
            ],
            out_specs=pl.BlockSpec((bm, D), lambda i, f: (i, 0)),
            scratch_shapes=scratch_shapes,
        ),
        compiler_params=pltpu.CompilerParams(
            dimension_semantics=("parallel", "arbitrary"),
            vmem_limit_bytes=_VMEM_LIMIT_BYTES),
        cost_estimate=cost,
    )(x2, w1c, b1f, w2c, b2f)

    return out2.reshape(B, S, D)


# Pure-JAX reference with the same numerics (bf16 operands, f32 accumulation).
def _reference(x, params, compute_dtype=jnp.bfloat16):
    cd = compute_dtype
    h = jnp.dot(x.astype(cd), params["w1"].astype(cd),
                preferred_element_type=jnp.float32) + params["b1"]
    h = jnp.maximum(h, 0.0)
    y = jnp.dot(h.astype(cd), params["w2"].astype(cd),
                preferred_element_type=jnp.float32) + params["b2"]
    return y.astype(x.dtype)


if __name__ == "__main__":
    # Module's real feature dims (d_model=512, d_ff=2048) with a small batch/seq.
    B, S, D, F = 2, 64, 512, 2048

    key = jax.random.PRNGKey(0)
    k_w1, k_b1, k_w2, k_b2, k_x = jax.random.split(key, 5)

    # nn.Linear-style uniform init (deterministic).
    bound1 = 1.0 / math.sqrt(D)
    bound2 = 1.0 / math.sqrt(F)
    params = {
        "w1": jax.random.uniform(k_w1, (D, F), jnp.float32, -bound1, bound1),
        "b1": jax.random.uniform(k_b1, (F,), jnp.float32, -bound1, bound1),
        "w2": jax.random.uniform(k_w2, (F, D), jnp.float32, -bound2, bound2),
        "b2": jax.random.uniform(k_b2, (D,), jnp.float32, -bound2, bound2),
    }
    x = jax.random.normal(k_x, (B, S, D), jnp.float32)

    ref = _reference(x, params)

    # 1) Auto tiling: weight-resident path (bf = d_ff, weights DMA'd once).
    out_auto = jax.block_until_ready(position_wise_feed_forward(x, params))
    assert out_auto.shape == (B, S, D)
    assert jnp.allclose(out_auto, ref, atol=1e-2, rtol=1e-2), "auto-tile mismatch"

    # 2) Forced small blocks: exercises the multi-step ("parallel", "arbitrary")
    #    grid with zero-init / accumulate / bias-finalize over the d_ff axis.
    out_blk = jax.block_until_ready(
        position_wise_feed_forward(x, params, block_m=64, block_f=256))
    assert jnp.allclose(out_blk, ref, atol=1e-2, rtol=1e-2), "blocked mismatch"

    print("KERNEL_OK")
</pallas_src>

<mosaic_0001>
module attributes {stable_mosaic.version = 11 : i64} {
  func.func @_ffn_kernel_accum_out(%arg0: i32, %arg1: i32, %arg2: memref<128x512xbf16, #tpu.memory_space<vmem>>, %arg3: memref<512x2048xbf16, #tpu.memory_space<vmem>>, %arg4: memref<1x2048xf32, #tpu.memory_space<vmem>>, %arg5: memref<2048x512xbf16, #tpu.memory_space<vmem>>, %arg6: memref<1x512xf32, #tpu.memory_space<vmem>>, %arg7: memref<128x512xf32, #tpu.memory_space<vmem>>) attributes {dimension_semantics = [#tpu.dimension_semantics<parallel>, #tpu.dimension_semantics<arbitrary>], iteration_bounds = array<i64: 1, 1>, scalar_prefetch = 0 : i64, scratch_operands = 0 : i64, tpu.core_type = #tpu.core_type<tc>, window_params = [{transform_indices = @transform_0, window_bounds = array<i64: 128, 512>}, {transform_indices = @transform_1, window_bounds = array<i64: 512, 2048>}, {transform_indices = @transform_2, window_bounds = array<i64: 1, 2048>}, {transform_indices = @transform_3, window_bounds = array<i64: 2048, 512>}, {pipeline_mode = #tpu.pipeline_mode<synchronous>, transform_indices = @transform_4, window_bounds = array<i64: 1, 512>}, {transform_indices = @transform_5, window_bounds = array<i64: 128, 512>}]} {
    %c0_i32 = arith.constant 0 : i32
    %0 = arith.cmpi eq, %arg1, %c0_i32 : i32
    %1 = arith.extui %0 : i1 to i32
    %c0_i32_0 = arith.constant 0 : i32
    %2 = arith.cmpi ne, %1, %c0_i32_0 : i32
    scf.if %2 {
      %cst_16 = arith.constant 0.000000e+00 : f32
      %20 = vector.broadcast %cst_16 : f32 to vector<128x512xf32>
      %c0_17 = arith.constant 0 : index
      %c0_18 = arith.constant 0 : index
      %21 = vector.load %arg7[%c0_17, %c0_18] : memref<128x512xf32, #tpu.memory_space<vmem>>, vector<128x512xf32>
      tpu.vector_store %arg7[%c0_17, %c0_18], %20 {strides = array<i32>} : memref<128x512xf32, #tpu.memory_space<vmem>>, vector<128x512xf32>,
    } else {
    }
    %c0 = arith.constant 0 : index
    %c0_1 = arith.constant 0 : index
    %3 = vector.load %arg2[%c0, %c0_1] : memref<128x512xbf16, #tpu.memory_space<vmem>>, vector<128x512xbf16>
    %c0_2 = arith.constant 0 : index
    %c0_3 = arith.constant 0 : index
    %4 = vector.load %arg3[%c0_2, %c0_3] : memref<512x2048xbf16, #tpu.memory_space<vmem>>, vector<512x2048xbf16>
    %cst = arith.constant dense<0.000000e+00> : vector<128x2048xf32>
    %5 = tpu.matmul %3, %4, %cst {dimension_numbers = #tpu.dot_dimension_numbers<[1], [0], [0], [1], [0, 0, 1, 1], [], []>} : vector<128x512xbf16>, vector<512x2048xbf16>, vector<128x2048xf32> -> vector<128x2048xf32>
    %c0_4 = arith.constant 0 : index
    %c0_5 = arith.constant 0 : index
    %6 = vector.load %arg4[%c0_4, %c0_5] : memref<1x2048xf32, #tpu.memory_space<vmem>>, vector<1x2048xf32>
    %7 = vector.broadcast %6 : vector<1x2048xf32> to vector<128x2048xf32>
    %8 = arith.addf %5, %7 : vector<128x2048xf32>
    %cst_6 = arith.constant 0.000000e+00 : f32
    %9 = vector.broadcast %cst_6 : f32 to vector<128x2048xf32>
    %10 = arith.maximumf %8, %9 : vector<128x2048xf32>
    %c0_7 = arith.constant 0 : index
    %c0_8 = arith.constant 0 : index
    %11 = vector.load %arg7[%c0_7, %c0_8] : memref<128x512xf32, #tpu.memory_space<vmem>>, vector<128x512xf32>
    %12 = arith.truncf %10 : vector<128x2048xf32> to vector<128x2048xbf16>
    %c0_9 = arith.constant 0 : index
    %c0_10 = arith.constant 0 : index
    %13 = vector.load %arg5[%c0_9, %c0_10] : memref<2048x512xbf16, #tpu.memory_space<vmem>>, vector<2048x512xbf16>
    %cst_11 = arith.constant dense<0.000000e+00> : vector<128x512xf32>
    %14 = tpu.matmul %12, %13, %cst_11 {dimension_numbers = #tpu.dot_dimension_numbers<[1], [0], [0], [1], [0, 0, 1, 1], [], []>} : vector<128x2048xbf16>, vector<2048x512xbf16>, vector<128x512xf32> -> vector<128x512xf32>
    %15 = arith.addf %11, %14 : vector<128x512xf32>
    %c0_12 = arith.constant 0 : index
    %c0_13 = arith.constant 0 : index
    %16 = vector.load %arg7[%c0_12, %c0_13] : memref<128x512xf32, #tpu.memory_space<vmem>>, vector<128x512xf32>
    tpu.vector_store %arg7[%c0_12, %c0_13], %15 {strides = array<i32>} : memref<128x512xf32, #tpu.memory_space<vmem>>, vector<128x512xf32>,
    %c0_i32_14 = arith.constant 0 : i32
    %17 = arith.cmpi eq, %arg1, %c0_i32_14 : i32
    %18 = arith.extui %17 : i1 to i32
    %c0_i32_15 = arith.constant 0 : i32
    %19 = arith.cmpi ne, %18, %c0_i32_15 : i32
    scf.if %19 {
      %c0_16 = arith.constant 0 : index
      %c0_17 = arith.constant 0 : index
      %20 = vector.load %arg7[%c0_16, %c0_17] : memref<128x512xf32, #tpu.memory_space<vmem>>, vector<128x512xf32>
      %c0_18 = arith.constant 0 : index
      %c0_19 = arith.constant 0 : index
      %21 = vector.load %arg6[%c0_18, %c0_19] : memref<1x512xf32, #tpu.memory_space<vmem>>, vector<1x512xf32>
      %22 = vector.broadcast %21 : vector<1x512xf32> to vector<128x512xf32>
      %23 = arith.addf %20, %22 : vector<128x512xf32>
      %c0_20 = arith.constant 0 : index
      %c0_21 = arith.constant 0 : index
      %24 = vector.load %arg7[%c0_20, %c0_21] : memref<128x512xf32, #tpu.memory_space<vmem>>, vector<128x512xf32>
      tpu.vector_store %arg7[%c0_20, %c0_21], %23 {strides = array<i32>} : memref<128x512xf32, #tpu.memory_space<vmem>>, vector<128x512xf32>,
    } else {
    }
    return
  }
  func.func @transform_0(%arg0: i32, %arg1: i32) -> (i32, i32) {
    %c0_i32 = arith.constant 0 : i32
    %c0_i32_0 = arith.constant 0 : i32
    return %arg0, %c0_i32 : i32, i32
  }
  func.func @transform_1(%arg0: i32, %arg1: i32) -> (i32, i32) {
    %c0_i32 = arith.constant 0 : i32
    %c0_i32_0 = arith.constant 0 : i32
    return %c0_i32, %arg1 : i32, i32
  }
  func.func @transform_2(%arg0: i32, %arg1: i32) -> (i32, i32) {
    %c0_i32 = arith.constant 0 : i32
    %c0_i32_0 = arith.constant 0 : i32
    return %c0_i32, %arg1 : i32, i32
  }
  func.func @transform_3(%arg0: i32, %arg1: i32) -> (i32, i32) {
    %c0_i32 = arith.constant 0 : i32
    %c0_i32_0 = arith.constant 0 : i32
    return %arg1, %c0_i32 : i32, i32
  }
  func.func @transform_4(%arg0: i32, %arg1: i32) -> (i32, i32) {
    %c0_i32 = arith.constant 0 : i32
    %c0_i32_0 = arith.constant 0 : i32
    %c0_i32_1 = arith.constant 0 : i32
    return %c0_i32, %c0_i32_0 : i32, i32
  }
  func.func @transform_5(%arg0: i32, %arg1: i32) -> (i32, i32) {
    %c0_i32 = arith.constant 0 : i32
    %c0_i32_0 = arith.constant 0 : i32
    return %arg0, %c0_i32 : i32, i32
  }
}

</mosaic_0001>

<bundles_post_ra>
// kernel: tpu_custom_call.1
= control target key start
LH: loop header
LB: loop body
LE: loop exit
PB: predicated region body
PF: predicated region fallthrough
CT: control target
= control target key end

     0   :  { %10 = vsyncpa [#allocation3], 0  ;;  %s15508_s0 = inlined_call_operand.hbm [shape: bf16[128,512], index: 0, kind: input, shape index: {}]   ;;  %s15509_s1 = inlined_call_operand.hbm [shape: bf16[512,2048], index: 1, kind: input, shape index: {}]   ;;  %s15510_s2 = inlined_call_operand.hbm [shape: f32[1,2048], index: 2, kind: input, shape index: {}]   ;;  %s15511_s3 = inlined_call_operand.hbm [shape: bf16[2048,512], index: 3, kind: input, shape index: {}]   ;;  %s15512_s4 = inlined_call_operand.hbm [shape: f32[1,512], index: 4, kind: input, shape index: {}]   ;;  %s15513_s5 = inlined_call_operand.hbm [shape: f32[128,512], index: 5, kind: output, shape index: {}]  }
   0x1   :  { %11 = vsyncpa [#allocation6], 0 }
   0x2   :  { %12 = vsyncpa [#allocation9], 0 }
   0x3   :  { %13 = vsyncpa [#allocation4], 0  ;;  %s14084_s18 = smov [#allocation5]   ;;  %s13944_s22 = scalar_lea.hbm %s15509_s1, 65536 }
   0x4   :  { %s31_s19 = sshll.u32 %s14084_s18, 4  ;;  %p13945_p0 = scmp.ne.s32.totalorder %s15509_s1, %s13944_s22  ;;  %s32_s19 = int_to_ptr.vmem [resolvable:$true] %s31_s19 }
   0x5   :  { %p13948_p1 = scmp.lt.u32.totalorder %s13944_s22, %s15509_s1 }
   0x7   :  { %p13950_p2 = pnand %p13948_p1, %p13945_p0 }
   0x9   :  { %13953 = shalt.err (!%p13950_p2)
}
   0xa   :  { %s13954_s27 = scalar_lea.vmem %s32_s19, 65536  ;;  %p13959_p4 = scmp.lt.s32.totalorder %s32_s19, %s32_s19 }
   0xb   :  { %p13955_p3 = scmp.ne.s32.totalorder %s32_s19, %s13954_s27  ;;  %p13960_p5 = scmp.lt.s32.totalorder %s13954_s27, %s13954_s27 }
   0xd   :  { %p13961_p6 = por %p13960_p5, %p13959_p4 }
   0xf   :  { %p13962_p7 = pnand %p13961_p6, %p13955_p3 }
  0x11   :  { %13965 = shalt.err (!%p13962_p7)
}
  0x12   :  { %s14085_s28 = smov 1024   ;;  %s14086_s29 = smov 64  }
  0x13   :  { %37 = dma.hbm_to_vmem [thread:$0]  %s15509_s1, 65536, %s32_s19, [#allocation6], %s14085_s28, %s14085_s28, %s14086_s29  }
  0x14   :  { %s14087_s7 = smov [#allocation8]   ;;  %s14088_s9 = smov [#allocation2]  }
  0x15   :  { %s53_s8 = sshll.u32 %s14087_s7, 4  ;;  %s19_s10 = sshll.u32 %s14088_s9, 4  ;;  %s54_s8 = int_to_ptr.vmem [resolvable:$true] %s53_s8  ;;  %s20_s10 = int_to_ptr.vmem [resolvable:$true] %s19_s10 }
  0x16   :  { %s13966_s13 = scalar_lea.hbm %s15511_s3, 65536 }
  0x17   :  { %p13967_p8 = scmp.ne.s32.totalorder %s15511_s3, %s13966_s13  ;;  %p13970_p9 = scmp.lt.u32.totalorder %s13966_s13, %s15511_s3 }
  0x19   :  { %p13972_p10 = pnand %p13970_p9, %p13967_p8 }
  0x1b   :  { %13975 = shalt.err (!%p13972_p10)
}
  0x1c   :  { %s13976_s1 = scalar_lea.vmem %s54_s8, 65536  ;;  %p13981_p12 = scmp.lt.s32.totalorder %s54_s8, %s54_s8 }
  0x1d   :  { %p13977_p11 = scmp.ne.s32.totalorder %s54_s8, %s13976_s1  ;;  %p13982_p13 = scmp.lt.s32.totalorder %s13976_s1, %s13976_s1 }
  0x1f   :  { %p13983_p0 = por %p13982_p13, %p13981_p12 }
  0x21   :  { %p13984_p1 = pnand %p13983_p0, %p13977_p11 }
  0x23   :  { %13987 = shalt.err (!%p13984_p1)
}
  0x24   :  { %s14089_s18 = smov 256   ;;  %s14090_s19 = smov 16  }
  0x25   :  { %59 = dma.hbm_to_vmem [thread:$0]  %s15511_s3, 65536, %s54_s8, [#allocation9], %s14089_s18, %s14089_s18, %s14090_s19  }
  0x26   :  { %s13988_s24 = scalar_lea.hbm %s15508_s0, 4096 }
  0x27   :  { %p13989_p2 = scmp.ne.s32.totalorder %s15508_s0, %s13988_s24  ;;  %p13992_p3 = scmp.lt.u32.totalorder %s13988_s24, %s15508_s0 }
  0x29   :  { %p13994_p4 = pnand %p13992_p3, %p13989_p2 }
  0x2b   :  { %13997 = shalt.err (!%p13994_p4)
}
  0x2c   :  { %s13998_s29 = scalar_lea.vmem %s20_s10, 4096  ;;  %p14003_p6 = scmp.lt.s32.totalorder %s20_s10, %s20_s10 }
  0x2d   :  { %p13999_p5 = scmp.ne.s32.totalorder %s20_s10, %s13998_s29  ;;  %p14004_p7 = scmp.lt.s32.totalorder %s13998_s29, %s13998_s29 }
  0x2f   :  { %p14005_p8 = por %p14004_p7, %p14003_p6 }
  0x31   :  { %p14006_p9 = pnand %p14005_p8, %p13999_p5 }
  0x33   :  { %14009 = shalt.err (!%p14006_p9)
}
  0x34   :  { %25 = dma.hbm_to_vmem [thread:$0]  %s15508_s0, 4096, %s20_s10, [#allocation3], %s14089_s18, %s14089_s18, %s14090_s19  }
  0x35   :  { %s14091_s6 = smov [#allocation7]   ;;  %s14092_s8 = smov [#allocation10]  }
  0x36   :  { %s44_s7 = sshll.u32 %s14091_s6, 4  ;;  %s66_s9 = sshll.u32 %s14092_s8, 4  ;;  %s45_s7 = int_to_ptr.vmem [resolvable:$true] %s44_s7  ;;  %s67_s9 = int_to_ptr.vmem [resolvable:$true] %s66_s9 }
  0x37   :  { %s14010_s13 = scalar_lea.hbm %s15510_s2, 256 }
  0x38   :  { %p14011_p10 = scmp.ne.s32.totalorder %s15510_s2, %s14010_s13  ;;  %p14014_p11 = scmp.lt.u32.totalorder %s14010_s13, %s15510_s2 }
  0x3a   :  { %p14016_p12 = pnand %p14014_p11, %p14011_p10 }
  0x3c   :  { %14019 = shalt.err (!%p14016_p12)
}
  0x3d   :  { %s14020_s0 = scalar_lea.vmem %s45_s7, 256  ;;  %p14025_p0 = scmp.lt.s32.totalorder %s45_s7, %s45_s7 }
  0x3e   :  { %p14021_p13 = scmp.ne.s32.totalorder %s45_s7, %s14020_s0  ;;  %p14026_p1 = scmp.lt.s32.totalorder %s14020_s0, %s14020_s0 }
  0x40   :  { %p14027_p2 = por %p14026_p1, %p14025_p0 }
  0x42   :  { %p14028_p3 = pnand %p14027_p2, %p14021_p13 }
  0x44   :  { %14031 = shalt.err (!%p14028_p3)
}
  0x45   :  { %47 = dma.hbm_to_vmem [thread:$0]  %s15510_s2, 256, %s45_s7, [#allocation6]  }
  0x46   :  { %s14032_s20 = scalar_lea.hbm %s15512_s4, 64 }
  0x47   :  { %p14033_p4 = scmp.ne.s32.totalorder %s15512_s4, %s14032_s20  ;;  %p14036_p5 = scmp.lt.u32.totalorder %s14032_s20, %s15512_s4 }
  0x49   :  { %p14038_p6 = pnand %p14036_p5, %p14033_p4 }
  0x4b   :  { %14041 = shalt.err (!%p14038_p6)
}
  0x4c   :  { %s14042_s25 = scalar_lea.vmem %s67_s9, 64  ;;  %p14047_p8 = scmp.lt.s32.totalorder %s67_s9, %s67_s9 }
  0x4d   :  { %p14043_p7 = scmp.ne.s32.totalorder %s67_s9, %s14042_s25  ;;  %p14048_p9 = scmp.lt.s32.totalorder %s14042_s25, %s14042_s25 }
  0x4f   :  { %p14049_p10 = por %p14048_p9, %p14047_p8 }
  0x51   :  { %p14050_p11 = pnand %p14049_p10, %p14043_p7 }
  0x53   :  { %14053 = shalt.err (!%p14050_p11)
}
  0x54   :  { %69 = dma.hbm_to_vmem [thread:$0]  %s15512_s4, 64, %s67_s9, [#allocation9]  }
  0x55   :  { %14076 = dma.done.wait [#allocation3], 4096  }
  0x56   :  { %14077 = vsyncadd [#allocation3], 4294963200 }
  0x57   :  { %14078 = dma.done.wait [#allocation6], 65792  }
  0x58   :  { %14079 = vsyncadd [#allocation6], 4294901504 }
  0x59   :  { %14080 = dma.done.wait [#allocation9], 65600  }
  0x5a   :  { %14081 = vsyncadd [#allocation9], 4294901696  ;;  %v185_v0 = vld [vmem:[#allocation5] sm:$0xff]  ;;  %v186_v2 = vld [vmem:[#allocation5 + $0x8] sm:$0xff]  ;;  %s14093_s4 = smov [#allocation11]  }
  0x5b   :  { %v193_v1 = vld [vmem:[#allocation5 + $0x40] sm:$0xff]  ;;  %v194_v4 = vld [vmem:[#allocation5 + $0x48] sm:$0xff]  ;;  %s10987_s27 = sshll.u32 %s14093_s4, 4  ;;  %s10988_s27 = int_to_ptr.vmem [resolvable:$true] %s10987_s27 }
  0x5c   :  { %v11034_v3 = vcombine.high %v185_v0, %v193_v1  ;;  %v11033_v5 = vcombine.low %v185_v0, %v193_v1  ;;  %v201_v6 = vld [vmem:[#allocation5 + $0x80] sm:$0xff]  ;;  %v11036_v8 = vcombine.high %v186_v2, %v194_v4  ;;  %v11035_v9 = vcombine.low %v186_v2, %v194_v4  ;;  %v202_v11 = vld [vmem:[#allocation5 + $0x88] sm:$0xff]  ;;  %s14054_s28 = scalar_lea.vmem %s10988_s27, 8192  ;;  %p14059_p13 = scmp.lt.s32.totalorder %s10988_s27, %s10988_s27 }
  0x5d   :  { %v209_v7 = vld [vmem:[#allocation5 + $0xc0] sm:$0xff]  ;;  %v210_v12 = vld [vmem:[#allocation5 + $0xc8] sm:$0xff]  ;;  %p14055_p12 = scmp.ne.s32.totalorder %s10988_s27, %s14054_s28  ;;  %p14060_p0 = scmp.lt.s32.totalorder %s14054_s28, %s14054_s28 }
  0x5e   :  { %v11050_v10 = vcombine.high %v201_v6, %v209_v7  ;;  %v217_v13 = vld [vmem:[#allocation5 + $0x100] sm:$0xff]  ;;  %3501 = vmatprep.subr.bf16.mxu0 %v11034_v3  ;;  %v11052_v14 = vcombine.high %v202_v11, %v210_v12  ;;  %v218_v16 = vld [vmem:[#allocation5 + $0x108] sm:$0xff]  ;;  %3727 = vmatprep.subr.bf16.mxu1 %v11036_v8  ;;  %v11049_v18 = vcombine.low %v201_v6, %v209_v7 }
  0x5f   :  { %v225_v15 = vld [vmem:[#allocation5 + $0x140] sm:$0xff]  ;;  %v226_v17 = vld [vmem:[#allocation5 + $0x148] sm:$0xff]  ;;  %3502 = vmatpush1.bf16.msra.mxu0 %v11033_v5  ;;  %3728 = vmatpush1.bf16.msra.mxu1 %v11035_v9  ;;  %v11051_v19 = vcombine.low %v202_v11, %v210_v12  ;;  %p14061_p1 = por %p14060_p0, %p14059_p13 }
  0x60   :  { %3503 = vmatprep.subr.bf16.mxu0 %v11050_v10  ;;  %v11066_v20 = vcombine.high %v217_v13, %v225_v15  ;;  %3729 = vmatprep.subr.bf16.mxu1 %v11052_v14  ;;  %v11068_v21 = vcombine.high %v218_v16, %v226_v17  ;;  %v233_v22 = vld [vmem:[#allocation5 + $0x180] sm:$0xff]  ;;  %v234_v24 = vld [vmem:[#allocation5 + $0x188] sm:$0xff]  ;;  %v11065_v26 = vcombine.low %v217_v13, %v225_v15 }
  0x61   :  { %v241_v23 = vld [vmem:[#allocation5 + $0x1c0] sm:$0xff]  ;;  %v242_v25 = vld [vmem:[#allocation5 + $0x1c8] sm:$0xff]  ;;  %v11067_v27 = vcombine.low %v218_v16, %v226_v17  ;;  %p14062_p2 = pnand %p14061_p1, %p14055_p12 }
  0x62   :  { %v11082_v28 = vcombine.high %v233_v22, %v241_v23  ;;  %v11084_v29 = vcombine.high %v234_v24, %v242_v25  ;;  %v249_v30 = vld [vmem:[#allocation5 + $0x200] sm:$0xff]  ;;  %v250_v32 = vld [vmem:[#allocation5 + $0x208] sm:$0xff]  ;;  %v11081_v34 = vcombine.low %v233_v22, %v241_v23  ;;  %v11083_v35 = vcombine.low %v234_v24, %v242_v25 }
  0x63   :  { %3504 = vmatpush1.bf16.msra.mxu0 %v11049_v18  ;;  %3730 = vmatpush1.bf16.msra.mxu1 %v11051_v19  ;;  %v257_v31 = vld [vmem:[#allocation5 + $0x240] sm:$0xff]  ;;  %v258_v33 = vld [vmem:[#allocation5 + $0x248] sm:$0xff] }
  0x64   :  { %3505 = vmatprep.subr.bf16.mxu0 %v11066_v20  ;;  %3731 = vmatprep.subr.bf16.mxu1 %v11068_v21  ;;  %v11098_v36 = vcombine.high %v249_v30, %v257_v31  ;;  %v11100_v37 = vcombine.high %v250_v32, %v258_v33  ;;  %v265_v38 = vld [vmem:[#allocation5 + $0x280] sm:$0xff]  ;;  %v266_v40 = vld [vmem:[#allocation5 + $0x288] sm:$0xff]  ;;  %v11097_v42 = vcombine.low %v249_v30, %v257_v31 }
  0x65   :  { %v273_v39 = vld [vmem:[#allocation5 + $0x2c0] sm:$0xff]  ;;  %v274_v41 = vld [vmem:[#allocation5 + $0x2c8] sm:$0xff]  ;;  %v11099_v43 = vcombine.low %v250_v32, %v258_v33 }
  0x66   :  { %v11114_v44 = vcombine.high %v265_v38, %v273_v39  ;;  %v11116_v45 = vcombine.high %v266_v40, %v274_v41  ;;  %v281_v46 = vld [vmem:[#allocation5 + $0x300] sm:$0xff]  ;;  %v282_v48 = vld [vmem:[#allocation5 + $0x308] sm:$0xff]  ;;  %v11113_v50 = vcombine.low %v265_v38, %v273_v39  ;;  %v11115_v51 = vcombine.low %v266_v40, %v274_v41 }
  0x67   :  { %3506 = vmatpush1.bf16.msra.mxu0 %v11065_v26  ;;  %3732 = vmatpush1.bf16.msra.mxu1 %v11067_v27  ;;  %v289_v47 = vld [vmem:[#allocation5 + $0x340] sm:$0xff]  ;;  %v290_v49 = vld [vmem:[#allocation5 + $0x348] sm:$0xff] }
  0x68   :  { %3507 = vmatprep.subr.bf16.mxu0 %v11082_v28  ;;  %3733 = vmatprep.subr.bf16.mxu1 %v11084_v29  ;;  %v11130_v52 = vcombine.high %v281_v46, %v289_v47  ;;  %v11132_v53 = vcombine.high %v282_v48, %v290_v49  ;;  %v297_v54 = vld [vmem:[#allocation5 + $0x380] sm:$0xff]  ;;  %v298_v57 = vld [vmem:[#allocation5 + $0x388] sm:$0xff]  ;;  %v11129_v59 = vcombine.low %v281_v46, %v289_v47 }
  0x69   :  { %v305_v55 = vld [vmem:[#allocation5 + $0x3c0] sm:$0xff]  ;;  %v306_v58 = vld [vmem:[#allocation5 + $0x3c8] sm:$0xff]  ;;  %v11131_v60 = vcombine.low %v282_v48, %v290_v49 }
  0x6a   :  { %v13030_v56 = vld [vmem:[#allocation2 + $0x4] ss:$16 sps:$4 sm:$0xff]   ;;  %v11146_v61 = vcombine.high %v297_v54, %v305_v55  ;;  %v11148_v62 = vcombine.high %v298_v57, %v306_v58  ;;  %v314_v1 = vld [vmem:[#allocation5 + $0x408] sm:$0xff]  ;;  %v11145_v3 = vcombine.low %v297_v54, %v305_v55  ;;  %v11147_v4 = vcombine.low %v298_v57, %v306_v58 }
  0x6b   :  { %3508 = vmatpush1.bf16.msra.mxu0 %v11081_v34  ;;  %3734 = vmatpush1.bf16.msra.mxu1 %v11083_v35  ;;  %v313_v63 = vld [vmem:[#allocation5 + $0x400] sm:$0xff]  ;;  %v322_v2 = vld [vmem:[#allocation5 + $0x448] sm:$0xff] }
  0x6c   :  { %3509 = vmatprep.subr.bf16.mxu0 %v11098_v36  ;;  %3735 = vmatprep.subr.bf16.mxu1 %v11100_v37  ;;  %v321_v0 = vld [vmem:[#allocation5 + $0x440] sm:$0xff]  ;;  %v11164_v6 = vcombine.high %v314_v1, %v322_v2  ;;  %v330_v9 = vld [vmem:[#allocation5 + $0x488] sm:$0xff]  ;;  %v11163_v12 = vcombine.low %v314_v1, %v322_v2 }
  0x6d   :  { %3533 = vmatprep.mubr.bf16.mxu0 %v13030_v56  ;;  %3759 = vmatprep.mubr.bf16.mxu1 %v13030_v56  ;;  %v11162_v5 = vcombine.high %v313_v63, %v321_v0  ;;  %v329_v7 = vld [vmem:[#allocation5 + $0x480] sm:$0xff]  ;;  %v338_v10 = vld [vmem:[#allocation5 + $0x4c8] sm:$0xff]  ;;  %v11161_v11 = vcombine.low %v313_v63, %v321_v0 }
  0x6e   :  { %v337_v8 = vld [vmem:[#allocation5 + $0x4c0] sm:$0xff]  ;;  %v11180_v14 = vcombine.high %v330_v9, %v338_v10  ;;  %v346_v17 = vld [vmem:[#allocation5 + $0x508] sm:$0xff]  ;;  %v11179_v20 = vcombine.low %v330_v9, %v338_v10 }
  0x6f   :  { %3510 = vmatpush1.bf16.msra.mxu0 %v11097_v42  ;;  %3736 = vmatpush1.bf16.msra.mxu1 %v11099_v43  ;;  %v11178_v13 = vcombine.high %v329_v7, %v337_v8  ;;  %v345_v15 = vld [vmem:[#allocation5 + $0x500] sm:$0xff]  ;;  %v354_v18 = vld [vmem:[#allocation5 + $0x548] sm:$0xff]  ;;  %v11177_v19 = vcombine.low %v329_v7, %v337_v8 }
  0x70   :  { %3511 = vmatprep.subr.bf16.mxu0 %v11114_v44  ;;  %3737 = vmatprep.subr.bf16.mxu1 %v11116_v45  ;;  %v353_v16 = vld [vmem:[#allocation5 + $0x540] sm:$0xff]  ;;  %v11196_v22 = vcombine.high %v346_v17, %v354_v18  ;;  %v362_v25 = vld [vmem:[#allocation5 + $0x588] sm:$0xff]  ;;  %v11195_v28 = vcombine.low %v346_v17, %v354_v18 }
  0x71   :  { %v11194_v21 = vcombine.high %v345_v15, %v353_v16  ;;  %v361_v23 = vld [vmem:[#allocation5 + $0x580] sm:$0xff]  ;;  %v370_v26 = vld [vmem:[#allocation5 + $0x5c8] sm:$0xff]  ;;  %v11193_v27 = vcombine.low %v345_v15, %v353_v16 }
  0x72   :  { %v369_v24 = vld [vmem:[#allocation5 + $0x5c0] sm:$0xff]  ;;  %v11212_v30 = vcombine.high %v362_v25, %v370_v26  ;;  %v378_v33 = vld [vmem:[#allocation5 + $0x608] sm:$0xff]  ;;  %v11211_v36 = vcombine.low %v362_v25, %v370_v26 }
  0x73   :  { %3512 = vmatpush1.bf16.msra.mxu0 %v11113_v50  ;;  %3738 = vmatpush1.bf16.msra.mxu1 %v11115_v51  ;;  %v11210_v29 = vcombine.high %v361_v23, %v369_v24  ;;  %v377_v31 = vld [vmem:[#allocation5 + $0x600] sm:$0xff]  ;;  %v386_v34 = vld [vmem:[#allocation5 + $0x648] sm:$0xff]  ;;  %v11209_v35 = vcombine.low %v361_v23, %v369_v24 }
  0x74   :  { %3513 = vmatprep.subr.bf16.mxu0 %v11130_v52  ;;  %3739 = vmatprep.subr.bf16.mxu1 %v11132_v53  ;;  %v385_v32 = vld [vmem:[#allocation5 + $0x640] sm:$0xff]  ;;  %v11228_v38 = vcombine.high %v378_v33, %v386_v34  ;;  %v394_v41 = vld [vmem:[#allocation5 + $0x688] sm:$0xff]  ;;  %v11227_v44 = vcombine.low %v378_v33, %v386_v34 }
  0x75   :  { %v11226_v37 = vcombine.high %v377_v31, %v385_v32  ;;  %v393_v39 = vld [vmem:[#allocation5 + $0x680] sm:$0xff]  ;;  %v402_v42 = vld [vmem:[#allocation5 + $0x6c8] sm:$0xff]  ;;  %v11225_v43 = vcombine.low %v377_v31, %v385_v32 }
  0x76   :  { %v401_v40 = vld [vmem:[#allocation5 + $0x6c0] sm:$0xff]  ;;  %v11244_v46 = vcombine.high %v394_v41, %v402_v42  ;;  %v410_v49 = vld [vmem:[#allocation5 + $0x708] sm:$0xff]  ;;  %v11243_v52 = vcombine.low %v394_v41, %v402_v42 }
  0x77   :  { %3514 = vmatpush1.bf16.msra.mxu0 %v11129_v59  ;;  %3740 = vmatpush1.bf16.msra.mxu1 %v11131_v60  ;;  %v11242_v45 = vcombine.high %v393_v39, %v401_v40  ;;  %v409_v47 = vld [vmem:[#allocation5 + $0x700] sm:$0xff]  ;;  %v418_v50 = vld [vmem:[#allocation5 + $0x748] sm:$0xff]  ;;  %v11241_v51 = vcombine.low %v393_v39, %v401_v40 }
  0x78   :  { %3515 = vmatprep.subr.bf16.mxu0 %v11146_v61  ;;  %3741 = vmatprep.subr.bf16.mxu1 %v11148_v62  ;;  %v417_v48 = vld [vmem:[#allocation5 + $0x740] sm:$0xff]  ;;  %v11260_v54 = vcombine.high %v410_v49, %v418_v50  ;;  %v426_v57 = vld [vmem:[#allocation5 + $0x788] sm:$0xff]  ;;  %v11259_v60 = vcombine.low %v410_v49, %v418_v50 }
  0x79   :  { %v11258_v53 = vcombine.high %v409_v47, %v417_v48  ;;  %v425_v55 = vld [vmem:[#allocation5 + $0x780] sm:$0xff]  ;;  %v434_v58 = vld [vmem:[#allocation5 + $0x7c8] sm:$0xff]  ;;  %v11257_v59 = vcombine.low %v409_v47, %v417_v48 }
  0x7a   :  { %v433_v56 = vld [vmem:[#allocation5 + $0x7c0] sm:$0xff]  ;;  %v11276_v62 = vcombine.high %v426_v57, %v434_v58  ;;  %v442_v1 = vld [vmem:[#allocation5 + $0x808] sm:$0xff] }
  0x7b   :  { %3516 = vmatpush1.bf16.msra.mxu0 %v11145_v3  ;;  %3742 = vmatpush1.bf16.msra.mxu1 %v11147_v4  ;;  %v11274_v61 = vcombine.high %v425_v55, %v433_v56  ;;  %v441_v63 = vld [vmem:[#allocation5 + $0x800] sm:$0xff]  ;;  %v450_v2 = vld [vmem:[#allocation5 + $0x848] sm:$0xff]  ;;  %v11273_v3 = vcombine.low %v425_v55, %v433_v56  ;;  %v11275_v4 = vcombine.low %v426_v57, %v434_v58 }
  0x7c   :  { %3517 = vmatprep.subr.bf16.mxu0 %v11162_v5  ;;  %3743 = vmatprep.subr.bf16.mxu1 %v11164_v6  ;;  %v449_v0 = vld [vmem:[#allocation5 + $0x840] sm:$0xff]  ;;  %v11292_v6 = vcombine.high %v442_v1, %v450_v2  ;;  %v458_v10 = vld [vmem:[#allocation5 + $0x888] sm:$0xff] }
  0x7d   :  { %v11290_v5 = vcombine.high %v441_v63, %v449_v0  ;;  %v457_v7 = vld [vmem:[#allocation5 + $0x880] sm:$0xff]  ;;  %v530_v47 = vld [vmem:[#allocation5 + $0xac8] sm:$0xff] }
  0x7e   :  { %v465_v8 = vld [vmem:[#allocation5 + $0x8c0] sm:$0xff]  ;;  %v538_v55 = vld [vmem:[#allocation5 + $0xb08] sm:$0xff] }
  0x7f   :  { %3518 = vmatpush1.bf16.msra.mxu0 %v11161_v11  ;;  %3744 = vmatpush1.bf16.msra.mxu1 %v11163_v12  ;;  %v13032_v9 = vld [vmem:[#allocation2] ss:$16 sps:$4 sm:$0xff]   ;;  %v466_v11 = vld [vmem:[#allocation5 + $0x8c8] sm:$0xff]  ;;  %v11289_v12 = vcombine.low %v441_v63, %v449_v0  ;;  %v13033_v16 = vld [vmem:[#allocation2 + $0x24] ss:$16 sps:$4 sm:$0xff]  }
  0x80   :  { %3519 = vmatprep.subr.bf16.mxu0 %v11178_v13  ;;  %3745 = vmatprep.subr.bf16.mxu1 %v11180_v14  ;;  %v11291_v13 = vcombine.low %v442_v1, %v450_v2  ;;  %v11306_v14 = vcombine.high %v457_v7, %v465_v8  ;;  %v11308_v15 = vcombine.high %v458_v10, %v466_v11  ;;  %v473_v17 = vld [vmem:[#allocation5 + $0x900] sm:$0xff]  ;;  %v546_v56 = vld [vmem:[#allocation5 + $0xb48] sm:$0xff] }
  0x81   :  { %v481_v18 = vld [vmem:[#allocation5 + $0x940] sm:$0xff]  ;;  %v554_v0 = vld [vmem:[#allocation5 + $0xb88] sm:$0xff] }
  0x82   :  { %v11322_v23 = vcombine.high %v473_v17, %v481_v18  ;;  %v489_v25 = vld [vmem:[#allocation5 + $0x980] sm:$0xff]  ;;  %v562_v1 = vld [vmem:[#allocation5 + $0xbc8] sm:$0xff] }
  0x83   :  { %3520 = vmatpush1.bf16.msra.mxu0 %v11177_v19  ;;  %3746 = vmatpush1.bf16.msra.mxu1 %v11179_v20  ;;  %v474_v19 = vld [vmem:[#allocation5 + $0x908] sm:$0xff]  ;;  %v497_v26 = vld [vmem:[#allocation5 + $0x9c0] sm:$0xff] }
  0x84   :  { %3521 = vmatprep.subr.bf16.mxu0 %v11194_v21  ;;  %3747 = vmatprep.subr.bf16.mxu1 %v11196_v22  ;;  %v482_v20 = vld [vmem:[#allocation5 + $0x948] sm:$0xff]  ;;  %v11305_v21 = vcombine.low %v457_v7, %v465_v8  ;;  %v11307_v22 = vcombine.low %v458_v10, %v466_v11  ;;  %v11338_v32 = vcombine.high %v489_v25, %v497_v26  ;;  %v13036_v34 = vld [vmem:[#allocation2 + $0x44] ss:$16 sps:$4 sm:$0xff]   ;;  %v13041_v63 = vld [vmem:[#allocation2 + $0x60] ss:$16 sps:$4 sm:$0xff]  }
  0x85   :  { %v11324_v24 = vcombine.high %v474_v19, %v482_v20  ;;  %v11323_v31 = vcombine.low %v474_v19, %v482_v20  ;;  %v11337_v39 = vcombine.low %v489_v25, %v497_v26  ;;  %v569_v7 = vld [vmem:[#allocation5 + $0xc00] sm:$0xff]  ;;  %v578_v10 = vld [vmem:[#allocation5 + $0xc48] sm:$0xff] }
  0x86   :  { %v577_v8 = vld [vmem:[#allocation5 + $0xc40] sm:$0xff]  ;;  %v594_v19 = vld [vmem:[#allocation5 + $0xcc8] sm:$0xff] }
  0x87   :  { %3522 = vmatpush1.bf16.msra.mxu0 %v11193_v27  ;;  %3748 = vmatpush1.bf16.msra.mxu1 %v11195_v28  ;;  %v13035_v27 = vld [vmem:[#allocation2 + $0x20] ss:$16 sps:$4 sm:$0xff]   ;;  %v490_v28 = vld [vmem:[#allocation5 + $0x988] sm:$0xff]  ;;  %v11417_v20 = vcombine.low %v569_v7, %v577_v8 }
  0x88   :  { %3523 = vmatprep.subr.bf16.mxu0 %v11210_v29  ;;  %3749 = vmatprep.subr.bf16.mxu1 %v11212_v30  ;;  %v498_v29 = vld [vmem:[#allocation5 + $0x9c8] sm:$0xff]  ;;  %v11321_v30 = vcombine.low %v473_v17, %v481_v18  ;;  %v13044_v17 = vld [vmem:[#allocation2 + $0x80] ss:$16 sps:$4 sm:$0xff]  }
  0x89   :  { %v11340_v33 = vcombine.high %v490_v28, %v498_v29  ;;  %v11339_v40 = vcombine.low %v490_v28, %v498_v29  ;;  %v586_v18 = vld [vmem:[#allocation5 + $0xc88] sm:$0xff]  ;;  %v609_v25 = vld [vmem:[#allocation5 + $0xd40] sm:$0xff] }
  0x8a   :  { %v602_v26 = vld [vmem:[#allocation5 + $0xd08] sm:$0xff] }
  0x8b   :  { %3524 = vmatpush1.bf16.msra.mxu0 %v11209_v35  ;;  %3750 = vmatpush1.bf16.msra.mxu1 %v11211_v36  ;;  %v505_v35 = vld [vmem:[#allocation5 + $0xa00] sm:$0xff]  ;;  %v610_v28 = vld [vmem:[#allocation5 + $0xd48] sm:$0xff] }
  0x8c   :  { %3525 = vmatprep.subr.bf16.mxu0 %v11226_v37  ;;  %3751 = vmatprep.subr.bf16.mxu1 %v11228_v38  ;;  %v513_v36 = vld [vmem:[#allocation5 + $0xa40] sm:$0xff]  ;;  %v506_v37 = vld [vmem:[#allocation5 + $0xa08] sm:$0xff] }
  0x8d   :  { %v514_v38 = vld [vmem:[#allocation5 + $0xa48] sm:$0xff]  ;;  %v11354_v41 = vcombine.high %v505_v35, %v513_v36  ;;  %v11353_v48 = vcombine.low %v505_v35, %v513_v36  ;;  %v11452_v36 = vcombine.high %v602_v26, %v610_v28 }
  0x8e   :  { %v11356_v42 = vcombine.high %v506_v37, %v514_v38  ;;  %v11355_v49 = vcombine.low %v506_v37, %v514_v38  ;;  %v618_v35 = vld [vmem:[#allocation5 + $0xd88] sm:$0xff] }
  0x8f   :  { %3526 = vmatpush1.bf16.msra.mxu0 %v11225_v43  ;;  %3752 = vmatpush1.bf16.msra.mxu1 %v11227_v44  ;;  %v521_v43 = vld [vmem:[#allocation5 + $0xa80] sm:$0xff]  ;;  %v626_v37 = vld [vmem:[#allocation5 + $0xdc8] sm:$0xff] }
  0x90   :  { %3527 = vmatprep.subr.bf16.mxu0 %v11242_v45  ;;  %3753 = vmatprep.subr.bf16.mxu1 %v11244_v46  ;;  %v529_v44 = vld [vmem:[#allocation5 + $0xac0] sm:$0xff]  ;;  %v522_v46 = vld [vmem:[#allocation5 + $0xa88] sm:$0xff] }
  0x91   :  { %v13038_v45 = vld [vmem:[#allocation2 + $0x40] ss:$16 sps:$4 sm:$0xff]   ;;  %v11370_v50 = vcombine.high %v521_v43, %v529_v44  ;;  %v11369_v57 = vcombine.low %v521_v43, %v529_v44  ;;  %v11371_v58 = vcombine.low %v522_v46, %v530_v47  ;;  %v634_v44 = vld [vmem:[#allocation5 + $0xe08] sm:$0xff] }
  0x92   :  { %v641_v43 = vld [vmem:[#allocation5 + $0xe40] sm:$0xff] }
  0x93   :  { %3528 = vmatpush1.bf16.msra.mxu0 %v11241_v51  ;;  %3754 = vmatpush1.bf16.msra.mxu1 %v11243_v52  ;;  %v11372_v51 = vcombine.high %v522_v46, %v530_v47  ;;  %v13039_v52 = vld [vmem:[#allocation2 + $0x64] ss:$16 sps:$4 sm:$0xff]   ;;  %v642_v46 = vld [vmem:[#allocation5 + $0xe48] sm:$0xff] }
  0x94   :  { %3529 = vmatprep.subr.bf16.mxu0 %v11258_v53  ;;  %3755 = vmatprep.subr.bf16.mxu1 %v11260_v54  ;;  %v537_v53 = vld [vmem:[#allocation5 + $0xb00] sm:$0xff] }
  0x95   :  { %v545_v54 = vld [vmem:[#allocation5 + $0xb40] sm:$0xff] }
  0x96   :  { %v11385_v2 = vcombine.low %v537_v53, %v545_v54 }
  0x97   :  { %3530 = vmatpush1.bf16.msra.mxu0 %v11257_v59  ;;  %3756 = vmatpush1.bf16.msra.mxu1 %v11259_v60  ;;  %v11386_v59 = vcombine.high %v537_v53, %v545_v54  ;;  %v11388_v60 = vcombine.high %v538_v55, %v546_v56  ;;  %v650_v53 = vld [vmem:[#allocation5 + $0xe88] sm:$0xff]  ;;  %v11484_v54 = vcombine.high %v634_v44, %v642_v46 }
  0x98   :  { %3531 = vmatprep.subr.bf16.mxu0 %v11274_v61  ;;  %3757 = vmatprep.subr.bf16.mxu1 %v11276_v62  ;;  %v553_v61 = vld [vmem:[#allocation5 + $0xb80] sm:$0xff] }
  0x99   :  { %v561_v62 = vld [vmem:[#allocation5 + $0xbc0] sm:$0xff] }
  0x9a   :  { %v11401_v11 = vcombine.low %v553_v61, %v561_v62 }
  0x9b   :  { %3532 = vmatpush1.bf16.msra.mxu0 %v11273_v3  ;;  %3758 = vmatpush1.bf16.msra.mxu1 %v11275_v4  ;;  %v11387_v3 = vcombine.low %v538_v55, %v546_v56  ;;  %v11402_v4 = vcombine.high %v553_v61, %v561_v62  ;;  %v658_v55 = vld [vmem:[#allocation5 + $0xec8] sm:$0xff]  ;;  %v673_v61 = vld [vmem:[#allocation5 + $0xf40] sm:$0xff] }
  0x9c   :  { %3614 = vmatprep.subr.bf16.mxu0 %v11290_v5  ;;  %3840 = vmatprep.subr.bf16.mxu1 %v11292_v6  ;;  %v11404_v5 = vcombine.high %v554_v0, %v562_v1  ;;  %v13042_v6 = vld [vmem:[#allocation2 + $0x84] ss:$16 sps:$4 sm:$0xff]   ;;  %v666_v62 = vld [vmem:[#allocation5 + $0xf08] sm:$0xff] }
  0x9e   :  { %3534 = vmatmul.mubr.bf16.vlgmr.msra.gmra.mrb[0].mxu0 %v13032_v9  ;;  %3760 = vmatmul.mubr.bf16.vlgmr.msra.gmra.mrb[0].mxu1 %v13032_v9  ;;  %v570_v9 = vld [vmem:[#allocation5 + $0xc08] sm:$0xff] }
  0x9f   :  { %3615 = vmatpush1.bf16.msra.mxu0 %v11289_v12  ;;  %3841 = vmatpush1.bf16.msra.mxu1 %v11291_v13  ;;  %v11403_v12 = vcombine.low %v554_v0, %v562_v1  ;;  %v11418_v13 = vcombine.high %v569_v7, %v577_v8  ;;  %v674_v0 = vld [vmem:[#allocation5 + $0xf48] sm:$0xff] }
  0xa0   :  { %3616 = vmatprep.subr.bf16.mxu0 %v11306_v14  ;;  %3842 = vmatprep.subr.bf16.mxu1 %v11308_v15  ;;  %v11420_v14 = vcombine.high %v570_v9, %v578_v10  ;;  %v585_v15 = vld [vmem:[#allocation5 + $0xc80] sm:$0xff]  ;;  %v682_v7 = vld [vmem:[#allocation5 + $0xf88] sm:$0xff]  ;;  %v11516_v8 = vcombine.high %v666_v62, %v674_v0 }
  0xa1   :  { %3543 = vmatprep.mubr.bf16.mxu0 %v13033_v16  ;;  %3769 = vmatprep.mubr.bf16.mxu1 %v13033_v16  ;;  %v593_v16 = vld [vmem:[#allocation5 + $0xcc0] sm:$0xff] }
  0xa2   :  { %v11433_v29 = vcombine.low %v585_v15, %v593_v16 }
  0xa3   :  { %3617 = vmatpush1.bf16.msra.mxu0 %v11305_v21  ;;  %3843 = vmatpush1.bf16.msra.mxu1 %v11307_v22  ;;  %v13045_v21 = vld [vmem:[#allocation2 + $0xa4] ss:$16 sps:$4 sm:$0xff]   ;;  %v11419_v22 = vcombine.low %v570_v9, %v578_v10  ;;  %v690_v9 = vld [vmem:[#allocation5 + $0xfc8] sm:$0xff] }
  0xa4   :  { %3618 = vmatprep.subr.bf16.mxu0 %v11322_v23  ;;  %3844 = vmatprep.subr.bf16.mxu1 %v11324_v24  ;;  %v11434_v23 = vcombine.high %v585_v15, %v593_v16  ;;  %v601_v24 = vld [vmem:[#allocation5 + $0xd00] sm:$0xff]  ;;  %v195_v15 = vld [vmem:[#allocation5 + $0x50] sm:$0xff]  ;;  %v188_v16 = vld [vmem:[#allocation5 + $0x18] sm:$0xff] }
  0xa5   :  { %v11449_v38 = vcombine.low %v601_v24, %v609_v25 }
  0xa6   :  { %3544 = vmatmul.mubr.bf16.gmra.mrb[4].mxu0 %v13035_v27  ;;  %3770 = vmatmul.mubr.bf16.gmra.mrb[4].mxu1 %v13035_v27  ;;  %v11436_v27 = vcombine.high %v586_v18, %v594_v19 }
  0xa7   :  { %3619 = vmatpush1.bf16.msra.mxu0 %v11321_v30  ;;  %3845 = vmatpush1.bf16.msra.mxu1 %v11323_v31  ;;  %v11435_v30 = vcombine.low %v586_v18, %v594_v19  ;;  %v13047_v31 = vld [vmem:[#allocation2 + $0xa0] ss:$16 sps:$4 sm:$0xff]   ;;  %v196_v18 = vld [vmem:[#allocation5 + $0x58] sm:$0xff] }
  0xa8   :  { %3620 = vmatprep.subr.bf16.mxu0 %v11338_v32  ;;  %3846 = vmatprep.subr.bf16.mxu1 %v11340_v33  ;;  %v11450_v32 = vcombine.high %v601_v24, %v609_v25  ;;  %v617_v33 = vld [vmem:[#allocation5 + $0xd80] sm:$0xff]  ;;  %v211_v24 = vld [vmem:[#allocation5 + $0xd0] sm:$0xff]  ;;  %v204_v25 = vld [vmem:[#allocation5 + $0x98] sm:$0xff] }
  0xa9   :  { %3553 = vmatprep.mubr.bf16.mxu0 %v13036_v34  ;;  %3779 = vmatprep.mubr.bf16.mxu1 %v13036_v34  ;;  %v625_v34 = vld [vmem:[#allocation5 + $0xdc0] sm:$0xff] }
  0xaa   :  { %v11465_v47 = vcombine.low %v617_v33, %v625_v34 }
  0xab   :  { %3621 = vmatpush1.bf16.msra.mxu0 %v11337_v39  ;;  %3847 = vmatpush1.bf16.msra.mxu1 %v11339_v40  ;;  %v13048_v39 = vld [vmem:[#allocation2 + $0xc4] ss:$16 sps:$4 sm:$0xff]   ;;  %v11451_v40 = vcombine.low %v602_v26, %v610_v28  ;;  %v11040_v26 = vcombine.high %v188_v16, %v196_v18 }
  0xac   :  { %3622 = vmatprep.subr.bf16.mxu0 %v11354_v41  ;;  %3848 = vmatprep.subr.bf16.mxu1 %v11356_v42  ;;  %v11466_v41 = vcombine.high %v617_v33, %v625_v34  ;;  %v633_v42 = vld [vmem:[#allocation5 + $0xe00] sm:$0xff]  ;;  %v227_v33 = vld [vmem:[#allocation5 + $0x150] sm:$0xff]  ;;  %v220_v34 = vld [vmem:[#allocation5 + $0x118] sm:$0xff] }
  0xad   :  { %v11481_v56 = vcombine.low %v633_v42, %v641_v43 }
  0xae   :  { %3554 = vmatmul.mubr.bf16.gmra.mrb[8].mxu0 %v13038_v45  ;;  %3780 = vmatmul.mubr.bf16.gmra.mrb[8].mxu1 %v13038_v45  ;;  %v11468_v45 = vcombine.high %v618_v35, %v626_v37 }
  0xaf   :  { %3623 = vmatpush1.bf16.msra.mxu0 %v11353_v48  ;;  %3849 = vmatpush1.bf16.msra.mxu1 %v11355_v49  ;;  %v11467_v48 = vcombine.low %v618_v35, %v626_v37  ;;  %v13050_v49 = vld [vmem:[#allocation2 + $0xc0] ss:$16 sps:$4 sm:$0xff]  }
  0xb0   :  { %3624 = vmatprep.subr.bf16.mxu0 %v11370_v50  ;;  %3850 = vmatprep.subr.bf16.mxu1 %v11372_v51  ;;  %v11482_v50 = vcombine.high %v633_v42, %v641_v43  ;;  %v649_v51 = vld [vmem:[#allocation5 + $0xe80] sm:$0xff]  ;;  %v243_v42 = vld [vmem:[#allocation5 + $0x1d0] sm:$0xff]  ;;  %v236_v43 = vld [vmem:[#allocation5 + $0x198] sm:$0xff] }
  0xb1   :  { %3563 = vmatprep.mubr.bf16.mxu0 %v13039_v52  ;;  %3789 = vmatprep.mubr.bf16.mxu1 %v13039_v52  ;;  %v657_v52 = vld [vmem:[#allocation5 + $0xec0] sm:$0xff] }
  0xb2   :  { %v11497_v1 = vcombine.low %v649_v51, %v657_v52 }
  0xb3   :  { %3625 = vmatpush1.bf16.msra.mxu0 %v11369_v57  ;;  %3851 = vmatpush1.bf16.msra.mxu1 %v11371_v58  ;;  %v13051_v57 = vld [vmem:[#allocation2 + $0xe4] ss:$16 sps:$4 sm:$0xff]   ;;  %v11483_v58 = vcombine.low %v634_v44, %v642_v46 }
  0xb4   :  { %3626 = vmatprep.subr.bf16.mxu0 %v11386_v59  ;;  %3852 = vmatprep.subr.bf16.mxu1 %v11388_v60  ;;  %v11498_v59 = vcombine.high %v649_v51, %v657_v52  ;;  %v665_v60 = vld [vmem:[#allocation5 + $0xf00] sm:$0xff]  ;;  %v259_v51 = vld [vmem:[#allocation5 + $0x250] sm:$0xff]  ;;  %v252_v52 = vld [vmem:[#allocation5 + $0x218] sm:$0xff] }
  0xb5   :  { %v11513_v10 = vcombine.low %v665_v60, %v673_v61 }
  0xb6   :  { %3564 = vmatmul.mubr.bf16.gmra.mrb[12].mxu0 %v13041_v63  ;;  %3790 = vmatmul.mubr.bf16.gmra.mrb[12].mxu1 %v13041_v63  ;;  %v11500_v63 = vcombine.high %v650_v53, %v658_v55 }
  0xb7   :  { %3627 = vmatpush1.bf16.msra.mxu0 %v11385_v2  ;;  %3853 = vmatpush1.bf16.msra.mxu1 %v11387_v3  ;;  %v11499_v2 = vcombine.low %v650_v53, %v658_v55  ;;  %v13053_v3 = vld [vmem:[#allocation2 + $0xe0] ss:$16 sps:$4 sm:$0xff]  }
  0xb8   :  { %3628 = vmatprep.subr.bf16.mxu0 %v11402_v4  ;;  %3854 = vmatprep.subr.bf16.mxu1 %v11404_v5  ;;  %v11514_v4 = vcombine.high %v665_v60, %v673_v61  ;;  %v681_v5 = vld [vmem:[#allocation5 + $0xf80] sm:$0xff]  ;;  %v275_v60 = vld [vmem:[#allocation5 + $0x2d0] sm:$0xff]  ;;  %v268_v61 = vld [vmem:[#allocation5 + $0x298] sm:$0xff] }
  0xb9   :  { %3573 = vmatprep.mubr.bf16.mxu0 %v13042_v6  ;;  %3799 = vmatprep.mubr.bf16.mxu1 %v13042_v6  ;;  %v689_v6 = vld [vmem:[#allocation5 + $0xfc0] sm:$0xff] }
  0xba   :  { %v11529_v19 = vcombine.low %v681_v5, %v689_v6 }
  0xbb   :  { %3629 = vmatpush1.bf16.msra.mxu0 %v11401_v11  ;;  %3855 = vmatpush1.bf16.msra.mxu1 %v11403_v12  ;;  %v13054_v11 = vld [vmem:[#allocation2 + $0xc] ss:$16 sps:$4 sm:$0xff]   ;;  %v11515_v12 = vcombine.low %v666_v62, %v674_v0 }
  0xbc   :  { %3630 = vmatprep.subr.bf16.mxu0 %v11418_v13  ;;  %3856 = vmatprep.subr.bf16.mxu1 %v11420_v14  ;;  %v11530_v13 = vcombine.high %v681_v5, %v689_v6  ;;  %v187_v14 = vld [vmem:[#allocation5 + $0x10] sm:$0xff]  ;;  %v284_v6 = vld [vmem:[#allocation5 + $0x318] sm:$0xff] }
  0xbd   :  { %v11037_v28 = vcombine.low %v187_v14, %v195_v15  ;;  %v291_v5 = vld [vmem:[#allocation5 + $0x350] sm:$0xff] }
  0xbe   :  { %3574 = vmatmul.mubr.bf16.gmra.mrb[16].mxu0 %v13044_v17  ;;  %3800 = vmatmul.mubr.bf16.gmra.mrb[16].mxu1 %v13044_v17  ;;  %v11532_v17 = vcombine.high %v682_v7, %v690_v9 }
  0xbf   :  { %3631 = vmatpush1.bf16.msra.mxu0 %v11417_v20  ;;  %3857 = vmatpush1.bf16.msra.mxu1 %v11419_v22  ;;  %v11531_v20 = vcombine.low %v682_v7, %v690_v9  ;;  %v11038_v22 = vcombine.high %v187_v14, %v195_v15  ;;  %v307_v14 = vld [vmem:[#allocation5 + $0x3d0] sm:$0xff]  ;;  %v300_v15 = vld [vmem:[#allocation5 + $0x398] sm:$0xff] }
  0xc0   :  { %3632 = vmatprep.subr.bf16.mxu0 %v11434_v23  ;;  %3858 = vmatprep.subr.bf16.mxu1 %v11436_v27  ;;  %v203_v23 = vld [vmem:[#allocation5 + $0x90] sm:$0xff]  ;;  %v212_v27 = vld [vmem:[#allocation5 + $0xd8] sm:$0xff] }
  0xc1   :  { %3583 = vmatprep.mubr.bf16.mxu0 %v13045_v21  ;;  %3809 = vmatprep.mubr.bf16.mxu1 %v13045_v21  ;;  %v13056_v21 = vld [vmem:[#allocation2 + $0x8] ss:$16 sps:$4 sm:$0xff]   ;;  %v11056_v35 = vcombine.high %v204_v25, %v212_v27  ;;  %v11053_v37 = vcombine.low %v203_v23, %v211_v24 }
  0xc3   :  { %3633 = vmatpush1.bf16.msra.mxu0 %v11433_v29  ;;  %3859 = vmatpush1.bf16.msra.mxu1 %v11435_v30  ;;  %v13057_v29 = vld [vmem:[#allocation2 + $0x2c] ss:$16 sps:$4 sm:$0xff]   ;;  %v11039_v30 = vcombine.low %v188_v16, %v196_v18 }
  0xc4   :  { %3634 = vmatprep.subr.bf16.mxu0 %v11450_v32  ;;  %3860 = vmatprep.subr.bf16.mxu1 %v11452_v36  ;;  %v219_v32 = vld [vmem:[#allocation5 + $0x110] sm:$0xff]  ;;  %v228_v36 = vld [vmem:[#allocation5 + $0x158] sm:$0xff] }
  0xc5   :  { %v11072_v44 = vcombine.high %v220_v34, %v228_v36  ;;  %v11069_v46 = vcombine.low %v219_v32, %v227_v33 }
  0xc6   :  { %3584 = vmatmul.mubr.bf16.gmra.mrb[20].mxu0 %v13047_v31  ;;  %3810 = vmatmul.mubr.bf16.gmra.mrb[20].mxu1 %v13047_v31  ;;  %v11054_v31 = vcombine.high %v203_v23, %v211_v24  ;;  %v323_v23 = vld [vmem:[#allocation5 + $0x450] sm:$0xff]  ;;  %v316_v24 = vld [vmem:[#allocation5 + $0x418] sm:$0xff] }
  0xc7   :  { %3635 = vmatpush1.bf16.msra.mxu0 %v11449_v38  ;;  %3861 = vmatpush1.bf16.msra.mxu1 %v11451_v40  ;;  %v11055_v38 = vcombine.low %v204_v25, %v212_v27  ;;  %v11070_v40 = vcombine.high %v219_v32, %v227_v33  ;;  %v339_v32 = vld [vmem:[#allocation5 + $0x4d0] sm:$0xff]  ;;  %v332_v33 = vld [vmem:[#allocation5 + $0x498] sm:$0xff] }
  0xc8   :  { %3636 = vmatprep.subr.bf16.mxu0 %v11466_v41  ;;  %3862 = vmatprep.subr.bf16.mxu1 %v11468_v45  ;;  %v235_v41 = vld [vmem:[#allocation5 + $0x190] sm:$0xff]  ;;  %v244_v45 = vld [vmem:[#allocation5 + $0x1d8] sm:$0xff] }
  0xc9   :  { %3593 = vmatprep.mubr.bf16.mxu0 %v13048_v39  ;;  %3819 = vmatprep.mubr.bf16.mxu1 %v13048_v39  ;;  %v13059_v39 = vld [vmem:[#allocation2 + $0x28] ss:$16 sps:$4 sm:$0xff]   ;;  %v11088_v53 = vcombine.high %v236_v43, %v244_v45  ;;  %v11085_v55 = vcombine.low %v235_v41, %v243_v42 }
  0xcb   :  { %3637 = vmatpush1.bf16.msra.mxu0 %v11465_v47  ;;  %3863 = vmatpush1.bf16.msra.mxu1 %v11467_v48  ;;  %v13060_v47 = vld [vmem:[#allocation2 + $0x4c] ss:$16 sps:$4 sm:$0xff]   ;;  %v11071_v48 = vcombine.low %v220_v34, %v228_v36 }
  0xcc   :  { %3638 = vmatprep.subr.bf16.mxu0 %v11482_v50  ;;  %3864 = vmatprep.subr.bf16.mxu1 %v11484_v54  ;;  %v251_v50 = vld [vmem:[#allocation5 + $0x210] sm:$0xff]  ;;  %v260_v54 = vld [vmem:[#allocation5 + $0x258] sm:$0xff] }
  0xcd   :  { %v11104_v62 = vcombine.high %v252_v52, %v260_v54  ;;  %v11101_v0 = vcombine.low %v251_v50, %v259_v51 }
  0xce   :  { %3594 = vmatmul.mubr.bf16.gmra.mrb[24].mxu0 %v13050_v49  ;;  %3820 = vmatmul.mubr.bf16.gmra.mrb[24].mxu1 %v13050_v49  ;;  %v11086_v49 = vcombine.high %v235_v41, %v243_v42  ;;  %v355_v41 = vld [vmem:[#allocation5 + $0x550] sm:$0xff]  ;;  %v348_v42 = vld [vmem:[#allocation5 + $0x518] sm:$0xff] }
  0xcf   :  { %3639 = vmatpush1.bf16.msra.mxu0 %v11481_v56  ;;  %3865 = vmatpush1.bf16.msra.mxu1 %v11483_v58  ;;  %v11087_v56 = vcombine.low %v236_v43, %v244_v45  ;;  %v11102_v58 = vcombine.high %v251_v50, %v259_v51  ;;  %v371_v50 = vld [vmem:[#allocation5 + $0x5d0] sm:$0xff]  ;;  %v364_v51 = vld [vmem:[#allocation5 + $0x598] sm:$0xff] }
  0xd0   :  { %3640 = vmatprep.subr.bf16.mxu0 %v11498_v59  ;;  %3866 = vmatprep.subr.bf16.mxu1 %v11500_v63  ;;  %v267_v59 = vld [vmem:[#allocation5 + $0x290] sm:$0xff]  ;;  %v276_v63 = vld [vmem:[#allocation5 + $0x2d8] sm:$0xff] }
  0xd1   :  { %3603 = vmatprep.mubr.bf16.mxu0 %v13051_v57  ;;  %3829 = vmatprep.mubr.bf16.mxu1 %v13051_v57  ;;  %v13062_v57 = vld [vmem:[#allocation2 + $0x48] ss:$16 sps:$4 sm:$0xff]   ;;  %v11120_v7 = vcombine.high %v268_v61, %v276_v63  ;;  %v11117_v9 = vcombine.low %v267_v59, %v275_v60 }
  0xd3   :  { %3641 = vmatpush1.bf16.msra.mxu0 %v11497_v1  ;;  %3867 = vmatpush1.bf16.msra.mxu1 %v11499_v2  ;;  %v13063_v1 = vld [vmem:[#allocation2 + $0x6c] ss:$16 sps:$4 sm:$0xff]   ;;  %v11103_v2 = vcombine.low %v252_v52, %v260_v54 }
  0xd4   :  { %3642 = vmatprep.subr.bf16.mxu0 %v11514_v4  ;;  %3868 = vmatprep.subr.bf16.mxu1 %v11516_v8  ;;  %v283_v4 = vld [vmem:[#allocation5 + $0x310] sm:$0xff]  ;;  %v292_v8 = vld [vmem:[#allocation5 + $0x358] sm:$0xff] }
  0xd5   :  { %v11136_v16 = vcombine.high %v284_v6, %v292_v8  ;;  %v11133_v18 = vcombine.low %v283_v4, %v291_v5 }
  0xd6   :  { %3604 = vmatmul.mubr.bf16.gmra.mrb[28].mxu0 %v13053_v3  ;;  %3830 = vmatmul.mubr.bf16.gmra.mrb[28].mxu1 %v13053_v3  ;;  %v11118_v3 = vcombine.high %v267_v59, %v275_v60  ;;  %v387_v59 = vld [vmem:[#allocation5 + $0x650] sm:$0xff]  ;;  %v380_v60 = vld [vmem:[#allocation5 + $0x618] sm:$0xff] }
  0xd7   :  { %3643 = vmatpush1.bf16.msra.mxu0 %v11513_v10  ;;  %3869 = vmatpush1.bf16.msra.mxu1 %v11515_v12  ;;  %v11119_v10 = vcombine.low %v268_v61, %v276_v63  ;;  %v11134_v12 = vcombine.high %v283_v4, %v291_v5  ;;  %v403_v4 = vld [vmem:[#allocation5 + $0x6d0] sm:$0xff]  ;;  %v396_v5 = vld [vmem:[#allocation5 + $0x698] sm:$0xff] }
  0xd8   :  { %3644 = vmatprep.subr.bf16.mxu0 %v11530_v13  ;;  %3870 = vmatprep.subr.bf16.mxu1 %v11532_v17  ;;  %v299_v13 = vld [vmem:[#allocation5 + $0x390] sm:$0xff]  ;;  %v308_v17 = vld [vmem:[#allocation5 + $0x3d8] sm:$0xff] }
  0xd9   :  { %3646 = vmatprep.mubr.bf16.mxu0 %v13054_v11  ;;  %3872 = vmatprep.mubr.bf16.mxu1 %v13054_v11  ;;  %v13065_v11 = vld [vmem:[#allocation2 + $0x68] ss:$16 sps:$4 sm:$0xff]   ;;  %v11152_v25 = vcombine.high %v300_v15, %v308_v17  ;;  %v11149_v27 = vcombine.low %v299_v13, %v307_v14 }
  0xdb   :  { %3645 = vmatpush1.bf16.msra.mxu0 %v11529_v19  ;;  %3871 = vmatpush1.bf16.msra.mxu1 %v11531_v20  ;;  %v13066_v19 = vld [vmem:[#allocation2 + $0x8c] ss:$16 sps:$4 sm:$0xff]   ;;  %v11135_v20 = vcombine.low %v284_v6, %v292_v8 }
  0xdc   :  { %3953 = vmatprep.subr.bf16.mxu0 %v11038_v22  ;;  %4179 = vmatprep.subr.bf16.mxu1 %v11040_v26  ;;  %v315_v22 = vld [vmem:[#allocation5 + $0x410] sm:$0xff]  ;;  %v324_v26 = vld [vmem:[#allocation5 + $0x458] sm:$0xff] }
  0xdd   :  { %v11168_v34 = vcombine.high %v316_v24, %v324_v26  ;;  %v11165_v36 = vcombine.low %v315_v22, %v323_v23 }
  0xde   :  { %3647 = vmatmul.mubr.bf16.vlgmr.msra.gmra.mrb[0].mxu0 %v13056_v21  ;;  %3873 = vmatmul.mubr.bf16.vlgmr.msra.gmra.mrb[0].mxu1 %v13056_v21  ;;  %v11150_v21 = vcombine.high %v299_v13, %v307_v14  ;;  %v419_v13 = vld [vmem:[#allocation5 + $0x750] sm:$0xff]  ;;  %v412_v14 = vld [vmem:[#allocation5 + $0x718] sm:$0xff] }
  0xdf   :  { %3954 = vmatpush1.bf16.msra.mxu0 %v11037_v28  ;;  %4180 = vmatpush1.bf16.msra.mxu1 %v11039_v30  ;;  %v11151_v28 = vcombine.low %v300_v15, %v308_v17  ;;  %v11166_v30 = vcombine.high %v315_v22, %v323_v23  ;;  %v435_v22 = vld [vmem:[#allocation5 + $0x7d0] sm:$0xff]  ;;  %v428_v23 = vld [vmem:[#allocation5 + $0x798] sm:$0xff] }
  0xe0   :  { %3955 = vmatprep.subr.bf16.mxu0 %v11054_v31  ;;  %4181 = vmatprep.subr.bf16.mxu1 %v11056_v35  ;;  %v331_v31 = vld [vmem:[#allocation5 + $0x490] sm:$0xff]  ;;  %v340_v35 = vld [vmem:[#allocation5 + $0x4d8] sm:$0xff] }
  0xe1   :  { %3656 = vmatprep.mubr.bf16.mxu0 %v13057_v29  ;;  %3882 = vmatprep.mubr.bf16.mxu1 %v13057_v29  ;;  %v13068_v29 = vld [vmem:[#allocation2 + $0x88] ss:$16 sps:$4 sm:$0xff]   ;;  %v11184_v43 = vcombine.high %v332_v33, %v340_v35  ;;  %v11181_v45 = vcombine.low %v331_v31, %v339_v32 }
  0xe3   :  { %3956 = vmatpush1.bf16.msra.mxu0 %v11053_v37  ;;  %4182 = vmatpush1.bf16.msra.mxu1 %v11055_v38  ;;  %v13069_v37 = vld [vmem:[#allocation2 + $0xac] ss:$16 sps:$4 sm:$0xff]   ;;  %v11167_v38 = vcombine.low %v316_v24, %v324_v26 }
  0xe4   :  { %3957 = vmatprep.subr.bf16.mxu0 %v11070_v40  ;;  %4183 = vmatprep.subr.bf16.mxu1 %v11072_v44  ;;  %v347_v40 = vld [vmem:[#allocation5 + $0x510] sm:$0xff]  ;;  %v356_v44 = vld [vmem:[#allocation5 + $0x558] sm:$0xff] }
  0xe5   :  { %v11200_v52 = vcombine.high %v348_v42, %v356_v44  ;;  %v11197_v54 = vcombine.low %v347_v40, %v355_v41 }
  0xe6   :  { %3657 = vmatmul.mubr.bf16.gmra.mrb[4].mxu0 %v13059_v39  ;;  %3883 = vmatmul.mubr.bf16.gmra.mrb[4].mxu1 %v13059_v39  ;;  %v11182_v39 = vcombine.high %v331_v31, %v339_v32  ;;  %v444_v31 = vld [vmem:[#allocation5 + $0x818] sm:$0xff] }
  0xe7   :  { %3958 = vmatpush1.bf16.msra.mxu0 %v11069_v46  ;;  %4184 = vmatpush1.bf16.msra.mxu1 %v11071_v48  ;;  %v11183_v46 = vcombine.low %v332_v33, %v340_v35  ;;  %v11198_v48 = vcombine.high %v347_v40, %v355_v41  ;;  %v452_v33 = vld [vmem:[#allocation5 + $0x858] sm:$0xff]  ;;  %v13846_v40 = vld [vmem:[#allocation2 + $0x4] ss:$16 sps:$4 sm:$0xff]  }
  0xe8   :  { %3959 = vmatprep.subr.bf16.mxu0 %v11086_v49  ;;  %4185 = vmatprep.subr.bf16.mxu1 %v11088_v53  ;;  %v363_v49 = vld [vmem:[#allocation5 + $0x590] sm:$0xff]  ;;  %v372_v53 = vld [vmem:[#allocation5 + $0x5d8] sm:$0xff]  ;;  %v11296_v41 = vcombine.high %v444_v31, %v452_v33 }
  0xe9   :  { %3666 = vmatprep.mubr.bf16.mxu0 %v13060_v47  ;;  %3892 = vmatprep.mubr.bf16.mxu1 %v13060_v47  ;;  %v13071_v47 = vld [vmem:[#allocation2 + $0xa8] ss:$16 sps:$4 sm:$0xff]   ;;  %v11216_v61 = vcombine.high %v364_v51, %v372_v53  ;;  %v11213_v63 = vcombine.low %v363_v49, %v371_v50 }
  0xeb   :  { %3960 = vmatpush1.bf16.msra.mxu0 %v11085_v55  ;;  %4186 = vmatpush1.bf16.msra.mxu1 %v11087_v56  ;;  %v13072_v55 = vld [vmem:[#allocation2 + $0xcc] ss:$16 sps:$4 sm:$0xff]   ;;  %v11199_v56 = vcombine.low %v348_v42, %v356_v44  ;;  %v11295_v44 = vcombine.low %v444_v31, %v452_v33 }
  0xec   :  { %3961 = vmatprep.subr.bf16.mxu0 %v11102_v58  ;;  %4187 = vmatprep.subr.bf16.mxu1 %v11104_v62  ;;  %v379_v58 = vld [vmem:[#allocation5 + $0x610] sm:$0xff]  ;;  %v388_v62 = vld [vmem:[#allocation5 + $0x658] sm:$0xff] }
  0xed   :  { %v11232_v6 = vcombine.high %v380_v60, %v388_v62  ;;  %v11229_v8 = vcombine.low %v379_v58, %v387_v59  ;;  %v468_v42 = vld [vmem:[#allocation5 + $0x8d8] sm:$0xff] }
  0xee   :  { %3667 = vmatmul.mubr.bf16.gmra.mrb[8].mxu0 %v13062_v57  ;;  %3893 = vmatmul.mubr.bf16.gmra.mrb[8].mxu1 %v13062_v57  ;;  %v11214_v57 = vcombine.high %v363_v49, %v371_v50  ;;  %v484_v50 = vld [vmem:[#allocation5 + $0x958] sm:$0xff] }
  0xef   :  { %3962 = vmatpush1.bf16.msra.mxu0 %v11101_v0  ;;  %4188 = vmatpush1.bf16.msra.mxu1 %v11103_v2  ;;  %v11215_v0 = vcombine.low %v364_v51, %v372_v53  ;;  %v11230_v2 = vcombine.high %v379_v58, %v387_v59  ;;  %v13847_v51 = vld [vmem:[#allocation2] ss:$16 sps:$4 sm:$0xff]   ;;  %v13848_v58 = vld [vmem:[#allocation2 + $0x24] ss:$16 sps:$4 sm:$0xff]   ;;  %v556_v31 = vld [vmem:[#allocation5 + $0xb98] sm:$0xff] }
  0xf0   :  { %3963 = vmatprep.subr.bf16.mxu0 %v11118_v3  ;;  %4189 = vmatprep.subr.bf16.mxu1 %v11120_v7  ;;  %v395_v3 = vld [vmem:[#allocation5 + $0x690] sm:$0xff]  ;;  %v404_v7 = vld [vmem:[#allocation5 + $0x6d8] sm:$0xff] }
  0xf1   :  { %3676 = vmatprep.mubr.bf16.mxu0 %v13063_v1  ;;  %3902 = vmatprep.mubr.bf16.mxu1 %v13063_v1  ;;  %v13074_v1 = vld [vmem:[#allocation2 + $0xc8] ss:$16 sps:$4 sm:$0xff]   ;;  %v11248_v15 = vcombine.high %v396_v5, %v404_v7  ;;  %v11245_v17 = vcombine.low %v395_v3, %v403_v4 }
  0xf3   :  { %3964 = vmatpush1.bf16.msra.mxu0 %v11117_v9  ;;  %4190 = vmatpush1.bf16.msra.mxu1 %v11119_v10  ;;  %v13075_v9 = vld [vmem:[#allocation2 + $0xec] ss:$16 sps:$4 sm:$0xff]   ;;  %v11231_v10 = vcombine.low %v380_v60, %v388_v62 }
  0xf4   :  { %3965 = vmatprep.subr.bf16.mxu0 %v11134_v12  ;;  %4191 = vmatprep.subr.bf16.mxu1 %v11136_v16  ;;  %v411_v12 = vld [vmem:[#allocation5 + $0x710] sm:$0xff]  ;;  %v420_v16 = vld [vmem:[#allocation5 + $0x758] sm:$0xff] }
  0xf5   :  { %v11264_v24 = vcombine.high %v412_v14, %v420_v16  ;;  %v11261_v26 = vcombine.low %v411_v12, %v419_v13  ;;  %v500_v60 = vld [vmem:[#allocation5 + $0x9d8] sm:$0xff] }
  0xf6   :  { %3677 = vmatmul.mubr.bf16.gmra.mrb[12].mxu0 %v13065_v11  ;;  %3903 = vmatmul.mubr.bf16.gmra.mrb[12].mxu1 %v13065_v11  ;;  %v11246_v11 = vcombine.high %v395_v3, %v403_v4  ;;  %v516_v4 = vld [vmem:[#allocation5 + $0xa58] sm:$0xff] }
  0xf7   :  { %3966 = vmatpush1.bf16.msra.mxu0 %v11133_v18  ;;  %4192 = vmatpush1.bf16.msra.mxu1 %v11135_v20  ;;  %v11247_v18 = vcombine.low %v396_v5, %v404_v7  ;;  %v11262_v20 = vcombine.high %v411_v12, %v419_v13  ;;  %v13849_v5 = vld [vmem:[#allocation2 + $0x20] ss:$16 sps:$4 sm:$0xff]   ;;  %v13850_v12 = vld [vmem:[#allocation2 + $0x44] ss:$16 sps:$4 sm:$0xff]  }
  0xf8   :  { %3967 = vmatprep.subr.bf16.mxu0 %v11150_v21  ;;  %4193 = vmatprep.subr.bf16.mxu1 %v11152_v25  ;;  %v427_v21 = vld [vmem:[#allocation5 + $0x790] sm:$0xff]  ;;  %v436_v25 = vld [vmem:[#allocation5 + $0x7d8] sm:$0xff] }
  0xf9   :  { %3686 = vmatprep.mubr.bf16.mxu0 %v13066_v19  ;;  %3912 = vmatprep.mubr.bf16.mxu1 %v13066_v19  ;;  %v13077_v19 = vld [vmem:[#allocation2 + $0xe8] ss:$16 sps:$4 sm:$0xff]   ;;  %v11280_v32 = vcombine.high %v428_v23, %v436_v25  ;;  %v11279_v35 = vcombine.low %v428_v23, %v436_v25  ;;  %v13851_v23 = vld [vmem:[#allocation2 + $0x40] ss:$16 sps:$4 sm:$0xff]  }
  0xfb   :  { %3968 = vmatpush1.bf16.msra.mxu0 %v11149_v27  ;;  %4194 = vmatpush1.bf16.msra.mxu1 %v11151_v28  ;;  %v11263_v27 = vcombine.low %v412_v14, %v420_v16  ;;  %v11278_v28 = vcombine.high %v427_v21, %v435_v22  ;;  %v532_v14 = vld [vmem:[#allocation5 + $0xad8] sm:$0xff] }
  0xfc   :  { %3969 = vmatprep.subr.bf16.mxu0 %v11166_v30  ;;  %4195 = vmatprep.subr.bf16.mxu1 %v11168_v34  ;;  %v451_v30 = vld [vmem:[#allocation5 + $0x850] sm:$0xff]  ;;  %v11277_v34 = vcombine.low %v427_v21, %v435_v22  ;;  %v548_v22 = vld [vmem:[#allocation5 + $0xb58] sm:$0xff] }
  0xfe   :  { %3687 = vmatmul.mubr.bf16.gmra.mrb[16].mxu0 %v13068_v29  ;;  %3913 = vmatmul.mubr.bf16.gmra.mrb[16].mxu1 %v13068_v29  ;;  %v443_v29 = vld [vmem:[#allocation5 + $0x810] sm:$0xff] }
  0xff   :  { %3970 = vmatpush1.bf16.msra.mxu0 %v11165_v36  ;;  %4196 = vmatpush1.bf16.msra.mxu1 %v11167_v38  ;;  %v11294_v36 = vcombine.high %v443_v29, %v451_v30  ;;  %v467_v38 = vld [vmem:[#allocation5 + $0x8d0] sm:$0xff] }
 0x100   :  { %3971 = vmatprep.subr.bf16.mxu0 %v11182_v39  ;;  %4197 = vmatprep.subr.bf16.mxu1 %v11184_v43  ;;  %v460_v39 = vld [vmem:[#allocation5 + $0x898] sm:$0xff]  ;;  %v11293_v43 = vcombine.low %v443_v29, %v451_v30  ;;  %v13852_v29 = vld [vmem:[#allocation2 + $0x64] ss:$16 sps:$4 sm:$0xff]  }
 0x101   :  { %3696 = vmatprep.mubr.bf16.mxu0 %v13069_v37  ;;  %3922 = vmatprep.mubr.bf16.mxu1 %v13069_v37  ;;  %v459_v37 = vld [vmem:[#allocation5 + $0x890] sm:$0xff]  ;;  %v11312_v49 = vcombine.high %v460_v39, %v468_v42  ;;  %v11311_v53 = vcombine.low %v460_v39, %v468_v42 }
 0x103   :  { %3972 = vmatpush1.bf16.msra.mxu0 %v11181_v45  ;;  %4198 = vmatpush1.bf16.msra.mxu1 %v11183_v46  ;;  %v11310_v45 = vcombine.high %v459_v37, %v467_v38  ;;  %v475_v46 = vld [vmem:[#allocation5 + $0x910] sm:$0xff] }
 0x104   :  { %3973 = vmatprep.subr.bf16.mxu0 %v11198_v48  ;;  %4199 = vmatprep.subr.bf16.mxu1 %v11200_v52  ;;  %v476_v48 = vld [vmem:[#allocation5 + $0x918] sm:$0xff]  ;;  %v11309_v52 = vcombine.low %v459_v37, %v467_v38  ;;  %v579_v37 = vld [vmem:[#allocation5 + $0xc50] sm:$0xff] }
 0x105   :  { %v11328_v59 = vcombine.high %v476_v48, %v484_v50  ;;  %v11327_v62 = vcombine.low %v476_v48, %v484_v50  ;;  %v572_v38 = vld [vmem:[#allocation5 + $0xc18] sm:$0xff]  ;;  %v13854_v48 = vld [vmem:[#allocation2 + $0x84] ss:$16 sps:$4 sm:$0xff]  }
 0x106   :  { %3697 = vmatmul.mubr.bf16.gmra.mrb[20].mxu0 %v13071_v47  ;;  %3923 = vmatmul.mubr.bf16.gmra.mrb[20].mxu1 %v13071_v47  ;;  %v483_v47 = vld [vmem:[#allocation5 + $0x950] sm:$0xff]  ;;  %v596_v50 = vld [vmem:[#allocation5 + $0xcd8] sm:$0xff] }
 0x107   :  { %3974 = vmatpush1.bf16.msra.mxu0 %v11197_v54  ;;  %4200 = vmatpush1.bf16.msra.mxu1 %v11199_v56  ;;  %v11326_v54 = vcombine.high %v475_v46, %v483_v47  ;;  %v499_v56 = vld [vmem:[#allocation5 + $0x9d0] sm:$0xff] }
 0x108   :  { %3975 = vmatprep.subr.bf16.mxu0 %v11214_v57  ;;  %4201 = vmatprep.subr.bf16.mxu1 %v11216_v61  ;;  %v492_v57 = vld [vmem:[#allocation5 + $0x998] sm:$0xff]  ;;  %v11325_v61 = vcombine.low %v475_v46, %v483_v47  ;;  %v595_v46 = vld [vmem:[#allocation5 + $0xcd0] sm:$0xff] }
 0x109   :  { %3706 = vmatprep.mubr.bf16.mxu0 %v13072_v55  ;;  %3932 = vmatprep.mubr.bf16.mxu1 %v13072_v55  ;;  %v491_v55 = vld [vmem:[#allocation5 + $0x990] sm:$0xff]  ;;  %v11344_v3 = vcombine.high %v492_v57, %v500_v60  ;;  %v11343_v7 = vcombine.low %v492_v57, %v500_v60  ;;  %v588_v47 = vld [vmem:[#allocation5 + $0xc98] sm:$0xff] }
 0x10a   :  { %v11440_v57 = vcombine.high %v588_v47, %v596_v50 }
 0x10b   :  { %3976 = vmatpush1.bf16.msra.mxu0 %v11213_v63  ;;  %4202 = vmatpush1.bf16.msra.mxu1 %v11215_v0  ;;  %v11342_v63 = vcombine.high %v491_v55, %v499_v56  ;;  %v507_v0 = vld [vmem:[#allocation5 + $0xa10] sm:$0xff] }
 0x10c   :  { %3977 = vmatprep.subr.bf16.mxu0 %v11230_v2  ;;  %4203 = vmatprep.subr.bf16.mxu1 %v11232_v6  ;;  %v508_v2 = vld [vmem:[#allocation5 + $0xa18] sm:$0xff]  ;;  %v11341_v6 = vcombine.low %v491_v55, %v499_v56  ;;  %v611_v55 = vld [vmem:[#allocation5 + $0xd50] sm:$0xff] }
 0x10d   :  { %v11360_v13 = vcombine.high %v508_v2, %v516_v4  ;;  %v11359_v16 = vcombine.low %v508_v2, %v516_v4  ;;  %v604_v56 = vld [vmem:[#allocation5 + $0xd18] sm:$0xff]  ;;  %v13856_v2 = vld [vmem:[#allocation2 + $0xa4] ss:$16 sps:$4 sm:$0xff]  }
 0x10e   :  { %3707 = vmatmul.mubr.bf16.gmra.mrb[24].mxu0 %v13074_v1  ;;  %3933 = vmatmul.mubr.bf16.gmra.mrb[24].mxu1 %v13074_v1  ;;  %v515_v1 = vld [vmem:[#allocation5 + $0xa50] sm:$0xff]  ;;  %v628_v4 = vld [vmem:[#allocation5 + $0xdd8] sm:$0xff] }
 0x10f   :  { %3978 = vmatpush1.bf16.msra.mxu0 %v11229_v8  ;;  %4204 = vmatpush1.bf16.msra.mxu1 %v11231_v10  ;;  %v11358_v8 = vcombine.high %v507_v0, %v515_v1  ;;  %v531_v10 = vld [vmem:[#allocation5 + $0xad0] sm:$0xff] }
 0x110   :  { %3979 = vmatprep.subr.bf16.mxu0 %v11246_v11  ;;  %4205 = vmatprep.subr.bf16.mxu1 %v11248_v15  ;;  %v524_v11 = vld [vmem:[#allocation5 + $0xa98] sm:$0xff]  ;;  %v11357_v15 = vcombine.low %v507_v0, %v515_v1  ;;  %v627_v0 = vld [vmem:[#allocation5 + $0xdd0] sm:$0xff] }
 0x111   :  { %3716 = vmatprep.mubr.bf16.mxu0 %v13075_v9  ;;  %3942 = vmatprep.mubr.bf16.mxu1 %v13075_v9  ;;  %v523_v9 = vld [vmem:[#allocation5 + $0xa90] sm:$0xff]  ;;  %v11376_v21 = vcombine.high %v524_v11, %v532_v14  ;;  %v11375_v25 = vcombine.low %v524_v11, %v532_v14  ;;  %v620_v1 = vld [vmem:[#allocation5 + $0xd98] sm:$0xff] }
 0x112   :  { %v11472_v11 = vcombine.high %v620_v1, %v628_v4 }
 0x113   :  { %3980 = vmatpush1.bf16.msra.mxu0 %v11245_v17  ;;  %4206 = vmatpush1.bf16.msra.mxu1 %v11247_v18  ;;  %v11374_v17 = vcombine.high %v523_v9, %v531_v10  ;;  %v539_v18 = vld [vmem:[#allocation5 + $0xb10] sm:$0xff] }
 0x114   :  { %3981 = vmatprep.subr.bf16.mxu0 %v11262_v20  ;;  %4207 = vmatprep.subr.bf16.mxu1 %v11264_v24  ;;  %v540_v20 = vld [vmem:[#allocation5 + $0xb18] sm:$0xff]  ;;  %v11373_v24 = vcombine.low %v523_v9, %v531_v10  ;;  %v643_v9 = vld [vmem:[#allocation5 + $0xe50] sm:$0xff] }
 0x115   :  { %v11392_v30 = vcombine.high %v540_v20, %v548_v22  ;;  %v636_v10 = vld [vmem:[#allocation5 + $0xe18] sm:$0xff] }
 0x116   :  { %3717 = vmatmul.mubr.bf16.gmra.mrb[28].mxu0 %v13077_v19  ;;  %3943 = vmatmul.mubr.bf16.gmra.mrb[28].mxu1 %v13077_v19  ;;  %v547_v19 = vld [vmem:[#allocation5 + $0xb50] sm:$0xff] }
 0x117   :  { %3982 = vmatpush1.bf16.msra.mxu0 %v11261_v26  ;;  %4208 = vmatpush1.bf16.msra.mxu1 %v11263_v27  ;;  %v11390_v26 = vcombine.high %v539_v18, %v547_v19  ;;  %v555_v27 = vld [vmem:[#allocation5 + $0xb90] sm:$0xff]  ;;  %v11389_v33 = vcombine.low %v539_v18, %v547_v19  ;;  %v652_v19 = vld [vmem:[#allocation5 + $0xe98] sm:$0xff] }
 0x118   :  { %3983 = vmatprep.subr.bf16.mxu0 %v11278_v28  ;;  %4209 = vmatprep.subr.bf16.mxu1 %v11280_v32  ;;  %v563_v28 = vld [vmem:[#allocation5 + $0xbd0] sm:$0xff]  ;;  %v564_v32 = vld [vmem:[#allocation5 + $0xbd8] sm:$0xff] }
 0x119   :  { %3985 = vmatprep.mubr.bf16.mxu0 %v13846_v40  ;;  %4211 = vmatprep.mubr.bf16.mxu1 %v13846_v40  ;;  %v11408_v39 = vcombine.high %v556_v31, %v564_v32  ;;  %v580_v40 = vld [vmem:[#allocation5 + $0xc58] sm:$0xff]  ;;  %v11405_v42 = vcombine.low %v555_v27, %v563_v28  ;;  %v659_v18 = vld [vmem:[#allocation5 + $0xed0] sm:$0xff] }
 0x11b   :  { %3984 = vmatpush1.bf16.msra.mxu0 %v11277_v34  ;;  %4210 = vmatpush1.bf16.msra.mxu1 %v11279_v35  ;;  %v11391_v34 = vcombine.low %v540_v20, %v548_v22  ;;  %v11406_v35 = vcombine.high %v555_v27, %v563_v28  ;;  %v13858_v20 = vld [vmem:[#allocation2 + $0xc4] ss:$16 sps:$4 sm:$0xff]   ;;  %v660_v22 = vld [vmem:[#allocation5 + $0xed8] sm:$0xff] }
 0x11c   :  { %4066 = vmatprep.subr.bf16.mxu0 %v11294_v36  ;;  %4292 = vmatprep.subr.bf16.mxu1 %v11296_v41  ;;  %v571_v36 = vld [vmem:[#allocation5 + $0xc10] sm:$0xff]  ;;  %v668_v28 = vld [vmem:[#allocation5 + $0xf18] sm:$0xff] }
 0x11d   :  { %v13853_v41 = vld [vmem:[#allocation2 + $0x60] ss:$16 sps:$4 sm:$0xff]  }
 0x11e   :  { %3986 = vmatmul.mubr.bf16.vlgmr.msra.gmra.mrb[32].mxu0 %v13847_v51  ;;  %4212 = vmatmul.mubr.bf16.vlgmr.msra.gmra.mrb[32].mxu1 %v13847_v51  ;;  %v11421_v51 = vcombine.low %v571_v36, %v579_v37  ;;  %v675_v27 = vld [vmem:[#allocation5 + $0xf50] sm:$0xff] }
 0x11f   :  { %4067 = vmatpush1.bf16.msra.mxu0 %v11293_v43  ;;  %4293 = vmatpush1.bf16.msra.mxu1 %v11295_v44  ;;  %v11407_v43 = vcombine.low %v556_v31, %v564_v32  ;;  %v11422_v44 = vcombine.high %v571_v36, %v579_v37  ;;  %v13859_v31 = vld [vmem:[#allocation2 + $0xc0] ss:$16 sps:$4 sm:$0xff]   ;;  %v684_v37 = vld [vmem:[#allocation5 + $0xf98] sm:$0xff] }
 0x120   :  { %4068 = vmatprep.subr.bf16.mxu0 %v11310_v45  ;;  %4294 = vmatprep.subr.bf16.mxu1 %v11312_v49  ;;  %v587_v45 = vld [vmem:[#allocation5 + $0xc90] sm:$0xff]  ;;  %v11424_v49 = vcombine.high %v572_v38, %v580_v40 }
 0x121   :  { %3995 = vmatprep.mubr.bf16.mxu0 %v13848_v58  ;;  %4221 = vmatprep.mubr.bf16.mxu1 %v13848_v58  ;;  %v612_v58 = vld [vmem:[#allocation5 + $0xd58] sm:$0xff]  ;;  %v11437_v60 = vcombine.low %v587_v45, %v595_v46  ;;  %v691_v36 = vld [vmem:[#allocation5 + $0xfd0] sm:$0xff] }
 0x123   :  { %4069 = vmatpush1.bf16.msra.mxu0 %v11309_v52  ;;  %4295 = vmatpush1.bf16.msra.mxu1 %v11311_v53  ;;  %v11423_v52 = vcombine.low %v572_v38, %v580_v40  ;;  %v11438_v53 = vcombine.high %v587_v45, %v595_v46  ;;  %v13860_v38 = vld [vmem:[#allocation2 + $0xe4] ss:$16 sps:$4 sm:$0xff]   ;;  %v692_v40 = vld [vmem:[#allocation5 + $0xfd8] sm:$0xff]  ;;  %v190_v46 = vld [vmem:[#allocation5 + $0x28] sm:$0xff] }
 0x124   :  { %4070 = vmatprep.subr.bf16.mxu0 %v11326_v54  ;;  %4296 = vmatprep.subr.bf16.mxu1 %v11328_v59  ;;  %v603_v54 = vld [vmem:[#allocation5 + $0xd10] sm:$0xff]  ;;  %v197_v45 = vld [vmem:[#allocation5 + $0x60] sm:$0xff] }
 0x125   :  { %v13855_v59 = vld [vmem:[#allocation2 + $0x80] ss:$16 sps:$4 sm:$0xff]  }
 0x126   :  { %3996 = vmatmul.mubr.bf16.gmra.mrb[36].mxu0 %v13849_v5  ;;  %4222 = vmatmul.mubr.bf16.gmra.mrb[36].mxu1 %v13849_v5  ;;  %v11453_v5 = vcombine.low %v603_v54, %v611_v55 }
 0x127   :  { %4071 = vmatpush1.bf16.msra.mxu0 %v11325_v61  ;;  %4297 = vmatpush1.bf16.msra.mxu1 %v11327_v62  ;;  %v11439_v61 = vcombine.low %v588_v47, %v596_v50  ;;  %v11454_v62 = vcombine.high %v603_v54, %v611_v55  ;;  %v11536_v47 = vcombine.high %v684_v37, %v692_v40  ;;  %v213_v54 = vld [vmem:[#allocation5 + $0xe0] sm:$0xff]  ;;  %v206_v55 = vld [vmem:[#allocation5 + $0xa8] sm:$0xff] }
 0x128   :  { %4072 = vmatprep.subr.bf16.mxu0 %v11342_v63  ;;  %4298 = vmatprep.subr.bf16.mxu1 %v11344_v3  ;;  %v619_v63 = vld [vmem:[#allocation5 + $0xd90] sm:$0xff]  ;;  %v11456_v3 = vcombine.high %v604_v56, %v612_v58 }
 0x129   :  { %4005 = vmatprep.mubr.bf16.mxu0 %v13850_v12  ;;  %4231 = vmatprep.mubr.bf16.mxu1 %v13850_v12  ;;  %v644_v12 = vld [vmem:[#allocation5 + $0xe58] sm:$0xff]  ;;  %v11469_v14 = vcombine.low %v619_v63, %v627_v0 }
 0x12b   :  { %4073 = vmatpush1.bf16.msra.mxu0 %v11341_v6  ;;  %4299 = vmatpush1.bf16.msra.mxu1 %v11343_v7  ;;  %v11455_v6 = vcombine.low %v604_v56, %v612_v58  ;;  %v11470_v7 = vcombine.high %v619_v63, %v627_v0  ;;  %v13862_v56 = vld [vmem:[#allocation2 + $0xc] ss:$16 sps:$4 sm:$0xff]   ;;  %v229_v63 = vld [vmem:[#allocation5 + $0x160] sm:$0xff] }
 0x12c   :  { %4074 = vmatprep.subr.bf16.mxu0 %v11358_v8  ;;  %4300 = vmatprep.subr.bf16.mxu1 %v11360_v13  ;;  %v635_v8 = vld [vmem:[#allocation5 + $0xe10] sm:$0xff]  ;;  %v214_v58 = vld [vmem:[#allocation5 + $0xe8] sm:$0xff] }
 0x12d   :  { %v13857_v13 = vld [vmem:[#allocation2 + $0xa0] ss:$16 sps:$4 sm:$0xff]   ;;  %v222_v0 = vld [vmem:[#allocation5 + $0x128] sm:$0xff] }
 0x12e   :  { %4006 = vmatmul.mubr.bf16.gmra.mrb[40].mxu0 %v13851_v23  ;;  %4232 = vmatmul.mubr.bf16.gmra.mrb[40].mxu1 %v13851_v23  ;;  %v11485_v23 = vcombine.low %v635_v8, %v643_v9 }
 0x12f   :  { %4075 = vmatpush1.bf16.msra.mxu0 %v11357_v15  ;;  %4301 = vmatpush1.bf16.msra.mxu1 %v11359_v16  ;;  %v11471_v15 = vcombine.low %v620_v1, %v628_v4  ;;  %v11486_v16 = vcombine.high %v635_v8, %v643_v9  ;;  %v11060_v1 = vcombine.high %v206_v55, %v214_v58  ;;  %v245_v8 = vld [vmem:[#allocation5 + $0x1e0] sm:$0xff]  ;;  %v238_v9 = vld [vmem:[#allocation5 + $0x1a8] sm:$0xff] }
 0x130   :  { %4076 = vmatprep.subr.bf16.mxu0 %v11374_v17  ;;  %4302 = vmatprep.subr.bf16.mxu1 %v11376_v21  ;;  %v651_v17 = vld [vmem:[#allocation5 + $0xe90] sm:$0xff]  ;;  %v11488_v21 = vcombine.high %v636_v10, %v644_v12 }
 0x131   :  { %4015 = vmatprep.mubr.bf16.mxu0 %v13852_v29  ;;  %4241 = vmatprep.mubr.bf16.mxu1 %v13852_v29  ;;  %v11504_v29 = vcombine.high %v652_v19, %v660_v22  ;;  %v11501_v32 = vcombine.low %v651_v17, %v659_v18 }
 0x133   :  { %4077 = vmatpush1.bf16.msra.mxu0 %v11373_v24  ;;  %4303 = vmatpush1.bf16.msra.mxu1 %v11375_v25  ;;  %v11487_v24 = vcombine.low %v636_v10, %v644_v12  ;;  %v11502_v25 = vcombine.high %v651_v17, %v659_v18  ;;  %v13864_v10 = vld [vmem:[#allocation2 + $0x2c] ss:$16 sps:$4 sm:$0xff]   ;;  %v261_v17 = vld [vmem:[#allocation5 + $0x260] sm:$0xff] }
 0x134   :  { %4078 = vmatprep.subr.bf16.mxu0 %v11390_v26  ;;  %4304 = vmatprep.subr.bf16.mxu1 %v11392_v30  ;;  %v667_v26 = vld [vmem:[#allocation5 + $0xf10] sm:$0xff]  ;;  %v676_v30 = vld [vmem:[#allocation5 + $0xf58] sm:$0xff]  ;;  %v246_v12 = vld [vmem:[#allocation5 + $0x1e8] sm:$0xff] }
 0x135   :  { %v254_v18 = vld [vmem:[#allocation5 + $0x228] sm:$0xff] }
 0x136   :  { %4016 = vmatmul.mubr.bf16.gmra.mrb[44].mxu0 %v13853_v41  ;;  %4242 = vmatmul.mubr.bf16.gmra.mrb[44].mxu1 %v13853_v41  ;;  %v11517_v41 = vcombine.low %v667_v26, %v675_v27 }
 0x137   :  { %4079 = vmatpush1.bf16.msra.mxu0 %v11389_v33  ;;  %4305 = vmatpush1.bf16.msra.mxu1 %v11391_v34  ;;  %v11503_v33 = vcombine.low %v652_v19, %v660_v22  ;;  %v11518_v34 = vcombine.high %v667_v26, %v675_v27  ;;  %v11092_v19 = vcombine.high %v238_v9, %v246_v12  ;;  %v277_v26 = vld [vmem:[#allocation5 + $0x2e0] sm:$0xff]  ;;  %v270_v27 = vld [vmem:[#allocation5 + $0x2a8] sm:$0xff] }
 0x138   :  { %4080 = vmatprep.subr.bf16.mxu0 %v11406_v35  ;;  %4306 = vmatprep.subr.bf16.mxu1 %v11408_v39  ;;  %v683_v35 = vld [vmem:[#allocation5 + $0xf90] sm:$0xff]  ;;  %v11520_v39 = vcombine.high %v668_v28, %v676_v30 }
 0x139   :  { %4025 = vmatprep.mubr.bf16.mxu0 %v13854_v48  ;;  %4251 = vmatprep.mubr.bf16.mxu1 %v13854_v48  ;;  %v198_v48 = vld [vmem:[#allocation5 + $0x68] sm:$0xff]  ;;  %v11533_v50 = vcombine.low %v683_v35, %v691_v36 }
 0x13b   :  { %4081 = vmatpush1.bf16.msra.mxu0 %v11405_v42  ;;  %4307 = vmatpush1.bf16.msra.mxu1 %v11407_v43  ;;  %v11519_v42 = vcombine.low %v668_v28, %v676_v30  ;;  %v11534_v43 = vcombine.high %v683_v35, %v691_v36  ;;  %v13866_v28 = vld [vmem:[#allocation2 + $0x4c] ss:$16 sps:$4 sm:$0xff]   ;;  %v293_v35 = vld [vmem:[#allocation5 + $0x360] sm:$0xff] }
 0x13c   :  { %4082 = vmatprep.subr.bf16.mxu0 %v11422_v44  ;;  %4308 = vmatprep.subr.bf16.mxu1 %v11424_v49  ;;  %v189_v44 = vld [vmem:[#allocation5 + $0x20] sm:$0xff]  ;;  %v278_v30 = vld [vmem:[#allocation5 + $0x2e8] sm:$0xff] }
 0x13d   :  { %v13861_v49 = vld [vmem:[#allocation2 + $0xe0] ss:$16 sps:$4 sm:$0xff]   ;;  %v286_v36 = vld [vmem:[#allocation5 + $0x328] sm:$0xff] }
 0x13e   :  { %4026 = vmatmul.mubr.bf16.gmra.mrb[48].mxu0 %v13855_v59  ;;  %4252 = vmatmul.mubr.bf16.gmra.mrb[48].mxu1 %v13855_v59  ;;  %v11041_v59 = vcombine.low %v189_v44, %v197_v45 }
 0x13f   :  { %4083 = vmatpush1.bf16.msra.mxu0 %v11421_v51  ;;  %4309 = vmatpush1.bf16.msra.mxu1 %v11423_v52  ;;  %v11535_v51 = vcombine.low %v684_v37, %v692_v40  ;;  %v11042_v52 = vcombine.high %v189_v44, %v197_v45  ;;  %v11124_v37 = vcombine.high %v270_v27, %v278_v30  ;;  %v309_v44 = vld [vmem:[#allocation5 + $0x3e0] sm:$0xff]  ;;  %v302_v45 = vld [vmem:[#allocation5 + $0x3a8] sm:$0xff] }
 0x140   :  { %4084 = vmatprep.subr.bf16.mxu0 %v11438_v53  ;;  %4310 = vmatprep.subr.bf16.mxu1 %v11440_v57  ;;  %v205_v53 = vld [vmem:[#allocation5 + $0xa0] sm:$0xff]  ;;  %v11044_v57 = vcombine.high %v190_v46, %v198_v48 }
 0x141   :  { %4035 = vmatprep.mubr.bf16.mxu0 %v13856_v2  ;;  %4261 = vmatprep.mubr.bf16.mxu1 %v13856_v2  ;;  %v230_v2 = vld [vmem:[#allocation5 + $0x168] sm:$0xff]  ;;  %v11057_v4 = vcombine.low %v205_v53, %v213_v54 }
 0x143   :  { %4085 = vmatpush1.bf16.msra.mxu0 %v11437_v60  ;;  %4311 = vmatpush1.bf16.msra.mxu1 %v11439_v61  ;;  %v11043_v60 = vcombine.low %v190_v46, %v198_v48  ;;  %v11058_v61 = vcombine.high %v205_v53, %v213_v54  ;;  %v13868_v46 = vld [vmem:[#allocation2 + $0x6c] ss:$16 sps:$4 sm:$0xff]   ;;  %v325_v53 = vld [vmem:[#allocation5 + $0x460] sm:$0xff] }
 0x144   :  { %4086 = vmatprep.subr.bf16.mxu0 %v11454_v62  ;;  %4312 = vmatprep.subr.bf16.mxu1 %v11456_v3  ;;  %v221_v62 = vld [vmem:[#allocation5 + $0x120] sm:$0xff]  ;;  %v13863_v3 = vld [vmem:[#allocation2 + $0x8] ss:$16 sps:$4 sm:$0xff]  }
 0x145   :  { %v310_v48 = vld [vmem:[#allocation5 + $0x3e8] sm:$0xff] }
 0x146   :  { %4036 = vmatmul.mubr.bf16.gmra.mrb[52].mxu0 %v13857_v13  ;;  %4262 = vmatmul.mubr.bf16.gmra.mrb[52].mxu1 %v13857_v13  ;;  %v11073_v13 = vcombine.low %v221_v62, %v229_v63  ;;  %v318_v54 = vld [vmem:[#allocation5 + $0x428] sm:$0xff] }
 0x147   :  { %4087 = vmatpush1.bf16.msra.mxu0 %v11453_v5  ;;  %4313 = vmatpush1.bf16.msra.mxu1 %v11455_v6  ;;  %v11059_v5 = vcombine.low %v206_v55, %v214_v58  ;;  %v11074_v6 = vcombine.high %v221_v62, %v229_v63  ;;  %v11156_v55 = vcombine.high %v302_v45, %v310_v48  ;;  %v341_v62 = vld [vmem:[#allocation5 + $0x4e0] sm:$0xff]  ;;  %v334_v63 = vld [vmem:[#allocation5 + $0x4a8] sm:$0xff] }
 0x148   :  { %4088 = vmatprep.subr.bf16.mxu0 %v11470_v7  ;;  %4314 = vmatprep.subr.bf16.mxu1 %v11472_v11  ;;  %v237_v7 = vld [vmem:[#allocation5 + $0x1a0] sm:$0xff]  ;;  %v11076_v11 = vcombine.high %v222_v0, %v230_v2 }
 0x149   :  { %4045 = vmatprep.mubr.bf16.mxu0 %v13858_v20  ;;  %4271 = vmatprep.mubr.bf16.mxu1 %v13858_v20  ;;  %v262_v20 = vld [vmem:[#allocation5 + $0x268] sm:$0xff]  ;;  %v11089_v22 = vcombine.low %v237_v7, %v245_v8 }
 0x14b   :  { %4089 = vmatpush1.bf16.msra.mxu0 %v11469_v14  ;;  %4315 = vmatpush1.bf16.msra.mxu1 %v11471_v15  ;;  %v11075_v14 = vcombine.low %v222_v0, %v230_v2  ;;  %v11090_v15 = vcombine.high %v237_v7, %v245_v8  ;;  %v13870_v0 = vld [vmem:[#allocation2 + $0x8c] ss:$16 sps:$4 sm:$0xff]   ;;  %v357_v7 = vld [vmem:[#allocation5 + $0x560] sm:$0xff] }
 0x14c   :  { %4090 = vmatprep.subr.bf16.mxu0 %v11486_v16  ;;  %4316 = vmatprep.subr.bf16.mxu1 %v11488_v21  ;;  %v253_v16 = vld [vmem:[#allocation5 + $0x220] sm:$0xff]  ;;  %v13865_v21 = vld [vmem:[#allocation2 + $0x28] ss:$16 sps:$4 sm:$0xff]  }
 0x14d   :  { %v342_v2 = vld [vmem:[#allocation5 + $0x4e8] sm:$0xff] }
 0x14e   :  { %4046 = vmatmul.mubr.bf16.gmra.mrb[56].mxu0 %v13859_v31  ;;  %4272 = vmatmul.mubr.bf16.gmra.mrb[56].mxu1 %v13859_v31  ;;  %v11105_v31 = vcombine.low %v253_v16, %v261_v17  ;;  %v350_v8 = vld [vmem:[#allocation5 + $0x528] sm:$0xff] }
 0x14f   :  { %4091 = vmatpush1.bf16.msra.mxu0 %v11485_v23  ;;  %4317 = vmatpush1.bf16.msra.mxu1 %v11487_v24  ;;  %v11091_v23 = vcombine.low %v238_v9, %v246_v12  ;;  %v11106_v24 = vcombine.high %v253_v16, %v261_v17  ;;  %v11188_v9 = vcombine.high %v334_v63, %v342_v2  ;;  %v373_v16 = vld [vmem:[#allocation5 + $0x5e0] sm:$0xff]  ;;  %v366_v17 = vld [vmem:[#allocation5 + $0x5a8] sm:$0xff] }
 0x150   :  { %4092 = vmatprep.subr.bf16.mxu0 %v11502_v25  ;;  %4318 = vmatprep.subr.bf16.mxu1 %v11504_v29  ;;  %v269_v25 = vld [vmem:[#allocation5 + $0x2a0] sm:$0xff]  ;;  %v11108_v29 = vcombine.high %v254_v18, %v262_v20 }
 0x151   :  { %4055 = vmatprep.mubr.bf16.mxu0 %v13860_v38  ;;  %4281 = vmatprep.mubr.bf16.mxu1 %v13860_v38  ;;  %v294_v38 = vld [vmem:[#allocation5 + $0x368] sm:$0xff]  ;;  %v11121_v40 = vcombine.low %v269_v25, %v277_v26 }
 0x153   :  { %4093 = vmatpush1.bf16.msra.mxu0 %v11501_v32  ;;  %4319 = vmatpush1.bf16.msra.mxu1 %v11503_v33  ;;  %v11107_v32 = vcombine.low %v254_v18, %v262_v20  ;;  %v11122_v33 = vcombine.high %v269_v25, %v277_v26  ;;  %v13872_v18 = vld [vmem:[#allocation2 + $0xac] ss:$16 sps:$4 sm:$0xff]   ;;  %v389_v25 = vld [vmem:[#allocation5 + $0x660] sm:$0xff] }
 0x154   :  { %4094 = vmatprep.subr.bf16.mxu0 %v11518_v34  ;;  %4320 = vmatprep.subr.bf16.mxu1 %v11520_v39  ;;  %v285_v34 = vld [vmem:[#allocation5 + $0x320] sm:$0xff]  ;;  %v13867_v39 = vld [vmem:[#allocation2 + $0x48] ss:$16 sps:$4 sm:$0xff]  }
 0x155   :  { %v374_v20 = vld [vmem:[#allocation5 + $0x5e8] sm:$0xff] }
 0x156   :  { %4056 = vmatmul.mubr.bf16.gmra.mrb[60].mxu0 %v13861_v49  ;;  %4282 = vmatmul.mubr.bf16.gmra.mrb[60].mxu1 %v13861_v49  ;;  %v11137_v49 = vcombine.low %v285_v34, %v293_v35  ;;  %v382_v26 = vld [vmem:[#allocation5 + $0x628] sm:$0xff] }
 0x157   :  { %4095 = vmatpush1.bf16.msra.mxu0 %v11517_v41  ;;  %4321 = vmatpush1.bf16.msra.mxu1 %v11519_v42  ;;  %v11123_v41 = vcombine.low %v270_v27, %v278_v30  ;;  %v11138_v42 = vcombine.high %v285_v34, %v293_v35  ;;  %v11220_v27 = vcombine.high %v366_v17, %v374_v20  ;;  %v405_v34 = vld [vmem:[#allocation5 + $0x6e0] sm:$0xff]  ;;  %v398_v35 = vld [vmem:[#allocation5 + $0x6a8] sm:$0xff] }
 0x158   :  { %4096 = vmatprep.subr.bf16.mxu0 %v11534_v43  ;;  %4322 = vmatprep.subr.bf16.mxu1 %v11536_v47  ;;  %v301_v43 = vld [vmem:[#allocation5 + $0x3a0] sm:$0xff]  ;;  %v11140_v47 = vcombine.high %v286_v36, %v294_v38 }
 0x159   :  { %4098 = vmatprep.mubr.bf16.mxu0 %v13862_v56  ;;  %4324 = vmatprep.mubr.bf16.mxu1 %v13862_v56  ;;  %v326_v56 = vld [vmem:[#allocation5 + $0x468] sm:$0xff]  ;;  %v11153_v58 = vcombine.low %v301_v43, %v309_v44 }
 0x15b   :  { %4097 = vmatpush1.bf16.msra.mxu0 %v11533_v50  ;;  %4323 = vmatpush1.bf16.msra.mxu1 %v11535_v51  ;;  %v11139_v50 = vcombine.low %v286_v36, %v294_v38  ;;  %v11154_v51 = vcombine.high %v301_v43, %v309_v44  ;;  %v13874_v36 = vld [vmem:[#allocation2 + $0xcc] ss:$16 sps:$4 sm:$0xff]   ;;  %v421_v43 = vld [vmem:[#allocation5 + $0x760] sm:$0xff] }
 0x15c   :  { %4405 = vmatprep.subr.bf16.mxu0 %v11042_v52  ;;  %4631 = vmatprep.subr.bf16.mxu1 %v11044_v57  ;;  %v317_v52 = vld [vmem:[#allocation5 + $0x420] sm:$0xff]  ;;  %v13869_v57 = vld [vmem:[#allocation2 + $0x68] ss:$16 sps:$4 sm:$0xff]  }
 0x15d   :  { %v406_v38 = vld [vmem:[#allocation5 + $0x6e8] sm:$0xff] }
 0x15e   :  { %4099 = vmatmul.mubr.bf16.vlgmr.msra.gmra.mrb[32].mxu0 %v13863_v3  ;;  %4325 = vmatmul.mubr.bf16.vlgmr.msra.gmra.mrb[32].mxu1 %v13863_v3  ;;  %v11169_v3 = vcombine.low %v317_v52, %v325_v53  ;;  %v414_v44 = vld [vmem:[#allocation5 + $0x728] sm:$0xff] }
 0x15f   :  { %4406 = vmatpush1.bf16.msra.mxu0 %v11041_v59  ;;  %4632 = vmatpush1.bf16.msra.mxu1 %v11043_v60  ;;  %v11155_v59 = vcombine.low %v302_v45, %v310_v48  ;;  %v11170_v60 = vcombine.high %v317_v52, %v325_v53  ;;  %v11252_v45 = vcombine.high %v398_v35, %v406_v38  ;;  %v437_v52 = vld [vmem:[#allocation5 + $0x7e0] sm:$0xff]  ;;  %v430_v53 = vld [vmem:[#allocation5 + $0x7a8] sm:$0xff] }
 0x160   :  { %4407 = vmatprep.subr.bf16.mxu0 %v11058_v61  ;;  %4633 = vmatprep.subr.bf16.mxu1 %v11060_v1  ;;  %v333_v61 = vld [vmem:[#allocation5 + $0x4a0] sm:$0xff]  ;;  %v11172_v1 = vcombine.high %v318_v54, %v326_v56 }
 0x161   :  { %4108 = vmatprep.mubr.bf16.mxu0 %v13864_v10  ;;  %4334 = vmatprep.mubr.bf16.mxu1 %v13864_v10  ;;  %v358_v10 = vld [vmem:[#allocation5 + $0x568] sm:$0xff]  ;;  %v11185_v12 = vcombine.low %v333_v61, %v341_v62 }
 0x163   :  { %4408 = vmatpush1.bf16.msra.mxu0 %v11057_v4  ;;  %4634 = vmatpush1.bf16.msra.mxu1 %v11059_v5  ;;  %v11171_v4 = vcombine.low %v318_v54, %v326_v56  ;;  %v11186_v5 = vcombine.high %v333_v61, %v341_v62  ;;  %v13876_v54 = vld [vmem:[#allocation2 + $0xec] ss:$16 sps:$4 sm:$0xff]   ;;  %v453_v61 = vld [vmem:[#allocation5 + $0x860] sm:$0xff] }
 0x164   :  { %4409 = vmatprep.subr.bf16.mxu0 %v11074_v6  ;;  %4635 = vmatprep.subr.bf16.mxu1 %v11076_v11  ;;  %v349_v6 = vld [vmem:[#allocation5 + $0x520] sm:$0xff]  ;;  %v13871_v11 = vld [vmem:[#allocation2 + $0x88] ss:$16 sps:$4 sm:$0xff]  }
 0x165   :  { %v438_v56 = vld [vmem:[#allocation5 + $0x7e8] sm:$0xff] }
 0x166   :  { %4109 = vmatmul.mubr.bf16.gmra.mrb[36].mxu0 %v13865_v21  ;;  %4335 = vmatmul.mubr.bf16.gmra.mrb[36].mxu1 %v13865_v21  ;;  %v11201_v21 = vcombine.low %v349_v6, %v357_v7  ;;  %v446_v62 = vld [vmem:[#allocation5 + $0x828] sm:$0xff] }
 0x167   :  { %4410 = vmatpush1.bf16.msra.mxu0 %v11073_v13  ;;  %4636 = vmatpush1.bf16.msra.mxu1 %v11075_v14  ;;  %v11187_v13 = vcombine.low %v334_v63, %v342_v2  ;;  %v11202_v14 = vcombine.high %v349_v6, %v357_v7  ;;  %v11284_v63 = vcombine.high %v430_v53, %v438_v56  ;;  %v469_v6 = vld [vmem:[#allocation5 + $0x8e0] sm:$0xff]  ;;  %v462_v7 = vld [vmem:[#allocation5 + $0x8a8] sm:$0xff] }
 0x168   :  { %4411 = vmatprep.subr.bf16.mxu0 %v11090_v15  ;;  %4637 = vmatprep.subr.bf16.mxu1 %v11092_v19  ;;  %v365_v15 = vld [vmem:[#allocation5 + $0x5a0] sm:$0xff]  ;;  %v11204_v19 = vcombine.high %v350_v8, %v358_v10 }
 0x169   :  { %4118 = vmatprep.mubr.bf16.mxu0 %v13866_v28  ;;  %4344 = vmatprep.mubr.bf16.mxu1 %v13866_v28  ;;  %v390_v28 = vld [vmem:[#allocation5 + $0x668] sm:$0xff]  ;;  %v11217_v30 = vcombine.low %v365_v15, %v373_v16 }
 0x16b   :  { %4412 = vmatpush1.bf16.msra.mxu0 %v11089_v22  ;;  %4638 = vmatpush1.bf16.msra.mxu1 %v11091_v23  ;;  %v11203_v22 = vcombine.low %v350_v8, %v358_v10  ;;  %v11218_v23 = vcombine.high %v365_v15, %v373_v16  ;;  %v13878_v8 = vld [vmem:[#allocation2 + $0x4] ss:$16 sps:$4 sm:$0xff]   ;;  %v470_v10 = vld [vmem:[#allocation5 + $0x8e8] sm:$0xff] }
 0x16c   :  { %4413 = vmatprep.subr.bf16.mxu0 %v11106_v24  ;;  %4639 = vmatprep.subr.bf16.mxu1 %v11108_v29  ;;  %v381_v24 = vld [vmem:[#allocation5 + $0x620] sm:$0xff]  ;;  %v13873_v29 = vld [vmem:[#allocation2 + $0xa8] ss:$16 sps:$4 sm:$0xff]  }
 0x16d   :  { %v485_v15 = vld [vmem:[#allocation5 + $0x960] sm:$0xff]  ;;  %v478_v16 = vld [vmem:[#allocation5 + $0x928] sm:$0xff] }
 0x16e   :  { %4119 = vmatmul.mubr.bf16.gmra.mrb[40].mxu0 %v13867_v39  ;;  %4345 = vmatmul.mubr.bf16.gmra.mrb[40].mxu1 %v13867_v39  ;;  %v11233_v39 = vcombine.low %v381_v24, %v389_v25 }
 0x16f   :  { %4414 = vmatpush1.bf16.msra.mxu0 %v11105_v31  ;;  %4640 = vmatpush1.bf16.msra.mxu1 %v11107_v32  ;;  %v11219_v31 = vcombine.low %v366_v17, %v374_v20  ;;  %v11234_v32 = vcombine.high %v381_v24, %v389_v25  ;;  %v11316_v17 = vcombine.high %v462_v7, %v470_v10  ;;  %v501_v24 = vld [vmem:[#allocation5 + $0x9e0] sm:$0xff]  ;;  %v494_v25 = vld [vmem:[#allocation5 + $0x9a8] sm:$0xff] }
 0x170   :  { %4415 = vmatprep.subr.bf16.mxu0 %v11122_v33  ;;  %4641 = vmatprep.subr.bf16.mxu1 %v11124_v37  ;;  %v397_v33 = vld [vmem:[#allocation5 + $0x6a0] sm:$0xff]  ;;  %v11236_v37 = vcombine.high %v382_v26, %v390_v28 }
 0x171   :  { %4128 = vmatprep.mubr.bf16.mxu0 %v13868_v46  ;;  %4354 = vmatprep.mubr.bf16.mxu1 %v13868_v46  ;;  %v422_v46 = vld [vmem:[#allocation5 + $0x768] sm:$0xff]  ;;  %v11249_v48 = vcombine.low %v397_v33, %v405_v34 }
 0x173   :  { %4416 = vmatpush1.bf16.msra.mxu0 %v11121_v40  ;;  %4642 = vmatpush1.bf16.msra.mxu1 %v11123_v41  ;;  %v11235_v40 = vcombine.low %v382_v26, %v390_v28  ;;  %v11250_v41 = vcombine.high %v397_v33, %v405_v34  ;;  %v13880_v26 = vld [vmem:[#allocation2 + $0x24] ss:$16 sps:$4 sm:$0xff]   ;;  %v502_v28 = vld [vmem:[#allocation5 + $0x9e8] sm:$0xff] }
 0x174   :  { %4417 = vmatprep.subr.bf16.mxu0 %v11138_v42  ;;  %4643 = vmatprep.subr.bf16.mxu1 %v11140_v47  ;;  %v413_v42 = vld [vmem:[#allocation5 + $0x720] sm:$0xff]  ;;  %v13875_v47 = vld [vmem:[#allocation2 + $0xc8] ss:$16 sps:$4 sm:$0xff]  }
 0x175   :  { %v509_v33 = vld [vmem:[#allocation5 + $0xa20] sm:$0xff] }
 0x176   :  { %4129 = vmatmul.mubr.bf16.gmra.mrb[44].mxu0 %v13869_v57  ;;  %4355 = vmatmul.mubr.bf16.gmra.mrb[44].mxu1 %v13869_v57  ;;  %v11265_v57 = vcombine.low %v413_v42, %v421_v43  ;;  %v517_v34 = vld [vmem:[#allocation5 + $0xa60] sm:$0xff] }
 0x177   :  { %4418 = vmatpush1.bf16.msra.mxu0 %v11137_v49  ;;  %4644 = vmatpush1.bf16.msra.mxu1 %v11139_v50  ;;  %v11251_v49 = vcombine.low %v398_v35, %v406_v38  ;;  %v11266_v50 = vcombine.high %v413_v42, %v421_v43  ;;  %v510_v35 = vld [vmem:[#allocation5 + $0xa28] sm:$0xff]  ;;  %v13881_v38 = vld [vmem:[#allocation2 + $0x20] ss:$16 sps:$4 sm:$0xff]   ;;  %v11362_v42 = vcombine.high %v509_v33, %v517_v34 }
 0x178   :  { %4419 = vmatprep.subr.bf16.mxu0 %v11154_v51  ;;  %4645 = vmatprep.subr.bf16.mxu1 %v11156_v55  ;;  %v429_v51 = vld [vmem:[#allocation5 + $0x7a0] sm:$0xff]  ;;  %v11268_v55 = vcombine.high %v414_v44, %v422_v46 }
 0x179   :  { %4138 = vmatprep.mubr.bf16.mxu0 %v13870_v0  ;;  %4364 = vmatprep.mubr.bf16.mxu1 %v13870_v0  ;;  %v454_v0 = vld [vmem:[#allocation5 + $0x868] sm:$0xff]  ;;  %v11281_v2 = vcombine.low %v429_v51, %v437_v52  ;;  %v525_v43 = vld [vmem:[#allocation5 + $0xaa0] sm:$0xff] }
 0x17b   :  { %4420 = vmatpush1.bf16.msra.mxu0 %v11153_v58  ;;  %4646 = vmatpush1.bf16.msra.mxu1 %v11155_v59  ;;  %v11267_v58 = vcombine.low %v414_v44, %v422_v46  ;;  %v11282_v59 = vcombine.high %v429_v51, %v437_v52  ;;  %v533_v44 = vld [vmem:[#allocation5 + $0xae0] sm:$0xff]  ;;  %v11361_v51 = vcombine.low %v509_v33, %v517_v34 }
 0x17c   :  { %4421 = vmatprep.subr.bf16.mxu0 %v11170_v60  ;;  %4647 = vmatprep.subr.bf16.mxu1 %v11172_v1  ;;  %v445_v60 = vld [vmem:[#allocation5 + $0x820] sm:$0xff]  ;;  %v13877_v1 = vld [vmem:[#allocation2 + $0xe8] ss:$16 sps:$4 sm:$0xff]  }
 0x17d   :  { %v13882_v46 = vld [vmem:[#allocation2 + $0x44] ss:$16 sps:$4 sm:$0xff]  }
 0x17e   :  { %4139 = vmatmul.mubr.bf16.gmra.mrb[48].mxu0 %v13871_v11  ;;  %4365 = vmatmul.mubr.bf16.gmra.mrb[48].mxu1 %v13871_v11  ;;  %v11297_v11 = vcombine.low %v445_v60, %v453_v61 }
 0x17f   :  { %4422 = vmatpush1.bf16.msra.mxu0 %v11169_v3  ;;  %4648 = vmatpush1.bf16.msra.mxu1 %v11171_v4  ;;  %v11283_v3 = vcombine.low %v430_v53, %v438_v56  ;;  %v11298_v4 = vcombine.high %v445_v60, %v453_v61  ;;  %v11378_v56 = vcombine.high %v525_v43, %v533_v44  ;;  %v14206_v61 = vld [vmem:[#allocation5 + $0xb68] sm:$0xff] }
 0x180   :  { %4423 = vmatprep.subr.bf16.mxu0 %v11186_v5  ;;  %4649 = vmatprep.subr.bf16.mxu1 %v11188_v9  ;;  %v461_v5 = vld [vmem:[#allocation5 + $0x8a0] sm:$0xff]  ;;  %v11300_v9 = vcombine.high %v446_v62, %v454_v0 }
 0x181   :  { %4148 = vmatprep.mubr.bf16.mxu0 %v13872_v18  ;;  %4374 = vmatprep.mubr.bf16.mxu1 %v13872_v18  ;;  %v486_v18 = vld [vmem:[#allocation5 + $0x968] sm:$0xff]  ;;  %v11313_v20 = vcombine.low %v461_v5, %v469_v6 }
 0x183   :  { %4424 = vmatpush1.bf16.msra.mxu0 %v11185_v12  ;;  %4650 = vmatpush1.bf16.msra.mxu1 %v11187_v13  ;;  %v11299_v12 = vcombine.low %v446_v62, %v454_v0  ;;  %v11314_v13 = vcombine.high %v461_v5, %v469_v6  ;;  %v13883_v62 = vld [vmem:[#allocation2 + $0x40] ss:$16 sps:$4 sm:$0xff]  }
 0x184   :  { %4425 = vmatprep.subr.bf16.mxu0 %v11202_v14  ;;  %4651 = vmatprep.subr.bf16.mxu1 %v11204_v19  ;;  %v477_v14 = vld [vmem:[#allocation5 + $0x920] sm:$0xff] }
 0x185   :  { %v13879_v19 = vld [vmem:[#allocation2] ss:$16 sps:$4 sm:$0xff]  }
 0x186   :  { %4149 = vmatmul.mubr.bf16.gmra.mrb[52].mxu0 %v13873_v29  ;;  %4375 = vmatmul.mubr.bf16.gmra.mrb[52].mxu1 %v13873_v29  ;;  %v701_v29 = vlaneseq  ;;  %v14222_v6 = vld [vmem:[#allocation5 + $0xba0] sm:$0xff] }
 0x187   :  { %4426 = vmatpush1.bf16.msra.mxu0 %v11201_v21  ;;  %4652 = vmatpush1.bf16.msra.mxu1 %v11203_v22  ;;  %v11315_v21 = vcombine.low %v462_v7, %v470_v10  ;;  %v11330_v22 = vcombine.high %v477_v14, %v485_v15  ;;  %v14224_v7 = vld [vmem:[#allocation5 + $0xbe0] sm:$0xff] }
 0x188   :  { %4427 = vmatprep.subr.bf16.mxu0 %v11218_v23  ;;  %4653 = vmatprep.subr.bf16.mxu1 %v11220_v27  ;;  %v493_v23 = vld [vmem:[#allocation5 + $0x9a0] sm:$0xff]  ;;  %v11332_v27 = vcombine.high %v478_v16, %v486_v18  ;;  %v11409_v33 = vcombine.low %v14222_v6, %v14224_v7 }
 0x189   :  { %4158 = vmatprep.mubr.bf16.mxu0 %v13874_v36  ;;  %4384 = vmatprep.mubr.bf16.mxu1 %v13874_v36  ;;  %v11348_v36 = vcombine.high %v494_v25, %v502_v28  ;;  %v13884_v10 = vld [vmem:[#allocation2 + $0x64] ss:$16 sps:$4 sm:$0xff]  }
 0x18b   :  { %4428 = vmatpush1.bf16.msra.mxu0 %v11217_v30  ;;  %4654 = vmatpush1.bf16.msra.mxu1 %v11219_v31  ;;  %v11329_v30 = vcombine.low %v477_v14, %v485_v15  ;;  %v11331_v31 = vcombine.low %v478_v16, %v486_v18 }
 0x18c   :  { %4429 = vmatprep.subr.bf16.mxu0 %v11234_v32  ;;  %4655 = vmatprep.subr.bf16.mxu1 %v11236_v37  ;;  %v11346_v32 = vcombine.high %v493_v23, %v501_v24  ;;  %v518_v37 = vld [vmem:[#allocation5 + $0xa68] sm:$0xff] }
 0x18e   :  { %4159 = vmatmul.mubr.bf16.gmra.mrb[56].mxu0 %v13875_v47  ;;  %4385 = vmatmul.mubr.bf16.gmra.mrb[56].mxu1 %v13875_v47  ;;  %v11364_v47 = vcombine.high %v510_v35, %v518_v37 }
 0x18f   :  { %4430 = vmatpush1.bf16.msra.mxu0 %v11233_v39  ;;  %4656 = vmatpush1.bf16.msra.mxu1 %v11235_v40  ;;  %v14186_v39 = vshrl.u32 %v701_v29, 7  ;;  %v11345_v40 = vcombine.low %v493_v23, %v501_v24  ;;  %v14247_v29 = vld [vmem:[#allocation5 + $0xc28] sm:$0xff] }
 0x190   :  { %4431 = vmatprep.subr.bf16.mxu0 %v11250_v41  ;;  %4657 = vmatprep.subr.bf16.mxu1 %v11252_v45  ;;  %v11347_v41 = vcombine.low %v494_v25, %v502_v28  ;;  %v526_v45 = vld [vmem:[#allocation5 + $0xaa8] sm:$0xff]  ;;  %v14245_v28 = vld [vmem:[#allocation5 + $0xc60] sm:$0xff] }
 0x191   :  { %4168 = vmatprep.mubr.bf16.mxu0 %v13876_v54  ;;  %4394 = vmatprep.mubr.bf16.mxu1 %v13876_v54  ;;  %15578 = vst [vmem:[#allocation16_spill] sm:$0xff] %v14186_v39  ;;  %v14192_v52 = vsub.s32 2, %v14186_v39  ;;  %v14195_v53 = vsub.s32 1, %v14186_v39  ;;  %v11363_v54 = vcombine.low %v510_v35, %v518_v37  ;;  %v14255_v35 = vld [vmem:[#allocation5 + $0xc68] sm:$0xff] }
 0x193   :  { %4432 = vmatpush1.bf16.msra.mxu0 %v11249_v48  ;;  %4658 = vmatpush1.bf16.msra.mxu1 %v11251_v49  ;;  %v697_v48 = vld [vmem:[#allocation7] sm:$0xff]  ;;  %v534_v49 = vld [vmem:[#allocation5 + $0xae8] sm:$0xff]  ;;  %15580 = vst [vmem:[#allocation18_spill] sm:$0xff] %v14192_v52  ;;  %15581 = vst [vmem:[#allocation19_spill] sm:$0xff] %v14195_v53 }
 0x194   :  { %4433 = vmatprep.subr.bf16.mxu0 %v11266_v50  ;;  %4659 = vmatprep.subr.bf16.mxu1 %v11268_v55  ;;  %v14189_v50 = vsub.s32 0, %v14186_v39  ;;  %v14198_v55 = vsub.s32 3, %v14186_v39  ;;  %v11380_v60 = vcombine.high %v526_v45, %v534_v49  ;;  %v14212_v0 = vrot.slane %v697_v48, %v14192_v52 }
 0x196   :  { %4169 = vmatmul.mubr.bf16.gmra.mrb[60].mxu0 %v13877_v1  ;;  %4395 = vmatmul.mubr.bf16.gmra.mrb[60].mxu1 %v13877_v1  ;;  %15579 = vst [vmem:[#allocation17_spill] sm:$0xff] %v14189_v50  ;;  %15582 = vst [vmem:[#allocation20_spill] sm:$0xff] %v14198_v55  ;;  %v14215_v1 = vrot.slane %v697_v48, %v14195_v53 }
 0x197   :  { %4434 = vmatpush1.bf16.msra.mxu0 %v11265_v57  ;;  %4660 = vmatpush1.bf16.msra.mxu1 %v11267_v58  ;;  %v14200_v57 = vld [vmem:[#allocation5 + $0xb20] sm:$0xff] }
 0x198   :  { %4435 = vmatprep.subr.bf16.mxu0 %v11282_v59  ;;  %4661 = vmatprep.subr.bf16.mxu1 %v11284_v63  ;;  %v14202_v58 = vld [vmem:[#allocation5 + $0xb60] sm:$0xff]  ;;  %v14204_v59 = vld [vmem:[#allocation5 + $0xb28] sm:$0xff]  ;;  %v14209_v63 = vrot.slane %v697_v48, %v14189_v50 }
 0x199   :  { %4437 = vmatprep.mubr.bf16.mxu0 %v13878_v8  ;;  %4663 = vmatprep.mubr.bf16.mxu1 %v13878_v8  ;;  %v11394_v5 = vcombine.high %v14200_v57, %v14202_v58  ;;  %v14226_v8 = vld [vmem:[#allocation5 + $0xba8] sm:$0xff] }
 0x19b   :  { %4436 = vmatpush1.bf16.msra.mxu0 %v11281_v2  ;;  %4662 = vmatpush1.bf16.msra.mxu1 %v11283_v3  ;;  %v11377_v2 = vcombine.low %v525_v43, %v533_v44  ;;  %v14218_v3 = vrot.slane %v697_v48, %v14198_v55 }
 0x19c   :  { %4518 = vmatprep.subr.bf16.mxu0 %v11298_v4  ;;  %4744 = vmatprep.subr.bf16.mxu1 %v11300_v9  ;;  %v11379_v4 = vcombine.low %v526_v45, %v534_v49 }
 0x19e   :  { %4438 = vmatmul.mubr.bf16.vlgmr.msra.gmra.mrb[64].mxu0 %v13879_v19  ;;  %4664 = vmatmul.mubr.bf16.vlgmr.msra.gmra.mrb[64].mxu1 %v13879_v19 }
 0x19f   :  { %4519 = vmatpush1.bf16.msra.mxu0 %v11297_v11  ;;  %4745 = vmatpush1.bf16.msra.mxu1 %v11299_v12  ;;  %v11396_v11 = vcombine.high %v14204_v59, %v14206_v61  ;;  %v14230_v12 = vld [vmem:[#allocation5 + $0xbe8] sm:$0xff] }
 0x1a0   :  { %4520 = vmatprep.subr.bf16.mxu0 %v11314_v13  ;;  %4746 = vmatprep.subr.bf16.mxu1 %v11316_v17  ;;  %v11412_v34 = vcombine.high %v14226_v8, %v14230_v12  ;;  %v11411_v45 = vcombine.low %v14226_v8, %v14230_v12  ;;  %v11427_v12 = vcombine.low %v14247_v29, %v14255_v35 }
 0x1a1   :  { %4447 = vmatprep.mubr.bf16.mxu0 %v13880_v26  ;;  %4673 = vmatprep.mubr.bf16.mxu1 %v13880_v26  ;;  %v11410_v26 = vcombine.high %v14222_v6, %v14224_v7 }
 0x1a3   :  { %4521 = vmatpush1.bf16.msra.mxu0 %v11313_v20  ;;  %4747 = vmatpush1.bf16.msra.mxu1 %v11315_v21  ;;  %v11393_v20 = vcombine.low %v14200_v57, %v14202_v58  ;;  %v11395_v21 = vcombine.low %v14204_v59, %v14206_v61  ;;  %v11428_v61 = vcombine.high %v14247_v29, %v14255_v35 }
 0x1a4   :  { %4522 = vmatprep.subr.bf16.mxu0 %v11330_v22  ;;  %4748 = vmatprep.subr.bf16.mxu1 %v11332_v27  ;;  %v14243_v27 = vld [vmem:[#allocation5 + $0xc20] sm:$0xff] }
 0x1a5   :  { %v11426_v49 = vcombine.high %v14243_v27, %v14245_v28 }
 0x1a6   :  { %4448 = vmatmul.mubr.bf16.gmra.mrb[68].mxu0 %v13881_v38  ;;  %4674 = vmatmul.mubr.bf16.gmra.mrb[68].mxu1 %v13881_v38 }
 0x1a7   :  { %4523 = vmatpush1.bf16.msra.mxu0 %v11329_v30  ;;  %4749 = vmatpush1.bf16.msra.mxu1 %v11331_v31 }
 0x1a8   :  { %4524 = vmatprep.subr.bf16.mxu0 %v11346_v32  ;;  %4750 = vmatprep.subr.bf16.mxu1 %v11348_v36 }
 0x1a9   :  { %4457 = vmatprep.mubr.bf16.mxu0 %v13882_v46  ;;  %4683 = vmatprep.mubr.bf16.mxu1 %v13882_v46 }
 0x1ab   :  { %4525 = vmatpush1.bf16.msra.mxu0 %v11345_v40  ;;  %4751 = vmatpush1.bf16.msra.mxu1 %v11347_v41  ;;  %v13885_v41 = vld [vmem:[#allocation2 + $0x60] ss:$16 sps:$4 sm:$0xff]  }
 0x1ac   :  { %4526 = vmatprep.subr.bf16.mxu0 %v11362_v42  ;;  %4752 = vmatprep.subr.bf16.mxu1 %v11364_v47 }
 0x1ae   :  { %4458 = vmatmul.mubr.bf16.gmra.mrb[72].mxu0 %v13883_v62  ;;  %4684 = vmatmul.mubr.bf16.gmra.mrb[72].mxu1 %v13883_v62  ;;  %v14276_v62 = vld [vmem:[#allocation5 + $0xce8] sm:$0xff] }
 0x1af   :  { %4527 = vmatpush1.bf16.msra.mxu0 %v11361_v51  ;;  %4753 = vmatpush1.bf16.msra.mxu1 %v11363_v54  ;;  %v14264_v51 = vld [vmem:[#allocation5 + $0xca0] sm:$0xff] }
 0x1b0   :  { %4528 = vmatprep.subr.bf16.mxu0 %v11378_v56  ;;  %4754 = vmatprep.subr.bf16.mxu1 %v11380_v60  ;;  %v14266_v54 = vld [vmem:[#allocation5 + $0xce0] sm:$0xff]  ;;  %v14268_v56 = vld [vmem:[#allocation5 + $0xca8] sm:$0xff] }
 0x1b1   :  { %v3648_v9 = vpop.f32.mrb[0].mxu0  ;;  %4467 = vmatprep.mubr.bf16.mxu0 %v13884_v10  ;;  %v3874_v14 = vpop.f32.mrb[0].mxu1  ;;  %4693 = vmatprep.mubr.bf16.mxu1 %v13884_v10  ;;  %v13886_v60 = vld [vmem:[#allocation2 + $0x84] ss:$16 sps:$4 sm:$0xff]   ;;  %v11443_v29 = vcombine.low %v14268_v56, %v14276_v62 }
 0x1b2   :  { %v12057_v13 = vadd.f32 %v3648_v9, %v14209_v63  ;;  %v3650_v15 = vpop.f32.mrb[1].mxu0  ;;  %v12089_v16 = vadd.f32 %v3874_v14, %v14212_v0  ;;  %v3876_v18 = vpop.f32.mrb[1].mxu1 }
 0x1b3   :  { %v12058_v17 = vadd.f32 %v3650_v15, %v14215_v1  ;;  %v3652_v19 = vpop.f32.mrb[2].mxu0  ;;  %4529 = vmatpush1.bf16.msra.mxu0 %v11377_v2  ;;  %v12090_v22 = vadd.f32 %v3876_v18, %v14218_v3  ;;  %v3878_v24 = vpop.f32.mrb[2].mxu1  ;;  %4755 = vmatpush1.bf16.msra.mxu1 %v11379_v4 }
 0x1b4   :  { %v12059_v23 = vadd.f32 %v3652_v19, %v14209_v63  ;;  %v3654_v25 = vpop.f32.mrb[3].mxu0  ;;  %4530 = vmatprep.subr.bf16.mxu0 %v11394_v5  ;;  %v12091_v30 = vadd.f32 %v3878_v24, %v14212_v0  ;;  %v3880_v32 = vpop.f32.mrb[3].mxu1  ;;  %4756 = vmatprep.subr.bf16.mxu1 %v11396_v11  ;;  %v5309_v36 = vmax.f32 %v12057_v13, 0.0  ;;  %v5311_v37 = vmax.f32 %v12089_v16, 0.0  ;;  %v14299_v24 = vld [vmem:[#allocation5 + $0xd60] sm:$0xff] }
 0x1b5   :  { %v12060_v31 = vadd.f32 %v3654_v25, %v14215_v1  ;;  %v12092_v40 = vadd.f32 %v3880_v32, %v14218_v3  ;;  %v5310_v42 = vmax.f32 %v12058_v17, 0.0  ;;  %v5312_v46 = vmax.f32 %v12090_v22, 0.0 }
 0x1b6   :  { %v5325_v38 = vmax.f32 %v12059_v23, 0.0  ;;  %4468 = vmatmul.mubr.bf16.gmra.mrb[76].mxu0 %v13885_v41  ;;  %v5327_v43 = vmax.f32 %v12091_v30, 0.0  ;;  %4694 = vmatmul.mubr.bf16.gmra.mrb[76].mxu1 %v13885_v41  ;;  %v11425_v11 = vcombine.low %v14243_v27, %v14245_v28  ;;  %v11442_v17 = vcombine.high %v14264_v51, %v14266_v54  ;;  %v14297_v23 = vld [vmem:[#allocation5 + $0xd20] sm:$0xff]  ;;  %v14304_v30 = vld [vmem:[#allocation5 + $0xd28] sm:$0xff] }
 0x1b7   :  { %v5326_v44 = vmax.f32 %v12060_v31, 0.0  ;;  %4531 = vmatpush1.bf16.msra.mxu0 %v11393_v20  ;;  %v5328_v48 = vmax.f32 %v12092_v40, 0.0  ;;  %4757 = vmatpush1.bf16.msra.mxu1 %v11395_v21  ;;  %v11441_v21 = vcombine.low %v14264_v51, %v14266_v54  ;;  %v11444_v22 = vcombine.high %v14268_v56, %v14276_v62  ;;  %v13887_v28 = vld [vmem:[#allocation2 + $0x80] ss:$16 sps:$4 sm:$0xff]   ;;  %v14306_v31 = vld [vmem:[#allocation5 + $0xd68] sm:$0xff] }
 0x1b8   :  { %v14260_v47 = vpack.c.bf16 %v5325_v38, %v5309_v36  ;;  %4532 = vmatprep.subr.bf16.mxu0 %v11410_v26  ;;  %v14270_v57 = vpack.c.bf16 %v5327_v43, %v5311_v37  ;;  %4758 = vmatprep.subr.bf16.mxu1 %v11412_v34  ;;  %v11458_v40 = vcombine.high %v14297_v23, %v14299_v24 }
 0x1b9   :  { %v14272_v58 = vpack.c.bf16 %v5326_v44, %v5310_v42  ;;  %v3658_v59 = vpop.f32.mrb[4].mxu0  ;;  %4477 = vmatprep.mubr.bf16.mxu0 %v13886_v60  ;;  %v14278_v2 = vpack.c.bf16 %v5328_v48, %v5312_v46  ;;  %v3884_v5 = vpop.f32.mrb[4].mxu1  ;;  %4703 = vmatprep.mubr.bf16.mxu1 %v13886_v60  ;;  %v13888_v44 = vld [vmem:[#allocation2 + $0xa4] ss:$16 sps:$4 sm:$0xff]   ;;  %v14327_v60 = vld [vmem:[#allocation5 + $0xde8] sm:$0xff] }
 0x1ba   :  { %v12061_v4 = vadd.f32 %v3658_v59, %v14209_v63  ;;  %v3660_v6 = vpop.f32.mrb[5].mxu0  ;;  %v12093_v7 = vadd.f32 %v3884_v5, %v14212_v0  ;;  %v3886_v9 = vpop.f32.mrb[5].mxu1  ;;  %v14318_v46 = vld [vmem:[#allocation5 + $0xda0] sm:$0xff]  ;;  %v14325_v59 = vld [vmem:[#allocation5 + $0xda8] sm:$0xff] }
 0x1bb   :  { %v12062_v8 = vadd.f32 %v3660_v6, %v14215_v1  ;;  %v3662_v10 = vpop.f32.mrb[6].mxu0  ;;  %4533 = vmatpush1.bf16.msra.mxu0 %v11409_v33  ;;  %v12094_v13 = vadd.f32 %v3886_v9, %v14218_v3  ;;  %v3888_v15 = vpop.f32.mrb[6].mxu1  ;;  %4759 = vmatpush1.bf16.msra.mxu1 %v11411_v45  ;;  %v11460_v45 = vcombine.high %v14304_v30, %v14306_v31  ;;  %v14320_v48 = vld [vmem:[#allocation5 + $0xde0] sm:$0xff] }
 0x1bc   :  { %v12063_v14 = vadd.f32 %v3662_v10, %v14209_v63  ;;  %v3664_v16 = vpop.f32.mrb[7].mxu0  ;;  %4534 = vmatprep.subr.bf16.mxu0 %v11426_v49  ;;  %v12095_v18 = vadd.f32 %v3888_v15, %v14212_v0  ;;  %v3890_v20 = vpop.f32.mrb[7].mxu1  ;;  %4760 = vmatprep.subr.bf16.mxu1 %v11428_v61  ;;  %v5341_v25 = vmax.f32 %v12061_v4, 0.0  ;;  %v5343_v32 = vmax.f32 %v12093_v7, 0.0 }
 0x1bd   :  { %v12064_v19 = vadd.f32 %v3664_v16, %v14215_v1  ;;  %v12096_v27 = vadd.f32 %v3890_v20, %v14218_v3  ;;  %v5342_v33 = vmax.f32 %v12062_v8, 0.0  ;;  %v5344_v36 = vmax.f32 %v12094_v13, 0.0 }
 0x1be   :  { %v5357_v26 = vmax.f32 %v12063_v14, 0.0  ;;  %4478 = vmatmul.mubr.bf16.gmra.mrb[80].mxu0 %v13887_v28  ;;  %v5359_v34 = vmax.f32 %v12095_v18, 0.0  ;;  %4704 = vmatmul.mubr.bf16.gmra.mrb[80].mxu1 %v13887_v28  ;;  %v11457_v6 = vcombine.low %v14297_v23, %v14299_v24  ;;  %v11459_v7 = vcombine.low %v14304_v30, %v14306_v31  ;;  %v14345_v18 = vld [vmem:[#allocation5 + $0xe20] sm:$0xff] }
 0x1bf   :  { %v5358_v35 = vmax.f32 %v12064_v19, 0.0  ;;  %4535 = vmatpush1.bf16.msra.mxu0 %v11425_v11  ;;  %v5360_v38 = vmax.f32 %v12096_v27, 0.0  ;;  %4761 = vmatpush1.bf16.msra.mxu1 %v11427_v12  ;;  %v11474_v12 = vcombine.high %v14318_v46, %v14320_v48  ;;  %v11473_v16 = vcombine.low %v14318_v46, %v14320_v48  ;;  %v14347_v19 = vld [vmem:[#allocation5 + $0xe60] sm:$0xff] }
 0x1c0   :  { %v14308_v37 = vpack.c.bf16 %v5357_v26, %v5341_v25  ;;  %4536 = vmatprep.subr.bf16.mxu0 %v11442_v17  ;;  %v14312_v41 = vpack.c.bf16 %v5359_v34, %v5343_v32  ;;  %4762 = vmatprep.subr.bf16.mxu1 %v11444_v22  ;;  %v11476_v17 = vcombine.high %v14325_v59, %v14327_v60  ;;  %v13889_v23 = vld [vmem:[#allocation2 + $0xa0] ss:$16 sps:$4 sm:$0xff]   ;;  %v14352_v25 = vld [vmem:[#allocation5 + $0xe28] sm:$0xff] }
 0x1c1   :  { %v14314_v42 = vpack.c.bf16 %v5358_v35, %v5342_v33  ;;  %v3668_v43 = vpop.f32.mrb[8].mxu0  ;;  %4487 = vmatprep.mubr.bf16.mxu0 %v13888_v44  ;;  %v14322_v49 = vpack.c.bf16 %v5360_v38, %v5344_v36  ;;  %v3894_v54 = vpop.f32.mrb[8].mxu1  ;;  %4713 = vmatprep.mubr.bf16.mxu1 %v13888_v44  ;;  %v11475_v24 = vcombine.low %v14325_v59, %v14327_v60  ;;  %v14354_v26 = vld [vmem:[#allocation5 + $0xe68] sm:$0xff]  ;;  %v14366_v44 = vld [vmem:[#allocation5 + $0xea0] sm:$0xff] }
 0x1c2   :  { %v12065_v51 = vadd.f32 %v3668_v43, %v14209_v63  ;;  %v3670_v56 = vpop.f32.mrb[9].mxu0  ;;  %v12097_v61 = vadd.f32 %v3894_v54, %v14212_v0  ;;  %v3896_v4 = vpop.f32.mrb[9].mxu1  ;;  %v11490_v34 = vcombine.high %v14345_v18, %v14347_v19  ;;  %v11492_v43 = vcombine.high %v14352_v25, %v14354_v26  ;;  %v14375_v59 = vld [vmem:[#allocation5 + $0xee8] sm:$0xff] }
 0x1c3   :  { %v12066_v62 = vadd.f32 %v3670_v56, %v14215_v1  ;;  %v3672_v5 = vpop.f32.mrb[10].mxu0  ;;  %4537 = vmatpush1.bf16.msra.mxu0 %v11441_v21  ;;  %v12098_v8 = vadd.f32 %v3896_v4, %v14218_v3  ;;  %v3898_v10 = vpop.f32.mrb[10].mxu1  ;;  %4763 = vmatpush1.bf16.msra.mxu1 %v11443_v29  ;;  %v14373_v56 = vld [vmem:[#allocation5 + $0xea8] sm:$0xff] }
 0x1c4   :  { %v12067_v9 = vadd.f32 %v3672_v5, %v14209_v63  ;;  %v3674_v11 = vpop.f32.mrb[11].mxu0  ;;  %4538 = vmatprep.subr.bf16.mxu0 %v11458_v40  ;;  %v12099_v13 = vadd.f32 %v3898_v10, %v14212_v0  ;;  %v3900_v15 = vpop.f32.mrb[11].mxu1  ;;  %4764 = vmatprep.subr.bf16.mxu1 %v11460_v45  ;;  %v5373_v20 = vmax.f32 %v12065_v51, 0.0  ;;  %v5375_v27 = vmax.f32 %v12097_v61, 0.0  ;;  %v13890_v40 = vld [vmem:[#allocation2 + $0xc4] ss:$16 sps:$4 sm:$0xff]  }
 0x1c5   :  { %v12068_v14 = vadd.f32 %v3674_v11, %v14215_v1  ;;  %v12100_v22 = vadd.f32 %v3900_v15, %v14218_v3  ;;  %v5374_v28 = vmax.f32 %v12066_v62, 0.0  ;;  %v5376_v31 = vmax.f32 %v12098_v8, 0.0  ;;  %v14368_v45 = vld [vmem:[#allocation5 + $0xee0] sm:$0xff] }
 0x1c6   :  { %v5389_v21 = vmax.f32 %v12067_v9, 0.0  ;;  %4488 = vmatmul.mubr.bf16.gmra.mrb[84].mxu0 %v13889_v23  ;;  %v5391_v29 = vmax.f32 %v12099_v13, 0.0  ;;  %4714 = vmatmul.mubr.bf16.gmra.mrb[84].mxu1 %v13889_v23  ;;  %v11489_v5 = vcombine.low %v14345_v18, %v14347_v19  ;;  %v11506_v11 = vcombine.high %v14366_v44, %v14368_v45  ;;  %v14395_v18 = vld [vmem:[#allocation5 + $0xf60] sm:$0xff] }
 0x1c7   :  { %v5390_v30 = vmax.f32 %v12068_v14, 0.0  ;;  %4539 = vmatpush1.bf16.msra.mxu0 %v11457_v6  ;;  %v5392_v33 = vmax.f32 %v12100_v22, 0.0  ;;  %4765 = vmatpush1.bf16.msra.mxu1 %v11459_v7  ;;  %v11491_v6 = vcombine.low %v14352_v25, %v14354_v26  ;;  %v11505_v15 = vcombine.low %v14366_v44, %v14368_v45  ;;  %v13891_v22 = vld [vmem:[#allocation2 + $0xc0] ss:$16 sps:$4 sm:$0xff]   ;;  %v14402_v25 = vld [vmem:[#allocation5 + $0xf68] sm:$0xff] }
 0x1c8   :  { %v14356_v32 = vpack.c.bf16 %v5389_v21, %v5373_v20  ;;  %4540 = vmatprep.subr.bf16.mxu0 %v11474_v12  ;;  %v14360_v35 = vpack.c.bf16 %v5391_v29, %v5375_v27  ;;  %4766 = vmatprep.subr.bf16.mxu1 %v11476_v17  ;;  %v14393_v17 = vld [vmem:[#allocation5 + $0xf20] sm:$0xff]  ;;  %v11507_v23 = vcombine.low %v14373_v56, %v14375_v59 }
 0x1c9   :  { %v14362_v36 = vpack.c.bf16 %v5390_v30, %v5374_v28  ;;  %v3678_v38 = vpop.f32.mrb[12].mxu0  ;;  %4497 = vmatprep.mubr.bf16.mxu0 %v13890_v40  ;;  %v14370_v46 = vpack.c.bf16 %v5392_v33, %v5376_v31  ;;  %v3904_v51 = vpop.f32.mrb[12].mxu1  ;;  %4723 = vmatprep.mubr.bf16.mxu1 %v13890_v40  ;;  %v13892_v44 = vld [vmem:[#allocation2 + $0xe4] ss:$16 sps:$4 sm:$0xff]  }
 0x1ca   :  { %v12069_v48 = vadd.f32 %v3678_v38, %v14209_v63  ;;  %v3680_v54 = vpop.f32.mrb[13].mxu0  ;;  %v12101_v60 = vadd.f32 %v3904_v51, %v14212_v0  ;;  %v3906_v62 = vpop.f32.mrb[13].mxu1  ;;  %v14416_v51 = vld [vmem:[#allocation5 + $0xfe0] sm:$0xff] }
 0x1cb   :  { %v12070_v61 = vadd.f32 %v3680_v54, %v14215_v1  ;;  %v3682_v4 = vpop.f32.mrb[14].mxu0  ;;  %4541 = vmatpush1.bf16.msra.mxu0 %v11473_v16  ;;  %v12102_v7 = vadd.f32 %v3906_v62, %v14218_v3  ;;  %v3908_v9 = vpop.f32.mrb[14].mxu1  ;;  %4767 = vmatpush1.bf16.msra.mxu1 %v11475_v24  ;;  %v11508_v16 = vcombine.high %v14373_v56, %v14375_v59  ;;  %v14400_v24 = vld [vmem:[#allocation5 + $0xf28] sm:$0xff] }
 0x1cc   :  { %v12071_v8 = vadd.f32 %v3682_v4, %v14209_v63  ;;  %v3684_v10 = vpop.f32.mrb[15].mxu0  ;;  %4542 = vmatprep.subr.bf16.mxu0 %v11490_v34  ;;  %v12103_v12 = vadd.f32 %v3908_v9, %v14212_v0  ;;  %v3910_v14 = vpop.f32.mrb[15].mxu1  ;;  %4768 = vmatprep.subr.bf16.mxu1 %v11492_v43  ;;  %v5405_v19 = vmax.f32 %v12069_v48, 0.0  ;;  %v5407_v26 = vmax.f32 %v12101_v60, 0.0  ;;  %v14414_v48 = vld [vmem:[#allocation5 + $0xfa0] sm:$0xff]  ;;  %v14423_v62 = vld [vmem:[#allocation5 + $0xfe8] sm:$0xff] }
 0x1cd   :  { %v12072_v13 = vadd.f32 %v3684_v10, %v14215_v1  ;;  %v12104_v21 = vadd.f32 %v3910_v14, %v14218_v3  ;;  %v5406_v27 = vmax.f32 %v12070_v61, 0.0  ;;  %v5408_v30 = vmax.f32 %v12102_v7, 0.0  ;;  %v14421_v61 = vld [vmem:[#allocation5 + $0xfa8] sm:$0xff] }
 0x1ce   :  { %v5421_v20 = vmax.f32 %v12071_v8, 0.0  ;;  %4498 = vmatmul.mubr.bf16.gmra.mrb[88].mxu0 %v13891_v22  ;;  %v5423_v28 = vmax.f32 %v12103_v12, 0.0  ;;  %4724 = vmatmul.mubr.bf16.gmra.mrb[88].mxu1 %v13891_v22  ;;  %v11522_v34 = vcombine.high %v14393_v17, %v14395_v18  ;;  %v11524_v45 = vcombine.high %v14400_v24, %v14402_v25 }
 0x1cf   :  { %v5422_v29 = vmax.f32 %v12072_v13, 0.0  ;;  %4543 = vmatpush1.bf16.msra.mxu0 %v11489_v5  ;;  %v5424_v33 = vmax.f32 %v12104_v21, 0.0  ;;  %4769 = vmatpush1.bf16.msra.mxu1 %v11491_v6  ;;  %v11521_v8 = vcombine.low %v14393_v17, %v14395_v18  ;;  %v11523_v9 = vcombine.low %v14400_v24, %v14402_v25  ;;  %v14443_v21 = vld [vmem:[#allocation5 + $0x70] sm:$0xff] }
 0x1d0   :  { %v14404_v31 = vpack.c.bf16 %v5421_v20, %v5405_v19  ;;  %4544 = vmatprep.subr.bf16.mxu0 %v11506_v11  ;;  %v14408_v38 = vpack.c.bf16 %v5423_v28, %v5407_v26  ;;  %4770 = vmatprep.subr.bf16.mxu1 %v11508_v16  ;;  %v11538_v14 = vcombine.high %v14414_v48, %v14416_v51  ;;  %v14441_v20 = vld [vmem:[#allocation5 + $0x30] sm:$0xff]  ;;  %v14450_v28 = vld [vmem:[#allocation5 + $0x78] sm:$0xff] }
 0x1d1   :  { %v14410_v40 = vpack.c.bf16 %v5422_v29, %v5406_v27  ;;  %v3688_v43 = vpop.f32.mrb[16].mxu0  ;;  %4507 = vmatprep.mubr.bf16.mxu0 %v13892_v44  ;;  %v14418_v54 = vpack.c.bf16 %v5424_v33, %v5408_v30  ;;  %v3914_v59 = vpop.f32.mrb[16].mxu1  ;;  %4733 = vmatprep.mubr.bf16.mxu1 %v13892_v44  ;;  %v11537_v17 = vcombine.low %v14414_v48, %v14416_v51  ;;  %v13893_v25 = vld [vmem:[#allocation2 + $0xe0] ss:$16 sps:$4 sm:$0xff]   ;;  %v14448_v27 = vld [vmem:[#allocation5 + $0x38] sm:$0xff] }
 0x1d2   :  { %v12073_v56 = vadd.f32 %v3688_v43, %v14209_v63  ;;  %v3690_v60 = vpop.f32.mrb[17].mxu0  ;;  %v12105_v4 = vadd.f32 %v3914_v59, %v14212_v0  ;;  %v3916_v6 = vpop.f32.mrb[17].mxu1  ;;  %v11540_v18 = vcombine.high %v14421_v61, %v14423_v62  ;;  %v11539_v26 = vcombine.low %v14421_v61, %v14423_v62  ;;  %v14462_v62 = vld [vmem:[#allocation5 + $0xb0] sm:$0xff] }
 0x1d3   :  { %v12074_v5 = vadd.f32 %v3690_v60, %v14215_v1  ;;  %v3692_v7 = vpop.f32.mrb[18].mxu0  ;;  %4545 = vmatpush1.bf16.msra.mxu0 %v11505_v15  ;;  %v12106_v10 = vadd.f32 %v3916_v6, %v14218_v3  ;;  %v3918_v12 = vpop.f32.mrb[18].mxu1  ;;  %4771 = vmatpush1.bf16.msra.mxu1 %v11507_v23  ;;  %v11046_v48 = vcombine.high %v14441_v20, %v14443_v21  ;;  %v13894_v60 = vld [vmem:[#allocation2 + $0xc] ss:$16 sps:$4 sm:$0xff]  }
 0x1d4   :  { %v12075_v11 = vadd.f32 %v3692_v7, %v14209_v63  ;;  %v3694_v13 = vpop.f32.mrb[19].mxu0  ;;  %4546 = vmatprep.subr.bf16.mxu0 %v11522_v34  ;;  %v12107_v16 = vadd.f32 %v3918_v12, %v14212_v0  ;;  %v3920_v19 = vpop.f32.mrb[19].mxu1  ;;  %4772 = vmatprep.subr.bf16.mxu1 %v11524_v45  ;;  %v5437_v22 = vmax.f32 %v12073_v56, 0.0  ;;  %v5439_v29 = vmax.f32 %v12105_v4, 0.0  ;;  %v14464_v4 = vld [vmem:[#allocation5 + $0xf0] sm:$0xff] }
 0x1d5   :  { %v12076_v15 = vadd.f32 %v3694_v13, %v14215_v1  ;;  %v12108_v24 = vadd.f32 %v3920_v19, %v14218_v3  ;;  %v5438_v30 = vmax.f32 %v12074_v5, 0.0  ;;  %v5440_v43 = vmax.f32 %v12106_v10, 0.0  ;;  %v14471_v10 = vld [vmem:[#allocation5 + $0xf8] sm:$0xff] }
 0x1d6   :  { %v5453_v23 = vmax.f32 %v12075_v11, 0.0  ;;  %4508 = vmatmul.mubr.bf16.gmra.mrb[92].mxu0 %v13893_v25  ;;  %v5455_v33 = vmax.f32 %v12107_v16, 0.0  ;;  %4734 = vmatmul.mubr.bf16.gmra.mrb[92].mxu1 %v13893_v25  ;;  %v11048_v61 = vcombine.high %v14448_v27, %v14450_v28  ;;  %v11045_v16 = vcombine.low %v14441_v20, %v14443_v21 }
 0x1d7   :  { %v5454_v34 = vmax.f32 %v12076_v15, 0.0  ;;  %4547 = vmatpush1.bf16.msra.mxu0 %v11521_v8  ;;  %v5456_v45 = vmax.f32 %v12108_v24, 0.0  ;;  %4773 = vmatpush1.bf16.msra.mxu1 %v11523_v9  ;;  %v14469_v9 = vld [vmem:[#allocation5 + $0xb8] sm:$0xff]  ;;  %v11047_v15 = vcombine.low %v14448_v27, %v14450_v28  ;;  %v11062_v24 = vcombine.high %v14462_v62, %v14464_v4  ;;  %v14489_v27 = vld [vmem:[#allocation5 + $0x130] sm:$0xff] }
 0x1d8   :  { %v14452_v44 = vpack.c.bf16 %v5453_v23, %v5437_v22  ;;  %4548 = vmatprep.subr.bf16.mxu0 %v11538_v14  ;;  %v14456_v51 = vpack.c.bf16 %v5455_v33, %v5439_v29  ;;  %4774 = vmatprep.subr.bf16.mxu1 %v11540_v18  ;;  %v11061_v20 = vcombine.low %v14462_v62, %v14464_v4 }
 0x1d9   :  { %v14458_v56 = vpack.c.bf16 %v5454_v34, %v5438_v30  ;;  %v3698_v59 = vpop.f32.mrb[20].mxu0  ;;  %4550 = vmatprep.mubr.bf16.mxu0 %v13894_v60  ;;  %v14466_v5 = vpack.c.bf16 %v5456_v45, %v5440_v43  ;;  %v3924_v7 = vpop.f32.mrb[20].mxu1  ;;  %4776 = vmatprep.mubr.bf16.mxu1 %v13894_v60  ;;  %v11064_v21 = vcombine.high %v14469_v9, %v14471_v10  ;;  %v13895_v34 = vld [vmem:[#allocation2 + $0x8] ss:$16 sps:$4 sm:$0xff]  }
 0x1da   :  { %v12077_v6 = vadd.f32 %v3698_v59, %v14209_v63  ;;  %v3700_v8 = vpop.f32.mrb[21].mxu0  ;;  %v12109_v11 = vadd.f32 %v3924_v7, %v14212_v0  ;;  %v3926_v13 = vpop.f32.mrb[21].mxu1  ;;  %v11063_v43 = vcombine.low %v14469_v9, %v14471_v10  ;;  %v14496_v45 = vld [vmem:[#allocation5 + $0x138] sm:$0xff] }
 0x1db   :  { %v12078_v12 = vadd.f32 %v3700_v8, %v14215_v1  ;;  %v3702_v14 = vpop.f32.mrb[22].mxu0  ;;  %4549 = vmatpush1.bf16.msra.mxu0 %v11537_v17  ;;  %v12110_v19 = vadd.f32 %v3926_v13, %v14218_v3  ;;  %v3928_v22 = vpop.f32.mrb[22].mxu1  ;;  %4775 = vmatpush1.bf16.msra.mxu1 %v11539_v26  ;;  %v14491_v26 = vld [vmem:[#allocation5 + $0x170] sm:$0xff] }
 0x1dc   :  { %v12079_v18 = vadd.f32 %v3702_v14, %v14209_v63  ;;  %v3704_v23 = vpop.f32.mrb[23].mxu0  ;;  %4857 = vmatprep.subr.bf16.mxu0 %v11046_v48  ;;  %v12111_v25 = vadd.f32 %v3928_v22, %v14212_v0  ;;  %v3930_v29 = vpop.f32.mrb[23].mxu1  ;;  %5083 = vmatprep.subr.bf16.mxu1 %v11048_v61  ;;  %v5469_v28 = vmax.f32 %v12077_v6, 0.0  ;;  %v14498_v48 = vld [vmem:[#allocation5 + $0x178] sm:$0xff]  ;;  %v5471_v59 = vmax.f32 %v12109_v11, 0.0  ;;  %v14510_v14 = vld [vmem:[#allocation5 + $0x1b0] sm:$0xff] }
 0x1dd   :  { %v12080_v17 = vadd.f32 %v3704_v23, %v14215_v1  ;;  %v12112_v33 = vadd.f32 %v3930_v29, %v14218_v3  ;;  %v5470_v60 = vmax.f32 %v12078_v12, 0.0  ;;  %v5472_v4 = vmax.f32 %v12110_v19, 0.0  ;;  %v13896_v11 = vld [vmem:[#allocation2 + $0x2c] ss:$16 sps:$4 sm:$0xff]  }
 0x1de   :  { %v5485_v30 = vmax.f32 %v12079_v18, 0.0  ;;  %4551 = vmatmul.mubr.bf16.vlgmr.msra.gmra.mrb[64].mxu0 %v13895_v34  ;;  %v5487_v61 = vmax.f32 %v12111_v25, 0.0  ;;  %4777 = vmatmul.mubr.bf16.vlgmr.msra.gmra.mrb[64].mxu1 %v13895_v34  ;;  %v11078_v8 = vcombine.high %v14489_v27, %v14491_v26  ;;  %v11080_v12 = vcombine.high %v14496_v45, %v14498_v48  ;;  %v14517_v23 = vld [vmem:[#allocation5 + $0x1b8] sm:$0xff] }
 0x1df   :  { %v5486_v62 = vmax.f32 %v12080_v17, 0.0  ;;  %4858 = vmatpush1.bf16.msra.mxu0 %v11045_v16  ;;  %v5488_v7 = vmax.f32 %v12112_v33, 0.0  ;;  %5084 = vmatpush1.bf16.msra.mxu1 %v11047_v15  ;;  %v14512_v16 = vld [vmem:[#allocation5 + $0x1f0] sm:$0xff] }
 0x1e0   :  { %v14500_v6 = vpack.c.bf16 %v5485_v30, %v5469_v28  ;;  %4859 = vmatprep.subr.bf16.mxu0 %v11062_v24  ;;  %v14504_v9 = vpack.c.bf16 %v5487_v61, %v5471_v59  ;;  %5085 = vmatprep.subr.bf16.mxu1 %v11064_v21  ;;  %v14519_v24 = vld [vmem:[#allocation5 + $0x1f8] sm:$0xff]  ;;  %v11077_v28 = vcombine.low %v14489_v27, %v14491_v26 }
 0x1e1   :  { %v14506_v10 = vpack.c.bf16 %v5486_v62, %v5470_v60  ;;  %v3708_v13 = vpop.f32.mrb[24].mxu0  ;;  %4560 = vmatprep.mubr.bf16.mxu0 %v13896_v11  ;;  %v14514_v15 = vpack.c.bf16 %v5488_v7, %v5472_v4  ;;  %v3934_v18 = vpop.f32.mrb[24].mxu1  ;;  %4786 = vmatprep.mubr.bf16.mxu1 %v13896_v11  ;;  %v11079_v30 = vcombine.low %v14496_v45, %v14498_v48  ;;  %v14537_v45 = vld [vmem:[#allocation5 + $0x230] sm:$0xff] }
 0x1e2   :  { %15583 = vst [vmem:[#allocation21_spill] sm:$0xff] %v14504_v9  ;;  %v12081_v19 = vadd.f32 %v3708_v13, %v14209_v63  ;;  %v3710_v22 = vpop.f32.mrb[25].mxu0  ;;  %v12113_v25 = vadd.f32 %v3934_v18, %v14212_v0  ;;  %v3936_v29 = vpop.f32.mrb[25].mxu1  ;;  %v11094_v61 = vcombine.high %v14510_v14, %v14512_v16  ;;  %v11093_v27 = vcombine.low %v14510_v14, %v14512_v16  ;;  %v13897_v13 = vld [vmem:[#allocation2 + $0x28] ss:$16 sps:$4 sm:$0xff]  }
 0x1e3   :  { %15584 = vst [vmem:[#allocation22_spill] sm:$0xff] %v14514_v15  ;;  %v12082_v17 = vadd.f32 %v3710_v22, %v14215_v1  ;;  %v3712_v21 = vpop.f32.mrb[26].mxu0  ;;  %4860 = vmatpush1.bf16.msra.mxu0 %v11061_v20  ;;  %v12114_v33 = vadd.f32 %v3936_v29, %v14218_v3  ;;  %v3938_v59 = vpop.f32.mrb[26].mxu1  ;;  %5086 = vmatpush1.bf16.msra.mxu1 %v11063_v43  ;;  %v14539_v43 = vld [vmem:[#allocation5 + $0x270] sm:$0xff]  ;;  %v14546_v18 = vld [vmem:[#allocation5 + $0x278] sm:$0xff] }
 0x1e4   :  { %v12083_v34 = vadd.f32 %v3712_v21, %v14209_v63  ;;  %v3714_v60 = vpop.f32.mrb[27].mxu0  ;;  %4861 = vmatprep.subr.bf16.mxu0 %v11078_v8  ;;  %v12115_v62 = vadd.f32 %v3938_v59, %v14212_v0  ;;  %v3940_v4 = vpop.f32.mrb[27].mxu1  ;;  %5087 = vmatprep.subr.bf16.mxu1 %v11080_v12  ;;  %v11096_v26 = vcombine.high %v14517_v23, %v14519_v24  ;;  %v5501_v48 = vmax.f32 %v12081_v19, 0.0  ;;  %v14544_v12 = vld [vmem:[#allocation5 + $0x238] sm:$0xff] }
 0x1e5   :  { %v12084_v20 = vadd.f32 %v3714_v60, %v14215_v1  ;;  %v12116_v8 = vadd.f32 %v3940_v4, %v14218_v3  ;;  %v11095_v11 = vcombine.low %v14517_v23, %v14519_v24  ;;  %v5503_v14 = vmax.f32 %v12113_v25, 0.0  ;;  %v13898_v25 = vld [vmem:[#allocation2 + $0x4c] ss:$16 sps:$4 sm:$0xff]  }
 0x1e6   :  { %v5517_v7 = vmax.f32 %v12083_v34, 0.0  ;;  %4561 = vmatmul.mubr.bf16.gmra.mrb[68].mxu0 %v13897_v13  ;;  %v5502_v16 = vmax.f32 %v12082_v17, 0.0  ;;  %v5519_v22 = vmax.f32 %v12115_v62, 0.0  ;;  %4787 = vmatmul.mubr.bf16.gmra.mrb[68].mxu1 %v13897_v13  ;;  %v5504_v21 = vmax.f32 %v12114_v33, 0.0  ;;  %v279_v33 = vld [vmem:[#allocation5 + $0x2f0] sm:$0xff]  ;;  %v272_v4 = vld [vmem:[#allocation5 + $0x2b8] sm:$0xff] }
 0x1e7   :  { %v5518_v29 = vmax.f32 %v12084_v20, 0.0  ;;  %4862 = vmatpush1.bf16.msra.mxu0 %v11077_v28  ;;  %v5520_v34 = vmax.f32 %v12116_v8, 0.0  ;;  %5088 = vmatpush1.bf16.msra.mxu1 %v11079_v30  ;;  %v11110_v59 = vcombine.high %v14537_v45, %v14539_v43  ;;  %v11112_v17 = vcombine.high %v14544_v12, %v14546_v18  ;;  %v14558_v28 = vld [vmem:[#allocation5 + $0x2b0] sm:$0xff] }
 0x1e8   :  { %v14548_v19 = vpack.c.bf16 %v5517_v7, %v5501_v48  ;;  %4863 = vmatprep.subr.bf16.mxu0 %v11094_v61  ;;  %v14552_v23 = vpack.c.bf16 %v5519_v22, %v5503_v14  ;;  %5089 = vmatprep.subr.bf16.mxu1 %v11096_v26  ;;  %v280_v48 = vld [vmem:[#allocation5 + $0x2f8] sm:$0xff]  ;;  %v11109_v14 = vcombine.low %v14537_v45, %v14539_v43 }
 0x1e9   :  { %v14554_v24 = vpack.c.bf16 %v5518_v29, %v5502_v16  ;;  %v3718_v60 = vpop.f32.mrb[28].mxu0  ;;  %4570 = vmatprep.mubr.bf16.mxu0 %v13898_v25  ;;  %v14560_v62 = vpack.c.bf16 %v5520_v34, %v5504_v21  ;;  %v3944_v61 = vpop.f32.mrb[28].mxu1  ;;  %4796 = vmatprep.mubr.bf16.mxu1 %v13898_v25  ;;  %v11111_v16 = vcombine.low %v14544_v12, %v14546_v18  ;;  %v287_v12 = vld [vmem:[#allocation5 + $0x330] sm:$0xff] }
 0x1ea   :  { %15585 = vst [vmem:[#allocation23_spill] sm:$0xff] %v14552_v23  ;;  %v12085_v30 = vadd.f32 %v3718_v60, %v14209_v63  ;;  %v3720_v20 = vpop.f32.mrb[29].mxu0  ;;  %v12117_v7 = vadd.f32 %v3944_v61, %v14212_v0  ;;  %v3946_v8 = vpop.f32.mrb[29].mxu1  ;;  %v11126_v60 = vcombine.high %v14558_v28, %v279_v33  ;;  %v11125_v45 = vcombine.low %v14558_v28, %v279_v33  ;;  %v295_v18 = vld [vmem:[#allocation5 + $0x370] sm:$0xff]  ;;  %v296_v23 = vld [vmem:[#allocation5 + $0x378] sm:$0xff] }
 0x1eb   :  { %15586 = vst [vmem:[#allocation24_spill] sm:$0xff] %v14560_v62  ;;  %v12086_v26 = vadd.f32 %v3720_v20, %v14215_v1  ;;  %v3722_v13 = vpop.f32.mrb[30].mxu0  ;;  %4864 = vmatpush1.bf16.msra.mxu0 %v11093_v27  ;;  %v12118_v22 = vadd.f32 %v3946_v8, %v14218_v3  ;;  %v3948_v21 = vpop.f32.mrb[30].mxu1  ;;  %5090 = vmatpush1.bf16.msra.mxu1 %v11095_v11  ;;  %v13899_v11 = vld [vmem:[#allocation2 + $0x48] ss:$16 sps:$4 sm:$0xff]  }
 0x1ec   :  { %v12087_v29 = vadd.f32 %v3722_v13, %v14209_v63  ;;  %v3724_v34 = vpop.f32.mrb[31].mxu0  ;;  %4865 = vmatprep.subr.bf16.mxu0 %v11110_v59  ;;  %v12119_v25 = vadd.f32 %v3948_v21, %v14212_v0  ;;  %v3950_v61 = vpop.f32.mrb[31].mxu1  ;;  %5091 = vmatprep.subr.bf16.mxu1 %v11112_v17  ;;  %v11128_v43 = vcombine.high %v272_v4, %v280_v48  ;;  %v5533_v20 = vmax.f32 %v12085_v30, 0.0  ;;  %v288_v13 = vld [vmem:[#allocation5 + $0x338] sm:$0xff] }
 0x1ed   :  { %v12088_v27 = vadd.f32 %v3724_v34, %v14215_v1  ;;  %v12120_v63 = vadd.f32 %v3950_v61, %v14218_v3  ;;  %v11127_v59 = vcombine.low %v272_v4, %v280_v48  ;;  %v5535_v62 = vmax.f32 %v12117_v7, 0.0  ;;  %v13900_v4 = vld [vmem:[#allocation2 + $0x6c] ss:$16 sps:$4 sm:$0xff]   ;;  %v303_v7 = vld [vmem:[#allocation5 + $0x3b0] sm:$0xff] }
 0x1ee   :  { %v5549_v8 = vmax.f32 %v12087_v29, 0.0  ;;  %4571 = vmatmul.mubr.bf16.gmra.mrb[72].mxu0 %v13899_v11  ;;  %v5534_v0 = vmax.f32 %v12086_v26, 0.0  ;;  %v5551_v21 = vmax.f32 %v12119_v25, 0.0  ;;  %4797 = vmatmul.mubr.bf16.gmra.mrb[72].mxu1 %v13899_v11  ;;  %v5536_v17 = vmax.f32 %v12118_v22, 0.0  ;;  %v311_v26 = vld [vmem:[#allocation5 + $0x3f0] sm:$0xff]  ;;  %v312_v22 = vld [vmem:[#allocation5 + $0x3f8] sm:$0xff] }
 0x1ef   :  { %v5550_v1 = vmax.f32 %v12088_v27, 0.0  ;;  %4866 = vmatpush1.bf16.msra.mxu0 %v11109_v14  ;;  %v5552_v33 = vmax.f32 %v12120_v63, 0.0  ;;  %5092 = vmatpush1.bf16.msra.mxu1 %v11111_v16  ;;  %v11142_v30 = vcombine.high %v287_v12, %v295_v18  ;;  %v11144_v48 = vcombine.high %v288_v13, %v296_v23  ;;  %v304_v14 = vld [vmem:[#allocation5 + $0x3b8] sm:$0xff]  ;;  %v319_v27 = vld [vmem:[#allocation5 + $0x430] sm:$0xff] }
 0x1f0   :  { %v14576_v28 = vpack.c.bf16 %v5549_v8, %v5533_v20  ;;  %4867 = vmatprep.subr.bf16.mxu0 %v11126_v60  ;;  %v14578_v29 = vpack.c.bf16 %v5551_v21, %v5535_v62  ;;  %5093 = vmatprep.subr.bf16.mxu1 %v11128_v43  ;;  %v11141_v25 = vcombine.low %v287_v12, %v295_v18  ;;  %v327_v61 = vld [vmem:[#allocation5 + $0x470] sm:$0xff]  ;;  %v13901_v43 = vld [vmem:[#allocation2 + $0x68] ss:$16 sps:$4 sm:$0xff]   ;;  %v13902_v12 = vld [vmem:[#allocation2 + $0x8c] ss:$16 sps:$4 sm:$0xff]  }
 0x1f1   :  { %v14580_v3 = vpack.c.bf16 %v5550_v1, %v5534_v0  ;;  %4580 = vmatprep.mubr.bf16.mxu0 %v13900_v4  ;;  %v14582_v34 = vpack.c.bf16 %v5552_v33, %v5536_v17  ;;  %4806 = vmatprep.mubr.bf16.mxu1 %v13900_v4  ;;  %v11143_v16 = vcombine.low %v288_v13, %v296_v23  ;;  %v320_v20 = vld [vmem:[#allocation5 + $0x438] sm:$0xff]  ;;  %v335_v18 = vld [vmem:[#allocation5 + $0x4b0] sm:$0xff] }
 0x1f2   :  { %15587 = vst [vmem:[#allocation25_spill] sm:$0xff] %v14578_v29  ;;  %v11158_v62 = vcombine.high %v303_v7, %v311_v26  ;;  %v11160_v60 = vcombine.high %v304_v14, %v312_v22  ;;  %v328_v8 = vld [vmem:[#allocation5 + $0x478] sm:$0xff]  ;;  %v11157_v63 = vcombine.low %v303_v7, %v311_v26  ;;  %v11159_v11 = vcombine.low %v304_v14, %v312_v22  ;;  %v359_v4 = vld [vmem:[#allocation5 + $0x570] sm:$0xff] }
 0x1f3   :  { %15588 = vst [vmem:[#allocation26_spill] sm:$0xff] %v14582_v34  ;;  %4868 = vmatpush1.bf16.msra.mxu0 %v11125_v45  ;;  %5094 = vmatpush1.bf16.msra.mxu1 %v11127_v59  ;;  %v11174_v45 = vcombine.high %v319_v27, %v327_v61  ;;  %v11176_v23 = vcombine.high %v320_v20, %v328_v8  ;;  %v343_v59 = vld [vmem:[#allocation5 + $0x4f0] sm:$0xff]  ;;  %v336_v13 = vld [vmem:[#allocation5 + $0x4b8] sm:$0xff] }
 0x1f4   :  { %4869 = vmatprep.subr.bf16.mxu0 %v11142_v30  ;;  %5095 = vmatprep.subr.bf16.mxu1 %v11144_v48  ;;  %v344_v0 = vld [vmem:[#allocation5 + $0x4f8] sm:$0xff]  ;;  %v11173_v21 = vcombine.low %v319_v27, %v327_v61  ;;  %v11175_v1 = vcombine.low %v320_v20, %v328_v8  ;;  %v11190_v17 = vcombine.high %v335_v18, %v343_v59  ;;  %v351_v30 = vld [vmem:[#allocation5 + $0x530] sm:$0xff] }
 0x1f5   :  { %v11192_v33 = vcombine.high %v336_v13, %v344_v0  ;;  %v13903_v48 = vld [vmem:[#allocation2 + $0x88] ss:$16 sps:$4 sm:$0xff]   ;;  %v11189_v14 = vcombine.low %v335_v18, %v343_v59  ;;  %v11191_v22 = vcombine.low %v336_v13, %v344_v0  ;;  %v375_v27 = vld [vmem:[#allocation5 + $0x5f0] sm:$0xff]  ;;  %v11205_v20 = vcombine.low %v351_v30, %v359_v4 }
 0x1f6   :  { %4581 = vmatmul.mubr.bf16.gmra.mrb[76].mxu0 %v13901_v43  ;;  %4807 = vmatmul.mubr.bf16.gmra.mrb[76].mxu1 %v13901_v43  ;;  %v352_v7 = vld [vmem:[#allocation5 + $0x538] sm:$0xff] }
 0x1f7   :  { %4870 = vmatpush1.bf16.msra.mxu0 %v11141_v25  ;;  %5096 = vmatpush1.bf16.msra.mxu1 %v11143_v16  ;;  %v360_v26 = vld [vmem:[#allocation5 + $0x578] sm:$0xff]  ;;  %v11206_v25 = vcombine.high %v351_v30, %v359_v4  ;;  %v407_v30 = vld [vmem:[#allocation5 + $0x6f0] sm:$0xff] }
 0x1f8   :  { %4871 = vmatprep.subr.bf16.mxu0 %v11158_v62  ;;  %5097 = vmatprep.subr.bf16.mxu1 %v11160_v60  ;;  %v13904_v16 = vld [vmem:[#allocation2 + $0xac] ss:$16 sps:$4 sm:$0xff]   ;;  %v11208_v62 = vcombine.high %v352_v7, %v360_v26  ;;  %v367_v60 = vld [vmem:[#allocation5 + $0x5b0] sm:$0xff]  ;;  %v11207_v8 = vcombine.low %v352_v7, %v360_v26 }
 0x1f9   :  { %4590 = vmatprep.mubr.bf16.mxu0 %v13902_v12  ;;  %4816 = vmatprep.mubr.bf16.mxu1 %v13902_v12  ;;  %v368_v61 = vld [vmem:[#allocation5 + $0x5b8] sm:$0xff]  ;;  %v391_v12 = vld [vmem:[#allocation5 + $0x670] sm:$0xff]  ;;  %v11221_v13 = vcombine.low %v367_v60, %v375_v27 }
 0x1fa   :  { %v376_v43 = vld [vmem:[#allocation5 + $0x5f8] sm:$0xff] }
 0x1fb   :  { %4872 = vmatpush1.bf16.msra.mxu0 %v11157_v63  ;;  %5098 = vmatpush1.bf16.msra.mxu1 %v11159_v11  ;;  %v11222_v63 = vcombine.high %v367_v60, %v375_v27  ;;  %v11224_v11 = vcombine.high %v368_v61, %v376_v43  ;;  %v384_v18 = vld [vmem:[#allocation5 + $0x638] sm:$0xff]  ;;  %v11223_v0 = vcombine.low %v368_v61, %v376_v43 }
 0x1fc   :  { %4873 = vmatprep.subr.bf16.mxu0 %v11174_v45  ;;  %5099 = vmatprep.subr.bf16.mxu1 %v11176_v23  ;;  %v383_v45 = vld [vmem:[#allocation5 + $0x630] sm:$0xff]  ;;  %v13905_v23 = vld [vmem:[#allocation2 + $0xa8] ss:$16 sps:$4 sm:$0xff]  }
 0x1fd   :  { %v392_v59 = vld [vmem:[#allocation5 + $0x678] sm:$0xff]  ;;  %v11237_v7 = vcombine.low %v383_v45, %v391_v12 }
 0x1fe   :  { %4591 = vmatmul.mubr.bf16.gmra.mrb[80].mxu0 %v13903_v48  ;;  %4817 = vmatmul.mubr.bf16.gmra.mrb[80].mxu1 %v13903_v48  ;;  %v400_v4 = vld [vmem:[#allocation5 + $0x6b8] sm:$0xff]  ;;  %v11239_v26 = vcombine.low %v384_v18, %v392_v59 }
 0x1ff   :  { %4874 = vmatpush1.bf16.msra.mxu0 %v11173_v21  ;;  %5100 = vmatpush1.bf16.msra.mxu1 %v11175_v1  ;;  %v11238_v21 = vcombine.high %v383_v45, %v391_v12  ;;  %v13906_v1 = vld [vmem:[#allocation2 + $0xcc] ss:$16 sps:$4 sm:$0xff]   ;;  %v439_v45 = vld [vmem:[#allocation5 + $0x7f0] sm:$0xff] }
 0x200   :  { %4875 = vmatprep.subr.bf16.mxu0 %v11190_v17  ;;  %5101 = vmatprep.subr.bf16.mxu1 %v11192_v33  ;;  %v11240_v17 = vcombine.high %v384_v18, %v392_v59  ;;  %v399_v33 = vld [vmem:[#allocation5 + $0x6b0] sm:$0xff]  ;;  %v408_v48 = vld [vmem:[#allocation5 + $0x6f8] sm:$0xff] }
 0x201   :  { %4600 = vmatprep.mubr.bf16.mxu0 %v13904_v16  ;;  %4826 = vmatprep.mubr.bf16.mxu1 %v13904_v16  ;;  %v423_v16 = vld [vmem:[#allocation5 + $0x770] sm:$0xff]  ;;  %v416_v60 = vld [vmem:[#allocation5 + $0x738] sm:$0xff]  ;;  %v11253_v61 = vcombine.low %v399_v33, %v407_v30  ;;  %v11255_v43 = vcombine.low %v400_v4, %v408_v48 }
 0x202   :  { %v424_v27 = vld [vmem:[#allocation5 + $0x778] sm:$0xff] }
 0x203   :  { %4876 = vmatpush1.bf16.msra.mxu0 %v11189_v14  ;;  %5102 = vmatpush1.bf16.msra.mxu1 %v11191_v22  ;;  %v11254_v14 = vcombine.high %v399_v33, %v407_v30  ;;  %v11256_v22 = vcombine.high %v400_v4, %v408_v48  ;;  %v432_v12 = vld [vmem:[#allocation5 + $0x7b8] sm:$0xff]  ;;  %v11271_v59 = vcombine.low %v416_v60, %v424_v27 }
 0x204   :  { %4877 = vmatprep.subr.bf16.mxu0 %v11206_v25  ;;  %5103 = vmatprep.subr.bf16.mxu1 %v11208_v62  ;;  %v415_v25 = vld [vmem:[#allocation5 + $0x730] sm:$0xff]  ;;  %v13907_v62 = vld [vmem:[#allocation2 + $0xc8] ss:$16 sps:$4 sm:$0xff]  }
 0x205   :  { %v11269_v18 = vcombine.low %v415_v25, %v423_v16  ;;  %v448_v33 = vld [vmem:[#allocation5 + $0x838] sm:$0xff] }
 0x206   :  { %4601 = vmatmul.mubr.bf16.gmra.mrb[84].mxu0 %v13905_v23  ;;  %4827 = vmatmul.mubr.bf16.gmra.mrb[84].mxu1 %v13905_v23  ;;  %v440_v23 = vld [vmem:[#allocation5 + $0x7f8] sm:$0xff] }
 0x207   :  { %4878 = vmatpush1.bf16.msra.mxu0 %v11205_v20  ;;  %5104 = vmatpush1.bf16.msra.mxu1 %v11207_v8  ;;  %v11270_v20 = vcombine.high %v415_v25, %v423_v16  ;;  %v13908_v8 = vld [vmem:[#allocation2 + $0xec] ss:$16 sps:$4 sm:$0xff]   ;;  %v11287_v48 = vcombine.low %v432_v12, %v440_v23  ;;  %v471_v25 = vld [vmem:[#allocation5 + $0x8f0] sm:$0xff] }
 0x208   :  { %4879 = vmatprep.subr.bf16.mxu0 %v11222_v63  ;;  %5105 = vmatprep.subr.bf16.mxu1 %v11224_v11  ;;  %v11272_v63 = vcombine.high %v416_v60, %v424_v27  ;;  %v431_v11 = vld [vmem:[#allocation5 + $0x7b0] sm:$0xff]  ;;  %v456_v30 = vld [vmem:[#allocation5 + $0x878] sm:$0xff] }
 0x209   :  { %4610 = vmatprep.mubr.bf16.mxu0 %v13906_v1  ;;  %4836 = vmatprep.mubr.bf16.mxu1 %v13906_v1  ;;  %v455_v1 = vld [vmem:[#allocation5 + $0x870] sm:$0xff]  ;;  %v11285_v4 = vcombine.low %v431_v11, %v439_v45  ;;  %v464_v16 = vld [vmem:[#allocation5 + $0x8b8] sm:$0xff]  ;;  %v11303_v27 = vcombine.low %v448_v33, %v456_v30 }
 0x20b   :  { %4880 = vmatpush1.bf16.msra.mxu0 %v11221_v13  ;;  %5106 = vmatpush1.bf16.msra.mxu1 %v11223_v0  ;;  %v11286_v13 = vcombine.high %v431_v11, %v439_v45  ;;  %v11288_v0 = vcombine.high %v432_v12, %v440_v23  ;;  %v480_v11 = vld [vmem:[#allocation5 + $0x938] sm:$0xff] }
 0x20c   :  { %4881 = vmatprep.subr.bf16.mxu0 %v11238_v21  ;;  %5107 = vmatprep.subr.bf16.mxu1 %v11240_v17  ;;  %v447_v21 = vld [vmem:[#allocation5 + $0x830] sm:$0xff]  ;;  %v13909_v17 = vld [vmem:[#allocation2 + $0xe8] ss:$16 sps:$4 sm:$0xff]  }
 0x20d   :  { %v11301_v60 = vcombine.low %v447_v21, %v455_v1  ;;  %v488_v45 = vld [vmem:[#allocation5 + $0x978] sm:$0xff] }
 0x20e   :  { %4611 = vmatmul.mubr.bf16.gmra.mrb[88].mxu0 %v13907_v62  ;;  %4837 = vmatmul.mubr.bf16.gmra.mrb[88].mxu1 %v13907_v62  ;;  %v472_v62 = vld [vmem:[#allocation5 + $0x8f8] sm:$0xff] }
 0x20f   :  { %4882 = vmatpush1.bf16.msra.mxu0 %v11237_v7  ;;  %5108 = vmatpush1.bf16.msra.mxu1 %v11239_v26  ;;  %v11302_v7 = vcombine.high %v447_v21, %v455_v1  ;;  %v13910_v26 = vld [vmem:[#allocation2 + $0x4] ss:$16 sps:$4 sm:$0xff]   ;;  %v11319_v23 = vcombine.low %v464_v16, %v472_v62  ;;  %v496_v1 = vld [vmem:[#allocation5 + $0x9b8] sm:$0xff] }
 0x210   :  { %4883 = vmatprep.subr.bf16.mxu0 %v11254_v14  ;;  %5109 = vmatprep.subr.bf16.mxu1 %v11256_v22  ;;  %v11304_v14 = vcombine.high %v448_v33, %v456_v30  ;;  %v463_v22 = vld [vmem:[#allocation5 + $0x8b0] sm:$0xff]  ;;  %v11335_v30 = vcombine.low %v480_v11, %v488_v45 }
 0x211   :  { %4620 = vmatprep.mubr.bf16.mxu0 %v13908_v8  ;;  %4846 = vmatprep.mubr.bf16.mxu1 %v13908_v8  ;;  %v487_v8 = vld [vmem:[#allocation5 + $0x970] sm:$0xff]  ;;  %v11317_v12 = vcombine.low %v463_v22, %v471_v25 }
 0x212   :  { %v503_v21 = vld [vmem:[#allocation5 + $0x9f0] sm:$0xff] }
 0x213   :  { %4884 = vmatpush1.bf16.msra.mxu0 %v11253_v61  ;;  %5110 = vmatpush1.bf16.msra.mxu1 %v11255_v43  ;;  %v11318_v61 = vcombine.high %v463_v22, %v471_v25  ;;  %v11320_v43 = vcombine.high %v464_v16, %v472_v62  ;;  %v512_v22 = vld [vmem:[#allocation5 + $0xa38] sm:$0xff] }
 0x214   :  { %4885 = vmatprep.subr.bf16.mxu0 %v11270_v20  ;;  %5111 = vmatprep.subr.bf16.mxu1 %v11272_v63  ;;  %v479_v20 = vld [vmem:[#allocation5 + $0x930] sm:$0xff]  ;;  %v520_v25 = vld [vmem:[#allocation5 + $0xa78] sm:$0xff] }
 0x215   :  { %v13911_v63 = vld [vmem:[#allocation2] ss:$16 sps:$4 sm:$0xff]   ;;  %v11333_v33 = vcombine.low %v479_v20, %v487_v8 }
 0x216   :  { %4621 = vmatmul.mubr.bf16.gmra.mrb[92].mxu0 %v13909_v17  ;;  %4847 = vmatmul.mubr.bf16.gmra.mrb[92].mxu1 %v13909_v17  ;;  %v504_v17 = vld [vmem:[#allocation5 + $0x9f8] sm:$0xff] }
 0x217   :  { %4886 = vmatpush1.bf16.msra.mxu0 %v11269_v18  ;;  %5112 = vmatpush1.bf16.msra.mxu1 %v11271_v59  ;;  %v11334_v18 = vcombine.high %v479_v20, %v487_v8  ;;  %v13912_v59 = vld [vmem:[#allocation2 + $0x24] ss:$16 sps:$4 sm:$0xff]   ;;  %v11351_v62 = vcombine.low %v496_v1, %v504_v17  ;;  %v15519_v8 = vsub.s32 4, %v14186_v39 }
 0x218   :  { %4887 = vmatprep.subr.bf16.mxu0 %v11286_v13  ;;  %5113 = vmatprep.subr.bf16.mxu1 %v11288_v0  ;;  %v11336_v13 = vcombine.high %v480_v11, %v488_v45  ;;  %v495_v0 = vld [vmem:[#allocation5 + $0x9b0] sm:$0xff]  ;;  %v536_v11 = vld [vmem:[#allocation5 + $0xaf8] sm:$0xff] }
 0x219   :  { %4889 = vmatprep.mubr.bf16.mxu0 %v13910_v26  ;;  %5115 = vmatprep.mubr.bf16.mxu1 %v13910_v26  ;;  %v519_v26 = vld [vmem:[#allocation5 + $0xa70] sm:$0xff]  ;;  %v11349_v16 = vcombine.low %v495_v0, %v503_v21 }
 0x21a   :  { %v535_v20 = vld [vmem:[#allocation5 + $0xaf0] sm:$0xff] }
 0x21b   :  { %4888 = vmatpush1.bf16.msra.mxu0 %v11285_v4  ;;  %5114 = vmatpush1.bf16.msra.mxu1 %v11287_v48  ;;  %v11350_v4 = vcombine.high %v495_v0, %v503_v21  ;;  %v11352_v48 = vcombine.high %v496_v1, %v504_v17  ;;  %v14588_v21 = vld [vmem:[#allocation5 + $0xb30] sm:$0xff] }
 0x21c   :  { %4970 = vmatprep.subr.bf16.mxu0 %v11302_v7  ;;  %5196 = vmatprep.subr.bf16.mxu1 %v11304_v14  ;;  %v511_v7 = vld [vmem:[#allocation5 + $0xa30] sm:$0xff] }
 0x21d   :  { %v13913_v14 = vld [vmem:[#allocation2 + $0x20] ss:$16 sps:$4 sm:$0xff]   ;;  %v11365_v45 = vcombine.low %v511_v7, %v519_v26 }
 0x21e   :  { %4890 = vmatmul.mubr.bf16.vlgmr.msra.gmra.mrb[96].mxu0 %v13911_v63  ;;  %5116 = vmatmul.mubr.bf16.vlgmr.msra.gmra.mrb[96].mxu1 %v13911_v63  ;;  %v528_v63 = vld [vmem:[#allocation5 + $0xab8] sm:$0xff]  ;;  %v14590_v1 = vld [vmem:[#allocation5 + $0xb70] sm:$0xff] }
 0x21f   :  { %4971 = vmatpush1.bf16.msra.mxu0 %v11301_v60  ;;  %5197 = vmatpush1.bf16.msra.mxu1 %v11303_v27  ;;  %v11366_v60 = vcombine.high %v511_v7, %v519_v26  ;;  %v13914_v27 = vld [vmem:[#allocation2 + $0x44] ss:$16 sps:$4 sm:$0xff]   ;;  %v11384_v0 = vcombine.high %v528_v63, %v536_v11  ;;  %v13915_v17 = vld [vmem:[#allocation2 + $0x40] ss:$16 sps:$4 sm:$0xff]  }
 0x220   :  { %4972 = vmatprep.subr.bf16.mxu0 %v11318_v61  ;;  %5198 = vmatprep.subr.bf16.mxu1 %v11320_v43  ;;  %v11368_v61 = vcombine.high %v512_v22, %v520_v25  ;;  %v527_v43 = vld [vmem:[#allocation5 + $0xab0] sm:$0xff] }
 0x221   :  { %4899 = vmatprep.mubr.bf16.mxu0 %v13912_v59  ;;  %5125 = vmatprep.mubr.bf16.mxu1 %v13912_v59  ;;  %v15516_v59 = vsub.s32 7, %v14186_v39 }
 0x223   :  { %4973 = vmatpush1.bf16.msra.mxu0 %v11317_v12  ;;  %5199 = vmatpush1.bf16.msra.mxu1 %v11319_v23  ;;  %v15518_v12 = vsub.s32 6, %v14186_v39  ;;  %v15517_v23 = vsub.s32 5, %v14186_v39 }
 0x224   :  { %4974 = vmatprep.subr.bf16.mxu0 %v11334_v18  ;;  %5200 = vmatprep.subr.bf16.mxu1 %v11336_v13  ;;  %v11367_v18 = vcombine.low %v512_v22, %v520_v25  ;;  %v11382_v13 = vcombine.high %v527_v43, %v535_v20  ;;  %v11383_v25 = vcombine.low %v528_v63, %v536_v11  ;;  %v14621_v63 = vld [vmem:[#allocation5 + $0xbb8] sm:$0xff] }
 0x225   :  { %v14623_v11 = vld [vmem:[#allocation5 + $0xbf8] sm:$0xff] }
 0x226   :  { %4900 = vmatmul.mubr.bf16.gmra.mrb[100].mxu0 %v13913_v14  ;;  %5126 = vmatmul.mubr.bf16.gmra.mrb[100].mxu1 %v13913_v14  ;;  %v11381_v14 = vcombine.low %v527_v43, %v535_v20  ;;  %v14618_v43 = vld [vmem:[#allocation5 + $0xbf0] sm:$0xff] }
 0x227   :  { %4975 = vmatpush1.bf16.msra.mxu0 %v11333_v33  ;;  %5201 = vmatpush1.bf16.msra.mxu1 %v11335_v30  ;;  %v13916_v33 = vld [vmem:[#allocation7] sm:$0xff] }
 0x228   :  { %4976 = vmatprep.subr.bf16.mxu0 %v11350_v4  ;;  %5202 = vmatprep.subr.bf16.mxu1 %v11352_v48  ;;  %v14594_v30 = vrot.slane %v13916_v33, %v15519_v8  ;;  %v14596_v4 = vld [vmem:[#allocation5 + $0xb38] sm:$0xff]  ;;  %v14602_v7 = vrot.slane %v13916_v33, %v15518_v12  ;;  %v14606_v26 = vrot.slane %v13916_v33, %v15517_v23 }
 0x229   :  { %4909 = vmatprep.mubr.bf16.mxu0 %v13914_v27  ;;  %5135 = vmatprep.mubr.bf16.mxu1 %v13914_v27  ;;  %v14598_v48 = vld [vmem:[#allocation5 + $0xb78] sm:$0xff]  ;;  %v14610_v22 = vrot.slane %v13916_v33, %v15516_v59  ;;  %v11397_v59 = vcombine.low %v14588_v21, %v14590_v1 }
 0x22a   :  { %v11400_v27 = vcombine.high %v14596_v4, %v14598_v48 }
 0x22b   :  { %4977 = vmatpush1.bf16.msra.mxu0 %v11349_v16  ;;  %5203 = vmatpush1.bf16.msra.mxu1 %v11351_v62  ;;  %v11398_v16 = vcombine.high %v14588_v21, %v14590_v1  ;;  %v11416_v1 = vcombine.high %v14621_v63, %v14623_v11 }
 0x22c   :  { %4978 = vmatprep.subr.bf16.mxu0 %v11366_v60  ;;  %5204 = vmatprep.subr.bf16.mxu1 %v11368_v61  ;;  %v13917_v60 = vld [vmem:[#allocation2 + $0x64] ss:$16 sps:$4 sm:$0xff]  }
 0x22d   :  { %v14616_v61 = vld [vmem:[#allocation5 + $0xbb0] sm:$0xff] }
 0x22e   :  { %4910 = vmatmul.mubr.bf16.gmra.mrb[104].mxu0 %v13915_v17  ;;  %5136 = vmatmul.mubr.bf16.gmra.mrb[104].mxu1 %v13915_v17  ;;  %v11413_v21 = vcombine.low %v14616_v61, %v14618_v43 }
 0x22f   :  { %4979 = vmatpush1.bf16.msra.mxu0 %v11365_v45  ;;  %5205 = vmatpush1.bf16.msra.mxu1 %v11367_v18 }
 0x230   :  { %4980 = vmatprep.subr.bf16.mxu0 %v11382_v13  ;;  %5206 = vmatprep.subr.bf16.mxu1 %v11384_v0 }
 0x231   :  { %v4100_v62 = vpop.f32.mrb[32].mxu0  ;;  %4919 = vmatprep.mubr.bf16.mxu0 %v13917_v60  ;;  %v4326_v45 = vpop.f32.mrb[32].mxu1  ;;  %5145 = vmatprep.mubr.bf16.mxu1 %v13917_v60 }
 0x232   :  { %v12121_v20 = vadd.f32 %v4100_v62, %v14594_v30  ;;  %v4102_v18 = vpop.f32.mrb[33].mxu0  ;;  %v12153_v13 = vadd.f32 %v4326_v45, %v14602_v7  ;;  %v4328_v17 = vpop.f32.mrb[33].mxu1  ;;  %v11399_v62 = vcombine.low %v14596_v4, %v14598_v48  ;;  %v11414_v45 = vcombine.high %v14616_v61, %v14618_v43  ;;  %v14641_v4 = vld [vmem:[#allocation5 + $0xc30] sm:$0xff] }
 0x233   :  { %v12122_v0 = vadd.f32 %v4102_v18, %v14606_v26  ;;  %v4104_v33 = vpop.f32.mrb[34].mxu0  ;;  %4981 = vmatpush1.bf16.msra.mxu0 %v11381_v14  ;;  %v12154_v23 = vadd.f32 %v4328_v17, %v14610_v22  ;;  %v4330_v12 = vpop.f32.mrb[34].mxu1  ;;  %5207 = vmatpush1.bf16.msra.mxu1 %v11383_v25  ;;  %v14643_v48 = vld [vmem:[#allocation5 + $0xc70] sm:$0xff] }
 0x234   :  { %v12123_v60 = vadd.f32 %v4104_v33, %v14594_v30  ;;  %v4106_v8 = vpop.f32.mrb[35].mxu0  ;;  %4982 = vmatprep.subr.bf16.mxu0 %v11398_v16  ;;  %v12155_v18 = vadd.f32 %v4330_v12, %v14602_v7  ;;  %v4332_v39 = vpop.f32.mrb[35].mxu1  ;;  %5208 = vmatprep.subr.bf16.mxu1 %v11400_v27  ;;  %v5313_v25 = vmax.f32 %v12121_v20, 0.0  ;;  %v13918_v33 = vld [vmem:[#allocation2 + $0x60] ss:$16 sps:$4 sm:$0xff]   ;;  %v14648_v12 = vld [vmem:[#allocation5 + $0xc38] sm:$0xff] }
 0x235   :  { %v12124_v14 = vadd.f32 %v4106_v8, %v14606_v26  ;;  %v12156_v17 = vadd.f32 %v4332_v39, %v14610_v22  ;;  %v11415_v8 = vcombine.low %v14621_v63, %v14623_v11  ;;  %v14650_v27 = vld [vmem:[#allocation5 + $0xc78] sm:$0xff]  ;;  %v5315_v61 = vmax.f32 %v12153_v13, 0.0  ;;  %v13919_v13 = vld [vmem:[#allocation2 + $0x84] ss:$16 sps:$4 sm:$0xff]  }
 0x236   :  { %v5329_v16 = vmax.f32 %v12123_v60, 0.0  ;;  %4920 = vmatmul.mubr.bf16.gmra.mrb[108].mxu0 %v13918_v33  ;;  %v5314_v43 = vmax.f32 %v12122_v0, 0.0  ;;  %v5331_v29 = vmax.f32 %v12155_v18, 0.0  ;;  %5146 = vmatmul.mubr.bf16.gmra.mrb[108].mxu1 %v13918_v33  ;;  %v5316_v9 = vmax.f32 %v12154_v23, 0.0  ;;  %v14662_v23 = vld [vmem:[#allocation5 + $0xcb0] sm:$0xff] }
 0x237   :  { %v5330_v34 = vmax.f32 %v12124_v14, 0.0  ;;  %4983 = vmatpush1.bf16.msra.mxu0 %v11397_v59  ;;  %v5332_v60 = vmax.f32 %v12156_v17, 0.0  ;;  %5209 = vmatpush1.bf16.msra.mxu1 %v11399_v62  ;;  %v11430_v39 = vcombine.high %v14641_v4, %v14643_v48  ;;  %v11432_v59 = vcombine.high %v14648_v12, %v14650_v27  ;;  %v14664_v0 = vld [vmem:[#allocation5 + $0xcf0] sm:$0xff]  ;;  %v14671_v14 = vld [vmem:[#allocation5 + $0xcf8] sm:$0xff] }
 0x238   :  { %v14652_v20 = vpack.c.bf16 %v5329_v16, %v5313_v25  ;;  %4984 = vmatprep.subr.bf16.mxu0 %v11414_v45  ;;  %v14656_v63 = vpack.c.bf16 %v5331_v29, %v5315_v61  ;;  %5210 = vmatprep.subr.bf16.mxu1 %v11416_v1 }
 0x239   :  { %v14658_v11 = vpack.c.bf16 %v5330_v34, %v5314_v43  ;;  %v4110_v15 = vpop.f32.mrb[36].mxu0  ;;  %4929 = vmatprep.mubr.bf16.mxu0 %v13919_v13  ;;  %v14666_v62 = vpack.c.bf16 %v5332_v60, %v5316_v9  ;;  %v4336_v18 = vpop.f32.mrb[36].mxu1  ;;  %5155 = vmatprep.mubr.bf16.mxu1 %v13919_v13  ;;  %v14669_v34 = vld [vmem:[#allocation5 + $0xcb8] sm:$0xff]  ;;  %v11429_v9 = vcombine.low %v14641_v4, %v14643_v48 }
 0x23a   :  { %15589 = vst [vmem:[#allocation27_spill] sm:$0xff] %v14652_v20  ;;  %15590 = vst [vmem:[#allocation28_spill] sm:$0xff] %v14656_v63  ;;  %v12125_v45 = vadd.f32 %v4110_v15, %v14594_v30  ;;  %v4112_v29 = vpop.f32.mrb[37].mxu0  ;;  %v12157_v1 = vadd.f32 %v4336_v18, %v14602_v7  ;;  %v4338_v16 = vpop.f32.mrb[37].mxu1  ;;  %v11431_v15 = vcombine.low %v14648_v12, %v14650_v27  ;;  %v14689_v12 = vld [vmem:[#allocation5 + $0xd30] sm:$0xff] }
 0x23b   :  { %15591 = vst [vmem:[#allocation29_spill] sm:$0xff] %v14658_v11  ;;  %15592 = vst [vmem:[#allocation30_spill] sm:$0xff] %v14666_v62  ;;  %v12126_v25 = vadd.f32 %v4112_v29, %v14606_v26  ;;  %v4114_v17 = vpop.f32.mrb[38].mxu0  ;;  %4985 = vmatpush1.bf16.msra.mxu0 %v11413_v21  ;;  %v12158_v33 = vadd.f32 %v4338_v16, %v14610_v22  ;;  %v4340_v43 = vpop.f32.mrb[38].mxu1  ;;  %5211 = vmatpush1.bf16.msra.mxu1 %v11415_v8  ;;  %v14691_v8 = vld [vmem:[#allocation5 + $0xd70] sm:$0xff] }
 0x23c   :  { %v12127_v61 = vadd.f32 %v4114_v17, %v14594_v30  ;;  %v4116_v60 = vpop.f32.mrb[39].mxu0  ;;  %4986 = vmatprep.subr.bf16.mxu0 %v11430_v39  ;;  %v11446_v13 = vcombine.high %v14662_v23, %v14664_v0  ;;  %v12159_v18 = vadd.f32 %v4340_v43, %v14602_v7  ;;  %v4342_v29 = vpop.f32.mrb[39].mxu1  ;;  %5212 = vmatprep.subr.bf16.mxu1 %v11432_v59  ;;  %v5345_v27 = vmax.f32 %v12125_v45, 0.0  ;;  %v13920_v17 = vld [vmem:[#allocation2 + $0x80] ss:$16 sps:$4 sm:$0xff]   ;;  %v14696_v59 = vld [vmem:[#allocation5 + $0xd38] sm:$0xff] }
 0x23d   :  { %v12128_v21 = vadd.f32 %v4116_v60, %v14606_v26  ;;  %v11445_v4 = vcombine.low %v14662_v23, %v14664_v0  ;;  %v11448_v48 = vcombine.high %v14669_v34, %v14671_v14  ;;  %v12160_v16 = vadd.f32 %v4342_v29, %v14610_v22  ;;  %v14698_v60 = vld [vmem:[#allocation5 + $0xd78] sm:$0xff] }
 0x23e   :  { %v5361_v39 = vmax.f32 %v12127_v61, 0.0  ;;  %4930 = vmatmul.mubr.bf16.gmra.mrb[112].mxu0 %v13920_v17  ;;  %v11447_v43 = vcombine.low %v14669_v34, %v14671_v14  ;;  %v5347_v23 = vmax.f32 %v12157_v1, 0.0  ;;  %v5346_v0 = vmax.f32 %v12126_v25, 0.0  ;;  %5156 = vmatmul.mubr.bf16.gmra.mrb[112].mxu1 %v13920_v17  ;;  %v13921_v1 = vld [vmem:[#allocation2 + $0xa4] ss:$16 sps:$4 sm:$0xff]  }
 0x23f   :  { %v5363_v63 = vmax.f32 %v12159_v18, 0.0  ;;  %v5362_v62 = vmax.f32 %v12128_v21, 0.0  ;;  %4987 = vmatpush1.bf16.msra.mxu0 %v11429_v9  ;;  %v5348_v20 = vmax.f32 %v12158_v33, 0.0  ;;  %v5364_v61 = vmax.f32 %v12160_v16, 0.0  ;;  %5213 = vmatpush1.bf16.msra.mxu1 %v11431_v15  ;;  %v14710_v9 = vld [vmem:[#allocation5 + $0xdb0] sm:$0xff]  ;;  %v14719_v21 = vld [vmem:[#allocation5 + $0xdf8] sm:$0xff] }
 0x240   :  { %v14700_v45 = vpack.c.bf16 %v5361_v39, %v5345_v27  ;;  %4988 = vmatprep.subr.bf16.mxu0 %v11446_v13  ;;  %v11462_v29 = vcombine.high %v14689_v12, %v14691_v8  ;;  %5214 = vmatprep.subr.bf16.mxu1 %v11448_v48  ;;  %v11464_v25 = vcombine.high %v14696_v59, %v14698_v60  ;;  %v14712_v33 = vld [vmem:[#allocation5 + $0xdf0] sm:$0xff] }
 0x241   :  { %v14704_v34 = vpack.c.bf16 %v5363_v63, %v5347_v23  ;;  %v14706_v14 = vpack.c.bf16 %v5362_v62, %v5346_v0  ;;  %v4120_v11 = vpop.f32.mrb[40].mxu0  ;;  %4939 = vmatprep.mubr.bf16.mxu0 %v13921_v1  ;;  %v14714_v15 = vpack.c.bf16 %v5364_v61, %v5348_v20  ;;  %v4346_v18 = vpop.f32.mrb[40].mxu1  ;;  %5165 = vmatprep.mubr.bf16.mxu1 %v13921_v1  ;;  %v14717_v62 = vld [vmem:[#allocation5 + $0xdb8] sm:$0xff] }
 0x242   :  { %15593 = vst [vmem:[#allocation31_spill] sm:$0xff] %v14700_v45  ;;  %v12129_v13 = vadd.f32 %v4120_v11, %v14594_v30  ;;  %v4122_v63 = vpop.f32.mrb[41].mxu0  ;;  %v12161_v48 = vadd.f32 %v4346_v18, %v14602_v7  ;;  %v4348_v39 = vpop.f32.mrb[41].mxu1  ;;  %v11461_v20 = vcombine.low %v14689_v12, %v14691_v8  ;;  %v11463_v11 = vcombine.low %v14696_v59, %v14698_v60  ;;  %v14737_v59 = vld [vmem:[#allocation5 + $0xe30] sm:$0xff] }
 0x243   :  { %15594 = vst [vmem:[#allocation32_spill] sm:$0xff] %v14704_v34  ;;  %15595 = vst [vmem:[#allocation33_spill] sm:$0xff] %v14706_v14  ;;  %v12130_v27 = vadd.f32 %v4122_v63, %v14606_v26  ;;  %v4124_v16 = vpop.f32.mrb[42].mxu0  ;;  %4989 = vmatpush1.bf16.msra.mxu0 %v11445_v4  ;;  %v12162_v17 = vadd.f32 %v4348_v39, %v14610_v22  ;;  %v4350_v0 = vpop.f32.mrb[42].mxu1  ;;  %5215 = vmatpush1.bf16.msra.mxu1 %v11447_v43  ;;  %v14739_v43 = vld [vmem:[#allocation5 + $0xe70] sm:$0xff] }
 0x244   :  { %15596 = vst [vmem:[#allocation34_spill] sm:$0xff] %v14714_v15  ;;  %v12131_v23 = vadd.f32 %v4124_v16, %v14594_v30  ;;  %v4126_v61 = vpop.f32.mrb[43].mxu0  ;;  %4990 = vmatprep.subr.bf16.mxu0 %v11462_v29  ;;  %v11478_v1 = vcombine.high %v14710_v9, %v14712_v33  ;;  %v12163_v18 = vadd.f32 %v4350_v0, %v14602_v7  ;;  %v4352_v63 = vpop.f32.mrb[43].mxu1  ;;  %v5377_v60 = vmax.f32 %v12129_v13, 0.0  ;;  %v13922_v16 = vld [vmem:[#allocation2 + $0xa0] ss:$16 sps:$4 sm:$0xff]  }
 0x245   :  { %v12132_v4 = vadd.f32 %v4126_v61, %v14606_v26  ;;  %5216 = vmatprep.subr.bf16.mxu1 %v11464_v25  ;;  %v11477_v12 = vcombine.low %v14710_v9, %v14712_v33  ;;  %v11480_v8 = vcombine.high %v14717_v62, %v14719_v21  ;;  %v12164_v39 = vadd.f32 %v4352_v63, %v14610_v22  ;;  %v14744_v25 = vld [vmem:[#allocation5 + $0xe38] sm:$0xff] }
 0x246   :  { %v5393_v29 = vmax.f32 %v12131_v23, 0.0  ;;  %4940 = vmatmul.mubr.bf16.gmra.mrb[116].mxu0 %v13922_v16  ;;  %v11479_v0 = vcombine.low %v14717_v62, %v14719_v21  ;;  %v14746_v61 = vld [vmem:[#allocation5 + $0xe78] sm:$0xff]  ;;  %v5379_v9 = vmax.f32 %v12161_v48, 0.0  ;;  %v5378_v33 = vmax.f32 %v12130_v27, 0.0  ;;  %5166 = vmatmul.mubr.bf16.gmra.mrb[116].mxu1 %v13922_v16  ;;  %v13923_v48 = vld [vmem:[#allocation2 + $0xc4] ss:$16 sps:$4 sm:$0xff]  }
 0x247   :  { %v5395_v34 = vmax.f32 %v12163_v18, 0.0  ;;  %v5394_v15 = vmax.f32 %v12132_v4, 0.0  ;;  %4991 = vmatpush1.bf16.msra.mxu0 %v11461_v20  ;;  %v5380_v45 = vmax.f32 %v12162_v17, 0.0  ;;  %v5396_v23 = vmax.f32 %v12164_v39, 0.0  ;;  %5217 = vmatpush1.bf16.msra.mxu1 %v11463_v11  ;;  %v14758_v20 = vld [vmem:[#allocation5 + $0xeb0] sm:$0xff]  ;;  %v14767_v4 = vld [vmem:[#allocation5 + $0xef8] sm:$0xff] }
 0x248   :  { %v14748_v13 = vpack.c.bf16 %v5393_v29, %v5377_v60  ;;  %4992 = vmatprep.subr.bf16.mxu0 %v11478_v1  ;;  %v11494_v63 = vcombine.high %v14737_v59, %v14739_v43  ;;  %5218 = vmatprep.subr.bf16.mxu1 %v11480_v8  ;;  %v11496_v27 = vcombine.high %v14744_v25, %v14746_v61  ;;  %v14760_v17 = vld [vmem:[#allocation5 + $0xef0] sm:$0xff] }
 0x249   :  { %v14752_v62 = vpack.c.bf16 %v5395_v34, %v5379_v9  ;;  %v14754_v21 = vpack.c.bf16 %v5394_v15, %v5378_v33  ;;  %v4130_v14 = vpop.f32.mrb[44].mxu0  ;;  %4949 = vmatprep.mubr.bf16.mxu0 %v13923_v48  ;;  %v14762_v11 = vpack.c.bf16 %v5396_v23, %v5380_v45  ;;  %v4356_v18 = vpop.f32.mrb[44].mxu1  ;;  %5175 = vmatprep.mubr.bf16.mxu1 %v13923_v48  ;;  %v14765_v15 = vld [vmem:[#allocation5 + $0xeb8] sm:$0xff] }
 0x24a   :  { %15597 = vst [vmem:[#allocation35_spill] sm:$0xff] %v14748_v13  ;;  %v12133_v1 = vadd.f32 %v4130_v14, %v14594_v30  ;;  %v4132_v34 = vpop.f32.mrb[45].mxu0  ;;  %v12165_v8 = vadd.f32 %v4356_v18, %v14602_v7  ;;  %v4358_v29 = vpop.f32.mrb[45].mxu1  ;;  %v11493_v45 = vcombine.low %v14737_v59, %v14739_v43  ;;  %v11495_v14 = vcombine.low %v14744_v25, %v14746_v61  ;;  %v14785_v25 = vld [vmem:[#allocation5 + $0xf30] sm:$0xff] }
 0x24b   :  { %15598 = vst [vmem:[#allocation36_spill] sm:$0xff] %v14752_v62  ;;  %15599 = vst [vmem:[#allocation37_spill] sm:$0xff] %v14754_v21  ;;  %v12134_v60 = vadd.f32 %v4132_v34, %v14606_v26  ;;  %v4134_v39 = vpop.f32.mrb[46].mxu0  ;;  %4993 = vmatpush1.bf16.msra.mxu0 %v11477_v12  ;;  %v12166_v16 = vadd.f32 %v4358_v29, %v14610_v22  ;;  %v4360_v33 = vpop.f32.mrb[46].mxu1  ;;  %5219 = vmatpush1.bf16.msra.mxu1 %v11479_v0  ;;  %v14787_v0 = vld [vmem:[#allocation5 + $0xf70] sm:$0xff] }
 0x24c   :  { %15600 = vst [vmem:[#allocation38_spill] sm:$0xff] %v14762_v11  ;;  %v12135_v9 = vadd.f32 %v4134_v39, %v14594_v30  ;;  %v4136_v23 = vpop.f32.mrb[47].mxu0  ;;  %4994 = vmatprep.subr.bf16.mxu0 %v11494_v63  ;;  %v11510_v48 = vcombine.high %v14758_v20, %v14760_v17  ;;  %v12167_v18 = vadd.f32 %v4360_v33, %v14602_v7  ;;  %v4362_v34 = vpop.f32.mrb[47].mxu1  ;;  %v5409_v61 = vmax.f32 %v12133_v1, 0.0  ;;  %v13924_v39 = vld [vmem:[#allocation2 + $0xc0] ss:$16 sps:$4 sm:$0xff]  }
 0x24d   :  { %v12136_v12 = vadd.f32 %v4136_v23, %v14606_v26  ;;  %5220 = vmatprep.subr.bf16.mxu1 %v11496_v27  ;;  %v11509_v59 = vcombine.low %v14758_v20, %v14760_v17  ;;  %v11512_v43 = vcombine.high %v14765_v15, %v14767_v4  ;;  %v12168_v29 = vadd.f32 %v4362_v34, %v14610_v22  ;;  %v14792_v27 = vld [vmem:[#allocation5 + $0xf38] sm:$0xff] }
 0x24e   :  { %v5425_v63 = vmax.f32 %v12135_v9, 0.0  ;;  %4950 = vmatmul.mubr.bf16.gmra.mrb[120].mxu0 %v13924_v39  ;;  %v11511_v33 = vcombine.low %v14765_v15, %v14767_v4  ;;  %v14794_v23 = vld [vmem:[#allocation5 + $0xf78] sm:$0xff]  ;;  %v5411_v20 = vmax.f32 %v12165_v8, 0.0  ;;  %v5410_v17 = vmax.f32 %v12134_v60, 0.0  ;;  %5176 = vmatmul.mubr.bf16.gmra.mrb[120].mxu1 %v13924_v39  ;;  %v13925_v8 = vld [vmem:[#allocation2 + $0xe4] ss:$16 sps:$4 sm:$0xff]  }
 0x24f   :  { %v5427_v62 = vmax.f32 %v12167_v18, 0.0  ;;  %v5426_v11 = vmax.f32 %v12136_v12, 0.0  ;;  %4995 = vmatpush1.bf16.msra.mxu0 %v11493_v45  ;;  %v5412_v13 = vmax.f32 %v12166_v16, 0.0  ;;  %v5428_v9 = vmax.f32 %v12168_v29, 0.0  ;;  %5221 = vmatpush1.bf16.msra.mxu1 %v11495_v14  ;;  %v14806_v45 = vld [vmem:[#allocation5 + $0xfb0] sm:$0xff] }
 0x250   :  { %v14796_v1 = vpack.c.bf16 %v5425_v63, %v5409_v61  ;;  %4996 = vmatprep.subr.bf16.mxu0 %v11510_v48  ;;  %v11526_v34 = vcombine.high %v14785_v25, %v14787_v0  ;;  %5222 = vmatprep.subr.bf16.mxu1 %v11512_v43  ;;  %v11528_v60 = vcombine.high %v14792_v27, %v14794_v23  ;;  %v695_v16 = vld [vmem:[#allocation5 + $0xff0] sm:$0xff] }
 0x251   :  { %v14800_v15 = vpack.c.bf16 %v5427_v62, %v5411_v20  ;;  %v14802_v4 = vpack.c.bf16 %v5426_v11, %v5410_v17  ;;  %v4140_v21 = vpop.f32.mrb[48].mxu0  ;;  %4959 = vmatprep.mubr.bf16.mxu0 %v13925_v8  ;;  %v14808_v18 = vpack.c.bf16 %v5428_v9, %v5412_v13  ;;  %v4366_v48 = vpop.f32.mrb[48].mxu1  ;;  %5185 = vmatprep.mubr.bf16.mxu1 %v13925_v8  ;;  %v688_v62 = vld [vmem:[#allocation5 + $0xfb8] sm:$0xff] }
 0x252   :  { %15601 = vst [vmem:[#allocation39_spill] sm:$0xff] %v14796_v1  ;;  %v12137_v14 = vadd.f32 %v4140_v21, %v14594_v30  ;;  %v4142_v12 = vpop.f32.mrb[49].mxu0  ;;  %v696_v11 = vld [vmem:[#allocation5 + $0xff8] sm:$0xff]  ;;  %v12169_v61 = vadd.f32 %v4366_v48, %v14602_v7  ;;  %v4368_v63 = vpop.f32.mrb[49].mxu1  ;;  %v11525_v39 = vcombine.low %v14785_v25, %v14787_v0  ;;  %v11527_v13 = vcombine.low %v14792_v27, %v14794_v23  ;;  %v13926_v23 = vld [vmem:[#allocation2 + $0xe0] ss:$16 sps:$4 sm:$0xff]  }
 0x253   :  { %15602 = vst [vmem:[#allocation40_spill] sm:$0xff] %v14800_v15  ;;  %15603 = vst [vmem:[#allocation41_spill] sm:$0xff] %v14802_v4  ;;  %v12138_v43 = vadd.f32 %v4142_v12, %v14606_v26  ;;  %v4144_v29 = vpop.f32.mrb[50].mxu0  ;;  %4997 = vmatpush1.bf16.msra.mxu0 %v11509_v59  ;;  %v12170_v21 = vadd.f32 %v4368_v63, %v14610_v22  ;;  %v4370_v17 = vpop.f32.mrb[50].mxu1  ;;  %5223 = vmatpush1.bf16.msra.mxu1 %v11511_v33 }
 0x254   :  { %15604 = vst [vmem:[#allocation42_spill] sm:$0xff] %v14808_v18  ;;  %v12139_v20 = vadd.f32 %v4144_v29, %v14594_v30  ;;  %v4146_v9 = vpop.f32.mrb[51].mxu0  ;;  %4998 = vmatprep.subr.bf16.mxu0 %v11526_v34  ;;  %v11542_v8 = vcombine.high %v14806_v45, %v695_v16  ;;  %v12171_v48 = vadd.f32 %v4370_v17, %v14602_v7  ;;  %v4372_v12 = vpop.f32.mrb[51].mxu1  ;;  %v5441_v0 = vmax.f32 %v12137_v14, 0.0  ;;  %v13080_v14 = vld [vmem:[#allocation8 + $0x4] ss:$16 sps:$4 sm:$0xff]  }
 0x255   :  { %v12140_v59 = vadd.f32 %v4146_v9, %v14606_v26  ;;  %5224 = vmatprep.subr.bf16.mxu1 %v11528_v60  ;;  %v11544_v25 = vcombine.high %v688_v62, %v696_v11  ;;  %v12172_v27 = vadd.f32 %v4372_v12, %v14610_v22  ;;  %v11541_v63 = vcombine.low %v14806_v45, %v695_v16  ;;  %v13927_v45 = vld [vmem:[#allocation2 + $0xc] ss:$16 sps:$4 sm:$0xff]  }
 0x256   :  { %v5457_v15 = vmax.f32 %v12139_v20, 0.0  ;;  %4960 = vmatmul.mubr.bf16.gmra.mrb[124].mxu0 %v13926_v23  ;;  %v5443_v33 = vmax.f32 %v12169_v61, 0.0  ;;  %v5442_v29 = vmax.f32 %v12138_v43, 0.0  ;;  %v5459_v34 = vmax.f32 %v12171_v48, 0.0  ;;  %5186 = vmatmul.mubr.bf16.gmra.mrb[124].mxu1 %v13926_v23  ;;  %v13083_v16 = vld [vmem:[#allocation8 + $0xc] ss:$16 sps:$4 sm:$0xff]  }
 0x257   :  { %v5458_v18 = vmax.f32 %v12140_v59, 0.0  ;;  %4999 = vmatpush1.bf16.msra.mxu0 %v11525_v39  ;;  %v5444_v17 = vmax.f32 %v12170_v21, 0.0  ;;  %v5460_v9 = vmax.f32 %v12172_v27, 0.0  ;;  %5225 = vmatpush1.bf16.msra.mxu1 %v11527_v13  ;;  %v11543_v60 = vcombine.low %v688_v62, %v696_v11 }
 0x258   :  { %v14824_v1 = vpack.c.bf16 %v5457_v15, %v5441_v0  ;;  %5000 = vmatprep.subr.bf16.mxu0 %v11542_v8  ;;  %v14826_v20 = vpack.c.bf16 %v5459_v34, %v5443_v33  ;;  %5226 = vmatprep.subr.bf16.mxu1 %v11544_v25  ;;  %v13086_v0 = vld [vmem:[#allocation8 + $0x24] ss:$16 sps:$4 sm:$0xff]  }
 0x259   :  { %v14828_v12 = vpack.c.bf16 %v5458_v18, %v5442_v29  ;;  %v4150_v4 = vpop.f32.mrb[52].mxu0  ;;  %5002 = vmatprep.mubr.bf16.mxu0 %v13927_v45  ;;  %v14830_v61 = vpack.c.bf16 %v5460_v9, %v5444_v17  ;;  %v4376_v15 = vpop.f32.mrb[52].mxu1  ;;  %5228 = vmatprep.mubr.bf16.mxu1 %v13927_v45  ;;  %v13078_v18 = vld [vmem:[#allocation8] ss:$16 sps:$4 sm:$0xff]   ;;  %v13089_v29 = vld [vmem:[#allocation8 + $0x2c] ss:$16 sps:$4 sm:$0xff]  }
 0x25a   :  { %15605 = vst [vmem:[#allocation43_spill] sm:$0xff] %v14826_v20  ;;  %v12141_v43 = vadd.f32 %v4150_v4, %v14594_v30  ;;  %v4152_v39 = vpop.f32.mrb[53].mxu0  ;;  %v12173_v13 = vadd.f32 %v4376_v15, %v14602_v7  ;;  %v4378_v11 = vpop.f32.mrb[53].mxu1  ;;  %v13081_v4 = vld [vmem:[#allocation8 + $0x8] ss:$16 sps:$4 sm:$0xff]  }
 0x25b   :  { %15606 = vst [vmem:[#allocation44_spill] sm:$0xff] %v14830_v61  ;;  %v12142_v62 = vadd.f32 %v4152_v39, %v14606_v26  ;;  %v4154_v21 = vpop.f32.mrb[54].mxu0  ;;  %5001 = vmatpush1.bf16.msra.mxu0 %v11541_v63  ;;  %v12174_v8 = vadd.f32 %v4378_v11, %v14610_v22  ;;  %v4380_v59 = vpop.f32.mrb[54].mxu1  ;;  %5227 = vmatpush1.bf16.msra.mxu1 %v11543_v60  ;;  %v13928_v9 = vld [vmem:[#allocation2 + $0x8] ss:$16 sps:$4 sm:$0xff]  }
 0x25c   :  { %v12143_v48 = vadd.f32 %v4154_v21, %v14594_v30  ;;  %v4156_v25 = vpop.f32.mrb[55].mxu0  ;;  %8829 = vmatprep.subr.bf16.mxu0 %v13080_v14  ;;  %v12175_v27 = vadd.f32 %v4380_v59, %v14602_v7  ;;  %v4382_v33 = vpop.f32.mrb[55].mxu1  ;;  %9733 = vmatprep.subr.bf16.mxu1 %v13083_v16  ;;  %v5473_v34 = vmax.f32 %v12141_v43, 0.0  ;;  %v5475_v45 = vmax.f32 %v12173_v13, 0.0  ;;  %v13084_v14 = vld [vmem:[#allocation8 + $0x20] ss:$16 sps:$4 sm:$0xff]  }
 0x25d   :  { %v12144_v23 = vadd.f32 %v4156_v25, %v14606_v26  ;;  %v12176_v17 = vadd.f32 %v4382_v33, %v14610_v22  ;;  %v5474_v15 = vmax.f32 %v12142_v62, 0.0  ;;  %v5476_v11 = vmax.f32 %v12174_v8, 0.0  ;;  %v13087_v16 = vld [vmem:[#allocation8 + $0x28] ss:$16 sps:$4 sm:$0xff]   ;;  %v13092_v43 = vld [vmem:[#allocation8 + $0x44] ss:$16 sps:$4 sm:$0xff]  }
 0x25e   :  { %v5489_v63 = vmax.f32 %v12143_v48, 0.0  ;;  %5003 = vmatmul.mubr.bf16.vlgmr.msra.gmra.mrb[96].mxu0 %v13928_v9  ;;  %v5491_v60 = vmax.f32 %v12175_v27, 0.0  ;;  %5229 = vmatmul.mubr.bf16.vlgmr.msra.gmra.mrb[96].mxu1 %v13928_v9  ;;  %v13929_v13 = vld [vmem:[#allocation2 + $0x2c] ss:$16 sps:$4 sm:$0xff]  }
 0x25f   :  { %v5490_v39 = vmax.f32 %v12144_v23, 0.0  ;;  %8830 = vmatpush1.bf16.msra.mxu0 %v13078_v18  ;;  %v5492_v59 = vmax.f32 %v12176_v17, 0.0  ;;  %9734 = vmatpush1.bf16.msra.mxu1 %v13081_v4  ;;  %v13095_v62 = vld [vmem:[#allocation8 + $0x4c] ss:$16 sps:$4 sm:$0xff]   ;;  %v13090_v17 = vld [vmem:[#allocation8 + $0x40] ss:$16 sps:$4 sm:$0xff]  }
 0x260   :  { %v14840_v21 = vpack.c.bf16 %v5489_v63, %v5473_v34  ;;  %8831 = vmatprep.subr.bf16.mxu0 %v13086_v0  ;;  %v14842_v48 = vpack.c.bf16 %v5491_v60, %v5475_v45  ;;  %9735 = vmatprep.subr.bf16.mxu1 %v13089_v29  ;;  %v13093_v60 = vld [vmem:[#allocation8 + $0x48] ss:$16 sps:$4 sm:$0xff]  }
 0x261   :  { %v14844_v25 = vpack.c.bf16 %v5490_v39, %v5474_v15  ;;  %v4160_v33 = vpop.f32.mrb[56].mxu0  ;;  %5012 = vmatprep.mubr.bf16.mxu0 %v13929_v13  ;;  %v14846_v27 = vpack.c.bf16 %v5492_v59, %v5476_v11  ;;  %v4386_v8 = vpop.f32.mrb[56].mxu1  ;;  %5238 = vmatprep.mubr.bf16.mxu1 %v13929_v13  ;;  %v13098_v39 = vld [vmem:[#allocation8 + $0x64] ss:$16 sps:$4 sm:$0xff]   ;;  %v13101_v13 = vld [vmem:[#allocation8 + $0x6c] ss:$16 sps:$4 sm:$0xff]  }
 0x262   :  { %15607 = vst [vmem:[#allocation45_spill] sm:$0xff] %v14842_v48  ;;  %v12145_v18 = vadd.f32 %v4160_v33, %v14594_v30  ;;  %v4162_v23 = vpop.f32.mrb[57].mxu0  ;;  %v12177_v4 = vadd.f32 %v4386_v8, %v14602_v7  ;;  %v4388_v34 = vpop.f32.mrb[57].mxu1 }
 0x263   :  { %15608 = vst [vmem:[#allocation46_spill] sm:$0xff] %v14846_v27  ;;  %v12146_v0 = vadd.f32 %v4162_v23, %v14606_v26  ;;  %v4164_v63 = vpop.f32.mrb[58].mxu0  ;;  %8832 = vmatpush1.bf16.msra.mxu0 %v13084_v14  ;;  %v12178_v29 = vadd.f32 %v4388_v34, %v14610_v22  ;;  %v4390_v45 = vpop.f32.mrb[58].mxu1  ;;  %9736 = vmatpush1.bf16.msra.mxu1 %v13087_v16  ;;  %v13930_v34 = vld [vmem:[#allocation2 + $0x28] ss:$16 sps:$4 sm:$0xff]  }
 0x264   :  { %v12147_v9 = vadd.f32 %v4164_v63, %v14594_v30  ;;  %v4166_v15 = vpop.f32.mrb[59].mxu0  ;;  %8833 = vmatprep.subr.bf16.mxu0 %v13092_v43  ;;  %v12179_v11 = vadd.f32 %v4390_v45, %v14602_v7  ;;  %v4392_v33 = vpop.f32.mrb[59].mxu1  ;;  %9737 = vmatprep.subr.bf16.mxu1 %v13095_v62  ;;  %v5505_v8 = vmax.f32 %v12145_v18, 0.0  ;;  %v5507_v63 = vmax.f32 %v12177_v4, 0.0  ;;  %v13096_v43 = vld [vmem:[#allocation8 + $0x60] ss:$16 sps:$4 sm:$0xff]  }
 0x265   :  { %v12148_v59 = vadd.f32 %v4166_v15, %v14606_v26  ;;  %v12180_v23 = vadd.f32 %v4392_v33, %v14610_v22  ;;  %v5506_v48 = vmax.f32 %v12146_v0, 0.0  ;;  %v5508_v20 = vmax.f32 %v12178_v29, 0.0  ;;  %v13099_v62 = vld [vmem:[#allocation8 + $0x68] ss:$16 sps:$4 sm:$0xff]   ;;  %v13104_v18 = vld [vmem:[#allocation8 + $0x84] ss:$16 sps:$4 sm:$0xff]  }
 0x266   :  { %v5521_v14 = vmax.f32 %v12147_v9, 0.0  ;;  %5013 = vmatmul.mubr.bf16.gmra.mrb[100].mxu0 %v13930_v34  ;;  %v5523_v16 = vmax.f32 %v12179_v11, 0.0  ;;  %5239 = vmatmul.mubr.bf16.gmra.mrb[100].mxu1 %v13930_v34  ;;  %v13931_v4 = vld [vmem:[#allocation2 + $0x4c] ss:$16 sps:$4 sm:$0xff]   ;;  %v13110_v34 = vld [vmem:[#allocation8 + $0xa4] ss:$16 sps:$4 sm:$0xff]  }
 0x267   :  { %v5522_v27 = vmax.f32 %v12148_v59, 0.0  ;;  %8834 = vmatpush1.bf16.msra.mxu0 %v13090_v17  ;;  %v5524_v15 = vmax.f32 %v12180_v23, 0.0  ;;  %9738 = vmatpush1.bf16.msra.mxu1 %v13093_v60  ;;  %v13107_v0 = vld [vmem:[#allocation8 + $0x8c] ss:$16 sps:$4 sm:$0xff]  }
 0x268   :  { %v14856_v45 = vpack.c.bf16 %v5521_v14, %v5505_v8  ;;  %8835 = vmatprep.subr.bf16.mxu0 %v13098_v39  ;;  %v14858_v9 = vpack.c.bf16 %v5523_v16, %v5507_v63  ;;  %9739 = vmatprep.subr.bf16.mxu1 %v13101_v13 }
 0x269   :  { %v14860_v33 = vpack.c.bf16 %v5522_v27, %v5506_v48  ;;  %v4170_v61 = vpop.f32.mrb[60].mxu0  ;;  %5022 = vmatprep.mubr.bf16.mxu0 %v13931_v4  ;;  %v14862_v11 = vpack.c.bf16 %v5524_v15, %v5508_v20  ;;  %v4396_v29 = vpop.f32.mrb[60].mxu1  ;;  %5248 = vmatprep.mubr.bf16.mxu1 %v13931_v4  ;;  %v13102_v48 = vld [vmem:[#allocation8 + $0x80] ss:$16 sps:$4 sm:$0xff]   ;;  %v13113_v4 = vld [vmem:[#allocation8 + $0xac] ss:$16 sps:$4 sm:$0xff]  }
 0x26a   :  { %15609 = vst [vmem:[#allocation47_spill] sm:$0xff] %v14858_v9  ;;  %v12149_v17 = vadd.f32 %v4170_v61, %v14594_v30  ;;  %v4172_v59 = vpop.f32.mrb[61].mxu0  ;;  %v12181_v60 = vadd.f32 %v4396_v29, %v14602_v7  ;;  %v4398_v8 = vpop.f32.mrb[61].mxu1  ;;  %v13105_v61 = vld [vmem:[#allocation8 + $0x88] ss:$16 sps:$4 sm:$0xff]  }
 0x26b   :  { %15610 = vst [vmem:[#allocation48_spill] sm:$0xff] %v14862_v11  ;;  %v12150_v39 = vadd.f32 %v4172_v59, %v14606_v26  ;;  %v4174_v14 = vpop.f32.mrb[62].mxu0  ;;  %8836 = vmatpush1.bf16.msra.mxu0 %v13096_v43  ;;  %v12182_v27 = vadd.f32 %v4398_v8, %v14610_v22  ;;  %v4400_v23 = vpop.f32.mrb[62].mxu1  ;;  %9740 = vmatpush1.bf16.msra.mxu1 %v13099_v62  ;;  %v13932_v8 = vld [vmem:[#allocation2 + $0x48] ss:$16 sps:$4 sm:$0xff]  }
 0x26c   :  { %v12151_v13 = vadd.f32 %v4174_v14, %v14594_v30  ;;  %v4176_v20 = vpop.f32.mrb[63].mxu0  ;;  %8837 = vmatprep.subr.bf16.mxu0 %v13104_v18  ;;  %v12183_v63 = vadd.f32 %v4400_v23, %v14602_v7  ;;  %v4402_v15 = vpop.f32.mrb[63].mxu1  ;;  %9741 = vmatprep.subr.bf16.mxu1 %v13107_v0  ;;  %v5537_v29 = vmax.f32 %v12149_v17, 0.0  ;;  %v5539_v30 = vmax.f32 %v12181_v60, 0.0  ;;  %v13108_v18 = vld [vmem:[#allocation8 + $0xa0] ss:$16 sps:$4 sm:$0xff]  }
 0x26d   :  { %v12152_v16 = vadd.f32 %v4176_v20, %v14606_v26  ;;  %v12184_v59 = vadd.f32 %v4402_v15, %v14610_v22  ;;  %v5538_v14 = vmax.f32 %v12150_v39, 0.0  ;;  %v5540_v11 = vmax.f32 %v12182_v27, 0.0  ;;  %v13111_v0 = vld [vmem:[#allocation8 + $0xa8] ss:$16 sps:$4 sm:$0xff]   ;;  %v13116_v17 = vld [vmem:[#allocation8 + $0xc4] ss:$16 sps:$4 sm:$0xff]  }
 0x26e   :  { %v5553_v43 = vmax.f32 %v12151_v13, 0.0  ;;  %5023 = vmatmul.mubr.bf16.gmra.mrb[104].mxu0 %v13932_v8  ;;  %v5555_v62 = vmax.f32 %v12183_v63, 0.0  ;;  %5249 = vmatmul.mubr.bf16.gmra.mrb[104].mxu1 %v13932_v8  ;;  %v13933_v60 = vld [vmem:[#allocation2 + $0x6c] ss:$16 sps:$4 sm:$0xff]   ;;  %v13117_v27 = vld [vmem:[#allocation8 + $0xc8] ss:$16 sps:$4 sm:$0xff]  }
 0x26f   :  { %v5554_v9 = vmax.f32 %v12152_v16, 0.0  ;;  %8838 = vmatpush1.bf16.msra.mxu0 %v13102_v48  ;;  %v5556_v26 = vmax.f32 %v12184_v59, 0.0  ;;  %9742 = vmatpush1.bf16.msra.mxu1 %v13105_v61  ;;  %v13119_v39 = vld [vmem:[#allocation8 + $0xcc] ss:$16 sps:$4 sm:$0xff]   ;;  %v13114_v48 = vld [vmem:[#allocation8 + $0xc0] ss:$16 sps:$4 sm:$0xff]  }
 0x270   :  { %v14872_v7 = vpack.c.bf16 %v5553_v43, %v5537_v29  ;;  %8839 = vmatprep.subr.bf16.mxu0 %v13110_v34  ;;  %v14874_v13 = vpack.c.bf16 %v5555_v62, %v5539_v30  ;;  %9743 = vmatprep.subr.bf16.mxu1 %v13113_v4  ;;  %v13122_v20 = vld [vmem:[#allocation8 + $0xe4] ss:$16 sps:$4 sm:$0xff]   ;;  %v13125_v61 = vld [vmem:[#allocation8 + $0xec] ss:$16 sps:$4 sm:$0xff]   ;;  %v13934_v34 = vld [vmem:[#allocation2 + $0x68] ss:$16 sps:$4 sm:$0xff]  }
 0x271   :  { %v14876_v22 = vpack.c.bf16 %v5554_v9, %v5538_v14  ;;  %5032 = vmatprep.mubr.bf16.mxu0 %v13933_v60  ;;  %v14878_v23 = vpack.c.bf16 %v5556_v26, %v5540_v11  ;;  %5258 = vmatprep.mubr.bf16.mxu1 %v13933_v60  ;;  %v13120_v9 = vld [vmem:[#allocation8 + $0xe0] ss:$16 sps:$4 sm:$0xff]   ;;  %v13123_v63 = vld [vmem:[#allocation8 + $0xe8] ss:$16 sps:$4 sm:$0xff]   ;;  %v13128_v16 = vld [vmem:[#allocation8 + $0x104] ss:$16 sps:$4 sm:$0xff]  }
 0x272   :  { %v13935_v11 = vld [vmem:[#allocation2 + $0x8c] ss:$16 sps:$4 sm:$0xff]   ;;  %v13126_v4 = vld [vmem:[#allocation8 + $0x100] ss:$16 sps:$4 sm:$0xff]   ;;  %v13129_v29 = vld [vmem:[#allocation8 + $0x108] ss:$16 sps:$4 sm:$0xff]  }
 0x273   :  { %8840 = vmatpush1.bf16.msra.mxu0 %v13108_v18  ;;  %9744 = vmatpush1.bf16.msra.mxu1 %v13111_v0  ;;  %v13131_v15 = vld [vmem:[#allocation8 + $0x10c] ss:$16 sps:$4 sm:$0xff]   ;;  %v13134_v43 = vld [vmem:[#allocation8 + $0x124] ss:$16 sps:$4 sm:$0xff]   ;;  %v13936_v8 = vld [vmem:[#allocation2 + $0x88] ss:$16 sps:$4 sm:$0xff]  }
 0x274   :  { %8841 = vmatprep.subr.bf16.mxu0 %v13116_v17  ;;  %9745 = vmatprep.subr.bf16.mxu1 %v13119_v39  ;;  %v13137_v59 = vld [vmem:[#allocation8 + $0x12c] ss:$16 sps:$4 sm:$0xff]   ;;  %v13132_v30 = vld [vmem:[#allocation8 + $0x120] ss:$16 sps:$4 sm:$0xff]   ;;  %v13135_v14 = vld [vmem:[#allocation8 + $0x128] ss:$16 sps:$4 sm:$0xff]  }
 0x275   :  { %v13140_v62 = vld [vmem:[#allocation8 + $0x144] ss:$16 sps:$4 sm:$0xff]   ;;  %v13937_v18 = vld [vmem:[#allocation2 + $0xac] ss:$16 sps:$4 sm:$0xff]   ;;  %v13138_v0 = vld [vmem:[#allocation8 + $0x140] ss:$16 sps:$4 sm:$0xff]  }
 0x276   :  { %5033 = vmatmul.mubr.bf16.gmra.mrb[108].mxu0 %v13934_v34  ;;  %5259 = vmatmul.mubr.bf16.gmra.mrb[108].mxu1 %v13934_v34  ;;  %v13143_v26 = vld [vmem:[#allocation8 + $0x14c] ss:$16 sps:$4 sm:$0xff]   ;;  %v13141_v17 = vld [vmem:[#allocation8 + $0x148] ss:$16 sps:$4 sm:$0xff]   ;;  %v13146_v60 = vld [vmem:[#allocation8 + $0x164] ss:$16 sps:$4 sm:$0xff]  }
 0x277   :  { %8842 = vmatpush1.bf16.msra.mxu0 %v13114_v48  ;;  %9746 = vmatpush1.bf16.msra.mxu1 %v13117_v27  ;;  %v13149_v39 = vld [vmem:[#allocation8 + $0x16c] ss:$16 sps:$4 sm:$0xff]   ;;  %v13938_v48 = vld [vmem:[#allocation2 + $0xa8] ss:$16 sps:$4 sm:$0xff]   ;;  %v13144_v27 = vld [vmem:[#allocation8 + $0x160] ss:$16 sps:$4 sm:$0xff]  }
 0x278   :  { %8843 = vmatprep.subr.bf16.mxu0 %v13122_v20  ;;  %9747 = vmatprep.subr.bf16.mxu1 %v13125_v61  ;;  %v13147_v20 = vld [vmem:[#allocation8 + $0x168] ss:$16 sps:$4 sm:$0xff]   ;;  %v13152_v61 = vld [vmem:[#allocation8 + $0x184] ss:$16 sps:$4 sm:$0xff]   ;;  %v13939_v34 = vld [vmem:[#allocation2 + $0xcc] ss:$16 sps:$4 sm:$0xff]  }
 0x279   :  { %5042 = vmatprep.mubr.bf16.mxu0 %v13935_v11  ;;  %5268 = vmatprep.mubr.bf16.mxu1 %v13935_v11  ;;  %v13158_v11 = vld [vmem:[#allocation8 + $0x1a4] ss:$16 sps:$4 sm:$0xff]  }
 0x27b   :  { %8844 = vmatpush1.bf16.msra.mxu0 %v13120_v9  ;;  %9748 = vmatpush1.bf16.msra.mxu1 %v13123_v63  ;;  %v13155_v9 = vld [vmem:[#allocation8 + $0x18c] ss:$16 sps:$4 sm:$0xff]   ;;  %v13150_v63 = vld [vmem:[#allocation8 + $0x180] ss:$16 sps:$4 sm:$0xff]  }
 0x27c   :  { %8845 = vmatprep.subr.bf16.mxu0 %v13128_v16  ;;  %9749 = vmatprep.subr.bf16.mxu1 %v13131_v15  ;;  %v13153_v16 = vld [vmem:[#allocation8 + $0x188] ss:$16 sps:$4 sm:$0xff]   ;;  %v13161_v15 = vld [vmem:[#allocation8 + $0x1ac] ss:$16 sps:$4 sm:$0xff]  }
 0x27e   :  { %5043 = vmatmul.mubr.bf16.gmra.mrb[112].mxu0 %v13936_v8  ;;  %5269 = vmatmul.mubr.bf16.gmra.mrb[112].mxu1 %v13936_v8  ;;  %v13941_v8 = vld [vmem:[#allocation2 + $0xec] ss:$16 sps:$4 sm:$0xff]  }
 0x27f   :  { %8846 = vmatpush1.bf16.msra.mxu0 %v13126_v4  ;;  %9750 = vmatpush1.bf16.msra.mxu1 %v13129_v29  ;;  %v13940_v4 = vld [vmem:[#allocation2 + $0xc8] ss:$16 sps:$4 sm:$0xff]   ;;  %v13156_v29 = vld [vmem:[#allocation8 + $0x1a0] ss:$16 sps:$4 sm:$0xff]  }
 0x280   :  { %8847 = vmatprep.subr.bf16.mxu0 %v13134_v43  ;;  %9751 = vmatprep.subr.bf16.mxu1 %v13137_v59  ;;  %v13159_v43 = vld [vmem:[#allocation8 + $0x1a8] ss:$16 sps:$4 sm:$0xff]   ;;  %v13164_v59 = vld [vmem:[#allocation8 + $0x1c4] ss:$16 sps:$4 sm:$0xff]  }
 0x281   :  { %5052 = vmatprep.mubr.bf16.mxu0 %v13937_v18  ;;  %5278 = vmatprep.mubr.bf16.mxu1 %v13937_v18  ;;  %v13170_v18 = vld [vmem:[#allocation8 + $0x1e4] ss:$16 sps:$4 sm:$0xff]  }
 0x283   :  { %8848 = vmatpush1.bf16.msra.mxu0 %v13132_v30  ;;  %9752 = vmatpush1.bf16.msra.mxu1 %v13135_v14  ;;  %v13167_v30 = vld [vmem:[#allocation8 + $0x1cc] ss:$16 sps:$4 sm:$0xff]   ;;  %v13162_v14 = vld [vmem:[#allocation8 + $0x1c0] ss:$16 sps:$4 sm:$0xff]  }
 0x284   :  { %8849 = vmatprep.subr.bf16.mxu0 %v13140_v62  ;;  %9753 = vmatprep.subr.bf16.mxu1 %v13143_v26  ;;  %v13165_v62 = vld [vmem:[#allocation8 + $0x1c8] ss:$16 sps:$4 sm:$0xff]  }
 0x285   :  { %v13942_v26 = vld [vmem:[#allocation2 + $0xe8] ss:$16 sps:$4 sm:$0xff]  }
 0x286   :  { %5053 = vmatmul.mubr.bf16.gmra.mrb[116].mxu0 %v13938_v48  ;;  %5279 = vmatmul.mubr.bf16.gmra.mrb[116].mxu1 %v13938_v48  ;;  %v13179_v48 = vld [vmem:[#allocation8 + $0x20c] ss:$16 sps:$4 sm:$0xff]  }
 0x287   :  { %8850 = vmatpush1.bf16.msra.mxu0 %v13138_v0  ;;  %9754 = vmatpush1.bf16.msra.mxu1 %v13141_v17  ;;  %v13173_v0 = vld [vmem:[#allocation8 + $0x1ec] ss:$16 sps:$4 sm:$0xff]   ;;  %v13168_v17 = vld [vmem:[#allocation8 + $0x1e0] ss:$16 sps:$4 sm:$0xff]  }
 0x288   :  { %8851 = vmatprep.subr.bf16.mxu0 %v13146_v60  ;;  %9755 = vmatprep.subr.bf16.mxu1 %v13149_v39  ;;  %v13171_v60 = vld [vmem:[#allocation8 + $0x1e8] ss:$16 sps:$4 sm:$0xff]   ;;  %v13176_v39 = vld [vmem:[#allocation8 + $0x204] ss:$16 sps:$4 sm:$0xff]  }
 0x289   :  { %5062 = vmatprep.mubr.bf16.mxu0 %v13939_v34  ;;  %5288 = vmatprep.mubr.bf16.mxu1 %v13939_v34  ;;  %v13185_v34 = vld [vmem:[#allocation8 + $0x22c] ss:$16 sps:$4 sm:$0xff]  }
 0x28b   :  { %8852 = vmatpush1.bf16.msra.mxu0 %v13144_v27  ;;  %9756 = vmatpush1.bf16.msra.mxu1 %v13147_v20  ;;  %v13174_v27 = vld [vmem:[#allocation8 + $0x200] ss:$16 sps:$4 sm:$0xff]   ;;  %v13177_v20 = vld [vmem:[#allocation8 + $0x208] ss:$16 sps:$4 sm:$0xff]  }
 0x28c   :  { %8853 = vmatprep.subr.bf16.mxu0 %v13152_v61  ;;  %9757 = vmatprep.subr.bf16.mxu1 %v13155_v9  ;;  %v13182_v61 = vld [vmem:[#allocation8 + $0x224] ss:$16 sps:$4 sm:$0xff]   ;;  %v13183_v9 = vld [vmem:[#allocation8 + $0x228] ss:$16 sps:$4 sm:$0xff]  }
 0x28e   :  { %5063 = vmatmul.mubr.bf16.gmra.mrb[120].mxu0 %v13940_v4  ;;  %5289 = vmatmul.mubr.bf16.gmra.mrb[120].mxu1 %v13940_v4  ;;  %v13194_v4 = vld [vmem:[#allocation8 + $0x264] ss:$16 sps:$4 sm:$0xff]  }
 0x28f   :  { %8854 = vmatpush1.bf16.msra.mxu0 %v13150_v63  ;;  %9758 = vmatpush1.bf16.msra.mxu1 %v13153_v16  ;;  %v13188_v63 = vld [vmem:[#allocation8 + $0x244] ss:$16 sps:$4 sm:$0xff]   ;;  %v13191_v16 = vld [vmem:[#allocation8 + $0x24c] ss:$16 sps:$4 sm:$0xff]  }
 0x290   :  { %8855 = vmatprep.subr.bf16.mxu0 %v13158_v11  ;;  %9759 = vmatprep.subr.bf16.mxu1 %v13161_v15  ;;  %v13186_v11 = vld [vmem:[#allocation8 + $0x240] ss:$16 sps:$4 sm:$0xff]   ;;  %v13189_v15 = vld [vmem:[#allocation8 + $0x248] ss:$16 sps:$4 sm:$0xff]  }
 0x291   :  { %5072 = vmatprep.mubr.bf16.mxu0 %v13941_v8  ;;  %5298 = vmatprep.mubr.bf16.mxu1 %v13941_v8  ;;  %v698_v8 = vld [vmem:[#allocation7 + $0x8] sm:$0xff] }
 0x293   :  { %8856 = vmatpush1.bf16.msra.mxu0 %v13156_v29  ;;  %9760 = vmatpush1.bf16.msra.mxu1 %v13159_v43  ;;  %v13195_v29 = vld [vmem:[#allocation8 + $0x268] ss:$16 sps:$4 sm:$0xff]   ;;  %v13200_v43 = vld [vmem:[#allocation8 + $0x284] ss:$16 sps:$4 sm:$0xff]  }
 0x294   :  { %8857 = vmatprep.subr.bf16.mxu0 %v13164_v59  ;;  %9761 = vmatprep.subr.bf16.mxu1 %v13167_v30  ;;  %v13203_v59 = vld [vmem:[#allocation8 + $0x28c] ss:$16 sps:$4 sm:$0xff]   ;;  %v13198_v30 = vld [vmem:[#allocation8 + $0x280] ss:$16 sps:$4 sm:$0xff]  }
 0x296   :  { %5073 = vmatmul.mubr.bf16.gmra.mrb[124].mxu0 %v13942_v26  ;;  %5299 = vmatmul.mubr.bf16.gmra.mrb[124].mxu1 %v13942_v26  ;;  %v14900_v26 = vrot.slane %v698_v8, %v14195_v53 }
 0x297   :  { %8858 = vmatpush1.bf16.msra.mxu0 %v13162_v14  ;;  %8861 = vmatprep.mubr.bf16.mxu0 %v14272_v58  ;;  %v13201_v14 = vld [vmem:[#allocation8 + $0x288] ss:$16 sps:$4 sm:$0xff]  }
 0x298   :  { %9762 = vmatpush1.bf16.msra.mxu1 %v13165_v62  ;;  %9765 = vmatprep.mubr.bf16.mxu1 %v14272_v58  ;;  %v13180_v58 = vld [vmem:[#allocation8 + $0x220] ss:$16 sps:$4 sm:$0xff]   ;;  %v13206_v62 = vld [vmem:[#allocation8 + $0x2a4] ss:$16 sps:$4 sm:$0xff]  }
 0x299   :  { %8859 = vmatprep.subr.bf16.mxu0 %v13170_v18  ;;  %9763 = vmatprep.subr.bf16.mxu1 %v13173_v0  ;;  %v14897_v18 = vrot.slane %v698_v8, %v14192_v52  ;;  %v14904_v0 = vrot.slane %v698_v8, %v14198_v55 }
 0x29b   :  { %8860 = vmatpush1.bf16.msra.mxu0 %v13168_v17  ;;  %v13204_v17 = vld [vmem:[#allocation8 + $0x2a0] ss:$16 sps:$4 sm:$0xff]  }
 0x29c   :  { %9764 = vmatpush1.bf16.msra.mxu1 %v13171_v60  ;;  %8942 = vmatprep.subr.bf16.mxu0 %v13176_v39  ;;  %v13207_v39 = vld [vmem:[#allocation8 + $0x2a8] ss:$16 sps:$4 sm:$0xff]  }
 0x29d   :  { %9846 = vmatprep.subr.bf16.mxu1 %v13179_v48 }
 0x29e   :  { %8862 = vmatmul.mubr.bf16.vlgmr.msra.gmra.mrb[128].mxu0 %v14260_v47 }
 0x29f   :  { %9766 = vmatmul.mubr.bf16.vlgmr.msra.gmra.mrb[128].mxu1 %v14260_v47  ;;  %8871 = vmatprep.mubr.bf16.mxu0 %v14314_v42  ;;  %v13197_v47 = vld [vmem:[#allocation8 + $0x26c] ss:$16 sps:$4 sm:$0xff]  }
 0x2a0   :  { %8943 = vmatpush1.bf16.msra.mxu0 %v13174_v27  ;;  %9775 = vmatprep.mubr.bf16.mxu1 %v14314_v42  ;;  %v13192_v42 = vld [vmem:[#allocation8 + $0x260] ss:$16 sps:$4 sm:$0xff]  }
 0x2a1   :  { %9847 = vmatpush1.bf16.msra.mxu1 %v13177_v20  ;;  %8944 = vmatprep.subr.bf16.mxu0 %v13182_v61  ;;  %v13215_v61 = vld [vmem:[#allocation8 + $0x2cc] ss:$16 sps:$4 sm:$0xff]  }
 0x2a2   :  { %9848 = vmatprep.subr.bf16.mxu1 %v13185_v34 }
 0x2a4   :  { %8945 = vmatpush1.bf16.msra.mxu0 %v13180_v58 }
 0x2a5   :  { %9849 = vmatpush1.bf16.msra.mxu1 %v13183_v9  ;;  %8946 = vmatprep.subr.bf16.mxu0 %v13188_v63 }
 0x2a6   :  { %8872 = vmatmul.mubr.bf16.gmra.mrb[132].mxu0 %v14308_v37  ;;  %9850 = vmatprep.subr.bf16.mxu1 %v13191_v16 }
 0x2a7   :  { %9776 = vmatmul.mubr.bf16.gmra.mrb[132].mxu1 %v14308_v37  ;;  %8881 = vmatprep.mubr.bf16.mxu0 %v14362_v36  ;;  %v14892_v37 = vrot.slane %v698_v8, %v14189_v50 }
 0x2a8   :  { %8947 = vmatpush1.bf16.msra.mxu0 %v13186_v11  ;;  %9785 = vmatprep.mubr.bf16.mxu1 %v14362_v36  ;;  %v13209_v36 = vld [vmem:[#allocation8 + $0x2ac] ss:$16 sps:$4 sm:$0xff]  }
 0x2a9   :  { %9851 = vmatpush1.bf16.msra.mxu1 %v13189_v15  ;;  %8948 = vmatprep.subr.bf16.mxu0 %v13194_v4  ;;  %v13210_v4 = vld [vmem:[#allocation8 + $0x2c0] ss:$16 sps:$4 sm:$0xff]  }
 0x2aa   :  { %9852 = vmatprep.subr.bf16.mxu1 %v13197_v47 }
 0x2ac   :  { %8949 = vmatpush1.bf16.msra.mxu0 %v13192_v42 }
 0x2ad   :  { %9853 = vmatpush1.bf16.msra.mxu1 %v13195_v29  ;;  %8950 = vmatprep.subr.bf16.mxu0 %v13200_v43  ;;  %v13213_v43 = vld [vmem:[#allocation8 + $0x2c8] ss:$16 sps:$4 sm:$0xff]  }
 0x2ae   :  { %8882 = vmatmul.mubr.bf16.gmra.mrb[136].mxu0 %v14356_v32  ;;  %9854 = vmatprep.subr.bf16.mxu1 %v13203_v59  ;;  %v13218_v59 = vld [vmem:[#allocation8 + $0x2e4] ss:$16 sps:$4 sm:$0xff]  }
 0x2af   :  { %9786 = vmatmul.mubr.bf16.gmra.mrb[136].mxu1 %v14356_v32  ;;  %8891 = vmatprep.mubr.bf16.mxu0 %v14410_v40  ;;  %v13212_v32 = vld [vmem:[#allocation8 + $0x2c4] ss:$16 sps:$4 sm:$0xff]  }
 0x2b0   :  { %8951 = vmatpush1.bf16.msra.mxu0 %v13198_v30  ;;  %9795 = vmatprep.mubr.bf16.mxu1 %v14410_v40 }
 0x2b1   :  { %9855 = vmatpush1.bf16.msra.mxu1 %v13201_v14  ;;  %v4552_v60 = vpop.f32.mrb[64].mxu0  ;;  %8952 = vmatprep.subr.bf16.mxu0 %v13206_v62  ;;  %v4778_v27 = vpop.f32.mrb[64].mxu1  ;;  %v13221_v62 = vld [vmem:[#allocation8 + $0x2ec] ss:$16 sps:$4 sm:$0xff]  }
 0x2b2   :  { %v12185_v48 = vadd.f32 %v4552_v60, %v14892_v37  ;;  %v4554_v20 = vpop.f32.mrb[65].mxu0  ;;  %9856 = vmatprep.subr.bf16.mxu1 %v13209_v36  ;;  %v12217_v34 = vadd.f32 %v4778_v27, %v14897_v18  ;;  %v4780_v40 = vpop.f32.mrb[65].mxu1 }
 0x2b3   :  { %v12186_v58 = vadd.f32 %v4554_v20, %v14900_v26  ;;  %v4556_v9 = vpop.f32.mrb[66].mxu0  ;;  %v12218_v63 = vadd.f32 %v4780_v40, %v14904_v0  ;;  %v4782_v11 = vpop.f32.mrb[66].mxu1 }
 0x2b4   :  { %v12187_v16 = vadd.f32 %v4556_v9, %v14892_v37  ;;  %8953 = vmatpush1.bf16.msra.mxu0 %v13204_v17  ;;  %v4558_v15 = vpop.f32.mrb[67].mxu0  ;;  %v12219_v47 = vadd.f32 %v4782_v11, %v14897_v18  ;;  %v4784_v29 = vpop.f32.mrb[67].mxu1  ;;  %v5317_v8 = vmax.f32 %v12185_v48, 0.0  ;;  %v5319_v36 = vmax.f32 %v12217_v34, 0.0  ;;  %v13216_v48 = vld [vmem:[#allocation8 + $0x2e0] ss:$16 sps:$4 sm:$0xff]  }
 0x2b5   :  { %9857 = vmatpush1.bf16.msra.mxu1 %v13207_v39  ;;  %v12188_v42 = vadd.f32 %v4558_v15, %v14900_v26  ;;  %8954 = vmatprep.subr.bf16.mxu0 %v13212_v32  ;;  %v12220_v14 = vadd.f32 %v4784_v29, %v14904_v0  ;;  %v5318_v17 = vmax.f32 %v12186_v58, 0.0  ;;  %v5320_v39 = vmax.f32 %v12218_v63, 0.0  ;;  %v13219_v58 = vld [vmem:[#allocation8 + $0x2e8] ss:$16 sps:$4 sm:$0xff]   ;;  %v13224_v9 = vld [vmem:[#allocation8 + $0x304] ss:$16 sps:$4 sm:$0xff]  }
 0x2b6   :  { %v5333_v30 = vmax.f32 %v12187_v16, 0.0  ;;  %8892 = vmatmul.mubr.bf16.gmra.mrb[140].mxu0 %v14404_v31  ;;  %9858 = vmatprep.subr.bf16.mxu1 %v13215_v61  ;;  %v5335_v60 = vmax.f32 %v12219_v47, 0.0  ;;  %v13227_v15 = vld [vmem:[#allocation8 + $0x30c] ss:$16 sps:$4 sm:$0xff]  }
 0x2b7   :  { %v5334_v27 = vmax.f32 %v12188_v42, 0.0  ;;  %9796 = vmatmul.mubr.bf16.gmra.mrb[140].mxu1 %v14404_v31  ;;  %8901 = vmatprep.mubr.bf16.mxu0 %v14458_v56  ;;  %v5336_v20 = vmax.f32 %v12220_v14, 0.0 }
 0x2b8   :  { %v14917_v32 = vpack.c.bf16 %v5333_v30, %v5317_v8  ;;  %8955 = vmatpush1.bf16.msra.mxu0 %v13210_v4  ;;  %9805 = vmatprep.mubr.bf16.mxu1 %v14458_v56  ;;  %v14920_v40 = vpack.c.bf16 %v5335_v60, %v5319_v36  ;;  %v13222_v30 = vld [vmem:[#allocation8 + $0x300] ss:$16 sps:$4 sm:$0xff]   ;;  %v13230_v60 = vld [vmem:[#allocation8 + $0x324] ss:$16 sps:$4 sm:$0xff]  }
 0x2b9   :  { %v14922_v61 = vpack.c.bf16 %v5334_v27, %v5318_v17  ;;  %9859 = vmatpush1.bf16.msra.mxu1 %v13213_v43  ;;  %v4562_v34 = vpop.f32.mrb[68].mxu0  ;;  %8956 = vmatprep.subr.bf16.mxu0 %v13218_v59  ;;  %v14924_v31 = vpack.c.bf16 %v5336_v20, %v5320_v39  ;;  %v4788_v16 = vpop.f32.mrb[68].mxu1  ;;  %v13225_v17 = vld [vmem:[#allocation8 + $0x308] ss:$16 sps:$4 sm:$0xff]  }
 0x2ba   :  { %v12189_v63 = vadd.f32 %v4562_v34, %v14892_v37  ;;  %v4564_v11 = vpop.f32.mrb[69].mxu0  ;;  %9860 = vmatprep.subr.bf16.mxu1 %v13221_v62  ;;  %v12221_v56 = vadd.f32 %v4788_v16, %v14897_v18  ;;  %v4790_v47 = vpop.f32.mrb[69].mxu1  ;;  %v13233_v34 = vld [vmem:[#allocation8 + $0x32c] ss:$16 sps:$4 sm:$0xff]  }
 0x2bb   :  { %v12190_v4 = vadd.f32 %v4564_v11, %v14900_v26  ;;  %v4566_v42 = vpop.f32.mrb[70].mxu0  ;;  %v12222_v29 = vadd.f32 %v4790_v47, %v14904_v0  ;;  %v4792_v59 = vpop.f32.mrb[70].mxu1 }
 0x2bc   :  { %v12191_v43 = vadd.f32 %v4566_v42, %v14892_v37  ;;  %8957 = vmatpush1.bf16.msra.mxu0 %v13216_v48  ;;  %v4568_v8 = vpop.f32.mrb[71].mxu0  ;;  %v12223_v14 = vadd.f32 %v4792_v59, %v14897_v18  ;;  %v4794_v36 = vpop.f32.mrb[71].mxu1  ;;  %v5349_v27 = vmax.f32 %v12189_v63, 0.0  ;;  %v5351_v48 = vmax.f32 %v12221_v56, 0.0  ;;  %v13228_v63 = vld [vmem:[#allocation8 + $0x320] ss:$16 sps:$4 sm:$0xff]  }
 0x2bd   :  { %9861 = vmatpush1.bf16.msra.mxu1 %v13219_v58  ;;  %v12192_v62 = vadd.f32 %v4568_v8, %v14900_v26  ;;  %8958 = vmatprep.subr.bf16.mxu0 %v13224_v9  ;;  %v12224_v20 = vadd.f32 %v4794_v36, %v14904_v0  ;;  %v5350_v16 = vmax.f32 %v12190_v4, 0.0  ;;  %v5352_v58 = vmax.f32 %v12222_v29, 0.0  ;;  %v13231_v4 = vld [vmem:[#allocation8 + $0x328] ss:$16 sps:$4 sm:$0xff]   ;;  %v13236_v59 = vld [vmem:[#allocation8 + $0x344] ss:$16 sps:$4 sm:$0xff]  }
 0x2be   :  { %v5365_v39 = vmax.f32 %v12191_v43, 0.0  ;;  %8902 = vmatmul.mubr.bf16.gmra.mrb[144].mxu0 %v14452_v44  ;;  %9862 = vmatprep.subr.bf16.mxu1 %v13227_v15  ;;  %v5367_v11 = vmax.f32 %v12223_v14, 0.0 }
 0x2bf   :  { %v5366_v47 = vmax.f32 %v12192_v62, 0.0  ;;  %9806 = vmatmul.mubr.bf16.gmra.mrb[144].mxu1 %v14452_v44  ;;  %8911 = vmatprep.mubr.bf16.mxu0 %v14506_v10  ;;  %v5368_v42 = vmax.f32 %v12224_v20, 0.0 }
 0x2c0   :  { %v14937_v9 = vpack.c.bf16 %v5365_v39, %v5349_v27  ;;  %8959 = vmatpush1.bf16.msra.mxu0 %v13222_v30  ;;  %9815 = vmatprep.mubr.bf16.mxu1 %v14506_v10  ;;  %v14940_v43 = vpack.c.bf16 %v5367_v11, %v5351_v48  ;;  %v13239_v30 = vld [vmem:[#allocation8 + $0x34c] ss:$16 sps:$4 sm:$0xff]   ;;  %v13234_v48 = vld [vmem:[#allocation8 + $0x340] ss:$16 sps:$4 sm:$0xff]  }
 0x2c1   :  { %v14942_v15 = vpack.c.bf16 %v5366_v47, %v5350_v16  ;;  %9863 = vmatpush1.bf16.msra.mxu1 %v13225_v17  ;;  %v4572_v56 = vpop.f32.mrb[72].mxu0  ;;  %8960 = vmatprep.subr.bf16.mxu0 %v13230_v60  ;;  %v14944_v44 = vpack.c.bf16 %v5368_v42, %v5352_v58  ;;  %v4798_v8 = vpop.f32.mrb[72].mxu1  ;;  %v13237_v47 = vld [vmem:[#allocation8 + $0x348] ss:$16 sps:$4 sm:$0xff]   ;;  %v13242_v58 = vld [vmem:[#allocation8 + $0x364] ss:$16 sps:$4 sm:$0xff]  }
 0x2c2   :  { %v12193_v29 = vadd.f32 %v4572_v56, %v14892_v37  ;;  %v4574_v14 = vpop.f32.mrb[73].mxu0  ;;  %9864 = vmatprep.subr.bf16.mxu1 %v13233_v34  ;;  %v12225_v10 = vadd.f32 %v4798_v8, %v14897_v18  ;;  %v4800_v36 = vpop.f32.mrb[73].mxu1 }
 0x2c3   :  { %v12194_v62 = vadd.f32 %v4574_v14, %v14900_v26  ;;  %v4576_v27 = vpop.f32.mrb[74].mxu0  ;;  %v12226_v17 = vadd.f32 %v4800_v36, %v14904_v0  ;;  %v4802_v39 = vpop.f32.mrb[74].mxu1  ;;  %v13245_v14 = vld [vmem:[#allocation8 + $0x36c] ss:$16 sps:$4 sm:$0xff]  }
 0x2c4   :  { %v12195_v60 = vadd.f32 %v4576_v27, %v14892_v37  ;;  %8961 = vmatpush1.bf16.msra.mxu0 %v13228_v63  ;;  %v4578_v20 = vpop.f32.mrb[75].mxu0  ;;  %v12227_v16 = vadd.f32 %v4802_v39, %v14897_v18  ;;  %v4804_v11 = vpop.f32.mrb[75].mxu1  ;;  %v5381_v42 = vmax.f32 %v12193_v29, 0.0  ;;  %v5383_v63 = vmax.f32 %v12225_v10, 0.0  ;;  %v13240_v29 = vld [vmem:[#allocation8 + $0x360] ss:$16 sps:$4 sm:$0xff]  }
 0x2c5   :  { %9865 = vmatpush1.bf16.msra.mxu1 %v13231_v4  ;;  %v12196_v34 = vadd.f32 %v4578_v20, %v14900_v26  ;;  %8962 = vmatprep.subr.bf16.mxu0 %v13236_v59  ;;  %v12228_v8 = vadd.f32 %v4804_v11, %v14904_v0  ;;  %v5382_v36 = vmax.f32 %v12194_v62, 0.0  ;;  %v5384_v4 = vmax.f32 %v12226_v17, 0.0  ;;  %v13243_v62 = vld [vmem:[#allocation8 + $0x368] ss:$16 sps:$4 sm:$0xff]   ;;  %v13248_v20 = vld [vmem:[#allocation8 + $0x384] ss:$16 sps:$4 sm:$0xff]  }
 0x2c6   :  { %v5397_v56 = vmax.f32 %v12195_v60, 0.0  ;;  %8912 = vmatmul.mubr.bf16.gmra.mrb[148].mxu0 %v14500_v6  ;;  %9866 = vmatprep.subr.bf16.mxu1 %v13239_v30  ;;  %v5399_v27 = vmax.f32 %v12227_v16, 0.0 }
 0x2c7   :  { %v5398_v55 = vmax.f32 %v12196_v34, 0.0  ;;  %9816 = vmatmul.mubr.bf16.gmra.mrb[148].mxu1 %v14500_v6  ;;  %8921 = vmatprep.mubr.bf16.mxu0 %v14554_v24  ;;  %v5400_v39 = vmax.f32 %v12228_v8, 0.0 }
 0x2c8   :  { %v14957_v59 = vpack.c.bf16 %v5397_v56, %v5381_v42  ;;  %8963 = vmatpush1.bf16.msra.mxu0 %v13234_v48  ;;  %9825 = vmatprep.mubr.bf16.mxu1 %v14554_v24  ;;  %v14960_v60 = vpack.c.bf16 %v5399_v27, %v5383_v63  ;;  %v13251_v48 = vld [vmem:[#allocation8 + $0x38c] ss:$16 sps:$4 sm:$0xff]   ;;  %v13246_v63 = vld [vmem:[#allocation8 + $0x380] ss:$16 sps:$4 sm:$0xff]  }
 0x2c9   :  { %v14962_v30 = vpack.c.bf16 %v5398_v55, %v5382_v36  ;;  %9867 = vmatpush1.bf16.msra.mxu1 %v13237_v47  ;;  %v4582_v10 = vpop.f32.mrb[76].mxu0  ;;  %8964 = vmatprep.subr.bf16.mxu0 %v13242_v58  ;;  %v14964_v6 = vpack.c.bf16 %v5400_v39, %v5384_v4  ;;  %v4808_v16 = vpop.f32.mrb[76].mxu1  ;;  %v13249_v4 = vld [vmem:[#allocation8 + $0x388] ss:$16 sps:$4 sm:$0xff]   ;;  %v13254_v39 = vld [vmem:[#allocation8 + $0x3a4] ss:$16 sps:$4 sm:$0xff]  }
 0x2ca   :  { %v12197_v17 = vadd.f32 %v4582_v10, %v14892_v37  ;;  %v4584_v34 = vpop.f32.mrb[77].mxu0  ;;  %9868 = vmatprep.subr.bf16.mxu1 %v13245_v14  ;;  %v12229_v24 = vadd.f32 %v4808_v16, %v14897_v18  ;;  %v4810_v42 = vpop.f32.mrb[77].mxu1 }
 0x2cb   :  { %v12198_v11 = vadd.f32 %v4584_v34, %v14900_v26  ;;  %v4586_v55 = vpop.f32.mrb[78].mxu0  ;;  %v12230_v47 = vadd.f32 %v4810_v42, %v14904_v0  ;;  %v4812_v56 = vpop.f32.mrb[78].mxu1  ;;  %v13257_v42 = vld [vmem:[#allocation8 + $0x3ac] ss:$16 sps:$4 sm:$0xff]  }
 0x2cc   :  { %v12199_v58 = vadd.f32 %v4586_v55, %v14892_v37  ;;  %8965 = vmatpush1.bf16.msra.mxu0 %v13240_v29  ;;  %v4588_v8 = vpop.f32.mrb[79].mxu0  ;;  %v12231_v36 = vadd.f32 %v4812_v56, %v14897_v18  ;;  %v4814_v27 = vpop.f32.mrb[79].mxu1  ;;  %v5413_v10 = vmax.f32 %v12197_v17, 0.0  ;;  %v5415_v29 = vmax.f32 %v12229_v24, 0.0  ;;  %v13252_v17 = vld [vmem:[#allocation8 + $0x3a0] ss:$16 sps:$4 sm:$0xff]  }
 0x2cd   :  { %9869 = vmatpush1.bf16.msra.mxu1 %v13243_v62  ;;  %v12200_v14 = vadd.f32 %v4588_v8, %v14900_v26  ;;  %8966 = vmatprep.subr.bf16.mxu0 %v13248_v20  ;;  %v12232_v34 = vadd.f32 %v4814_v27, %v14904_v0  ;;  %v5414_v55 = vmax.f32 %v12198_v11, 0.0  ;;  %v5416_v62 = vmax.f32 %v12230_v47, 0.0  ;;  %v13255_v11 = vld [vmem:[#allocation8 + $0x3a8] ss:$16 sps:$4 sm:$0xff]   ;;  %v13260_v8 = vld [vmem:[#allocation8 + $0x3c4] ss:$16 sps:$4 sm:$0xff]  }
 0x2ce   :  { %v5429_v16 = vmax.f32 %v12199_v58, 0.0  ;;  %8922 = vmatmul.mubr.bf16.gmra.mrb[152].mxu0 %v14548_v19  ;;  %9870 = vmatprep.subr.bf16.mxu1 %v13251_v48  ;;  %v5431_v53 = vmax.f32 %v12231_v36, 0.0 }
 0x2cf   :  { %v5430_v52 = vmax.f32 %v12200_v14, 0.0  ;;  %9826 = vmatmul.mubr.bf16.gmra.mrb[152].mxu1 %v14548_v19  ;;  %8931 = vmatprep.mubr.bf16.mxu0 %v14580_v3  ;;  %v5432_v56 = vmax.f32 %v12232_v34, 0.0  ;;  %v13258_v34 = vld [vmem:[#allocation8 + $0x3c0] ss:$16 sps:$4 sm:$0xff]  }
 0x2d0   :  { %v14977_v20 = vpack.c.bf16 %v5429_v16, %v5413_v10  ;;  %8967 = vmatpush1.bf16.msra.mxu0 %v13246_v63  ;;  %9835 = vmatprep.mubr.bf16.mxu1 %v14580_v3  ;;  %v14980_v58 = vpack.c.bf16 %v5431_v53, %v5415_v29  ;;  %v13263_v63 = vld [vmem:[#allocation8 + $0x3cc] ss:$16 sps:$4 sm:$0xff]  }
 0x2d1   :  { %v14982_v48 = vpack.c.bf16 %v5430_v52, %v5414_v55  ;;  %9871 = vmatpush1.bf16.msra.mxu1 %v13249_v4  ;;  %v4592_v24 = vpop.f32.mrb[80].mxu0  ;;  %8968 = vmatprep.subr.bf16.mxu0 %v13254_v39  ;;  %v14984_v19 = vpack.c.bf16 %v5432_v56, %v5416_v62  ;;  %v4818_v36 = vpop.f32.mrb[80].mxu1  ;;  %v13261_v62 = vld [vmem:[#allocation8 + $0x3c8] ss:$16 sps:$4 sm:$0xff]   ;;  %v13266_v56 = vld [vmem:[#allocation8 + $0x3e4] ss:$16 sps:$4 sm:$0xff]  }
 0x2d2   :  { %15611 = vst [vmem:[#allocation49_spill] sm:$0xff] %v14980_v58  ;;  %v12201_v47 = vadd.f32 %v4592_v24, %v14892_v37  ;;  %v4594_v14 = vpop.f32.mrb[81].mxu0  ;;  %9872 = vmatprep.subr.bf16.mxu1 %v13257_v42  ;;  %v12233_v3 = vadd.f32 %v4818_v36, %v14897_v18  ;;  %v4820_v27 = vpop.f32.mrb[81].mxu1 }
 0x2d3   :  { %15612 = vst [vmem:[#allocation50_spill] sm:$0xff] %v14984_v19  ;;  %v12202_v53 = vadd.f32 %v4594_v14, %v14900_v26  ;;  %v4596_v52 = vpop.f32.mrb[82].mxu0  ;;  %v12234_v4 = vadd.f32 %v4820_v27, %v14904_v0  ;;  %v4822_v10 = vpop.f32.mrb[82].mxu1  ;;  %v13269_v27 = vld [vmem:[#allocation8 + $0x3ec] ss:$16 sps:$4 sm:$0xff]  }
 0x2d4   :  { %v12203_v39 = vadd.f32 %v4596_v52, %v14892_v37  ;;  %8969 = vmatpush1.bf16.msra.mxu0 %v13252_v17  ;;  %v4598_v16 = vpop.f32.mrb[83].mxu0  ;;  %v12235_v29 = vadd.f32 %v4822_v10, %v14897_v18  ;;  %v4824_v55 = vpop.f32.mrb[83].mxu1  ;;  %v5445_v24 = vmax.f32 %v12201_v47, 0.0  ;;  %v5447_v17 = vmax.f32 %v12233_v3, 0.0  ;;  %v13264_v47 = vld [vmem:[#allocation8 + $0x3e0] ss:$16 sps:$4 sm:$0xff]  }
 0x2d5   :  { %9873 = vmatpush1.bf16.msra.mxu1 %v13255_v11  ;;  %v12204_v42 = vadd.f32 %v4598_v16, %v14900_v26  ;;  %8970 = vmatprep.subr.bf16.mxu0 %v13260_v8  ;;  %v12236_v14 = vadd.f32 %v4824_v55, %v14904_v0  ;;  %v5446_v52 = vmax.f32 %v12202_v53, 0.0  ;;  %v5448_v11 = vmax.f32 %v12234_v4, 0.0  ;;  %v13267_v53 = vld [vmem:[#allocation8 + $0x3e8] ss:$16 sps:$4 sm:$0xff]   ;;  %v13272_v16 = vld [vmem:[#allocation8 + $0x404] ss:$16 sps:$4 sm:$0xff]  }
 0x2d6   :  { %v5461_v36 = vmax.f32 %v12203_v39, 0.0  ;;  %8932 = vmatmul.mubr.bf16.gmra.mrb[156].mxu0 %v14576_v28  ;;  %9874 = vmatprep.subr.bf16.mxu1 %v13263_v63  ;;  %v5463_v50 = vmax.f32 %v12235_v29, 0.0 }
 0x2d7   :  { %v5462_v58 = vmax.f32 %v12204_v42, 0.0  ;;  %9836 = vmatmul.mubr.bf16.gmra.mrb[156].mxu1 %v14576_v28  ;;  %8974 = vmatprep.mubr.bf16.mxu0 %v14278_v2  ;;  %v5464_v10 = vmax.f32 %v12236_v14, 0.0 }
 0x2d8   :  { %v14997_v8 = vpack.c.bf16 %v5461_v36, %v5445_v24  ;;  %8971 = vmatpush1.bf16.msra.mxu0 %v13258_v34  ;;  %9878 = vmatprep.mubr.bf16.mxu1 %v14278_v2  ;;  %v15000_v39 = vpack.c.bf16 %v5463_v50, %v5447_v17  ;;  %v13275_v34 = vld [vmem:[#allocation8 + $0x40c] ss:$16 sps:$4 sm:$0xff]  }
 0x2d9   :  { %v15002_v63 = vpack.c.bf16 %v5462_v58, %v5446_v52  ;;  %9875 = vmatpush1.bf16.msra.mxu1 %v13261_v62  ;;  %v4602_v3 = vpop.f32.mrb[84].mxu0  ;;  %8972 = vmatprep.subr.bf16.mxu0 %v13266_v56  ;;  %v15004_v28 = vpack.c.bf16 %v5464_v10, %v5448_v11  ;;  %v4828_v29 = vpop.f32.mrb[84].mxu1  ;;  %v13270_v52 = vld [vmem:[#allocation8 + $0x400] ss:$16 sps:$4 sm:$0xff]  }
 0x2da   :  { %15613 = vst [vmem:[#allocation51_spill] sm:$0xff] %v15000_v39  ;;  %v12205_v4 = vadd.f32 %v4602_v3, %v14892_v37  ;;  %v4604_v42 = vpop.f32.mrb[85].mxu0  ;;  %9876 = vmatprep.subr.bf16.mxu1 %v13269_v27  ;;  %v12237_v2 = vadd.f32 %v4828_v29, %v14897_v18  ;;  %v4830_v55 = vpop.f32.mrb[85].mxu1  ;;  %v13273_v29 = vld [vmem:[#allocation8 + $0x408] ss:$16 sps:$4 sm:$0xff]  }
 0x2db   :  { %15614 = vst [vmem:[#allocation52_spill] sm:$0xff] %v15004_v28  ;;  %v12206_v50 = vadd.f32 %v4604_v42, %v14900_v26  ;;  %v4606_v58 = vpop.f32.mrb[86].mxu0  ;;  %v12238_v62 = vadd.f32 %v4830_v55, %v14904_v0  ;;  %v4832_v24 = vpop.f32.mrb[86].mxu1  ;;  %v13278_v42 = vld [vmem:[#allocation8 + $0x424] ss:$16 sps:$4 sm:$0xff]  }
 0x2dc   :  { %v12207_v56 = vadd.f32 %v4606_v58, %v14892_v37  ;;  %8973 = vmatpush1.bf16.msra.mxu0 %v13264_v47  ;;  %v4608_v36 = vpop.f32.mrb[87].mxu0  ;;  %v12239_v14 = vadd.f32 %v4832_v24, %v14897_v18  ;;  %v4834_v27 = vpop.f32.mrb[87].mxu1  ;;  %v5477_v11 = vmax.f32 %v12205_v4, 0.0  ;;  %v5479_v55 = vmax.f32 %v12237_v2, 0.0  ;;  %v13281_v24 = vld [vmem:[#allocation8 + $0x42c] ss:$16 sps:$4 sm:$0xff]  }
 0x2dd   :  { %9877 = vmatpush1.bf16.msra.mxu1 %v13267_v53  ;;  %v12208_v17 = vadd.f32 %v4608_v36, %v14900_v26  ;;  %9055 = vmatprep.subr.bf16.mxu0 %v13272_v16  ;;  %v12240_v3 = vadd.f32 %v4834_v27, %v14904_v0  ;;  %v5478_v58 = vmax.f32 %v12206_v50, 0.0  ;;  %v5480_v53 = vmax.f32 %v12238_v62, 0.0  ;;  %v13276_v2 = vld [vmem:[#allocation8 + $0x420] ss:$16 sps:$4 sm:$0xff]  }
 0x2de   :  { %v5493_v10 = vmax.f32 %v12207_v56, 0.0  ;;  %9959 = vmatprep.subr.bf16.mxu1 %v13275_v34  ;;  %v5495_v39 = vmax.f32 %v12239_v14, 0.0 }
 0x2df   :  { %v5494_v47 = vmax.f32 %v12208_v17, 0.0  ;;  %8975 = vmatmul.mubr.bf16.vlgmr.msra.gmra.mrb[128].mxu0 %v14270_v57  ;;  %v5496_v36 = vmax.f32 %v12240_v3, 0.0  ;;  %v13284_v17 = vld [vmem:[#allocation8 + $0x444] ss:$16 sps:$4 sm:$0xff]  }
 0x2e0   :  { %v15015_v28 = vpack.c.bf16 %v5493_v10, %v5477_v11  ;;  %9879 = vmatmul.mubr.bf16.vlgmr.msra.gmra.mrb[128].mxu1 %v14270_v57  ;;  %8984 = vmatprep.mubr.bf16.mxu0 %v14322_v49  ;;  %v15019_v16 = vpack.c.bf16 %v5495_v39, %v5479_v55  ;;  %v13279_v57 = vld [vmem:[#allocation8 + $0x428] ss:$16 sps:$4 sm:$0xff]  }
 0x2e1   :  { %v15021_v4 = vpack.c.bf16 %v5494_v47, %v5478_v58  ;;  %9056 = vmatpush1.bf16.msra.mxu0 %v13270_v52  ;;  %9888 = vmatprep.mubr.bf16.mxu1 %v14322_v49  ;;  %v4612_v34 = vpop.f32.mrb[88].mxu0  ;;  %v15024_v50 = vpack.c.bf16 %v5496_v36, %v5480_v53  ;;  %v4838_v56 = vpop.f32.mrb[88].mxu1  ;;  %v13287_v49 = vld [vmem:[#allocation8 + $0x44c] ss:$16 sps:$4 sm:$0xff]   ;;  %v13282_v53 = vld [vmem:[#allocation8 + $0x440] ss:$16 sps:$4 sm:$0xff]  }
 0x2e2   :  { %15615 = vst [vmem:[#allocation53_spill] sm:$0xff] %v15019_v16  ;;  %9960 = vmatpush1.bf16.msra.mxu1 %v13273_v29  ;;  %v12209_v62 = vadd.f32 %v4612_v34, %v14892_v37  ;;  %v4614_v14 = vpop.f32.mrb[89].mxu0  ;;  %9057 = vmatprep.subr.bf16.mxu0 %v13278_v42  ;;  %v12241_v39 = vadd.f32 %v4838_v56, %v14897_v18  ;;  %v4840_v11 = vpop.f32.mrb[89].mxu1  ;;  %v13285_v56 = vld [vmem:[#allocation8 + $0x448] ss:$16 sps:$4 sm:$0xff]  }
 0x2e3   :  { %15616 = vst [vmem:[#allocation54_spill] sm:$0xff] %v15024_v50  ;;  %v12210_v27 = vadd.f32 %v4614_v14, %v14900_v26  ;;  %9961 = vmatprep.subr.bf16.mxu1 %v13281_v24  ;;  %v4616_v52 = vpop.f32.mrb[90].mxu0  ;;  %v12242_v10 = vadd.f32 %v4840_v11, %v14904_v0  ;;  %v4842_v29 = vpop.f32.mrb[90].mxu1  ;;  %v13290_v14 = vld [vmem:[#allocation8 + $0x464] ss:$16 sps:$4 sm:$0xff]  }
 0x2e4   :  { %v12211_v3 = vadd.f32 %v4616_v52, %v14892_v37  ;;  %v4618_v55 = vpop.f32.mrb[91].mxu0  ;;  %v12243_v58 = vadd.f32 %v4842_v29, %v14897_v18  ;;  %v4844_v47 = vpop.f32.mrb[91].mxu1  ;;  %v5509_v36 = vmax.f32 %v12209_v62, 0.0  ;;  %v5511_v11 = vmax.f32 %v12241_v39, 0.0  ;;  %v13288_v39 = vld [vmem:[#allocation8 + $0x460] ss:$16 sps:$4 sm:$0xff]  }
 0x2e5   :  { %9058 = vmatpush1.bf16.msra.mxu0 %v13276_v2  ;;  %v12212_v42 = vadd.f32 %v4618_v55, %v14900_v26  ;;  %v12244_v24 = vadd.f32 %v4844_v47, %v14904_v0  ;;  %v5510_v16 = vmax.f32 %v12210_v27, 0.0  ;;  %v13293_v2 = vld [vmem:[#allocation8 + $0x46c] ss:$16 sps:$4 sm:$0xff]   ;;  %v5512_v29 = vmax.f32 %v12242_v10, 0.0 }
 0x2e6   :  { %v5525_v34 = vmax.f32 %v12211_v3, 0.0  ;;  %9962 = vmatpush1.bf16.msra.mxu1 %v13279_v57  ;;  %9059 = vmatprep.subr.bf16.mxu0 %v13284_v17  ;;  %v5527_v52 = vmax.f32 %v12243_v58, 0.0  ;;  %v13296_v58 = vld [vmem:[#allocation8 + $0x484] ss:$16 sps:$4 sm:$0xff]  }
 0x2e7   :  { %v5526_v50 = vmax.f32 %v12212_v42, 0.0  ;;  %8985 = vmatmul.mubr.bf16.gmra.mrb[132].mxu0 %v14312_v41  ;;  %9963 = vmatprep.subr.bf16.mxu1 %v13287_v49  ;;  %v5528_v19 = vmax.f32 %v12244_v24, 0.0 }
 0x2e8   :  { %v15035_v55 = vpack.c.bf16 %v5525_v34, %v5509_v36  ;;  %9889 = vmatmul.mubr.bf16.gmra.mrb[132].mxu1 %v14312_v41  ;;  %8994 = vmatprep.mubr.bf16.mxu0 %v14370_v46  ;;  %v15039_v62 = vpack.c.bf16 %v5527_v52, %v5511_v11  ;;  %v13291_v41 = vld [vmem:[#allocation8 + $0x468] ss:$16 sps:$4 sm:$0xff]   ;;  %v13294_v11 = vld [vmem:[#allocation8 + $0x480] ss:$16 sps:$4 sm:$0xff]  }
 0x2e9   :  { %v15041_v57 = vpack.c.bf16 %v5526_v50, %v5510_v16  ;;  %9060 = vmatpush1.bf16.msra.mxu0 %v13282_v53  ;;  %9898 = vmatprep.mubr.bf16.mxu1 %v14370_v46  ;;  %v4622_v17 = vpop.f32.mrb[92].mxu0  ;;  %v15044_v27 = vpack.c.bf16 %v5528_v19, %v5512_v29  ;;  %v4848_v10 = vpop.f32.mrb[92].mxu1  ;;  %v13299_v46 = vld [vmem:[#allocation8 + $0x48c] ss:$16 sps:$4 sm:$0xff]  }
 0x2ea   :  { %9964 = vmatpush1.bf16.msra.mxu1 %v13285_v56  ;;  %v12213_v49 = vadd.f32 %v4622_v17, %v14892_v37  ;;  %v4624_v3 = vpop.f32.mrb[93].mxu0  ;;  %9061 = vmatprep.subr.bf16.mxu0 %v13290_v14  ;;  %v12245_v42 = vadd.f32 %v4848_v10, %v14897_v18  ;;  %v4850_v50 = vpop.f32.mrb[93].mxu1  ;;  %v13297_v17 = vld [vmem:[#allocation8 + $0x488] ss:$16 sps:$4 sm:$0xff]   ;;  %v13302_v10 = vld [vmem:[#allocation8 + $0x4a4] ss:$16 sps:$4 sm:$0xff]  }
 0x2eb   :  { %v12214_v16 = vadd.f32 %v4624_v3, %v14900_v26  ;;  %9965 = vmatprep.subr.bf16.mxu1 %v13293_v2  ;;  %v4626_v47 = vpop.f32.mrb[94].mxu0  ;;  %v12246_v53 = vadd.f32 %v4850_v50, %v14904_v0  ;;  %v4852_v36 = vpop.f32.mrb[94].mxu1 }
 0x2ec   :  { %v12215_v19 = vadd.f32 %v4626_v47, %v14892_v37  ;;  %v4628_v34 = vpop.f32.mrb[95].mxu0  ;;  %v12247_v24 = vadd.f32 %v4852_v36, %v14897_v18  ;;  %v4854_v14 = vpop.f32.mrb[95].mxu1  ;;  %v5541_v52 = vmax.f32 %v12213_v49, 0.0  ;;  %v5543_v3 = vmax.f32 %v12245_v42, 0.0  ;;  %v13305_v18 = vld [vmem:[#allocation8 + $0x4ac] ss:$16 sps:$4 sm:$0xff]  }
 0x2ed   :  { %9062 = vmatpush1.bf16.msra.mxu0 %v13288_v39  ;;  %v12216_v56 = vadd.f32 %v4628_v34, %v14900_v26  ;;  %v12248_v2 = vadd.f32 %v4854_v14, %v14904_v0  ;;  %v5542_v50 = vmax.f32 %v12214_v16, 0.0  ;;  %v5544_v39 = vmax.f32 %v12246_v53, 0.0  ;;  %v13303_v42 = vld [vmem:[#allocation8 + $0x4a8] ss:$16 sps:$4 sm:$0xff]   ;;  %v13308_v16 = vld [vmem:[#allocation8 + $0x4c4] ss:$16 sps:$4 sm:$0xff]  }
 0x2ee   :  { %v5557_v29 = vmax.f32 %v12215_v19, 0.0  ;;  %9966 = vmatpush1.bf16.msra.mxu1 %v13291_v41  ;;  %9063 = vmatprep.subr.bf16.mxu0 %v13296_v58  ;;  %v5559_v37 = vmax.f32 %v12247_v24, 0.0  ;;  %v13300_v41 = vld [vmem:[#allocation8 + $0x4a0] ss:$16 sps:$4 sm:$0xff]   ;;  %v13309_v53 = vld [vmem:[#allocation8 + $0x4c8] ss:$16 sps:$4 sm:$0xff]  }
 0x2ef   :  { %v5558_v47 = vmax.f32 %v12216_v56, 0.0  ;;  %8995 = vmatmul.mubr.bf16.gmra.mrb[136].mxu0 %v14360_v35  ;;  %9967 = vmatprep.subr.bf16.mxu1 %v13299_v46  ;;  %v5560_v36 = vmax.f32 %v12248_v2, 0.0  ;;  %v13311_v46 = vld [vmem:[#allocation8 + $0x4cc] ss:$16 sps:$4 sm:$0xff]   ;;  %v13314_v19 = vld [vmem:[#allocation8 + $0x4e4] ss:$16 sps:$4 sm:$0xff]  }
 0x2f0   :  { %v15055_v26 = vpack.c.bf16 %v5557_v29, %v5541_v52  ;;  %9899 = vmatmul.mubr.bf16.gmra.mrb[136].mxu1 %v14360_v35  ;;  %9004 = vmatprep.mubr.bf16.mxu0 %v14418_v54  ;;  %v15059_v0 = vpack.c.bf16 %v5559_v37, %v5543_v3  ;;  %v13306_v35 = vld [vmem:[#allocation8 + $0x4c0] ss:$16 sps:$4 sm:$0xff]   ;;  %v13317_v34 = vld [vmem:[#allocation8 + $0x4ec] ss:$16 sps:$4 sm:$0xff]   ;;  %v13315_v24 = vld [vmem:[#allocation8 + $0x4e8] ss:$16 sps:$4 sm:$0xff]  }
 0x2f1   :  { %v15061_v49 = vpack.c.bf16 %v5558_v47, %v5542_v50  ;;  %9064 = vmatpush1.bf16.msra.mxu0 %v13294_v11  ;;  %9908 = vmatprep.mubr.bf16.mxu1 %v14418_v54  ;;  %v15064_v58 = vpack.c.bf16 %v5560_v36, %v5544_v39  ;;  %v13312_v54 = vld [vmem:[#allocation8 + $0x4e0] ss:$16 sps:$4 sm:$0xff]   ;;  %v13320_v56 = vld [vmem:[#allocation8 + $0x504] ss:$16 sps:$4 sm:$0xff]   ;;  %v13323_v14 = vld [vmem:[#allocation8 + $0x50c] ss:$16 sps:$4 sm:$0xff]  }
 0x2f2   :  { %15617 = vst [vmem:[#allocation55_spill] sm:$0xff] %v15059_v0  ;;  %9968 = vmatpush1.bf16.msra.mxu1 %v13297_v17  ;;  %9065 = vmatprep.subr.bf16.mxu0 %v13302_v10  ;;  %v13318_v11 = vld [vmem:[#allocation8 + $0x500] ss:$16 sps:$4 sm:$0xff]   ;;  %v13321_v52 = vld [vmem:[#allocation8 + $0x508] ss:$16 sps:$4 sm:$0xff]  }
 0x2f3   :  { %15618 = vst [vmem:[#allocation56_spill] sm:$0xff] %v15064_v58  ;;  %9969 = vmatprep.subr.bf16.mxu1 %v13305_v18  ;;  %v13326_v29 = vld [vmem:[#allocation8 + $0x524] ss:$16 sps:$4 sm:$0xff]   ;;  %v13324_v2 = vld [vmem:[#allocation8 + $0x520] ss:$16 sps:$4 sm:$0xff]  }
 0x2f4   :  { %v13327_v17 = vld [vmem:[#allocation8 + $0x528] ss:$16 sps:$4 sm:$0xff]   ;;  %v13332_v10 = vld [vmem:[#allocation8 + $0x544] ss:$16 sps:$4 sm:$0xff]   ;;  %v13335_v3 = vld [vmem:[#allocation8 + $0x54c] ss:$16 sps:$4 sm:$0xff]  }
 0x2f5   :  { %9066 = vmatpush1.bf16.msra.mxu0 %v13300_v41  ;;  %v13330_v50 = vld [vmem:[#allocation8 + $0x540] ss:$16 sps:$4 sm:$0xff]   ;;  %v13333_v37 = vld [vmem:[#allocation8 + $0x548] ss:$16 sps:$4 sm:$0xff]   ;;  %v13338_v47 = vld [vmem:[#allocation8 + $0x564] ss:$16 sps:$4 sm:$0xff]  }
 0x2f6   :  { %9970 = vmatpush1.bf16.msra.mxu1 %v13303_v42  ;;  %9067 = vmatprep.subr.bf16.mxu0 %v13308_v16  ;;  %v15620_v18 = vld [vmem:[#allocation21_spill] sm:$0xff]  ;;  %v15621_v39 = vld [vmem:[#allocation24_spill] sm:$0xff] }
 0x2f7   :  { %9005 = vmatmul.mubr.bf16.gmra.mrb[140].mxu0 %v14408_v38  ;;  %9971 = vmatprep.subr.bf16.mxu1 %v13311_v46  ;;  %v13336_v36 = vld [vmem:[#allocation8 + $0x560] ss:$16 sps:$4 sm:$0xff]   ;;  %v13339_v41 = vld [vmem:[#allocation8 + $0x568] ss:$16 sps:$4 sm:$0xff]   ;;  %v13344_v42 = vld [vmem:[#allocation8 + $0x584] ss:$16 sps:$4 sm:$0xff]  }
 0x2f8   :  { %9909 = vmatmul.mubr.bf16.gmra.mrb[140].mxu1 %v14408_v38  ;;  %9014 = vmatprep.mubr.bf16.mxu0 %v14466_v5  ;;  %v13329_v38 = vld [vmem:[#allocation8 + $0x52c] ss:$16 sps:$4 sm:$0xff]   ;;  %v13342_v46 = vld [vmem:[#allocation8 + $0x580] ss:$16 sps:$4 sm:$0xff]  }
 0x2f9   :  { %9068 = vmatpush1.bf16.msra.mxu0 %v13306_v35  ;;  %9918 = vmatprep.mubr.bf16.mxu1 %v14466_v5  ;;  %v15619_v5 = vld [vmem:[#allocation22_spill] sm:$0xff]  ;;  %v13347_v16 = vld [vmem:[#allocation8 + $0x58c] ss:$16 sps:$4 sm:$0xff]  }
 0x2fa   :  { %9972 = vmatpush1.bf16.msra.mxu1 %v13309_v53  ;;  %9069 = vmatprep.subr.bf16.mxu0 %v13314_v19  ;;  %v13345_v35 = vld [vmem:[#allocation8 + $0x588] ss:$16 sps:$4 sm:$0xff]   ;;  %v13350_v53 = vld [vmem:[#allocation8 + $0x5a4] ss:$16 sps:$4 sm:$0xff]   ;;  %v15622_v19 = vld [vmem:[#allocation23_spill] sm:$0xff] }
 0x2fb   :  { %9973 = vmatprep.subr.bf16.mxu1 %v13317_v34  ;;  %v13353_v34 = vld [vmem:[#allocation8 + $0x5ac] ss:$16 sps:$4 sm:$0xff]  }
 0x2fd   :  { %9070 = vmatpush1.bf16.msra.mxu0 %v13312_v54  ;;  %v15623_v54 = vld [vmem:[#allocation26_spill] sm:$0xff] }
 0x2fe   :  { %9974 = vmatpush1.bf16.msra.mxu1 %v13315_v24  ;;  %9071 = vmatprep.subr.bf16.mxu0 %v13320_v56  ;;  %v13348_v24 = vld [vmem:[#allocation8 + $0x5a0] ss:$16 sps:$4 sm:$0xff]   ;;  %v13351_v56 = vld [vmem:[#allocation8 + $0x5a8] ss:$16 sps:$4 sm:$0xff]  }
 0x2ff   :  { %9015 = vmatmul.mubr.bf16.gmra.mrb[144].mxu0 %v14456_v51  ;;  %9975 = vmatprep.subr.bf16.mxu1 %v13323_v14  ;;  %v13356_v14 = vld [vmem:[#allocation8 + $0x5c4] ss:$16 sps:$4 sm:$0xff]  }
 0x300   :  { %9919 = vmatmul.mubr.bf16.gmra.mrb[144].mxu1 %v14456_v51  ;;  %9024 = vmatprep.mubr.bf16.mxu0 %v15619_v5  ;;  %v13341_v51 = vld [vmem:[#allocation8 + $0x56c] ss:$16 sps:$4 sm:$0xff]  }
 0x301   :  { %9072 = vmatpush1.bf16.msra.mxu0 %v13318_v11  ;;  %9928 = vmatprep.mubr.bf16.mxu1 %v15619_v5  ;;  %v13359_v11 = vld [vmem:[#allocation8 + $0x5cc] ss:$16 sps:$4 sm:$0xff]  }
 0x302   :  { %9976 = vmatpush1.bf16.msra.mxu1 %v13321_v52  ;;  %9073 = vmatprep.subr.bf16.mxu0 %v13326_v29  ;;  %v13354_v52 = vld [vmem:[#allocation8 + $0x5c0] ss:$16 sps:$4 sm:$0xff]   ;;  %v13357_v29 = vld [vmem:[#allocation8 + $0x5c8] ss:$16 sps:$4 sm:$0xff]  }
 0x303   :  { %9977 = vmatprep.subr.bf16.mxu1 %v13329_v38  ;;  %v13362_v38 = vld [vmem:[#allocation8 + $0x5e4] ss:$16 sps:$4 sm:$0xff]   ;;  %v15624_v5 = vld [vmem:[#allocation25_spill] sm:$0xff] }
 0x305   :  { %9074 = vmatpush1.bf16.msra.mxu0 %v13324_v2  ;;  %v13365_v2 = vld [vmem:[#allocation8 + $0x5ec] ss:$16 sps:$4 sm:$0xff]  }
 0x306   :  { %9978 = vmatpush1.bf16.msra.mxu1 %v13327_v17  ;;  %9075 = vmatprep.subr.bf16.mxu0 %v13332_v10  ;;  %v15625_v17 = vld [vmem:[#allocation29_spill] sm:$0xff] }
 0x307   :  { %9025 = vmatmul.mubr.bf16.gmra.mrb[148].mxu0 %v15620_v18  ;;  %9979 = vmatprep.subr.bf16.mxu1 %v13335_v3  ;;  %v13360_v10 = vld [vmem:[#allocation8 + $0x5e0] ss:$16 sps:$4 sm:$0xff]   ;;  %v13363_v3 = vld [vmem:[#allocation8 + $0x5e8] ss:$16 sps:$4 sm:$0xff]  }
 0x308   :  { %9929 = vmatmul.mubr.bf16.gmra.mrb[148].mxu1 %v15620_v18  ;;  %9034 = vmatprep.mubr.bf16.mxu0 %v15621_v39  ;;  %v13369_v18 = vld [vmem:[#allocation8 + $0x608] ss:$16 sps:$4 sm:$0xff]  }
 0x309   :  { %9076 = vmatpush1.bf16.msra.mxu0 %v13330_v50  ;;  %9938 = vmatprep.mubr.bf16.mxu1 %v15621_v39  ;;  %v13368_v50 = vld [vmem:[#allocation8 + $0x604] ss:$16 sps:$4 sm:$0xff]   ;;  %v15626_v39 = vld [vmem:[#allocation27_spill] sm:$0xff] }
 0x30a   :  { %9980 = vmatpush1.bf16.msra.mxu1 %v13333_v37  ;;  %9077 = vmatprep.subr.bf16.mxu0 %v13338_v47  ;;  %v13371_v37 = vld [vmem:[#allocation8 + $0x60c] ss:$16 sps:$4 sm:$0xff]   ;;  %v13366_v47 = vld [vmem:[#allocation8 + $0x600] ss:$16 sps:$4 sm:$0xff]  }
 0x30b   :  { %9981 = vmatprep.subr.bf16.mxu1 %v13341_v51  ;;  %v13374_v51 = vld [vmem:[#allocation8 + $0x624] ss:$16 sps:$4 sm:$0xff]  }
 0x30d   :  { %9078 = vmatpush1.bf16.msra.mxu0 %v13336_v36  ;;  %v13377_v36 = vld [vmem:[#allocation8 + $0x62c] ss:$16 sps:$4 sm:$0xff]  }
 0x30e   :  { %9982 = vmatpush1.bf16.msra.mxu1 %v13339_v41  ;;  %9079 = vmatprep.subr.bf16.mxu0 %v13344_v42  ;;  %v15627_v41 = vld [vmem:[#allocation33_spill] sm:$0xff] }
 0x30f   :  { %9035 = vmatmul.mubr.bf16.gmra.mrb[152].mxu0 %v15622_v19  ;;  %9983 = vmatprep.subr.bf16.mxu1 %v13347_v16  ;;  %v13372_v42 = vld [vmem:[#allocation8 + $0x620] ss:$16 sps:$4 sm:$0xff]   ;;  %v13375_v16 = vld [vmem:[#allocation8 + $0x628] ss:$16 sps:$4 sm:$0xff]  }
 0x310   :  { %9939 = vmatmul.mubr.bf16.gmra.mrb[152].mxu1 %v15622_v19  ;;  %9044 = vmatprep.mubr.bf16.mxu0 %v15623_v54  ;;  %v13381_v19 = vld [vmem:[#allocation8 + $0x648] ss:$16 sps:$4 sm:$0xff]  }
 0x311   :  { %9080 = vmatpush1.bf16.msra.mxu0 %v13342_v46  ;;  %9948 = vmatprep.mubr.bf16.mxu1 %v15623_v54  ;;  %v13380_v46 = vld [vmem:[#allocation8 + $0x644] ss:$16 sps:$4 sm:$0xff]   ;;  %v15628_v54 = vld [vmem:[#allocation31_spill] sm:$0xff] }
 0x312   :  { %9984 = vmatpush1.bf16.msra.mxu1 %v13345_v35  ;;  %9081 = vmatprep.subr.bf16.mxu0 %v13350_v53  ;;  %v13383_v35 = vld [vmem:[#allocation8 + $0x64c] ss:$16 sps:$4 sm:$0xff]   ;;  %v13378_v53 = vld [vmem:[#allocation8 + $0x640] ss:$16 sps:$4 sm:$0xff]  }
 0x313   :  { %9985 = vmatprep.subr.bf16.mxu1 %v13353_v34  ;;  %v13386_v34 = vld [vmem:[#allocation8 + $0x664] ss:$16 sps:$4 sm:$0xff]  }
 0x315   :  { %9082 = vmatpush1.bf16.msra.mxu0 %v13348_v24  ;;  %v13389_v24 = vld [vmem:[#allocation8 + $0x66c] ss:$16 sps:$4 sm:$0xff]  }
 0x316   :  { %9986 = vmatpush1.bf16.msra.mxu1 %v13351_v56  ;;  %9083 = vmatprep.subr.bf16.mxu0 %v13356_v14  ;;  %v15629_v56 = vld [vmem:[#allocation37_spill] sm:$0xff] }
 0x317   :  { %9045 = vmatmul.mubr.bf16.gmra.mrb[156].mxu0 %v15624_v5  ;;  %9987 = vmatprep.subr.bf16.mxu1 %v13359_v11  ;;  %v13384_v14 = vld [vmem:[#allocation8 + $0x660] ss:$16 sps:$4 sm:$0xff]   ;;  %v13387_v11 = vld [vmem:[#allocation8 + $0x668] ss:$16 sps:$4 sm:$0xff]  }
 0x318   :  { %9949 = vmatmul.mubr.bf16.gmra.mrb[156].mxu1 %v15624_v5  ;;  %9087 = vmatprep.mubr.bf16.mxu0 %v15625_v17  ;;  %v13943_v5 = vld [vmem:[#allocation7 + $0x8] sm:$0xff] }
 0x319   :  { %9084 = vmatpush1.bf16.msra.mxu0 %v13354_v52  ;;  %9991 = vmatprep.mubr.bf16.mxu1 %v15625_v17  ;;  %v13392_v52 = vld [vmem:[#allocation8 + $0x684] ss:$16 sps:$4 sm:$0xff]  }
 0x31a   :  { %9988 = vmatpush1.bf16.msra.mxu1 %v13357_v29  ;;  %9085 = vmatprep.subr.bf16.mxu0 %v13362_v38  ;;  %v13395_v29 = vld [vmem:[#allocation8 + $0x68c] ss:$16 sps:$4 sm:$0xff]   ;;  %v13390_v38 = vld [vmem:[#allocation8 + $0x680] ss:$16 sps:$4 sm:$0xff]  }
 0x31b   :  { %9989 = vmatprep.subr.bf16.mxu1 %v13365_v2  ;;  %v15630_v2 = vld [vmem:[#allocation16_spill] sm:$0xff] }
 0x31c   :  { %v15631_v17 = vsub.s32 4, %v15630_v2 }
 0x31d   :  { %9086 = vmatpush1.bf16.msra.mxu0 %v13360_v10 }
 0x31e   :  { %9990 = vmatpush1.bf16.msra.mxu1 %v13363_v3  ;;  %9168 = vmatprep.subr.bf16.mxu0 %v13368_v50  ;;  %v15096_v10 = vrot.slane %v13943_v5, %v15631_v17  ;;  %v13393_v3 = vld [vmem:[#allocation8 + $0x688] ss:$16 sps:$4 sm:$0xff]   ;;  %v15632_v50 = vsub.s32 6, %v15630_v2  ;;  %v13407_v17 = vld [vmem:[#allocation8 + $0x6cc] ss:$16 sps:$4 sm:$0xff]  }
 0x31f   :  { %10072 = vmatprep.subr.bf16.mxu1 %v13371_v37 }
 0x320   :  { %9088 = vmatmul.mubr.bf16.vlgmr.msra.gmra.mrb[128].mxu0 %v15626_v39  ;;  %v15100_v37 = vrot.slane %v13943_v5, %v15632_v50 }
 0x321   :  { %9992 = vmatmul.mubr.bf16.vlgmr.msra.gmra.mrb[128].mxu1 %v15626_v39  ;;  %9097 = vmatprep.mubr.bf16.mxu0 %v15627_v41  ;;  %v15634_v39 = vld [vmem:[#allocation35_spill] sm:$0xff] }
 0x322   :  { %9169 = vmatpush1.bf16.msra.mxu0 %v13366_v47  ;;  %10001 = vmatprep.mubr.bf16.mxu1 %v15627_v41  ;;  %v15633_v47 = vsub.s32 5, %v15630_v2 }
 0x323   :  { %10073 = vmatpush1.bf16.msra.mxu1 %v13369_v18  ;;  %9170 = vmatprep.subr.bf16.mxu0 %v13374_v51  ;;  %v13398_v51 = vld [vmem:[#allocation8 + $0x6a4] ss:$16 sps:$4 sm:$0xff]  }
 0x324   :  { %10074 = vmatprep.subr.bf16.mxu1 %v13377_v36  ;;  %v15104_v18 = vrot.slane %v13943_v5, %v15633_v47  ;;  %v15635_v36 = vsub.s32 7, %v15630_v2 }
 0x326   :  { %9171 = vmatpush1.bf16.msra.mxu0 %v13372_v42  ;;  %v15109_v41 = vrot.slane %v13943_v5, %v15635_v36  ;;  %v13401_v42 = vld [vmem:[#allocation8 + $0x6ac] ss:$16 sps:$4 sm:$0xff]  }
 0x327   :  { %10075 = vmatpush1.bf16.msra.mxu1 %v13375_v16  ;;  %9172 = vmatprep.subr.bf16.mxu0 %v13380_v46  ;;  %v15636_v16 = vld [vmem:[#allocation41_spill] sm:$0xff] }
 0x328   :  { %9098 = vmatmul.mubr.bf16.gmra.mrb[132].mxu0 %v15628_v54  ;;  %10076 = vmatprep.subr.bf16.mxu1 %v13383_v35 }
 0x329   :  { %10002 = vmatmul.mubr.bf16.gmra.mrb[132].mxu1 %v15628_v54  ;;  %9107 = vmatprep.mubr.bf16.mxu0 %v15629_v56 }
 0x32a   :  { %9173 = vmatpush1.bf16.msra.mxu0 %v13378_v53  ;;  %10011 = vmatprep.mubr.bf16.mxu1 %v15629_v56 }
 0x32b   :  { %10077 = vmatpush1.bf16.msra.mxu1 %v13381_v19  ;;  %9174 = vmatprep.subr.bf16.mxu0 %v13386_v34  ;;  %v13396_v34 = vld [vmem:[#allocation8 + $0x6a0] ss:$16 sps:$4 sm:$0xff]  }
 0x32c   :  { %10078 = vmatprep.subr.bf16.mxu1 %v13389_v24 }
 0x32e   :  { %9175 = vmatpush1.bf16.msra.mxu0 %v13384_v14  ;;  %v13399_v14 = vld [vmem:[#allocation8 + $0x6a8] ss:$16 sps:$4 sm:$0xff]  }
 0x32f   :  { %10079 = vmatpush1.bf16.msra.mxu1 %v13387_v11  ;;  %9176 = vmatprep.subr.bf16.mxu0 %v13392_v52  ;;  %v13404_v52 = vld [vmem:[#allocation8 + $0x6c4] ss:$16 sps:$4 sm:$0xff]  }
 0x330   :  { %9108 = vmatmul.mubr.bf16.gmra.mrb[136].mxu0 %v15634_v39  ;;  %10080 = vmatprep.subr.bf16.mxu1 %v13395_v29 }
 0x331   :  { %10012 = vmatmul.mubr.bf16.gmra.mrb[136].mxu1 %v15634_v39  ;;  %9117 = vmatprep.mubr.bf16.mxu0 %v15636_v16  ;;  %v5004_v46 = vpop.f32.mrb[96].mxu0  ;;  %v5230_v53 = vpop.f32.mrb[96].mxu1 }
 0x332   :  { %9177 = vmatpush1.bf16.msra.mxu0 %v13390_v38  ;;  %10021 = vmatprep.mubr.bf16.mxu1 %v15636_v16  ;;  %v12249_v35 = vadd.f32 %v5004_v46, %v15096_v10  ;;  %v5006_v19 = vpop.f32.mrb[97].mxu0  ;;  %v12281_v54 = vadd.f32 %v5230_v53, %v15100_v37  ;;  %v5232_v56 = vpop.f32.mrb[97].mxu1  ;;  %v13402_v16 = vld [vmem:[#allocation8 + $0x6c0] ss:$16 sps:$4 sm:$0xff]   ;;  %v13405_v46 = vld [vmem:[#allocation8 + $0x6c8] ss:$16 sps:$4 sm:$0xff]  }
 0x333   :  { %10081 = vmatpush1.bf16.msra.mxu1 %v13393_v3  ;;  %v12250_v24 = vadd.f32 %v5006_v19, %v15104_v18  ;;  %9178 = vmatprep.subr.bf16.mxu0 %v13398_v51  ;;  %v5008_v11 = vpop.f32.mrb[98].mxu0  ;;  %v12282_v29 = vadd.f32 %v5232_v56, %v15109_v41  ;;  %v5234_v5 = vpop.f32.mrb[98].mxu1 }
 0x334   :  { %10082 = vmatprep.subr.bf16.mxu1 %v13401_v42  ;;  %v12251_v38 = vadd.f32 %v5008_v11, %v15096_v10  ;;  %v5010_v2 = vpop.f32.mrb[99].mxu0  ;;  %v12283_v50 = vadd.f32 %v5234_v5, %v15100_v37  ;;  %v5236_v47 = vpop.f32.mrb[99].mxu1  ;;  %v5321_v39 = vmax.f32 %v12249_v35, 0.0  ;;  %v5323_v53 = vmax.f32 %v12281_v54, 0.0  ;;  %v13410_v11 = vld [vmem:[#allocation8 + $0x6e4] ss:$16 sps:$4 sm:$0xff]  }
 0x335   :  { %v12252_v3 = vadd.f32 %v5010_v2, %v15104_v18  ;;  %v12284_v51 = vadd.f32 %v5236_v47, %v15109_v41  ;;  %v5322_v19 = vmax.f32 %v12250_v24, 0.0  ;;  %v5324_v0 = vmax.f32 %v12282_v29, 0.0  ;;  %v15638_v2 = vld [vmem:[#allocation39_spill] sm:$0xff] }
 0x336   :  { %v5337_v36 = vmax.f32 %v12251_v38, 0.0  ;;  %9179 = vmatpush1.bf16.msra.mxu0 %v13396_v34  ;;  %v5339_v42 = vmax.f32 %v12283_v50, 0.0  ;;  %v13413_v35 = vld [vmem:[#allocation8 + $0x6ec] ss:$16 sps:$4 sm:$0xff]  }
 0x337   :  { %10083 = vmatpush1.bf16.msra.mxu1 %v13399_v14  ;;  %v5338_v56 = vmax.f32 %v12252_v3, 0.0  ;;  %9180 = vmatprep.subr.bf16.mxu0 %v13404_v52  ;;  %v5340_v5 = vmax.f32 %v12284_v51, 0.0  ;;  %v13416_v51 = vld [vmem:[#allocation8 + $0x704] ss:$16 sps:$4 sm:$0xff]  }
 0x338   :  { %v15122_v58 = vpack.c.bf16 %v5337_v36, %v5321_v39  ;;  %9118 = vmatmul.mubr.bf16.gmra.mrb[140].mxu0 %v15638_v2  ;;  %10084 = vmatprep.subr.bf16.mxu1 %v13407_v17  ;;  %v15125_v34 = vpack.c.bf16 %v5339_v42, %v5323_v53  ;;  %v13408_v17 = vld [vmem:[#allocation8 + $0x6e0] ss:$16 sps:$4 sm:$0xff]   ;;  %v13411_v39 = vld [vmem:[#allocation8 + $0x6e8] ss:$16 sps:$4 sm:$0xff]  }
 0x339   :  { %v15127_v38 = vpack.c.bf16 %v5338_v56, %v5322_v19  ;;  %10022 = vmatmul.mubr.bf16.gmra.mrb[140].mxu1 %v15638_v2  ;;  %9127 = vmatprep.mubr.bf16.mxu0 %v14828_v12  ;;  %v5014_v54 = vpop.f32.mrb[100].mxu0  ;;  %v15131_v24 = vpack.c.bf16 %v5340_v5, %v5324_v0  ;;  %v5240_v52 = vpop.f32.mrb[100].mxu1  ;;  %v13419_v19 = vld [vmem:[#allocation8 + $0x70c] ss:$16 sps:$4 sm:$0xff]  }
 0x33a   :  { %15637 = vst [vmem:[#allocation22_spill] sm:$0xff] %v15122_v58  ;;  %15639 = vst [vmem:[#allocation21_spill] sm:$0xff] %v15125_v34  ;;  %9181 = vmatpush1.bf16.msra.mxu0 %v13402_v16  ;;  %10031 = vmatprep.mubr.bf16.mxu1 %v14828_v12  ;;  %v12253_v14 = vadd.f32 %v5014_v54, %v15096_v10  ;;  %v5016_v29 = vpop.f32.mrb[101].mxu0  ;;  %v12285_v50 = vadd.f32 %v5240_v52, %v15100_v37  ;;  %v5242_v47 = vpop.f32.mrb[101].mxu1  ;;  %v13414_v54 = vld [vmem:[#allocation8 + $0x700] ss:$16 sps:$4 sm:$0xff]  }
 0x33b   :  { %15640 = vst [vmem:[#allocation24_spill] sm:$0xff] %v15131_v24  ;;  %10085 = vmatpush1.bf16.msra.mxu1 %v13405_v46  ;;  %v12254_v3 = vadd.f32 %v5016_v29, %v15104_v18  ;;  %9182 = vmatprep.subr.bf16.mxu0 %v13410_v11  ;;  %v5018_v36 = vpop.f32.mrb[102].mxu0  ;;  %v12286_v0 = vadd.f32 %v5242_v47, %v15109_v41  ;;  %v5244_v16 = vpop.f32.mrb[102].mxu1  ;;  %v13417_v52 = vld [vmem:[#allocation8 + $0x708] ss:$16 sps:$4 sm:$0xff]  }
 0x33c   :  { %10086 = vmatprep.subr.bf16.mxu1 %v13413_v35  ;;  %v12255_v12 = vadd.f32 %v5018_v36, %v15096_v10  ;;  %v5020_v53 = vpop.f32.mrb[103].mxu0  ;;  %v12287_v42 = vadd.f32 %v5244_v16, %v15100_v37  ;;  %v5246_v56 = vpop.f32.mrb[103].mxu1  ;;  %v5353_v5 = vmax.f32 %v12253_v14, 0.0  ;;  %v5355_v29 = vmax.f32 %v12285_v50, 0.0  ;;  %v13422_v34 = vld [vmem:[#allocation8 + $0x724] ss:$16 sps:$4 sm:$0xff]  }
 0x33d   :  { %v12256_v46 = vadd.f32 %v5020_v53, %v15104_v18  ;;  %v12288_v11 = vadd.f32 %v5246_v56, %v15109_v41  ;;  %v5354_v47 = vmax.f32 %v12254_v3, 0.0  ;;  %v5356_v24 = vmax.f32 %v12286_v0, 0.0  ;;  %v13425_v14 = vld [vmem:[#allocation8 + $0x72c] ss:$16 sps:$4 sm:$0xff]   ;;  %v13420_v53 = vld [vmem:[#allocation8 + $0x720] ss:$16 sps:$4 sm:$0xff]  }
 0x33e   :  { %v5369_v2 = vmax.f32 %v12255_v12, 0.0  ;;  %9183 = vmatpush1.bf16.msra.mxu0 %v13408_v17  ;;  %v5371_v35 = vmax.f32 %v12287_v42, 0.0 }
 0x33f   :  { %10087 = vmatpush1.bf16.msra.mxu1 %v13411_v39  ;;  %v5370_v36 = vmax.f32 %v12256_v46, 0.0  ;;  %9184 = vmatprep.subr.bf16.mxu0 %v13416_v51  ;;  %v5372_v16 = vmax.f32 %v12288_v11, 0.0 }
 0x340   :  { %v15142_v58 = vpack.c.bf16 %v5369_v2, %v5353_v5  ;;  %9128 = vmatmul.mubr.bf16.gmra.mrb[144].mxu0 %v14824_v1  ;;  %10088 = vmatprep.subr.bf16.mxu1 %v13419_v19  ;;  %v15145_v17 = vpack.c.bf16 %v5371_v35, %v5355_v29  ;;  %v13428_v5 = vld [vmem:[#allocation8 + $0x744] ss:$16 sps:$4 sm:$0xff]  }
 0x341   :  { %v15147_v12 = vpack.c.bf16 %v5370_v36, %v5354_v47  ;;  %10032 = vmatmul.mubr.bf16.gmra.mrb[144].mxu1 %v14824_v1  ;;  %9137 = vmatprep.mubr.bf16.mxu0 %v14844_v25  ;;  %v5024_v50 = vpop.f32.mrb[104].mxu0  ;;  %v15151_v3 = vpack.c.bf16 %v5372_v16, %v5356_v24  ;;  %v5250_v51 = vpop.f32.mrb[104].mxu1  ;;  %v13423_v1 = vld [vmem:[#allocation8 + $0x728] ss:$16 sps:$4 sm:$0xff]   ;;  %v13426_v16 = vld [vmem:[#allocation8 + $0x740] ss:$16 sps:$4 sm:$0xff]  }
 0x342   :  { %15641 = vst [vmem:[#allocation23_spill] sm:$0xff] %v15145_v17  ;;  %9185 = vmatpush1.bf16.msra.mxu0 %v13414_v54  ;;  %10041 = vmatprep.mubr.bf16.mxu1 %v14844_v25  ;;  %v12257_v39 = vadd.f32 %v5024_v50, %v15096_v10  ;;  %v5026_v0 = vpop.f32.mrb[105].mxu0  ;;  %v12289_v19 = vadd.f32 %v5250_v51, %v15100_v37  ;;  %v5252_v46 = vpop.f32.mrb[105].mxu1  ;;  %v13431_v54 = vld [vmem:[#allocation8 + $0x74c] ss:$16 sps:$4 sm:$0xff]  }
 0x343   :  { %15642 = vst [vmem:[#allocation26_spill] sm:$0xff] %v15151_v3  ;;  %10089 = vmatpush1.bf16.msra.mxu1 %v13417_v52  ;;  %v12258_v42 = vadd.f32 %v5026_v0, %v15104_v18  ;;  %9186 = vmatprep.subr.bf16.mxu0 %v13422_v34  ;;  %v5028_v56 = vpop.f32.mrb[106].mxu0  ;;  %v12290_v24 = vadd.f32 %v5252_v46, %v15109_v41  ;;  %v5254_v2 = vpop.f32.mrb[106].mxu1  ;;  %v13429_v50 = vld [vmem:[#allocation8 + $0x748] ss:$16 sps:$4 sm:$0xff]  }
 0x344   :  { %10090 = vmatprep.subr.bf16.mxu1 %v13425_v14  ;;  %v12259_v25 = vadd.f32 %v5028_v56, %v15096_v10  ;;  %v5030_v11 = vpop.f32.mrb[107].mxu0  ;;  %v12291_v29 = vadd.f32 %v5254_v2, %v15100_v37  ;;  %v5256_v47 = vpop.f32.mrb[107].mxu1  ;;  %v5385_v35 = vmax.f32 %v12257_v39, 0.0  ;;  %v5387_v51 = vmax.f32 %v12289_v19, 0.0  ;;  %v13434_v56 = vld [vmem:[#allocation8 + $0x764] ss:$16 sps:$4 sm:$0xff]  }
 0x345   :  { %v12260_v52 = vadd.f32 %v5030_v11, %v15104_v18  ;;  %v12292_v34 = vadd.f32 %v5256_v47, %v15109_v41  ;;  %v5386_v0 = vmax.f32 %v12258_v42, 0.0  ;;  %v5388_v17 = vmax.f32 %v12290_v24, 0.0  ;;  %v13437_v39 = vld [vmem:[#allocation8 + $0x76c] ss:$16 sps:$4 sm:$0xff]   ;;  %v13432_v11 = vld [vmem:[#allocation8 + $0x760] ss:$16 sps:$4 sm:$0xff]  }
 0x346   :  { %v5401_v36 = vmax.f32 %v12259_v25, 0.0  ;;  %9187 = vmatpush1.bf16.msra.mxu0 %v13420_v53  ;;  %v5403_v14 = vmax.f32 %v12291_v29, 0.0 }
 0x347   :  { %10091 = vmatpush1.bf16.msra.mxu1 %v13423_v1  ;;  %v5402_v46 = vmax.f32 %v12260_v52, 0.0  ;;  %9188 = vmatprep.subr.bf16.mxu0 %v13428_v5  ;;  %v5404_v2 = vmax.f32 %v12292_v34, 0.0 }
 0x348   :  { %v15162_v3 = vpack.c.bf16 %v5401_v36, %v5385_v35  ;;  %9138 = vmatmul.mubr.bf16.gmra.mrb[148].mxu0 %v14840_v21  ;;  %10092 = vmatprep.subr.bf16.mxu1 %v13431_v54  ;;  %v15165_v53 = vpack.c.bf16 %v5403_v14, %v5387_v51  ;;  %v13440_v35 = vld [vmem:[#allocation8 + $0x784] ss:$16 sps:$4 sm:$0xff]  }
 0x349   :  { %v15167_v25 = vpack.c.bf16 %v5402_v46, %v5386_v0  ;;  %10042 = vmatmul.mubr.bf16.gmra.mrb[148].mxu1 %v14840_v21  ;;  %9147 = vmatprep.mubr.bf16.mxu0 %v14860_v33  ;;  %v5034_v19 = vpop.f32.mrb[108].mxu0  ;;  %v15171_v42 = vpack.c.bf16 %v5404_v2, %v5388_v17  ;;  %v5260_v5 = vpop.f32.mrb[108].mxu1  ;;  %v13435_v21 = vld [vmem:[#allocation8 + $0x768] ss:$16 sps:$4 sm:$0xff]   ;;  %v13438_v2 = vld [vmem:[#allocation8 + $0x780] ss:$16 sps:$4 sm:$0xff]  }
 0x34a   :  { %15643 = vst [vmem:[#allocation25_spill] sm:$0xff] %v15165_v53  ;;  %9189 = vmatpush1.bf16.msra.mxu0 %v13426_v16  ;;  %10051 = vmatprep.mubr.bf16.mxu1 %v14860_v33  ;;  %v12261_v1 = vadd.f32 %v5034_v19, %v15096_v10  ;;  %v5036_v24 = vpop.f32.mrb[109].mxu0  ;;  %v12293_v54 = vadd.f32 %v5260_v5, %v15100_v37  ;;  %v5262_v52 = vpop.f32.mrb[109].mxu1  ;;  %v13443_v16 = vld [vmem:[#allocation8 + $0x78c] ss:$16 sps:$4 sm:$0xff]  }
 0x34b   :  { %15644 = vst [vmem:[#allocation29_spill] sm:$0xff] %v15171_v42  ;;  %10093 = vmatpush1.bf16.msra.mxu1 %v13429_v50  ;;  %v12262_v29 = vadd.f32 %v5036_v24, %v15104_v18  ;;  %9190 = vmatprep.subr.bf16.mxu0 %v13434_v56  ;;  %v5038_v47 = vpop.f32.mrb[110].mxu0  ;;  %v12294_v17 = vadd.f32 %v5262_v52, %v15109_v41  ;;  %v5264_v36 = vpop.f32.mrb[110].mxu1  ;;  %v13441_v19 = vld [vmem:[#allocation8 + $0x788] ss:$16 sps:$4 sm:$0xff]  }
 0x34c   :  { %10094 = vmatprep.subr.bf16.mxu1 %v13437_v39  ;;  %v12263_v33 = vadd.f32 %v5038_v47, %v15096_v10  ;;  %v5040_v34 = vpop.f32.mrb[111].mxu0  ;;  %v12295_v51 = vadd.f32 %v5264_v36, %v15100_v37  ;;  %v5266_v0 = vpop.f32.mrb[111].mxu1  ;;  %v5417_v14 = vmax.f32 %v12261_v1, 0.0  ;;  %v5419_v5 = vmax.f32 %v12293_v54, 0.0  ;;  %v13446_v47 = vld [vmem:[#allocation8 + $0x7a4] ss:$16 sps:$4 sm:$0xff]  }
 0x34d   :  { %v12264_v50 = vadd.f32 %v5040_v34, %v15104_v18  ;;  %v12296_v56 = vadd.f32 %v5266_v0, %v15109_v41  ;;  %v5418_v24 = vmax.f32 %v12262_v29, 0.0  ;;  %v5420_v53 = vmax.f32 %v12294_v17, 0.0  ;;  %v13449_v1 = vld [vmem:[#allocation8 + $0x7ac] ss:$16 sps:$4 sm:$0xff]   ;;  %v13444_v34 = vld [vmem:[#allocation8 + $0x7a0] ss:$16 sps:$4 sm:$0xff]  }
 0x34e   :  { %v5433_v46 = vmax.f32 %v12263_v33, 0.0  ;;  %9191 = vmatpush1.bf16.msra.mxu0 %v13432_v11  ;;  %v5435_v39 = vmax.f32 %v12295_v51, 0.0 }
 0x34f   :  { %10095 = vmatpush1.bf16.msra.mxu1 %v13435_v21  ;;  %v5434_v52 = vmax.f32 %v12264_v50, 0.0  ;;  %9192 = vmatprep.subr.bf16.mxu0 %v13440_v35  ;;  %v5436_v36 = vmax.f32 %v12296_v56, 0.0 }
 0x350   :  { %v15182_v42 = vpack.c.bf16 %v5433_v46, %v5417_v14  ;;  %9148 = vmatmul.mubr.bf16.gmra.mrb[152].mxu0 %v14856_v45  ;;  %10096 = vmatprep.subr.bf16.mxu1 %v13443_v16  ;;  %v15185_v11 = vpack.c.bf16 %v5435_v39, %v5419_v5  ;;  %v13452_v14 = vld [vmem:[#allocation8 + $0x7c4] ss:$16 sps:$4 sm:$0xff]  }
 0x351   :  { %v15187_v33 = vpack.c.bf16 %v5434_v52, %v5418_v24  ;;  %10052 = vmatmul.mubr.bf16.gmra.mrb[152].mxu1 %v14856_v45  ;;  %9157 = vmatprep.mubr.bf16.mxu0 %v14876_v22  ;;  %v5044_v54 = vpop.f32.mrb[112].mxu0  ;;  %v15191_v29 = vpack.c.bf16 %v5436_v36, %v5420_v53  ;;  %v5270_v35 = vpop.f32.mrb[112].mxu1  ;;  %v13447_v45 = vld [vmem:[#allocation8 + $0x7a8] ss:$16 sps:$4 sm:$0xff]   ;;  %v13450_v36 = vld [vmem:[#allocation8 + $0x7c0] ss:$16 sps:$4 sm:$0xff]  }
 0x352   :  { %15645 = vst [vmem:[#allocation27_spill] sm:$0xff] %v15185_v11  ;;  %9193 = vmatpush1.bf16.msra.mxu0 %v13438_v2  ;;  %10061 = vmatprep.mubr.bf16.mxu1 %v14876_v22  ;;  %v12265_v21 = vadd.f32 %v5044_v54, %v15096_v10  ;;  %v5046_v17 = vpop.f32.mrb[113].mxu0  ;;  %v12297_v16 = vadd.f32 %v5270_v35, %v15100_v37  ;;  %v5272_v50 = vpop.f32.mrb[113].mxu1  ;;  %v13455_v2 = vld [vmem:[#allocation8 + $0x7cc] ss:$16 sps:$4 sm:$0xff]  }
 0x353   :  { %15646 = vst [vmem:[#allocation33_spill] sm:$0xff] %v15191_v29  ;;  %10097 = vmatpush1.bf16.msra.mxu1 %v13441_v19  ;;  %v12266_v51 = vadd.f32 %v5046_v17, %v15104_v18  ;;  %9194 = vmatprep.subr.bf16.mxu0 %v13446_v47  ;;  %v5048_v0 = vpop.f32.mrb[114].mxu0  ;;  %v12298_v53 = vadd.f32 %v5272_v50, %v15109_v41  ;;  %v5274_v46 = vpop.f32.mrb[114].mxu1  ;;  %v13453_v54 = vld [vmem:[#allocation8 + $0x7c8] ss:$16 sps:$4 sm:$0xff]  }
 0x354   :  { %10098 = vmatprep.subr.bf16.mxu1 %v13449_v1  ;;  %v12267_v22 = vadd.f32 %v5048_v0, %v15096_v10  ;;  %v5050_v56 = vpop.f32.mrb[115].mxu0  ;;  %v12299_v5 = vadd.f32 %v5274_v46, %v15100_v37  ;;  %v5276_v24 = vpop.f32.mrb[115].mxu1  ;;  %v5449_v39 = vmax.f32 %v12265_v21, 0.0  ;;  %v5451_v35 = vmax.f32 %v12297_v16, 0.0  ;;  %v13458_v0 = vld [vmem:[#allocation8 + $0x7e4] ss:$16 sps:$4 sm:$0xff]  }
 0x355   :  { %v12268_v19 = vadd.f32 %v5050_v56, %v15104_v18  ;;  %v12300_v47 = vadd.f32 %v5276_v24, %v15109_v41  ;;  %v5450_v17 = vmax.f32 %v12266_v51, 0.0  ;;  %v5452_v11 = vmax.f32 %v12298_v53, 0.0  ;;  %v13461_v21 = vld [vmem:[#allocation8 + $0x7ec] ss:$16 sps:$4 sm:$0xff]   ;;  %v15649_v16 = vld [vmem:[#allocation30_spill] sm:$0xff] }
 0x356   :  { %v5465_v52 = vmax.f32 %v12267_v22, 0.0  ;;  %9195 = vmatpush1.bf16.msra.mxu0 %v13444_v34  ;;  %v5467_v1 = vmax.f32 %v12299_v5, 0.0 }
 0x357   :  { %10099 = vmatpush1.bf16.msra.mxu1 %v13447_v45  ;;  %v5466_v50 = vmax.f32 %v12268_v19, 0.0  ;;  %9196 = vmatprep.subr.bf16.mxu0 %v13452_v14  ;;  %v5468_v46 = vmax.f32 %v12300_v47, 0.0 }
 0x358   :  { %v15202_v29 = vpack.c.bf16 %v5465_v52, %v5449_v39  ;;  %9158 = vmatmul.mubr.bf16.gmra.mrb[156].mxu0 %v14872_v7  ;;  %10100 = vmatprep.subr.bf16.mxu1 %v13455_v2  ;;  %v15205_v34 = vpack.c.bf16 %v5467_v1, %v5451_v35  ;;  %v13456_v2 = vld [vmem:[#allocation8 + $0x7e0] ss:$16 sps:$4 sm:$0xff]   ;;  %v13464_v52 = vld [vmem:[#allocation8 + $0x804] ss:$16 sps:$4 sm:$0xff]  }
 0x359   :  { %v15207_v22 = vpack.c.bf16 %v5466_v50, %v5450_v17  ;;  %10062 = vmatmul.mubr.bf16.gmra.mrb[156].mxu1 %v14872_v7  ;;  %9200 = vmatprep.mubr.bf16.mxu0 %v15649_v16  ;;  %v5054_v51 = vpop.f32.mrb[116].mxu0  ;;  %v15211_v45 = vpack.c.bf16 %v5468_v46, %v5452_v11  ;;  %v5280_v53 = vpop.f32.mrb[116].mxu1  ;;  %v13459_v7 = vld [vmem:[#allocation8 + $0x7e8] ss:$16 sps:$4 sm:$0xff]   ;;  %v13467_v17 = vld [vmem:[#allocation8 + $0x80c] ss:$16 sps:$4 sm:$0xff]  }
 0x35a   :  { %15647 = vst [vmem:[#allocation31_spill] sm:$0xff] %v15202_v29  ;;  %15648 = vst [vmem:[#allocation37_spill] sm:$0xff] %v15205_v34  ;;  %9197 = vmatpush1.bf16.msra.mxu0 %v13450_v36  ;;  %10104 = vmatprep.mubr.bf16.mxu1 %v15649_v16  ;;  %v12269_v14 = vadd.f32 %v5054_v51, %v15096_v10  ;;  %v5056_v56 = vpop.f32.mrb[117].mxu0  ;;  %v12301_v5 = vadd.f32 %v5280_v53, %v15100_v37  ;;  %v5282_v24 = vpop.f32.mrb[117].mxu1 }
 0x35b   :  { %15650 = vst [vmem:[#allocation16_spill] sm:$0xff] %v15211_v45  ;;  %10101 = vmatpush1.bf16.msra.mxu1 %v13453_v54  ;;  %v12270_v19 = vadd.f32 %v5056_v56, %v15104_v18  ;;  %9198 = vmatprep.subr.bf16.mxu0 %v13458_v0  ;;  %v5058_v39 = vpop.f32.mrb[118].mxu0  ;;  %v12302_v11 = vadd.f32 %v5282_v24, %v15109_v41  ;;  %v5284_v36 = vpop.f32.mrb[118].mxu1  ;;  %v13462_v24 = vld [vmem:[#allocation8 + $0x800] ss:$16 sps:$4 sm:$0xff]  }
 0x35c   :  { %10102 = vmatprep.subr.bf16.mxu1 %v13461_v21  ;;  %v12271_v47 = vadd.f32 %v5058_v39, %v15096_v10  ;;  %v5060_v35 = vpop.f32.mrb[119].mxu0  ;;  %v12303_v1 = vadd.f32 %v5284_v36, %v15100_v37  ;;  %v5286_v50 = vpop.f32.mrb[119].mxu1  ;;  %v5481_v46 = vmax.f32 %v12269_v14, 0.0  ;;  %v5483_v51 = vmax.f32 %v12301_v5, 0.0  ;;  %v13465_v36 = vld [vmem:[#allocation8 + $0x808] ss:$16 sps:$4 sm:$0xff]  }
 0x35d   :  { %v12272_v54 = vadd.f32 %v5060_v35, %v15104_v18  ;;  %v12304_v0 = vadd.f32 %v5286_v50, %v15109_v41  ;;  %v5482_v53 = vmax.f32 %v12270_v19, 0.0  ;;  %v5484_v39 = vmax.f32 %v12302_v11, 0.0  ;;  %v13470_v35 = vld [vmem:[#allocation8 + $0x824] ss:$16 sps:$4 sm:$0xff]   ;;  %v13473_v19 = vld [vmem:[#allocation8 + $0x82c] ss:$16 sps:$4 sm:$0xff]  }
 0x35e   :  { %v5497_v16 = vmax.f32 %v12271_v47, 0.0  ;;  %9199 = vmatpush1.bf16.msra.mxu0 %v13456_v2  ;;  %v5499_v56 = vmax.f32 %v12303_v1, 0.0  ;;  %v15654_v2 = vld [vmem:[#allocation28_spill] sm:$0xff] }
 0x35f   :  { %10103 = vmatpush1.bf16.msra.mxu1 %v13459_v7  ;;  %v5498_v21 = vmax.f32 %v12272_v54, 0.0  ;;  %9281 = vmatprep.subr.bf16.mxu0 %v13464_v52  ;;  %v5500_v45 = vmax.f32 %v12304_v0, 0.0  ;;  %v15656_v7 = vld [vmem:[#allocation34_spill] sm:$0xff] }
 0x360   :  { %v15222_v34 = vpack.c.bf16 %v5497_v16, %v5481_v46  ;;  %10185 = vmatprep.subr.bf16.mxu1 %v13467_v17  ;;  %v15224_v29 = vpack.c.bf16 %v5499_v56, %v5483_v51  ;;  %v13468_v46 = vld [vmem:[#allocation8 + $0x820] ss:$16 sps:$4 sm:$0xff]   ;;  %v13471_v0 = vld [vmem:[#allocation8 + $0x828] ss:$16 sps:$4 sm:$0xff]  }
 0x361   :  { %v15226_v14 = vpack.c.bf16 %v5498_v21, %v5482_v53  ;;  %9201 = vmatmul.mubr.bf16.vlgmr.msra.gmra.mrb[128].mxu0 %v15654_v2  ;;  %v5064_v5 = vpop.f32.mrb[120].mxu0  ;;  %v15229_v47 = vpack.c.bf16 %v5500_v45, %v5484_v39  ;;  %v5290_v11 = vpop.f32.mrb[120].mxu1  ;;  %v13476_v21 = vld [vmem:[#allocation8 + $0x844] ss:$16 sps:$4 sm:$0xff]  }
 0x362   :  { %15651 = vst [vmem:[#allocation35_spill] sm:$0xff] %v15222_v34  ;;  %15652 = vst [vmem:[#allocation41_spill] sm:$0xff] %v15224_v29  ;;  %10105 = vmatmul.mubr.bf16.vlgmr.msra.gmra.mrb[128].mxu1 %v15654_v2  ;;  %9210 = vmatprep.mubr.bf16.mxu0 %v15656_v7  ;;  %v12273_v52 = vadd.f32 %v5064_v5, %v15096_v10  ;;  %v5066_v1 = vpop.f32.mrb[121].mxu0  ;;  %v12305_v17 = vadd.f32 %v5290_v11, %v15100_v37  ;;  %v5292_v50 = vpop.f32.mrb[121].mxu1  ;;  %v13479_v5 = vld [vmem:[#allocation8 + $0x84c] ss:$16 sps:$4 sm:$0xff]  }
 0x363   :  { %15653 = vst [vmem:[#allocation39_spill] sm:$0xff] %v15226_v14  ;;  %15655 = vst [vmem:[#allocation30_spill] sm:$0xff] %v15229_v47  ;;  %9282 = vmatpush1.bf16.msra.mxu0 %v13462_v24  ;;  %10114 = vmatprep.mubr.bf16.mxu1 %v15656_v7  ;;  %v12274_v54 = vadd.f32 %v5066_v1, %v15104_v18  ;;  %v5068_v16 = vpop.f32.mrb[122].mxu0  ;;  %v12306_v45 = vadd.f32 %v5292_v50, %v15109_v41  ;;  %v5294_v53 = vpop.f32.mrb[122].mxu1 }
 0x364   :  { %10186 = vmatpush1.bf16.msra.mxu1 %v13465_v36  ;;  %9283 = vmatprep.subr.bf16.mxu0 %v13470_v35  ;;  %v12275_v51 = vadd.f32 %v5068_v16, %v15096_v10  ;;  %v5070_v56 = vpop.f32.mrb[123].mxu0  ;;  %v12307_v24 = vadd.f32 %v5294_v53, %v15100_v37  ;;  %v5296_v2 = vpop.f32.mrb[123].mxu1  ;;  %v5513_v7 = vmax.f32 %v12273_v52, 0.0  ;;  %v5515_v1 = vmax.f32 %v12305_v17, 0.0  ;;  %v13474_v16 = vld [vmem:[#allocation8 + $0x840] ss:$16 sps:$4 sm:$0xff]  }
 0x365   :  { %10187 = vmatprep.subr.bf16.mxu1 %v13473_v19  ;;  %v12276_v39 = vadd.f32 %v5070_v56, %v15104_v18  ;;  %v12308_v36 = vadd.f32 %v5296_v2, %v15109_v41  ;;  %v5514_v50 = vmax.f32 %v12274_v54, 0.0  ;;  %v5516_v47 = vmax.f32 %v12306_v45, 0.0  ;;  %v13477_v53 = vld [vmem:[#allocation8 + $0x848] ss:$16 sps:$4 sm:$0xff]   ;;  %v13482_v56 = vld [vmem:[#allocation8 + $0x864] ss:$16 sps:$4 sm:$0xff]  }
 0x366   :  { %v5529_v11 = vmax.f32 %v12275_v51, 0.0  ;;  %v5531_v35 = vmax.f32 %v12307_v24, 0.0  ;;  %v15658_v51 = vld [vmem:[#allocation32_spill] sm:$0xff]  ;;  %v13485_v54 = vld [vmem:[#allocation8 + $0x86c] ss:$16 sps:$4 sm:$0xff]   ;;  %v15660_v45 = vld [vmem:[#allocation38_spill] sm:$0xff] }
 0x367   :  { %9284 = vmatpush1.bf16.msra.mxu0 %v13468_v46  ;;  %v5530_v29 = vmax.f32 %v12276_v39, 0.0  ;;  %v5532_v19 = vmax.f32 %v12308_v36, 0.0 }
 0x368   :  { %v15242_v34 = vpack.c.bf16 %v5529_v11, %v5513_v7  ;;  %10188 = vmatpush1.bf16.msra.mxu1 %v13471_v0  ;;  %9285 = vmatprep.subr.bf16.mxu0 %v13476_v21  ;;  %v15244_v14 = vpack.c.bf16 %v5531_v35, %v5515_v1  ;;  %v13483_v11 = vld [vmem:[#allocation8 + $0x868] ss:$16 sps:$4 sm:$0xff]   ;;  %v13488_v35 = vld [vmem:[#allocation8 + $0x884] ss:$16 sps:$4 sm:$0xff]  }
 0x369   :  { %v15246_v52 = vpack.c.bf16 %v5530_v29, %v5514_v50  ;;  %9211 = vmatmul.mubr.bf16.gmra.mrb[132].mxu0 %v15658_v51  ;;  %10189 = vmatprep.subr.bf16.mxu1 %v13479_v5  ;;  %v5074_v17 = vpop.f32.mrb[124].mxu0  ;;  %v15249_v46 = vpack.c.bf16 %v5532_v19, %v5516_v47  ;;  %v5300_v21 = vpop.f32.mrb[124].mxu1  ;;  %v13480_v5 = vld [vmem:[#allocation8 + $0x860] ss:$16 sps:$4 sm:$0xff]  }
 0x36a   :  { %15657 = vst [vmem:[#allocation28_spill] sm:$0xff] %v15244_v14  ;;  %10115 = vmatmul.mubr.bf16.gmra.mrb[132].mxu1 %v15658_v51  ;;  %9220 = vmatprep.mubr.bf16.mxu0 %v15660_v45  ;;  %v12277_v0 = vadd.f32 %v5074_v17, %v15096_v10  ;;  %v5076_v24 = vpop.f32.mrb[125].mxu0  ;;  %v12309_v29 = vadd.f32 %v5300_v21, %v15100_v37  ;;  %v5302_v2 = vpop.f32.mrb[125].mxu1  ;;  %v13491_v17 = vld [vmem:[#allocation8 + $0x88c] ss:$16 sps:$4 sm:$0xff]  }
 0x36b   :  { %15659 = vst [vmem:[#allocation34_spill] sm:$0xff] %v15249_v46  ;;  %9286 = vmatpush1.bf16.msra.mxu0 %v13474_v16  ;;  %10124 = vmatprep.mubr.bf16.mxu1 %v15660_v45  ;;  %v12278_v39 = vadd.f32 %v5076_v24, %v15104_v18  ;;  %v5078_v7 = vpop.f32.mrb[126].mxu0  ;;  %v12310_v47 = vadd.f32 %v5302_v2, %v15109_v41  ;;  %v5304_v1 = vpop.f32.mrb[126].mxu1 }
 0x36c   :  { %10190 = vmatpush1.bf16.msra.mxu1 %v13477_v53  ;;  %9287 = vmatprep.subr.bf16.mxu0 %v13482_v56  ;;  %v12279_v36 = vadd.f32 %v5078_v7, %v15096_v10  ;;  %v5080_v50 = vpop.f32.mrb[127].mxu0  ;;  %v12311_v16 = vadd.f32 %v5304_v1, %v15100_v37  ;;  %v5306_v51 = vpop.f32.mrb[127].mxu1  ;;  %v5545_v45 = vmax.f32 %v12277_v0, 0.0  ;;  %v5547_v24 = vmax.f32 %v12309_v29, 0.0  ;;  %v13486_v10 = vld [vmem:[#allocation8 + $0x880] ss:$16 sps:$4 sm:$0xff]  }
 0x36d   :  { %10191 = vmatprep.subr.bf16.mxu1 %v13485_v54  ;;  %v12280_v19 = vadd.f32 %v5080_v50, %v15104_v18  ;;  %v12312_v53 = vadd.f32 %v5306_v51, %v15109_v41  ;;  %v5546_v2 = vmax.f32 %v12278_v39, 0.0  ;;  %v5548_v7 = vmax.f32 %v12310_v47, 0.0  ;;  %v13489_v37 = vld [vmem:[#allocation8 + $0x888] ss:$16 sps:$4 sm:$0xff]   ;;  %v13494_v18 = vld [vmem:[#allocation8 + $0x8a4] ss:$16 sps:$4 sm:$0xff]  }
 0x36e   :  { %v5561_v21 = vmax.f32 %v12279_v36, 0.0  ;;  %v5563_v56 = vmax.f32 %v12311_v16, 0.0  ;;  %v15661_v36 = vld [vmem:[#allocation36_spill] sm:$0xff]  ;;  %v13497_v41 = vld [vmem:[#allocation8 + $0x8ac] ss:$16 sps:$4 sm:$0xff]   ;;  %v15662_v39 = vld [vmem:[#allocation42_spill] sm:$0xff] }
 0x36f   :  { %9288 = vmatpush1.bf16.msra.mxu0 %v13480_v5  ;;  %v5562_v14 = vmax.f32 %v12280_v19, 0.0  ;;  %v5564_v54 = vmax.f32 %v12312_v53, 0.0  ;;  %v13492_v5 = vld [vmem:[#allocation8 + $0x8a0] ss:$16 sps:$4 sm:$0xff]   ;;  %v13495_v47 = vld [vmem:[#allocation8 + $0x8a8] ss:$16 sps:$4 sm:$0xff]  }
 0x370   :  { %v15262_v46 = vpack.c.bf16 %v5561_v21, %v5545_v45  ;;  %10192 = vmatpush1.bf16.msra.mxu1 %v13483_v11  ;;  %9289 = vmatprep.subr.bf16.mxu0 %v13488_v35  ;;  %v15264_v1 = vpack.c.bf16 %v5563_v56, %v5547_v24  ;;  %v13500_v11 = vld [vmem:[#allocation8 + $0x8c4] ss:$16 sps:$4 sm:$0xff]   ;;  %v13498_v50 = vld [vmem:[#allocation8 + $0x8c0] ss:$16 sps:$4 sm:$0xff]   ;;  %v13501_v35 = vld [vmem:[#allocation8 + $0x8c8] ss:$16 sps:$4 sm:$0xff]  }
 0x371   :  { %v15266_v0 = vpack.c.bf16 %v5562_v14, %v5546_v2  ;;  %9221 = vmatmul.mubr.bf16.gmra.mrb[136].mxu0 %v15661_v36  ;;  %10193 = vmatprep.subr.bf16.mxu1 %v13491_v17  ;;  %v15269_v29 = vpack.c.bf16 %v5564_v54, %v5548_v7  ;;  %v13503_v14 = vld [vmem:[#allocation8 + $0x8cc] ss:$16 sps:$4 sm:$0xff]   ;;  %v13506_v16 = vld [vmem:[#allocation8 + $0x8e4] ss:$16 sps:$4 sm:$0xff]   ;;  %v13504_v45 = vld [vmem:[#allocation8 + $0x8e0] ss:$16 sps:$4 sm:$0xff]  }
 0x372   :  { %10125 = vmatmul.mubr.bf16.gmra.mrb[136].mxu1 %v15661_v36  ;;  %9230 = vmatprep.mubr.bf16.mxu0 %v15662_v39  ;;  %v15663_v19 = vld [vmem:[#allocation40_spill] sm:$0xff]  ;;  %v13509_v51 = vld [vmem:[#allocation8 + $0x8ec] ss:$16 sps:$4 sm:$0xff]   ;;  %v13510_v2 = vld [vmem:[#allocation8 + $0x900] ss:$16 sps:$4 sm:$0xff]  }
 0x373   :  { %9290 = vmatpush1.bf16.msra.mxu0 %v13486_v10  ;;  %10134 = vmatprep.mubr.bf16.mxu1 %v15662_v39  ;;  %v15664_v17 = vld [vmem:[#allocation44_spill] sm:$0xff]  ;;  %v13515_v24 = vld [vmem:[#allocation8 + $0x90c] ss:$16 sps:$4 sm:$0xff]  }
 0x374   :  { %10194 = vmatpush1.bf16.msra.mxu1 %v13489_v37  ;;  %9291 = vmatprep.subr.bf16.mxu0 %v13494_v18  ;;  %v13507_v21 = vld [vmem:[#allocation8 + $0x8e8] ss:$16 sps:$4 sm:$0xff]   ;;  %v13512_v53 = vld [vmem:[#allocation8 + $0x904] ss:$16 sps:$4 sm:$0xff]   ;;  %v15665_v7 = vld [vmem:[#allocation43_spill] sm:$0xff] }
 0x375   :  { %10195 = vmatprep.subr.bf16.mxu1 %v13497_v41  ;;  %v13513_v56 = vld [vmem:[#allocation8 + $0x908] ss:$16 sps:$4 sm:$0xff]   ;;  %v13518_v10 = vld [vmem:[#allocation8 + $0x924] ss:$16 sps:$4 sm:$0xff]   ;;  %v13521_v54 = vld [vmem:[#allocation8 + $0x92c] ss:$16 sps:$4 sm:$0xff]  }
 0x376   :  { %v15666_v37 = vld [vmem:[#allocation46_spill] sm:$0xff]  ;;  %v13516_v18 = vld [vmem:[#allocation8 + $0x920] ss:$16 sps:$4 sm:$0xff]   ;;  %v13527_v39 = vld [vmem:[#allocation8 + $0x94c] ss:$16 sps:$4 sm:$0xff]  }
 0x377   :  { %9292 = vmatpush1.bf16.msra.mxu0 %v13492_v5  ;;  %v13519_v36 = vld [vmem:[#allocation8 + $0x928] ss:$16 sps:$4 sm:$0xff]   ;;  %v13524_v41 = vld [vmem:[#allocation8 + $0x944] ss:$16 sps:$4 sm:$0xff]   ;;  %v13522_v5 = vld [vmem:[#allocation8 + $0x940] ss:$16 sps:$4 sm:$0xff]  }
 0x378   :  { %10196 = vmatpush1.bf16.msra.mxu1 %v13495_v47  ;;  %9293 = vmatprep.subr.bf16.mxu0 %v13500_v11  ;;  %v13525_v47 = vld [vmem:[#allocation8 + $0x948] ss:$16 sps:$4 sm:$0xff]   ;;  %v13530_v11 = vld [vmem:[#allocation8 + $0x964] ss:$16 sps:$4 sm:$0xff]  }
 0x379   :  { %9231 = vmatmul.mubr.bf16.gmra.mrb[140].mxu0 %v15663_v19  ;;  %10197 = vmatprep.subr.bf16.mxu1 %v13503_v14  ;;  %v15667_v14 = vld [vmem:[#allocation45_spill] sm:$0xff] }
 0x37a   :  { %10135 = vmatmul.mubr.bf16.gmra.mrb[140].mxu1 %v15663_v19  ;;  %9240 = vmatprep.mubr.bf16.mxu0 %v15664_v17  ;;  %v13531_v19 = vld [vmem:[#allocation8 + $0x968] ss:$16 sps:$4 sm:$0xff]  }
 0x37b   :  { %9294 = vmatpush1.bf16.msra.mxu0 %v13498_v50  ;;  %10144 = vmatprep.mubr.bf16.mxu1 %v15664_v17  ;;  %v13533_v50 = vld [vmem:[#allocation8 + $0x96c] ss:$16 sps:$4 sm:$0xff]  }
 0x37c   :  { %10198 = vmatpush1.bf16.msra.mxu1 %v13501_v35  ;;  %9295 = vmatprep.subr.bf16.mxu0 %v13506_v16  ;;  %v15668_v35 = vld [vmem:[#allocation48_spill] sm:$0xff]  ;;  %v13528_v16 = vld [vmem:[#allocation8 + $0x960] ss:$16 sps:$4 sm:$0xff]   ;;  %v13539_v17 = vld [vmem:[#allocation8 + $0x98c] ss:$16 sps:$4 sm:$0xff]  }
 0x37d   :  { %10199 = vmatprep.subr.bf16.mxu1 %v13509_v51  ;;  %v13536_v51 = vld [vmem:[#allocation8 + $0x984] ss:$16 sps:$4 sm:$0xff]  }
 0x37f   :  { %9296 = vmatpush1.bf16.msra.mxu0 %v13504_v45  ;;  %v13534_v45 = vld [vmem:[#allocation8 + $0x980] ss:$16 sps:$4 sm:$0xff]  }
 0x380   :  { %10200 = vmatpush1.bf16.msra.mxu1 %v13507_v21  ;;  %9297 = vmatprep.subr.bf16.mxu0 %v13512_v53  ;;  %v13537_v21 = vld [vmem:[#allocation8 + $0x988] ss:$16 sps:$4 sm:$0xff]   ;;  %v13542_v53 = vld [vmem:[#allocation8 + $0x9a4] ss:$16 sps:$4 sm:$0xff]  }
 0x381   :  { %9241 = vmatmul.mubr.bf16.gmra.mrb[144].mxu0 %v15665_v7  ;;  %10201 = vmatprep.subr.bf16.mxu1 %v13515_v24  ;;  %v15669_v24 = vld [vmem:[#allocation47_spill] sm:$0xff] }
 0x382   :  { %10145 = vmatmul.mubr.bf16.gmra.mrb[144].mxu1 %v15665_v7  ;;  %9250 = vmatprep.mubr.bf16.mxu0 %v15666_v37  ;;  %v13548_v7 = vld [vmem:[#allocation8 + $0x9c4] ss:$16 sps:$4 sm:$0xff]  }
 0x383   :  { %9298 = vmatpush1.bf16.msra.mxu0 %v13510_v2  ;;  %10154 = vmatprep.mubr.bf16.mxu1 %v15666_v37  ;;  %v13545_v2 = vld [vmem:[#allocation8 + $0x9ac] ss:$16 sps:$4 sm:$0xff]   ;;  %v13546_v37 = vld [vmem:[#allocation8 + $0x9c0] ss:$16 sps:$4 sm:$0xff]  }
 0x384   :  { %10202 = vmatpush1.bf16.msra.mxu1 %v13513_v56  ;;  %9299 = vmatprep.subr.bf16.mxu0 %v13518_v10  ;;  %v13540_v56 = vld [vmem:[#allocation8 + $0x9a0] ss:$16 sps:$4 sm:$0xff]   ;;  %v13543_v10 = vld [vmem:[#allocation8 + $0x9a8] ss:$16 sps:$4 sm:$0xff]  }
 0x385   :  { %10203 = vmatprep.subr.bf16.mxu1 %v13521_v54  ;;  %v13551_v54 = vld [vmem:[#allocation8 + $0x9cc] ss:$16 sps:$4 sm:$0xff]  }
 0x387   :  { %9300 = vmatpush1.bf16.msra.mxu0 %v13516_v18  ;;  %v13549_v18 = vld [vmem:[#allocation8 + $0x9c8] ss:$16 sps:$4 sm:$0xff]  }
 0x388   :  { %10204 = vmatpush1.bf16.msra.mxu1 %v13519_v36  ;;  %9301 = vmatprep.subr.bf16.mxu0 %v13524_v41  ;;  %v13554_v36 = vld [vmem:[#allocation8 + $0x9e4] ss:$16 sps:$4 sm:$0xff]   ;;  %v13557_v41 = vld [vmem:[#allocation8 + $0x9ec] ss:$16 sps:$4 sm:$0xff]  }
 0x389   :  { %9251 = vmatmul.mubr.bf16.gmra.mrb[148].mxu0 %v15667_v14  ;;  %10205 = vmatprep.subr.bf16.mxu1 %v13527_v39  ;;  %v13555_v39 = vld [vmem:[#allocation8 + $0x9e8] ss:$16 sps:$4 sm:$0xff]  }
 0x38a   :  { %10155 = vmatmul.mubr.bf16.gmra.mrb[148].mxu1 %v15667_v14  ;;  %9260 = vmatprep.mubr.bf16.mxu0 %v15668_v35  ;;  %v13561_v14 = vld [vmem:[#allocation8 + $0xa08] ss:$16 sps:$4 sm:$0xff]  }
 0x38b   :  { %9302 = vmatpush1.bf16.msra.mxu0 %v13522_v5  ;;  %10164 = vmatprep.mubr.bf16.mxu1 %v15668_v35  ;;  %v13560_v5 = vld [vmem:[#allocation8 + $0xa04] ss:$16 sps:$4 sm:$0xff]   ;;  %v13567_v35 = vld [vmem:[#allocation8 + $0xa28] ss:$16 sps:$4 sm:$0xff]  }
 0x38c   :  { %10206 = vmatpush1.bf16.msra.mxu1 %v13525_v47  ;;  %9303 = vmatprep.subr.bf16.mxu0 %v13530_v11  ;;  %v13563_v47 = vld [vmem:[#allocation8 + $0xa0c] ss:$16 sps:$4 sm:$0xff]   ;;  %v13558_v11 = vld [vmem:[#allocation8 + $0xa00] ss:$16 sps:$4 sm:$0xff]  }
 0x38d   :  { %10207 = vmatprep.subr.bf16.mxu1 %v13533_v50  ;;  %v13566_v50 = vld [vmem:[#allocation8 + $0xa24] ss:$16 sps:$4 sm:$0xff]  }
 0x38f   :  { %9304 = vmatpush1.bf16.msra.mxu0 %v13528_v16  ;;  %v13572_v16 = vld [vmem:[#allocation8 + $0xa44] ss:$16 sps:$4 sm:$0xff]  }
 0x390   :  { %10208 = vmatpush1.bf16.msra.mxu1 %v13531_v19  ;;  %9305 = vmatprep.subr.bf16.mxu0 %v13536_v51  ;;  %v13575_v19 = vld [vmem:[#allocation8 + $0xa4c] ss:$16 sps:$4 sm:$0xff]   ;;  %v13570_v51 = vld [vmem:[#allocation8 + $0xa40] ss:$16 sps:$4 sm:$0xff]  }
 0x391   :  { %9261 = vmatmul.mubr.bf16.gmra.mrb[152].mxu0 %v15669_v24  ;;  %10209 = vmatprep.subr.bf16.mxu1 %v13539_v17  ;;  %v13573_v17 = vld [vmem:[#allocation8 + $0xa48] ss:$16 sps:$4 sm:$0xff]  }
 0x392   :  { %10165 = vmatmul.mubr.bf16.gmra.mrb[152].mxu1 %v15669_v24  ;;  %9270 = vmatprep.mubr.bf16.mxu0 %v14878_v23  ;;  %v13587_v24 = vld [vmem:[#allocation8 + $0xa8c] ss:$16 sps:$4 sm:$0xff]  }
 0x393   :  { %9306 = vmatpush1.bf16.msra.mxu0 %v13534_v45  ;;  %10174 = vmatprep.mubr.bf16.mxu1 %v14878_v23  ;;  %v13552_v23 = vld [vmem:[#allocation8 + $0x9e0] ss:$16 sps:$4 sm:$0xff]   ;;  %v13578_v45 = vld [vmem:[#allocation8 + $0xa64] ss:$16 sps:$4 sm:$0xff]  }
 0x394   :  { %10210 = vmatpush1.bf16.msra.mxu1 %v13537_v21  ;;  %9307 = vmatprep.subr.bf16.mxu0 %v13542_v53  ;;  %v13579_v21 = vld [vmem:[#allocation8 + $0xa68] ss:$16 sps:$4 sm:$0xff]   ;;  %v13584_v53 = vld [vmem:[#allocation8 + $0xa84] ss:$16 sps:$4 sm:$0xff]  }
 0x395   :  { %10211 = vmatprep.subr.bf16.mxu1 %v13545_v2  ;;  %v13582_v2 = vld [vmem:[#allocation8 + $0xa80] ss:$16 sps:$4 sm:$0xff]  }
 0x397   :  { %9308 = vmatpush1.bf16.msra.mxu0 %v13540_v56  ;;  %v13585_v56 = vld [vmem:[#allocation8 + $0xa88] ss:$16 sps:$4 sm:$0xff]  }
 0x398   :  { %10212 = vmatpush1.bf16.msra.mxu1 %v13543_v10  ;;  %9309 = vmatprep.subr.bf16.mxu0 %v13548_v7  ;;  %v13590_v10 = vld [vmem:[#allocation8 + $0xaa4] ss:$16 sps:$4 sm:$0xff]   ;;  %v13591_v7 = vld [vmem:[#allocation8 + $0xaa8] ss:$16 sps:$4 sm:$0xff]  }
 0x399   :  { %9271 = vmatmul.mubr.bf16.gmra.mrb[156].mxu0 %v14874_v13  ;;  %10213 = vmatprep.subr.bf16.mxu1 %v13551_v54  ;;  %v13596_v54 = vld [vmem:[#allocation8 + $0xac4] ss:$16 sps:$4 sm:$0xff]  }
 0x39a   :  { %10175 = vmatmul.mubr.bf16.gmra.mrb[156].mxu1 %v14874_v13  ;;  %9313 = vmatprep.mubr.bf16.mxu0 %v14922_v61  ;;  %v13569_v13 = vld [vmem:[#allocation8 + $0xa2c] ss:$16 sps:$4 sm:$0xff]  }
 0x39b   :  { %9310 = vmatpush1.bf16.msra.mxu0 %v13546_v37  ;;  %10217 = vmatprep.mubr.bf16.mxu1 %v14922_v61  ;;  %v13564_v61 = vld [vmem:[#allocation8 + $0xa20] ss:$16 sps:$4 sm:$0xff]   ;;  %v13599_v37 = vld [vmem:[#allocation8 + $0xacc] ss:$16 sps:$4 sm:$0xff]  }
 0x39c   :  { %10214 = vmatpush1.bf16.msra.mxu1 %v13549_v18  ;;  %9311 = vmatprep.subr.bf16.mxu0 %v13554_v36  ;;  %v13594_v18 = vld [vmem:[#allocation8 + $0xac0] ss:$16 sps:$4 sm:$0xff]   ;;  %v13597_v36 = vld [vmem:[#allocation8 + $0xac8] ss:$16 sps:$4 sm:$0xff]  }
 0x39d   :  { %10215 = vmatprep.subr.bf16.mxu1 %v13557_v41  ;;  %v13602_v41 = vld [vmem:[#allocation8 + $0xae4] ss:$16 sps:$4 sm:$0xff]  }
 0x39f   :  { %9312 = vmatpush1.bf16.msra.mxu0 %v13552_v23  ;;  %v13603_v23 = vld [vmem:[#allocation8 + $0xae8] ss:$16 sps:$4 sm:$0xff]  }
 0x3a0   :  { %10216 = vmatpush1.bf16.msra.mxu1 %v13555_v39  ;;  %9394 = vmatprep.subr.bf16.mxu0 %v13560_v5  ;;  %v13608_v39 = vld [vmem:[#allocation8 + $0xb04] ss:$16 sps:$4 sm:$0xff]   ;;  %v13611_v5 = vld [vmem:[#allocation8 + $0xb0c] ss:$16 sps:$4 sm:$0xff]  }
 0x3a1   :  { %10298 = vmatprep.subr.bf16.mxu1 %v13563_v47  ;;  %v13606_v47 = vld [vmem:[#allocation8 + $0xb00] ss:$16 sps:$4 sm:$0xff]  }
 0x3a2   :  { %9314 = vmatmul.mubr.bf16.vlgmr.msra.gmra.mrb[128].mxu0 %v14917_v32 }
 0x3a3   :  { %10218 = vmatmul.mubr.bf16.vlgmr.msra.gmra.mrb[128].mxu1 %v14917_v32  ;;  %9323 = vmatprep.mubr.bf16.mxu0 %v14942_v15  ;;  %v13581_v32 = vld [vmem:[#allocation8 + $0xa6c] ss:$16 sps:$4 sm:$0xff]  }
 0x3a4   :  { %9395 = vmatpush1.bf16.msra.mxu0 %v13558_v11  ;;  %10227 = vmatprep.mubr.bf16.mxu1 %v14942_v15  ;;  %v13576_v15 = vld [vmem:[#allocation8 + $0xa60] ss:$16 sps:$4 sm:$0xff]   ;;  %v13609_v11 = vld [vmem:[#allocation8 + $0xb08] ss:$16 sps:$4 sm:$0xff]  }
 0x3a5   :  { %10299 = vmatpush1.bf16.msra.mxu1 %v13561_v14  ;;  %9396 = vmatprep.subr.bf16.mxu0 %v13566_v50  ;;  %v13614_v14 = vld [vmem:[#allocation8 + $0xb24] ss:$16 sps:$4 sm:$0xff]   ;;  %v13615_v50 = vld [vmem:[#allocation8 + $0xb28] ss:$16 sps:$4 sm:$0xff]  }
 0x3a6   :  { %10300 = vmatprep.subr.bf16.mxu1 %v13569_v13  ;;  %v13620_v13 = vld [vmem:[#allocation8 + $0xb44] ss:$16 sps:$4 sm:$0xff]  }
 0x3a8   :  { %9397 = vmatpush1.bf16.msra.mxu0 %v13564_v61  ;;  %v13623_v61 = vld [vmem:[#allocation8 + $0xb4c] ss:$16 sps:$4 sm:$0xff]  }
 0x3a9   :  { %10301 = vmatpush1.bf16.msra.mxu1 %v13567_v35  ;;  %9398 = vmatprep.subr.bf16.mxu0 %v13572_v16  ;;  %v13618_v35 = vld [vmem:[#allocation8 + $0xb40] ss:$16 sps:$4 sm:$0xff]   ;;  %v13621_v16 = vld [vmem:[#allocation8 + $0xb48] ss:$16 sps:$4 sm:$0xff]  }
 0x3aa   :  { %9324 = vmatmul.mubr.bf16.gmra.mrb[132].mxu0 %v14937_v9  ;;  %10302 = vmatprep.subr.bf16.mxu1 %v13575_v19  ;;  %v13626_v19 = vld [vmem:[#allocation8 + $0xb64] ss:$16 sps:$4 sm:$0xff]  }
 0x3ab   :  { %10228 = vmatmul.mubr.bf16.gmra.mrb[132].mxu1 %v14937_v9  ;;  %9333 = vmatprep.mubr.bf16.mxu0 %v14962_v30  ;;  %v13593_v9 = vld [vmem:[#allocation8 + $0xaac] ss:$16 sps:$4 sm:$0xff]  }
 0x3ac   :  { %9399 = vmatpush1.bf16.msra.mxu0 %v13570_v51  ;;  %10237 = vmatprep.mubr.bf16.mxu1 %v14962_v30  ;;  %v13588_v30 = vld [vmem:[#allocation8 + $0xaa0] ss:$16 sps:$4 sm:$0xff]   ;;  %v13627_v51 = vld [vmem:[#allocation8 + $0xb68] ss:$16 sps:$4 sm:$0xff]  }
 0x3ad   :  { %10303 = vmatpush1.bf16.msra.mxu1 %v13573_v17  ;;  %9400 = vmatprep.subr.bf16.mxu0 %v13578_v45  ;;  %v13632_v17 = vld [vmem:[#allocation8 + $0xb84] ss:$16 sps:$4 sm:$0xff]   ;;  %v13635_v45 = vld [vmem:[#allocation8 + $0xb8c] ss:$16 sps:$4 sm:$0xff]  }
 0x3ae   :  { %10304 = vmatprep.subr.bf16.mxu1 %v13581_v32  ;;  %v13630_v32 = vld [vmem:[#allocation8 + $0xb80] ss:$16 sps:$4 sm:$0xff]  }
 0x3b0   :  { %9401 = vmatpush1.bf16.msra.mxu0 %v13576_v15  ;;  %v13633_v15 = vld [vmem:[#allocation8 + $0xb88] ss:$16 sps:$4 sm:$0xff]  }
 0x3b1   :  { %10305 = vmatpush1.bf16.msra.mxu1 %v13579_v21  ;;  %9402 = vmatprep.subr.bf16.mxu0 %v13584_v53  ;;  %v13638_v21 = vld [vmem:[#allocation8 + $0xba4] ss:$16 sps:$4 sm:$0xff]   ;;  %v13639_v53 = vld [vmem:[#allocation8 + $0xba8] ss:$16 sps:$4 sm:$0xff]  }
 0x3b2   :  { %9334 = vmatmul.mubr.bf16.gmra.mrb[136].mxu0 %v14957_v59  ;;  %10306 = vmatprep.subr.bf16.mxu1 %v13587_v24  ;;  %v13644_v24 = vld [vmem:[#allocation8 + $0xbc4] ss:$16 sps:$4 sm:$0xff]  }
 0x3b3   :  { %10238 = vmatmul.mubr.bf16.gmra.mrb[136].mxu1 %v14957_v59  ;;  %9343 = vmatprep.mubr.bf16.mxu0 %v14982_v48  ;;  %v13605_v59 = vld [vmem:[#allocation8 + $0xaec] ss:$16 sps:$4 sm:$0xff]  }
 0x3b4   :  { %9403 = vmatpush1.bf16.msra.mxu0 %v13582_v2  ;;  %10247 = vmatprep.mubr.bf16.mxu1 %v14982_v48  ;;  %v13600_v48 = vld [vmem:[#allocation8 + $0xae0] ss:$16 sps:$4 sm:$0xff]   ;;  %v13647_v2 = vld [vmem:[#allocation8 + $0xbcc] ss:$16 sps:$4 sm:$0xff]  }
 0x3b5   :  { %10307 = vmatpush1.bf16.msra.mxu1 %v13585_v56  ;;  %9404 = vmatprep.subr.bf16.mxu0 %v13590_v10  ;;  %v13642_v56 = vld [vmem:[#allocation8 + $0xbc0] ss:$16 sps:$4 sm:$0xff]   ;;  %v13645_v10 = vld [vmem:[#allocation8 + $0xbc8] ss:$16 sps:$4 sm:$0xff]  }
 0x3b6   :  { %10308 = vmatprep.subr.bf16.mxu1 %v13593_v9  ;;  %v13650_v9 = vld [vmem:[#allocation8 + $0xbe4] ss:$16 sps:$4 sm:$0xff]  }
 0x3b8   :  { %9405 = vmatpush1.bf16.msra.mxu0 %v13588_v30  ;;  %v13651_v30 = vld [vmem:[#allocation8 + $0xbe8] ss:$16 sps:$4 sm:$0xff]  }
 0x3b9   :  { %10309 = vmatpush1.bf16.msra.mxu1 %v13591_v7  ;;  %9406 = vmatprep.subr.bf16.mxu0 %v13596_v54  ;;  %v13656_v7 = vld [vmem:[#allocation8 + $0xc04] ss:$16 sps:$4 sm:$0xff]   ;;  %v13659_v54 = vld [vmem:[#allocation8 + $0xc0c] ss:$16 sps:$4 sm:$0xff]  }
 0x3ba   :  { %9344 = vmatmul.mubr.bf16.gmra.mrb[140].mxu0 %v14977_v20  ;;  %10310 = vmatprep.subr.bf16.mxu1 %v13599_v37  ;;  %v13654_v37 = vld [vmem:[#allocation8 + $0xc00] ss:$16 sps:$4 sm:$0xff]  }
 0x3bb   :  { %10248 = vmatmul.mubr.bf16.gmra.mrb[140].mxu1 %v14977_v20  ;;  %9353 = vmatprep.mubr.bf16.mxu0 %v15002_v63  ;;  %v13617_v20 = vld [vmem:[#allocation8 + $0xb2c] ss:$16 sps:$4 sm:$0xff]  }
 0x3bc   :  { %9407 = vmatpush1.bf16.msra.mxu0 %v13594_v18  ;;  %10257 = vmatprep.mubr.bf16.mxu1 %v15002_v63  ;;  %v13612_v63 = vld [vmem:[#allocation8 + $0xb20] ss:$16 sps:$4 sm:$0xff]   ;;  %v13657_v18 = vld [vmem:[#allocation8 + $0xc08] ss:$16 sps:$4 sm:$0xff]  }
 0x3bd   :  { %10311 = vmatpush1.bf16.msra.mxu1 %v13597_v36  ;;  %9408 = vmatprep.subr.bf16.mxu0 %v13602_v41  ;;  %v13662_v36 = vld [vmem:[#allocation8 + $0xc24] ss:$16 sps:$4 sm:$0xff]   ;;  %v13663_v41 = vld [vmem:[#allocation8 + $0xc28] ss:$16 sps:$4 sm:$0xff]  }
 0x3be   :  { %10312 = vmatprep.subr.bf16.mxu1 %v13605_v59  ;;  %v13668_v59 = vld [vmem:[#allocation8 + $0xc44] ss:$16 sps:$4 sm:$0xff]  }
 0x3c0   :  { %9409 = vmatpush1.bf16.msra.mxu0 %v13600_v48  ;;  %v13671_v48 = vld [vmem:[#allocation8 + $0xc4c] ss:$16 sps:$4 sm:$0xff]  }
 0x3c1   :  { %10313 = vmatpush1.bf16.msra.mxu1 %v13603_v23  ;;  %9410 = vmatprep.subr.bf16.mxu0 %v13608_v39  ;;  %v13666_v23 = vld [vmem:[#allocation8 + $0xc40] ss:$16 sps:$4 sm:$0xff]   ;;  %v13669_v39 = vld [vmem:[#allocation8 + $0xc48] ss:$16 sps:$4 sm:$0xff]  }
 0x3c2   :  { %9354 = vmatmul.mubr.bf16.gmra.mrb[144].mxu0 %v14997_v8  ;;  %10314 = vmatprep.subr.bf16.mxu1 %v13611_v5  ;;  %v13674_v5 = vld [vmem:[#allocation8 + $0xc64] ss:$16 sps:$4 sm:$0xff]  }
 0x3c3   :  { %10258 = vmatmul.mubr.bf16.gmra.mrb[144].mxu1 %v14997_v8  ;;  %9363 = vmatprep.mubr.bf16.mxu0 %v15021_v4  ;;  %v13629_v8 = vld [vmem:[#allocation8 + $0xb6c] ss:$16 sps:$4 sm:$0xff]  }
 0x3c4   :  { %9411 = vmatpush1.bf16.msra.mxu0 %v13606_v47  ;;  %10267 = vmatprep.mubr.bf16.mxu1 %v15021_v4  ;;  %v13624_v4 = vld [vmem:[#allocation8 + $0xb60] ss:$16 sps:$4 sm:$0xff]   ;;  %v13675_v47 = vld [vmem:[#allocation8 + $0xc68] ss:$16 sps:$4 sm:$0xff]  }
 0x3c5   :  { %10315 = vmatpush1.bf16.msra.mxu1 %v13609_v11  ;;  %9412 = vmatprep.subr.bf16.mxu0 %v13614_v14  ;;  %v13680_v11 = vld [vmem:[#allocation8 + $0xc84] ss:$16 sps:$4 sm:$0xff]   ;;  %v13683_v14 = vld [vmem:[#allocation8 + $0xc8c] ss:$16 sps:$4 sm:$0xff]  }
 0x3c6   :  { %10316 = vmatprep.subr.bf16.mxu1 %v13617_v20  ;;  %v13678_v20 = vld [vmem:[#allocation8 + $0xc80] ss:$16 sps:$4 sm:$0xff]  }
 0x3c8   :  { %9413 = vmatpush1.bf16.msra.mxu0 %v13612_v63  ;;  %v13681_v63 = vld [vmem:[#allocation8 + $0xc88] ss:$16 sps:$4 sm:$0xff]  }
 0x3c9   :  { %10317 = vmatpush1.bf16.msra.mxu1 %v13615_v50  ;;  %9414 = vmatprep.subr.bf16.mxu0 %v13620_v13  ;;  %v13686_v50 = vld [vmem:[#allocation8 + $0xca4] ss:$16 sps:$4 sm:$0xff]   ;;  %v13684_v13 = vld [vmem:[#allocation8 + $0xca0] ss:$16 sps:$4 sm:$0xff]  }
 0x3ca   :  { %9364 = vmatmul.mubr.bf16.gmra.mrb[148].mxu0 %v15015_v28  ;;  %10318 = vmatprep.subr.bf16.mxu1 %v13623_v61  ;;  %v13687_v61 = vld [vmem:[#allocation8 + $0xca8] ss:$16 sps:$4 sm:$0xff]  }
 0x3cb   :  { %10268 = vmatmul.mubr.bf16.gmra.mrb[148].mxu1 %v15015_v28  ;;  %9373 = vmatprep.mubr.bf16.mxu0 %v15041_v57  ;;  %v13641_v28 = vld [vmem:[#allocation8 + $0xbac] ss:$16 sps:$4 sm:$0xff]  }
 0x3cc   :  { %9415 = vmatpush1.bf16.msra.mxu0 %v13618_v35  ;;  %10277 = vmatprep.mubr.bf16.mxu1 %v15041_v57  ;;  %v13636_v57 = vld [vmem:[#allocation8 + $0xba0] ss:$16 sps:$4 sm:$0xff]   ;;  %v13692_v35 = vld [vmem:[#allocation8 + $0xcc4] ss:$16 sps:$4 sm:$0xff]  }
 0x3cd   :  { %10319 = vmatpush1.bf16.msra.mxu1 %v13621_v16  ;;  %9416 = vmatprep.subr.bf16.mxu0 %v13626_v19  ;;  %v13695_v16 = vld [vmem:[#allocation8 + $0xccc] ss:$16 sps:$4 sm:$0xff]   ;;  %v13690_v19 = vld [vmem:[#allocation8 + $0xcc0] ss:$16 sps:$4 sm:$0xff]  }
 0x3ce   :  { %10320 = vmatprep.subr.bf16.mxu1 %v13629_v8  ;;  %v13693_v8 = vld [vmem:[#allocation8 + $0xcc8] ss:$16 sps:$4 sm:$0xff]  }
 0x3d0   :  { %9417 = vmatpush1.bf16.msra.mxu0 %v13624_v4  ;;  %v13698_v4 = vld [vmem:[#allocation8 + $0xce4] ss:$16 sps:$4 sm:$0xff]  }
 0x3d1   :  { %10321 = vmatpush1.bf16.msra.mxu1 %v13627_v51  ;;  %9418 = vmatprep.subr.bf16.mxu0 %v13632_v17  ;;  %v15671_v51 = vld [vmem:[#allocation49_spill] sm:$0xff]  ;;  %v15672_v17 = vld [vmem:[#allocation52_spill] sm:$0xff] }
 0x3d2   :  { %9374 = vmatmul.mubr.bf16.gmra.mrb[152].mxu0 %v15035_v55  ;;  %10322 = vmatprep.subr.bf16.mxu1 %v13635_v45  ;;  %v13696_v45 = vld [vmem:[#allocation8 + $0xce0] ss:$16 sps:$4 sm:$0xff]  }
 0x3d3   :  { %10278 = vmatmul.mubr.bf16.gmra.mrb[152].mxu1 %v15035_v55  ;;  %9383 = vmatprep.mubr.bf16.mxu0 %v15061_v49  ;;  %v13653_v55 = vld [vmem:[#allocation8 + $0xbec] ss:$16 sps:$4 sm:$0xff]  }
 0x3d4   :  { %9419 = vmatpush1.bf16.msra.mxu0 %v13630_v32  ;;  %10287 = vmatprep.mubr.bf16.mxu1 %v15061_v49  ;;  %v13648_v49 = vld [vmem:[#allocation8 + $0xbe0] ss:$16 sps:$4 sm:$0xff]   ;;  %v13699_v32 = vld [vmem:[#allocation8 + $0xce8] ss:$16 sps:$4 sm:$0xff]  }
 0x3d5   :  { %10323 = vmatpush1.bf16.msra.mxu1 %v13633_v15  ;;  %9420 = vmatprep.subr.bf16.mxu0 %v13638_v21  ;;  %v13704_v15 = vld [vmem:[#allocation8 + $0xd04] ss:$16 sps:$4 sm:$0xff]   ;;  %v13707_v21 = vld [vmem:[#allocation8 + $0xd0c] ss:$16 sps:$4 sm:$0xff]  }
 0x3d6   :  { %10324 = vmatprep.subr.bf16.mxu1 %v13641_v28  ;;  %v13702_v28 = vld [vmem:[#allocation8 + $0xd00] ss:$16 sps:$4 sm:$0xff]  }
 0x3d8   :  { %9421 = vmatpush1.bf16.msra.mxu0 %v13636_v57  ;;  %v13705_v57 = vld [vmem:[#allocation8 + $0xd08] ss:$16 sps:$4 sm:$0xff]  }
 0x3d9   :  { %10325 = vmatpush1.bf16.msra.mxu1 %v13639_v53  ;;  %9422 = vmatprep.subr.bf16.mxu0 %v13644_v24  ;;  %v13710_v53 = vld [vmem:[#allocation8 + $0xd24] ss:$16 sps:$4 sm:$0xff]   ;;  %v15673_v24 = vld [vmem:[#allocation51_spill] sm:$0xff] }
 0x3da   :  { %9384 = vmatmul.mubr.bf16.gmra.mrb[156].mxu0 %v15055_v26  ;;  %10326 = vmatprep.subr.bf16.mxu1 %v13647_v2  ;;  %v13713_v2 = vld [vmem:[#allocation8 + $0xd2c] ss:$16 sps:$4 sm:$0xff]  }
 0x3db   :  { %10288 = vmatmul.mubr.bf16.gmra.mrb[156].mxu1 %v15055_v26  ;;  %9426 = vmatprep.mubr.bf16.mxu0 %v14924_v31  ;;  %v13665_v26 = vld [vmem:[#allocation8 + $0xc2c] ss:$16 sps:$4 sm:$0xff]  }
 0x3dc   :  { %9423 = vmatpush1.bf16.msra.mxu0 %v13642_v56  ;;  %10330 = vmatprep.mubr.bf16.mxu1 %v14924_v31  ;;  %v13660_v31 = vld [vmem:[#allocation8 + $0xc20] ss:$16 sps:$4 sm:$0xff]   ;;  %v15674_v56 = vld [vmem:[#allocation54_spill] sm:$0xff] }
 0x3dd   :  { %10327 = vmatpush1.bf16.msra.mxu1 %v13645_v10  ;;  %9424 = vmatprep.subr.bf16.mxu0 %v13650_v9  ;;  %v13708_v10 = vld [vmem:[#allocation8 + $0xd20] ss:$16 sps:$4 sm:$0xff]   ;;  %v13711_v9 = vld [vmem:[#allocation8 + $0xd28] ss:$16 sps:$4 sm:$0xff]  }
 0x3de   :  { %10328 = vmatprep.subr.bf16.mxu1 %v13653_v55  ;;  %v13716_v55 = vld [vmem:[#allocation8 + $0xd44] ss:$16 sps:$4 sm:$0xff]  }
 0x3e0   :  { %9425 = vmatpush1.bf16.msra.mxu0 %v13648_v49  ;;  %v13719_v49 = vld [vmem:[#allocation8 + $0xd4c] ss:$16 sps:$4 sm:$0xff]  }
 0x3e1   :  { %10329 = vmatpush1.bf16.msra.mxu1 %v13651_v30  ;;  %9507 = vmatprep.subr.bf16.mxu0 %v13656_v7  ;;  %v13714_v30 = vld [vmem:[#allocation8 + $0xd40] ss:$16 sps:$4 sm:$0xff]   ;;  %v13717_v7 = vld [vmem:[#allocation8 + $0xd48] ss:$16 sps:$4 sm:$0xff]  }
 0x3e2   :  { %10411 = vmatprep.subr.bf16.mxu1 %v13659_v54  ;;  %v13722_v54 = vld [vmem:[#allocation8 + $0xd64] ss:$16 sps:$4 sm:$0xff]  }
 0x3e3   :  { %9427 = vmatmul.mubr.bf16.vlgmr.msra.gmra.mrb[128].mxu0 %v14920_v40 }
 0x3e4   :  { %10331 = vmatmul.mubr.bf16.vlgmr.msra.gmra.mrb[128].mxu1 %v14920_v40  ;;  %9436 = vmatprep.mubr.bf16.mxu0 %v14944_v44  ;;  %v13677_v40 = vld [vmem:[#allocation8 + $0xc6c] ss:$16 sps:$4 sm:$0xff]  }
 0x3e5   :  { %9508 = vmatpush1.bf16.msra.mxu0 %v13654_v37  ;;  %10340 = vmatprep.mubr.bf16.mxu1 %v14944_v44  ;;  %v13672_v44 = vld [vmem:[#allocation8 + $0xc60] ss:$16 sps:$4 sm:$0xff]  }
 0x3e6   :  { %10412 = vmatpush1.bf16.msra.mxu1 %v13657_v18  ;;  %9509 = vmatprep.subr.bf16.mxu0 %v13662_v36  ;;  %v15675_v37 = vld [vmem:[#allocation53_spill] sm:$0xff] }
 0x3e7   :  { %10413 = vmatprep.subr.bf16.mxu1 %v13665_v26  ;;  %v13725_v18 = vld [vmem:[#allocation8 + $0xd6c] ss:$16 sps:$4 sm:$0xff]   ;;  %v13720_v36 = vld [vmem:[#allocation8 + $0xd60] ss:$16 sps:$4 sm:$0xff]   ;;  %v13723_v26 = vld [vmem:[#allocation8 + $0xd68] ss:$16 sps:$4 sm:$0xff]  }
 0x3e9   :  { %9510 = vmatpush1.bf16.msra.mxu0 %v13660_v31  ;;  %v13728_v31 = vld [vmem:[#allocation8 + $0xd84] ss:$16 sps:$4 sm:$0xff]  }
 0x3ea   :  { %10414 = vmatpush1.bf16.msra.mxu1 %v13663_v41  ;;  %9511 = vmatprep.subr.bf16.mxu0 %v13668_v59  ;;  %v13731_v41 = vld [vmem:[#allocation8 + $0xd8c] ss:$16 sps:$4 sm:$0xff]   ;;  %v13726_v59 = vld [vmem:[#allocation8 + $0xd80] ss:$16 sps:$4 sm:$0xff]  }
 0x3eb   :  { %9437 = vmatmul.mubr.bf16.gmra.mrb[132].mxu0 %v14940_v43  ;;  %10415 = vmatprep.subr.bf16.mxu1 %v13671_v48  ;;  %v13729_v48 = vld [vmem:[#allocation8 + $0xd88] ss:$16 sps:$4 sm:$0xff]  }
 0x3ec   :  { %10341 = vmatmul.mubr.bf16.gmra.mrb[132].mxu1 %v14940_v43  ;;  %9446 = vmatprep.mubr.bf16.mxu0 %v14964_v6  ;;  %v13689_v43 = vld [vmem:[#allocation8 + $0xcac] ss:$16 sps:$4 sm:$0xff]  }
 0x3ed   :  { %9512 = vmatpush1.bf16.msra.mxu0 %v13666_v23  ;;  %10350 = vmatprep.mubr.bf16.mxu1 %v14964_v6  ;;  %v15670_v6 = vld [vmem:[#allocation50_spill] sm:$0xff] }
 0x3ee   :  { %10416 = vmatpush1.bf16.msra.mxu1 %v13669_v39  ;;  %9513 = vmatprep.subr.bf16.mxu0 %v13674_v5  ;;  %v13734_v23 = vld [vmem:[#allocation8 + $0xda4] ss:$16 sps:$4 sm:$0xff]   ;;  %v13737_v39 = vld [vmem:[#allocation8 + $0xdac] ss:$16 sps:$4 sm:$0xff]   ;;  %v13732_v5 = vld [vmem:[#allocation8 + $0xda0] ss:$16 sps:$4 sm:$0xff]  }
 0x3ef   :  { %10417 = vmatprep.subr.bf16.mxu1 %v13677_v40  ;;  %v13735_v40 = vld [vmem:[#allocation8 + $0xda8] ss:$16 sps:$4 sm:$0xff]  }
 0x3f1   :  { %9514 = vmatpush1.bf16.msra.mxu0 %v13672_v44  ;;  %v13740_v44 = vld [vmem:[#allocation8 + $0xdc4] ss:$16 sps:$4 sm:$0xff]  }
 0x3f2   :  { %10418 = vmatpush1.bf16.msra.mxu1 %v13675_v47  ;;  %9515 = vmatprep.subr.bf16.mxu0 %v13680_v11  ;;  %v13743_v47 = vld [vmem:[#allocation8 + $0xdcc] ss:$16 sps:$4 sm:$0xff]   ;;  %v13738_v11 = vld [vmem:[#allocation8 + $0xdc0] ss:$16 sps:$4 sm:$0xff]  }
 0x3f3   :  { %9447 = vmatmul.mubr.bf16.gmra.mrb[136].mxu0 %v14960_v60  ;;  %10419 = vmatprep.subr.bf16.mxu1 %v13683_v14  ;;  %v13741_v14 = vld [vmem:[#allocation8 + $0xdc8] ss:$16 sps:$4 sm:$0xff]  }
 0x3f4   :  { %10351 = vmatmul.mubr.bf16.gmra.mrb[136].mxu1 %v14960_v60  ;;  %9456 = vmatprep.mubr.bf16.mxu0 %v15670_v6  ;;  %v13701_v60 = vld [vmem:[#allocation8 + $0xcec] ss:$16 sps:$4 sm:$0xff]  }
 0x3f5   :  { %9516 = vmatpush1.bf16.msra.mxu0 %v13678_v20  ;;  %10360 = vmatprep.mubr.bf16.mxu1 %v15670_v6  ;;  %v13746_v20 = vld [vmem:[#allocation8 + $0xde4] ss:$16 sps:$4 sm:$0xff]  }
 0x3f6   :  { %10420 = vmatpush1.bf16.msra.mxu1 %v13681_v63  ;;  %9517 = vmatprep.subr.bf16.mxu0 %v13686_v50  ;;  %v15677_v63 = vld [vmem:[#allocation55_spill] sm:$0xff]  ;;  %v13752_v6 = vld [vmem:[#allocation8 + $0xe04] ss:$16 sps:$4 sm:$0xff]  }
 0x3f7   :  { %10421 = vmatprep.subr.bf16.mxu1 %v13689_v43  ;;  %v13744_v50 = vld [vmem:[#allocation8 + $0xde0] ss:$16 sps:$4 sm:$0xff]   ;;  %v13747_v43 = vld [vmem:[#allocation8 + $0xde8] ss:$16 sps:$4 sm:$0xff]  }
 0x3f9   :  { %9518 = vmatpush1.bf16.msra.mxu0 %v13684_v13  ;;  %v13755_v13 = vld [vmem:[#allocation8 + $0xe0c] ss:$16 sps:$4 sm:$0xff]  }
 0x3fa   :  { %10422 = vmatpush1.bf16.msra.mxu1 %v13687_v61  ;;  %9519 = vmatprep.subr.bf16.mxu0 %v13692_v35  ;;  %v13750_v61 = vld [vmem:[#allocation8 + $0xe00] ss:$16 sps:$4 sm:$0xff]   ;;  %v13753_v35 = vld [vmem:[#allocation8 + $0xe08] ss:$16 sps:$4 sm:$0xff]  }
 0x3fb   :  { %9457 = vmatmul.mubr.bf16.gmra.mrb[140].mxu0 %v15671_v51  ;;  %10423 = vmatprep.subr.bf16.mxu1 %v13695_v16  ;;  %v13758_v16 = vld [vmem:[#allocation8 + $0xe24] ss:$16 sps:$4 sm:$0xff]  }
 0x3fc   :  { %10361 = vmatmul.mubr.bf16.gmra.mrb[140].mxu1 %v15671_v51  ;;  %9466 = vmatprep.mubr.bf16.mxu0 %v15672_v17  ;;  %v13764_v51 = vld [vmem:[#allocation8 + $0xe44] ss:$16 sps:$4 sm:$0xff]  }
 0x3fd   :  { %9520 = vmatpush1.bf16.msra.mxu0 %v13690_v19  ;;  %10370 = vmatprep.mubr.bf16.mxu1 %v15672_v17  ;;  %v15678_v19 = vld [vmem:[#allocation22_spill] sm:$0xff]  ;;  %v13762_v17 = vld [vmem:[#allocation8 + $0xe40] ss:$16 sps:$4 sm:$0xff]  }
 0x3fe   :  { %10424 = vmatpush1.bf16.msra.mxu1 %v13693_v8  ;;  %9521 = vmatprep.subr.bf16.mxu0 %v13698_v4  ;;  %v13761_v8 = vld [vmem:[#allocation8 + $0xe2c] ss:$16 sps:$4 sm:$0xff]   ;;  %v13759_v4 = vld [vmem:[#allocation8 + $0xe28] ss:$16 sps:$4 sm:$0xff]  }
 0x3ff   :  { %10425 = vmatprep.subr.bf16.mxu1 %v13701_v60  ;;  %v13767_v60 = vld [vmem:[#allocation8 + $0xe4c] ss:$16 sps:$4 sm:$0xff]  }
 0x401   :  { %9522 = vmatpush1.bf16.msra.mxu0 %v13696_v45  ;;  %v13765_v45 = vld [vmem:[#allocation8 + $0xe48] ss:$16 sps:$4 sm:$0xff]  }
 0x402   :  { %10426 = vmatpush1.bf16.msra.mxu1 %v13699_v32  ;;  %9523 = vmatprep.subr.bf16.mxu0 %v13704_v15  ;;  %v13770_v32 = vld [vmem:[#allocation8 + $0xe64] ss:$16 sps:$4 sm:$0xff]   ;;  %v13773_v15 = vld [vmem:[#allocation8 + $0xe6c] ss:$16 sps:$4 sm:$0xff]  }
 0x403   :  { %9467 = vmatmul.mubr.bf16.gmra.mrb[144].mxu0 %v15673_v24  ;;  %10427 = vmatprep.subr.bf16.mxu1 %v13707_v21  ;;  %v13771_v21 = vld [vmem:[#allocation8 + $0xe68] ss:$16 sps:$4 sm:$0xff]  }
 0x404   :  { %10371 = vmatmul.mubr.bf16.gmra.mrb[144].mxu1 %v15673_v24  ;;  %9476 = vmatprep.mubr.bf16.mxu0 %v15674_v56  ;;  %v13777_v24 = vld [vmem:[#allocation8 + $0xe88] ss:$16 sps:$4 sm:$0xff]  }
 0x405   :  { %9524 = vmatpush1.bf16.msra.mxu0 %v13702_v28  ;;  %10380 = vmatprep.mubr.bf16.mxu1 %v15674_v56  ;;  %v13776_v28 = vld [vmem:[#allocation8 + $0xe84] ss:$16 sps:$4 sm:$0xff]   ;;  %v13783_v56 = vld [vmem:[#allocation8 + $0xea8] ss:$16 sps:$4 sm:$0xff]  }
 0x406   :  { %10428 = vmatpush1.bf16.msra.mxu1 %v13705_v57  ;;  %9525 = vmatprep.subr.bf16.mxu0 %v13710_v53  ;;  %v13779_v57 = vld [vmem:[#allocation8 + $0xe8c] ss:$16 sps:$4 sm:$0xff]   ;;  %v13774_v53 = vld [vmem:[#allocation8 + $0xe80] ss:$16 sps:$4 sm:$0xff]  }
 0x407   :  { %10429 = vmatprep.subr.bf16.mxu1 %v13713_v2  ;;  %v13782_v2 = vld [vmem:[#allocation8 + $0xea4] ss:$16 sps:$4 sm:$0xff]  }
 0x409   :  { %9526 = vmatpush1.bf16.msra.mxu0 %v13708_v10  ;;  %v13788_v10 = vld [vmem:[#allocation8 + $0xec4] ss:$16 sps:$4 sm:$0xff]  }
 0x40a   :  { %10430 = vmatpush1.bf16.msra.mxu1 %v13711_v9  ;;  %9527 = vmatprep.subr.bf16.mxu0 %v13716_v55  ;;  %v13791_v9 = vld [vmem:[#allocation8 + $0xecc] ss:$16 sps:$4 sm:$0xff]   ;;  %v13786_v55 = vld [vmem:[#allocation8 + $0xec0] ss:$16 sps:$4 sm:$0xff]  }
 0x40b   :  { %9477 = vmatmul.mubr.bf16.gmra.mrb[148].mxu0 %v15675_v37  ;;  %10431 = vmatprep.subr.bf16.mxu1 %v13719_v49  ;;  %v13789_v49 = vld [vmem:[#allocation8 + $0xec8] ss:$16 sps:$4 sm:$0xff]  }
 0x40c   :  { %10381 = vmatmul.mubr.bf16.gmra.mrb[148].mxu1 %v15675_v37  ;;  %9486 = vmatprep.mubr.bf16.mxu0 %v15044_v27  ;;  %v13803_v37 = vld [vmem:[#allocation8 + $0xf0c] ss:$16 sps:$4 sm:$0xff]  }
 0x40d   :  { %9528 = vmatpush1.bf16.msra.mxu0 %v13714_v30  ;;  %10390 = vmatprep.mubr.bf16.mxu1 %v15044_v27  ;;  %v15676_v27 = vld [vmem:[#allocation56_spill] sm:$0xff] }
 0x40e   :  { %10432 = vmatpush1.bf16.msra.mxu1 %v13717_v7  ;;  %9529 = vmatprep.subr.bf16.mxu0 %v13722_v54  ;;  %v13794_v30 = vld [vmem:[#allocation8 + $0xee4] ss:$16 sps:$4 sm:$0xff]   ;;  %v13795_v7 = vld [vmem:[#allocation8 + $0xee8] ss:$16 sps:$4 sm:$0xff]  }
 0x40f   :  { %10433 = vmatprep.subr.bf16.mxu1 %v13725_v18  ;;  %v13800_v54 = vld [vmem:[#allocation8 + $0xf04] ss:$16 sps:$4 sm:$0xff]   ;;  %v13798_v18 = vld [vmem:[#allocation8 + $0xf00] ss:$16 sps:$4 sm:$0xff]  }
 0x411   :  { %9530 = vmatpush1.bf16.msra.mxu0 %v13720_v36  ;;  %v13801_v36 = vld [vmem:[#allocation8 + $0xf08] ss:$16 sps:$4 sm:$0xff]  }
 0x412   :  { %10434 = vmatpush1.bf16.msra.mxu1 %v13723_v26  ;;  %9531 = vmatprep.subr.bf16.mxu0 %v13728_v31  ;;  %v13806_v26 = vld [vmem:[#allocation8 + $0xf24] ss:$16 sps:$4 sm:$0xff]   ;;  %v15679_v31 = vld [vmem:[#allocation31_spill] sm:$0xff] }
 0x413   :  { %9487 = vmatmul.mubr.bf16.gmra.mrb[152].mxu0 %v15039_v62  ;;  %10435 = vmatprep.subr.bf16.mxu1 %v13731_v41  ;;  %v13804_v41 = vld [vmem:[#allocation8 + $0xf20] ss:$16 sps:$4 sm:$0xff]  }
 0x414   :  { %10391 = vmatmul.mubr.bf16.gmra.mrb[152].mxu1 %v15039_v62  ;;  %9496 = vmatprep.mubr.bf16.mxu0 %v15676_v27  ;;  %v13749_v62 = vld [vmem:[#allocation8 + $0xdec] ss:$16 sps:$4 sm:$0xff]  }
 0x415   :  { %9532 = vmatpush1.bf16.msra.mxu0 %v13726_v59  ;;  %10400 = vmatprep.mubr.bf16.mxu1 %v15676_v27  ;;  %v13807_v59 = vld [vmem:[#allocation8 + $0xf28] ss:$16 sps:$4 sm:$0xff]  }
 0x416   :  { %10436 = vmatpush1.bf16.msra.mxu1 %v13729_v48  ;;  %9533 = vmatprep.subr.bf16.mxu0 %v13734_v23  ;;  %v13812_v48 = vld [vmem:[#allocation8 + $0xf44] ss:$16 sps:$4 sm:$0xff]   ;;  %v13815_v23 = vld [vmem:[#allocation8 + $0xf4c] ss:$16 sps:$4 sm:$0xff]   ;;  %v13813_v27 = vld [vmem:[#allocation8 + $0xf48] ss:$16 sps:$4 sm:$0xff]  }
 0x417   :  { %10437 = vmatprep.subr.bf16.mxu1 %v13737_v39  ;;  %v13810_v39 = vld [vmem:[#allocation8 + $0xf40] ss:$16 sps:$4 sm:$0xff]  }
 0x419   :  { %9534 = vmatpush1.bf16.msra.mxu0 %v13732_v5  ;;  %v13818_v5 = vld [vmem:[#allocation8 + $0xf64] ss:$16 sps:$4 sm:$0xff]  }
 0x41a   :  { %10438 = vmatpush1.bf16.msra.mxu1 %v13735_v40  ;;  %9535 = vmatprep.subr.bf16.mxu0 %v13740_v44  ;;  %v15681_v40 = vld [vmem:[#allocation35_spill] sm:$0xff] }
 0x41b   :  { %9497 = vmatmul.mubr.bf16.gmra.mrb[156].mxu0 %v15677_v63  ;;  %10439 = vmatprep.subr.bf16.mxu1 %v13743_v47  ;;  %v13821_v44 = vld [vmem:[#allocation8 + $0xf6c] ss:$16 sps:$4 sm:$0xff]   ;;  %v13816_v47 = vld [vmem:[#allocation8 + $0xf60] ss:$16 sps:$4 sm:$0xff]  }
 0x41c   :  { %10401 = vmatmul.mubr.bf16.gmra.mrb[156].mxu1 %v15677_v63  ;;  %9539 = vmatprep.mubr.bf16.mxu0 %v15127_v38  ;;  %v13822_v63 = vld [vmem:[#allocation8 + $0xf80] ss:$16 sps:$4 sm:$0xff]  }
 0x41d   :  { %9536 = vmatpush1.bf16.msra.mxu0 %v13738_v11  ;;  %10443 = vmatprep.mubr.bf16.mxu1 %v15127_v38  ;;  %v13756_v38 = vld [vmem:[#allocation8 + $0xe20] ss:$16 sps:$4 sm:$0xff]   ;;  %v13819_v11 = vld [vmem:[#allocation8 + $0xf68] ss:$16 sps:$4 sm:$0xff]  }
 0x41e   :  { %10440 = vmatpush1.bf16.msra.mxu1 %v13741_v14  ;;  %9537 = vmatprep.subr.bf16.mxu0 %v13746_v20  ;;  %v13824_v14 = vld [vmem:[#allocation8 + $0xf84] ss:$16 sps:$4 sm:$0xff]   ;;  %v13827_v20 = vld [vmem:[#allocation8 + $0xf8c] ss:$16 sps:$4 sm:$0xff]  }
 0x41f   :  { %10441 = vmatprep.subr.bf16.mxu1 %v13749_v62  ;;  %v13825_v62 = vld [vmem:[#allocation8 + $0xf88] ss:$16 sps:$4 sm:$0xff]  }
 0x421   :  { %9538 = vmatpush1.bf16.msra.mxu0 %v13744_v50  ;;  %v13830_v50 = vld [vmem:[#allocation8 + $0xfa4] ss:$16 sps:$4 sm:$0xff]  }
 0x422   :  { %10442 = vmatpush1.bf16.msra.mxu1 %v13747_v43  ;;  %9620 = vmatprep.subr.bf16.mxu0 %v13752_v6  ;;  %v13833_v43 = vld [vmem:[#allocation8 + $0xfac] ss:$16 sps:$4 sm:$0xff]   ;;  %v13831_v6 = vld [vmem:[#allocation8 + $0xfa8] ss:$16 sps:$4 sm:$0xff]  }
 0x423   :  { %10524 = vmatprep.subr.bf16.mxu1 %v13755_v13  ;;  %v13836_v13 = vld [vmem:[#allocation8 + $0xfc4] ss:$16 sps:$4 sm:$0xff]  }
 0x424   :  { %9540 = vmatmul.mubr.bf16.vlgmr.msra.gmra.mrb[128].mxu0 %v15678_v19 }
 0x425   :  { %10444 = vmatmul.mubr.bf16.vlgmr.msra.gmra.mrb[128].mxu1 %v15678_v19  ;;  %9549 = vmatprep.mubr.bf16.mxu0 %v15147_v12  ;;  %v13842_v19 = vld [vmem:[#allocation8 + $0xfe4] ss:$16 sps:$4 sm:$0xff]  }
 0x426   :  { %9621 = vmatpush1.bf16.msra.mxu0 %v13750_v61  ;;  %10453 = vmatprep.mubr.bf16.mxu1 %v15147_v12  ;;  %v13768_v12 = vld [vmem:[#allocation8 + $0xe60] ss:$16 sps:$4 sm:$0xff]   ;;  %v13839_v61 = vld [vmem:[#allocation8 + $0xfcc] ss:$16 sps:$4 sm:$0xff]  }
 0x427   :  { %10525 = vmatpush1.bf16.msra.mxu1 %v13753_v35  ;;  %9622 = vmatprep.subr.bf16.mxu0 %v13758_v16  ;;  %v13834_v35 = vld [vmem:[#allocation8 + $0xfc0] ss:$16 sps:$4 sm:$0xff]   ;;  %v13837_v16 = vld [vmem:[#allocation8 + $0xfc8] ss:$16 sps:$4 sm:$0xff]  }
 0x428   :  { %10526 = vmatprep.subr.bf16.mxu1 %v13761_v8  ;;  %v13840_v8 = vld [vmem:[#allocation8 + $0xfe0] ss:$16 sps:$4 sm:$0xff]  }
 0x42a   :  { %9623 = vmatpush1.bf16.msra.mxu0 %v13756_v38  ;;  %v13843_v38 = vld [vmem:[#allocation8 + $0xfe8] ss:$16 sps:$4 sm:$0xff]  }
 0x42b   :  { %10527 = vmatpush1.bf16.msra.mxu1 %v13759_v4  ;;  %9624 = vmatprep.subr.bf16.mxu0 %v13764_v51  ;;  %v15683_v4 = vld [vmem:[#allocation21_spill] sm:$0xff]  ;;  %v15684_v51 = vld [vmem:[#allocation26_spill] sm:$0xff] }
 0x42c   :  { %9550 = vmatmul.mubr.bf16.gmra.mrb[132].mxu0 %v15142_v58  ;;  %10528 = vmatprep.subr.bf16.mxu1 %v13767_v60  ;;  %v15686_v60 = vld [vmem:[#allocation29_spill] sm:$0xff] }
 0x42d   :  { %10454 = vmatmul.mubr.bf16.gmra.mrb[132].mxu1 %v15142_v58  ;;  %9559 = vmatprep.mubr.bf16.mxu0 %v15167_v25  ;;  %v13785_v58 = vld [vmem:[#allocation8 + $0xeac] ss:$16 sps:$4 sm:$0xff]  }
 0x42e   :  { %9625 = vmatpush1.bf16.msra.mxu0 %v13762_v17  ;;  %10463 = vmatprep.mubr.bf16.mxu1 %v15167_v25  ;;  %v13780_v25 = vld [vmem:[#allocation8 + $0xea0] ss:$16 sps:$4 sm:$0xff]  }
 0x42f   :  { %10529 = vmatpush1.bf16.msra.mxu1 %v13765_v45  ;;  %9626 = vmatprep.subr.bf16.mxu0 %v13770_v32  ;;  %v15687_v17 = vld [vmem:[#allocation25_spill] sm:$0xff]  ;;  %v15689_v32 = vld [vmem:[#allocation27_spill] sm:$0xff] }
 0x430   :  { %10530 = vmatprep.subr.bf16.mxu1 %v13773_v15  ;;  %v15688_v45 = vld [vmem:[#allocation33_spill] sm:$0xff]  ;;  %v15690_v15 = vld [vmem:[#allocation16_spill] sm:$0xff] }
 0x432   :  { %9627 = vmatpush1.bf16.msra.mxu0 %v13768_v12  ;;  %v15691_v12 = vld [vmem:[#allocation37_spill] sm:$0xff] }
 0x433   :  { %10531 = vmatpush1.bf16.msra.mxu1 %v13771_v21  ;;  %9628 = vmatprep.subr.bf16.mxu0 %v13776_v28  ;;  %v15692_v21 = vld [vmem:[#allocation30_spill] sm:$0xff]  ;;  %v15693_v28 = vld [vmem:[#allocation41_spill] sm:$0xff] }
 0x434   :  { %9560 = vmatmul.mubr.bf16.gmra.mrb[136].mxu0 %v15162_v3  ;;  %10532 = vmatprep.subr.bf16.mxu1 %v13779_v57  ;;  %v15694_v57 = vld [vmem:[#allocation34_spill] sm:$0xff] }
 0x435   :  { %10464 = vmatmul.mubr.bf16.gmra.mrb[136].mxu1 %v15162_v3  ;;  %9569 = vmatprep.mubr.bf16.mxu0 %v15187_v33  ;;  %v13797_v3 = vld [vmem:[#allocation8 + $0xeec] ss:$16 sps:$4 sm:$0xff]  }
 0x436   :  { %9629 = vmatpush1.bf16.msra.mxu0 %v13774_v53  ;;  %10473 = vmatprep.mubr.bf16.mxu1 %v15187_v33  ;;  %v13792_v33 = vld [vmem:[#allocation8 + $0xee0] ss:$16 sps:$4 sm:$0xff]   ;;  %v15695_v53 = vld [vmem:[#allocation28_spill] sm:$0xff] }
 0x437   :  { %10533 = vmatpush1.bf16.msra.mxu1 %v13777_v24  ;;  %9630 = vmatprep.subr.bf16.mxu0 %v13782_v2  ;;  %v10832_v24 = vld [vmem:[#allocation10] sm:$0xf]  ;;  %v15696_v2 = vld [vmem:[#allocation17_spill] sm:$0xff] }
 0x438   :  { %10534 = vmatprep.subr.bf16.mxu1 %v13785_v58  ;;  %v15421_v58 = vrot.slane %v10832_v24, %v15696_v2 }
 0x43a   :  { %9631 = vmatpush1.bf16.msra.mxu0 %v13780_v25 }
 0x43b   :  { %10535 = vmatpush1.bf16.msra.mxu1 %v13783_v56  ;;  %9632 = vmatprep.subr.bf16.mxu0 %v13788_v10  ;;  %v15697_v56 = vld [vmem:[#allocation18_spill] sm:$0xff] }
 0x43c   :  { %9570 = vmatmul.mubr.bf16.gmra.mrb[140].mxu0 %v15182_v42  ;;  %10536 = vmatprep.subr.bf16.mxu1 %v13791_v9  ;;  %v15424_v10 = vrot.slane %v10832_v24, %v15697_v56  ;;  %v15698_v9 = vld [vmem:[#allocation19_spill] sm:$0xff] }
 0x43d   :  { %10474 = vmatmul.mubr.bf16.gmra.mrb[140].mxu1 %v15182_v42  ;;  %9579 = vmatprep.mubr.bf16.mxu0 %v15207_v22  ;;  %v13809_v42 = vld [vmem:[#allocation8 + $0xf2c] ss:$16 sps:$4 sm:$0xff]  }
 0x43e   :  { %9633 = vmatpush1.bf16.msra.mxu0 %v13786_v55  ;;  %10483 = vmatprep.mubr.bf16.mxu1 %v15207_v22  ;;  %v15680_v22 = vld [vmem:[#allocation39_spill] sm:$0xff]  ;;  %v15427_v55 = vrot.slane %v10832_v24, %v15698_v9 }
 0x43f   :  { %10537 = vmatpush1.bf16.msra.mxu1 %v13789_v49  ;;  %9634 = vmatprep.subr.bf16.mxu0 %v13794_v30 }
 0x440   :  { %10538 = vmatprep.subr.bf16.mxu1 %v13797_v3  ;;  %v15699_v3 = vld [vmem:[#allocation20_spill] sm:$0xff] }
 0x442   :  { %9635 = vmatpush1.bf16.msra.mxu0 %v13792_v33  ;;  %v15430_v33 = vrot.slane %v10832_v24, %v15699_v3 }
 0x443   :  { %10539 = vmatpush1.bf16.msra.mxu1 %v13795_v7  ;;  %9636 = vmatprep.subr.bf16.mxu0 %v13800_v54 }
 0x444   :  { %9580 = vmatmul.mubr.bf16.gmra.mrb[144].mxu0 %v15679_v31  ;;  %10540 = vmatprep.subr.bf16.mxu1 %v13803_v37 }
 0x445   :  { %10484 = vmatmul.mubr.bf16.gmra.mrb[144].mxu1 %v15679_v31  ;;  %9589 = vmatprep.mubr.bf16.mxu0 %v15680_v22 }
 0x446   :  { %9637 = vmatpush1.bf16.msra.mxu0 %v13798_v18  ;;  %10493 = vmatprep.mubr.bf16.mxu1 %v15680_v22 }
 0x447   :  { %10541 = vmatpush1.bf16.msra.mxu1 %v13801_v36  ;;  %9638 = vmatprep.subr.bf16.mxu0 %v13806_v26 }
 0x448   :  { %10542 = vmatprep.subr.bf16.mxu1 %v13809_v42 }
 0x44a   :  { %9639 = vmatpush1.bf16.msra.mxu0 %v13804_v41 }
 0x44b   :  { %10543 = vmatpush1.bf16.msra.mxu1 %v13807_v59  ;;  %9640 = vmatprep.subr.bf16.mxu0 %v13812_v48 }
 0x44c   :  { %9590 = vmatmul.mubr.bf16.gmra.mrb[148].mxu0 %v15681_v40  ;;  %10544 = vmatprep.subr.bf16.mxu1 %v13815_v23 }
 0x44d   :  { %10494 = vmatmul.mubr.bf16.gmra.mrb[148].mxu1 %v15681_v40  ;;  %9599 = vmatprep.mubr.bf16.mxu0 %v15246_v52 }
 0x44e   :  { %9641 = vmatpush1.bf16.msra.mxu0 %v13810_v39  ;;  %10503 = vmatprep.mubr.bf16.mxu1 %v15246_v52  ;;  %v13828_v52 = vld [vmem:[#allocation8 + $0xfa0] ss:$16 sps:$4 sm:$0xff]  }
 0x44f   :  { %10545 = vmatpush1.bf16.msra.mxu1 %v13813_v27  ;;  %9642 = vmatprep.subr.bf16.mxu0 %v13818_v5 }
 0x450   :  { %10546 = vmatprep.subr.bf16.mxu1 %v13821_v44 }
 0x452   :  { %9643 = vmatpush1.bf16.msra.mxu0 %v13816_v47 }
 0x453   :  { %10547 = vmatpush1.bf16.msra.mxu1 %v13819_v11  ;;  %9644 = vmatprep.subr.bf16.mxu0 %v13824_v14 }
 0x454   :  { %9600 = vmatmul.mubr.bf16.gmra.mrb[152].mxu0 %v15242_v34  ;;  %10548 = vmatprep.subr.bf16.mxu1 %v13827_v20 }
 0x455   :  { %10504 = vmatmul.mubr.bf16.gmra.mrb[152].mxu1 %v15242_v34  ;;  %9609 = vmatprep.mubr.bf16.mxu0 %v15266_v0  ;;  %v13845_v34 = vld [vmem:[#allocation8 + $0xfec] ss:$16 sps:$4 sm:$0xff]  }
 0x456   :  { %9645 = vmatpush1.bf16.msra.mxu0 %v13822_v63  ;;  %10513 = vmatprep.mubr.bf16.mxu1 %v15266_v0  ;;  %v15682_v0 = vld [vmem:[#allocation24_spill] sm:$0xff] }
 0x457   :  { %10549 = vmatpush1.bf16.msra.mxu1 %v13825_v62  ;;  %9646 = vmatprep.subr.bf16.mxu0 %v13830_v50 }
 0x458   :  { %10550 = vmatprep.subr.bf16.mxu1 %v13833_v43 }
 0x45a   :  { %9647 = vmatpush1.bf16.msra.mxu0 %v13828_v52 }
 0x45b   :  { %10551 = vmatpush1.bf16.msra.mxu1 %v13831_v6  ;;  %9648 = vmatprep.subr.bf16.mxu0 %v13836_v13 }
 0x45c   :  { %9610 = vmatmul.mubr.bf16.gmra.mrb[156].mxu0 %v15262_v46  ;;  %10552 = vmatprep.subr.bf16.mxu1 %v13839_v61 }
 0x45d   :  { %10514 = vmatmul.mubr.bf16.gmra.mrb[156].mxu1 %v15262_v46  ;;  %9652 = vmatprep.mubr.bf16.mxu0 %v15682_v0  ;;  %v15685_v46 = vld [vmem:[#allocation23_spill] sm:$0xff] }
 0x45e   :  { %9649 = vmatpush1.bf16.msra.mxu0 %v13834_v35  ;;  %10556 = vmatprep.mubr.bf16.mxu1 %v15682_v0 }
 0x45f   :  { %10553 = vmatpush1.bf16.msra.mxu1 %v13837_v16  ;;  %9650 = vmatprep.subr.bf16.mxu0 %v13842_v19 }
 0x460   :  { %10554 = vmatprep.subr.bf16.mxu1 %v13845_v34 }
 0x462   :  { %9651 = vmatpush1.bf16.msra.mxu0 %v13840_v8 }
 0x463   :  { %10555 = vmatpush1.bf16.msra.mxu1 %v13843_v38 }
 0x465   :  { %9653 = vmatmul.mubr.bf16.vlgmr.msra.gmra.mrb[128].mxu0 %v15683_v4 }
 0x466   :  { %10557 = vmatmul.mubr.bf16.vlgmr.msra.gmra.mrb[128].mxu1 %v15683_v4  ;;  %9662 = vmatprep.mubr.bf16.mxu0 %v15684_v51 }
 0x467   :  { %10566 = vmatprep.mubr.bf16.mxu1 %v15684_v51 }
 0x46d   :  { %9663 = vmatmul.mubr.bf16.gmra.mrb[132].mxu0 %v15685_v46 }
 0x46e   :  { %10567 = vmatmul.mubr.bf16.gmra.mrb[132].mxu1 %v15685_v46  ;;  %9672 = vmatprep.mubr.bf16.mxu0 %v15686_v60 }
 0x46f   :  { %10576 = vmatprep.mubr.bf16.mxu1 %v15686_v60 }
 0x475   :  { %9673 = vmatmul.mubr.bf16.gmra.mrb[136].mxu0 %v15687_v17 }
 0x476   :  { %10577 = vmatmul.mubr.bf16.gmra.mrb[136].mxu1 %v15687_v17  ;;  %9682 = vmatprep.mubr.bf16.mxu0 %v15688_v45 }
 0x477   :  { %10586 = vmatprep.mubr.bf16.mxu1 %v15688_v45 }
 0x47d   :  { %9683 = vmatmul.mubr.bf16.gmra.mrb[140].mxu0 %v15689_v32 }
 0x47e   :  { %10587 = vmatmul.mubr.bf16.gmra.mrb[140].mxu1 %v15689_v32  ;;  %9692 = vmatprep.mubr.bf16.mxu0 %v15690_v15 }
 0x47f   :  { %10596 = vmatprep.mubr.bf16.mxu1 %v15690_v15 }
 0x485   :  { %9693 = vmatmul.mubr.bf16.gmra.mrb[144].mxu0 %v15691_v12 }
 0x486   :  { %10597 = vmatmul.mubr.bf16.gmra.mrb[144].mxu1 %v15691_v12  ;;  %9702 = vmatprep.mubr.bf16.mxu0 %v15692_v21 }
 0x487   :  { %10606 = vmatprep.mubr.bf16.mxu1 %v15692_v21 }
 0x48d   :  { %9703 = vmatmul.mubr.bf16.gmra.mrb[148].mxu0 %v15693_v28 }
 0x48e   :  { %10607 = vmatmul.mubr.bf16.gmra.mrb[148].mxu1 %v15693_v28  ;;  %9712 = vmatprep.mubr.bf16.mxu0 %v15694_v57 }
 0x48f   :  { %10616 = vmatprep.mubr.bf16.mxu1 %v15694_v57 }
 0x495   :  { %9713 = vmatmul.mubr.bf16.gmra.mrb[152].mxu0 %v15695_v53 }
 0x496   :  { %10617 = vmatmul.mubr.bf16.gmra.mrb[152].mxu1 %v15695_v53  ;;  %9722 = vmatprep.mubr.bf16.mxu0 %v15269_v29 }
 0x497   :  { %10626 = vmatprep.mubr.bf16.mxu1 %v15269_v29 }
 0x49d   :  { %9723 = vmatmul.mubr.bf16.gmra.mrb[156].mxu0 %v15264_v1 }
 0x49e   :  { %10627 = vmatmul.mubr.bf16.gmra.mrb[156].mxu1 %v15264_v1 }
 0x538   :  { %v9654_v25 = vpop.f32.mrb[128].mxu0 }
 0x539   :  { %v10558_v49 = vpop.f32.mrb[128].mxu1  ;;  %v9656_v30 = vpop.f32.mrb[129].mxu0  ;;  %v10854_v1 = vadd.f32 %v15421_v58, %v9654_v25 }
 0x53a   :  { %v10560_v29 = vpop.f32.mrb[129].mxu1  ;;  %v9658_v7 = vpop.f32.mrb[130].mxu0  ;;  %v10856_v18 = vadd.f32 %v15424_v10, %v10558_v49  ;;  %v10855_v36 = vadd.f32 %v15427_v55, %v9656_v30 }
 0x53b   :  { %v10562_v54 = vpop.f32.mrb[130].mxu1  ;;  %v9660_v37 = vpop.f32.mrb[131].mxu0  ;;  %10918 = vst [vmem:[#allocation11] sm:$0xff] %v10854_v1  ;;  %v10857_v31 = vadd.f32 %v15430_v33, %v10560_v29  ;;  %v10858_v42 = vadd.f32 %v15421_v58, %v9658_v7 }
 0x53c   :  { %v10564_v26 = vpop.f32.mrb[131].mxu1  ;;  %10920 = vst [vmem:[#allocation11 + $0x10] sm:$0xff] %v10856_v18  ;;  %10919 = vst [vmem:[#allocation11 + $0x8] sm:$0xff] %v10855_v36  ;;  %v10860_v22 = vadd.f32 %v15424_v10, %v10562_v54  ;;  %v10859_v41 = vadd.f32 %v15427_v55, %v9660_v37 }
 0x53d   :  { %10921 = vst [vmem:[#allocation11 + $0x18] sm:$0xff] %v10857_v31  ;;  %10922 = vst [vmem:[#allocation11 + $0x20] sm:$0xff] %v10858_v42  ;;  %v10861_v59 = vadd.f32 %v15430_v33, %v10564_v26 }
 0x53e   :  { %10924 = vst [vmem:[#allocation11 + $0x30] sm:$0xff] %v10860_v22  ;;  %10923 = vst [vmem:[#allocation11 + $0x28] sm:$0xff] %v10859_v41 }
 0x53f   :  { %10925 = vst [vmem:[#allocation11 + $0x38] sm:$0xff] %v10861_v59 }
 0x540   :  { %v9664_v48 = vpop.f32.mrb[132].mxu0 }
 0x541   :  { %v10568_v23 = vpop.f32.mrb[132].mxu1  ;;  %v9666_v39 = vpop.f32.mrb[133].mxu0  ;;  %v10862_v40 = vadd.f32 %v15421_v58, %v9664_v48 }
 0x542   :  { %v10570_v27 = vpop.f32.mrb[133].mxu1  ;;  %v9668_v5 = vpop.f32.mrb[134].mxu0  ;;  %v10864_v11 = vadd.f32 %v15424_v10, %v10568_v23  ;;  %v10863_v14 = vadd.f32 %v15427_v55, %v9666_v39 }
 0x543   :  { %v10572_v44 = vpop.f32.mrb[134].mxu1  ;;  %v9670_v47 = vpop.f32.mrb[135].mxu0  ;;  %10926 = vst [vmem:[#allocation11 + $0x40] sm:$0xff] %v10862_v40  ;;  %v10865_v63 = vadd.f32 %v15430_v33, %v10570_v27  ;;  %v10866_v62 = vadd.f32 %v15421_v58, %v9668_v5 }
 0x544   :  { %v10574_v20 = vpop.f32.mrb[135].mxu1  ;;  %10928 = vst [vmem:[#allocation11 + $0x50] sm:$0xff] %v10864_v11  ;;  %10927 = vst [vmem:[#allocation11 + $0x48] sm:$0xff] %v10863_v14  ;;  %v10868_v50 = vadd.f32 %v15424_v10, %v10572_v44  ;;  %v10867_v43 = vadd.f32 %v15427_v55, %v9670_v47 }
 0x545   :  { %10929 = vst [vmem:[#allocation11 + $0x58] sm:$0xff] %v10865_v63  ;;  %10930 = vst [vmem:[#allocation11 + $0x60] sm:$0xff] %v10866_v62  ;;  %v10869_v52 = vadd.f32 %v15430_v33, %v10574_v20 }
 0x546   :  { %10932 = vst [vmem:[#allocation11 + $0x70] sm:$0xff] %v10868_v50  ;;  %10931 = vst [vmem:[#allocation11 + $0x68] sm:$0xff] %v10867_v43 }
 0x547   :  { %10933 = vst [vmem:[#allocation11 + $0x78] sm:$0xff] %v10869_v52 }
 0x548   :  { %v9674_v6 = vpop.f32.mrb[136].mxu0 }
 0x549   :  { %v10578_v13 = vpop.f32.mrb[136].mxu1  ;;  %v9676_v61 = vpop.f32.mrb[137].mxu0  ;;  %v10870_v19 = vadd.f32 %v15421_v58, %v9674_v6 }
 0x54a   :  { %v10580_v35 = vpop.f32.mrb[137].mxu1  ;;  %v9678_v16 = vpop.f32.mrb[138].mxu0  ;;  %v10872_v8 = vadd.f32 %v15424_v10, %v10578_v13  ;;  %v10871_v38 = vadd.f32 %v15427_v55, %v9676_v61 }
 0x54b   :  { %v10582_v34 = vpop.f32.mrb[138].mxu1  ;;  %v9680_v0 = vpop.f32.mrb[139].mxu0  ;;  %10934 = vst [vmem:[#allocation11 + $0x80] sm:$0xff] %v10870_v19  ;;  %v10873_v51 = vadd.f32 %v15430_v33, %v10580_v35  ;;  %v10874_v46 = vadd.f32 %v15421_v58, %v9678_v16 }
 0x54c   :  { %v10584_v4 = vpop.f32.mrb[139].mxu1  ;;  %10936 = vst [vmem:[#allocation11 + $0x90] sm:$0xff] %v10872_v8  ;;  %10935 = vst [vmem:[#allocation11 + $0x88] sm:$0xff] %v10871_v38  ;;  %v10876_v60 = vadd.f32 %v15424_v10, %v10582_v34  ;;  %v10875_v17 = vadd.f32 %v15427_v55, %v9680_v0 }
 0x54d   :  { %10937 = vst [vmem:[#allocation11 + $0x98] sm:$0xff] %v10873_v51  ;;  %10938 = vst [vmem:[#allocation11 + $0xa0] sm:$0xff] %v10874_v46  ;;  %v10877_v45 = vadd.f32 %v15430_v33, %v10584_v4 }
 0x54e   :  { %10940 = vst [vmem:[#allocation11 + $0xb0] sm:$0xff] %v10876_v60  ;;  %10939 = vst [vmem:[#allocation11 + $0xa8] sm:$0xff] %v10875_v17 }
 0x54f   :  { %10941 = vst [vmem:[#allocation11 + $0xb8] sm:$0xff] %v10877_v45 }
 0x550   :  { %v9684_v32 = vpop.f32.mrb[140].mxu0 }
 0x551   :  { %v10588_v15 = vpop.f32.mrb[140].mxu1  ;;  %v9686_v12 = vpop.f32.mrb[141].mxu0  ;;  %v10878_v57 = vadd.f32 %v15421_v58, %v9684_v32 }
 0x552   :  { %v10590_v21 = vpop.f32.mrb[141].mxu1  ;;  %v9688_v28 = vpop.f32.mrb[142].mxu0  ;;  %v10880_v2 = vadd.f32 %v15424_v10, %v10588_v15  ;;  %v10879_v25 = vadd.f32 %v15427_v55, %v9686_v12 }
 0x553   :  { %v10592_v53 = vpop.f32.mrb[142].mxu1  ;;  %v9690_v24 = vpop.f32.mrb[143].mxu0  ;;  %10942 = vst [vmem:[#allocation11 + $0xc0] sm:$0xff] %v10878_v57  ;;  %v10881_v9 = vadd.f32 %v15430_v33, %v10590_v21  ;;  %v10882_v49 = vadd.f32 %v15421_v58, %v9688_v28 }
 0x554   :  { %v10594_v56 = vpop.f32.mrb[143].mxu1  ;;  %10944 = vst [vmem:[#allocation11 + $0xd0] sm:$0xff] %v10880_v2  ;;  %10943 = vst [vmem:[#allocation11 + $0xc8] sm:$0xff] %v10879_v25  ;;  %v10884_v30 = vadd.f32 %v15424_v10, %v10592_v53  ;;  %v10883_v3 = vadd.f32 %v15427_v55, %v9690_v24 }
 0x555   :  { %10945 = vst [vmem:[#allocation11 + $0xd8] sm:$0xff] %v10881_v9  ;;  %10946 = vst [vmem:[#allocation11 + $0xe0] sm:$0xff] %v10882_v49  ;;  %v10885_v29 = vadd.f32 %v15430_v33, %v10594_v56 }
 0x556   :  { %10948 = vst [vmem:[#allocation11 + $0xf0] sm:$0xff] %v10884_v30  ;;  %10947 = vst [vmem:[#allocation11 + $0xe8] sm:$0xff] %v10883_v3 }
 0x557   :  { %10949 = vst [vmem:[#allocation11 + $0xf8] sm:$0xff] %v10885_v29 }
 0x558   :  { %v9694_v7 = vpop.f32.mrb[144].mxu0 }
 0x559   :  { %v10598_v1 = vpop.f32.mrb[144].mxu1  ;;  %v9696_v54 = vpop.f32.mrb[145].mxu0  ;;  %v10886_v36 = vadd.f32 %v15421_v58, %v9694_v7 }
 0x55a   :  { %v10600_v37 = vpop.f32.mrb[145].mxu1  ;;  %v9698_v18 = vpop.f32.mrb[146].mxu0  ;;  %v10888_v42 = vadd.f32 %v15424_v10, %v10598_v1  ;;  %v10887_v22 = vadd.f32 %v15427_v55, %v9696_v54 }
 0x55b   :  { %v10602_v26 = vpop.f32.mrb[146].mxu1  ;;  %v9700_v31 = vpop.f32.mrb[147].mxu0  ;;  %10950 = vst [vmem:[#allocation11 + $0x100] sm:$0xff] %v10886_v36  ;;  %v10889_v59 = vadd.f32 %v15430_v33, %v10600_v37  ;;  %v10890_v48 = vadd.f32 %v15421_v58, %v9698_v18 }
 0x55c   :  { %v10604_v41 = vpop.f32.mrb[147].mxu1  ;;  %10952 = vst [vmem:[#allocation11 + $0x110] sm:$0xff] %v10888_v42  ;;  %10951 = vst [vmem:[#allocation11 + $0x108] sm:$0xff] %v10887_v22  ;;  %v10892_v23 = vadd.f32 %v15424_v10, %v10602_v26  ;;  %v10891_v39 = vadd.f32 %v15427_v55, %v9700_v31 }
 0x55d   :  { %10953 = vst [vmem:[#allocation11 + $0x118] sm:$0xff] %v10889_v59  ;;  %10954 = vst [vmem:[#allocation11 + $0x120] sm:$0xff] %v10890_v48  ;;  %v10893_v27 = vadd.f32 %v15430_v33, %v10604_v41 }
 0x55e   :  { %10956 = vst [vmem:[#allocation11 + $0x130] sm:$0xff] %v10892_v23  ;;  %10955 = vst [vmem:[#allocation11 + $0x128] sm:$0xff] %v10891_v39 }
 0x55f   :  { %10957 = vst [vmem:[#allocation11 + $0x138] sm:$0xff] %v10893_v27 }
 0x560   :  { %v9704_v5 = vpop.f32.mrb[148].mxu0 }
 0x561   :  { %v10608_v40 = vpop.f32.mrb[148].mxu1  ;;  %v9706_v44 = vpop.f32.mrb[149].mxu0  ;;  %v10894_v14 = vadd.f32 %v15421_v58, %v9704_v5 }
 0x562   :  { %v10610_v47 = vpop.f32.mrb[149].mxu1  ;;  %v9708_v11 = vpop.f32.mrb[150].mxu0  ;;  %v10896_v62 = vadd.f32 %v15424_v10, %v10608_v40  ;;  %v10895_v50 = vadd.f32 %v15427_v55, %v9706_v44 }
 0x563   :  { %v10612_v20 = vpop.f32.mrb[150].mxu1  ;;  %v9710_v63 = vpop.f32.mrb[151].mxu0  ;;  %10958 = vst [vmem:[#allocation11 + $0x140] sm:$0xff] %v10894_v14  ;;  %v10897_v52 = vadd.f32 %v15430_v33, %v10610_v47  ;;  %v10898_v6 = vadd.f32 %v15421_v58, %v9708_v11 }
 0x564   :  { %v10614_v43 = vpop.f32.mrb[151].mxu1  ;;  %10960 = vst [vmem:[#allocation11 + $0x150] sm:$0xff] %v10896_v62  ;;  %10959 = vst [vmem:[#allocation11 + $0x148] sm:$0xff] %v10895_v50  ;;  %v10900_v13 = vadd.f32 %v15424_v10, %v10612_v20  ;;  %v10899_v61 = vadd.f32 %v15427_v55, %v9710_v63 }
 0x565   :  { %10961 = vst [vmem:[#allocation11 + $0x158] sm:$0xff] %v10897_v52  ;;  %10962 = vst [vmem:[#allocation11 + $0x160] sm:$0xff] %v10898_v6  ;;  %v10901_v35 = vadd.f32 %v15430_v33, %v10614_v43 }
 0x566   :  { %10964 = vst [vmem:[#allocation11 + $0x170] sm:$0xff] %v10900_v13  ;;  %10963 = vst [vmem:[#allocation11 + $0x168] sm:$0xff] %v10899_v61 }
 0x567   :  { %10965 = vst [vmem:[#allocation11 + $0x178] sm:$0xff] %v10901_v35 }
 0x568   :  { %v9714_v16 = vpop.f32.mrb[152].mxu0 }
 0x569   :  { %v10618_v19 = vpop.f32.mrb[152].mxu1  ;;  %v9716_v34 = vpop.f32.mrb[153].mxu0  ;;  %v10902_v38 = vadd.f32 %v15421_v58, %v9714_v16 }
 0x56a   :  { %v10620_v0 = vpop.f32.mrb[153].mxu1  ;;  %v9718_v8 = vpop.f32.mrb[154].mxu0  ;;  %v10904_v46 = vadd.f32 %v15424_v10, %v10618_v19  ;;  %v10903_v60 = vadd.f32 %v15427_v55, %v9716_v34 }
 0x56b   :  { %v10622_v4 = vpop.f32.mrb[154].mxu1  ;;  %v9720_v51 = vpop.f32.mrb[155].mxu0  ;;  %10966 = vst [vmem:[#allocation11 + $0x180] sm:$0xff] %v10902_v38  ;;  %v10905_v45 = vadd.f32 %v15430_v33, %v10620_v0  ;;  %v10906_v32 = vadd.f32 %v15421_v58, %v9718_v8 }
 0x56c   :  { %v10624_v17 = vpop.f32.mrb[155].mxu1  ;;  %10968 = vst [vmem:[#allocation11 + $0x190] sm:$0xff] %v10904_v46  ;;  %10967 = vst [vmem:[#allocation11 + $0x188] sm:$0xff] %v10903_v60  ;;  %v10908_v15 = vadd.f32 %v15424_v10, %v10622_v4  ;;  %v10907_v12 = vadd.f32 %v15427_v55, %v9720_v51 }
 0x56d   :  { %10969 = vst [vmem:[#allocation11 + $0x198] sm:$0xff] %v10905_v45  ;;  %10970 = vst [vmem:[#allocation11 + $0x1a0] sm:$0xff] %v10906_v32  ;;  %v10909_v21 = vadd.f32 %v15430_v33, %v10624_v17 }
 0x56e   :  { %10972 = vst [vmem:[#allocation11 + $0x1b0] sm:$0xff] %v10908_v15  ;;  %10971 = vst [vmem:[#allocation11 + $0x1a8] sm:$0xff] %v10907_v12 }
 0x56f   :  { %10973 = vst [vmem:[#allocation11 + $0x1b8] sm:$0xff] %v10909_v21 }
 0x570   :  { %v9724_v28 = vpop.f32.mrb[156].mxu0 }
 0x571   :  { %v10628_v57 = vpop.f32.mrb[156].mxu1  ;;  %v9726_v53 = vpop.f32.mrb[157].mxu0  ;;  %v10910_v25 = vadd.f32 %v15421_v58, %v9724_v28 }
 0x572   :  { %v10630_v24 = vpop.f32.mrb[157].mxu1  ;;  %v9728_v2 = vpop.f32.mrb[158].mxu0  ;;  %v10912_v49 = vadd.f32 %v15424_v10, %v10628_v57  ;;  %v10911_v30 = vadd.f32 %v15427_v55, %v9726_v53 }
 0x573   :  { %v10632_v56 = vpop.f32.mrb[158].mxu1  ;;  %v9730_v9 = vpop.f32.mrb[159].mxu0  ;;  %10974 = vst [vmem:[#allocation11 + $0x1c0] sm:$0xff] %v10910_v25  ;;  %v10913_v29 = vadd.f32 %v15430_v33, %v10630_v24  ;;  %v10914_v7 = vadd.f32 %v15421_v58, %v9728_v2 }
 0x574   :  { %v10634_v3 = vpop.f32.mrb[159].mxu1  ;;  %10976 = vst [vmem:[#allocation11 + $0x1d0] sm:$0xff] %v10912_v49  ;;  %10975 = vst [vmem:[#allocation11 + $0x1c8] sm:$0xff] %v10911_v30  ;;  %v10916_v1 = vadd.f32 %v15424_v10, %v10632_v56  ;;  %v10915_v54 = vadd.f32 %v15427_v55, %v9730_v9 }
 0x575   :  { %10977 = vst [vmem:[#allocation11 + $0x1d8] sm:$0xff] %v10913_v29  ;;  %10978 = vst [vmem:[#allocation11 + $0x1e0] sm:$0xff] %v10914_v7  ;;  %v10917_v37 = vadd.f32 %v15430_v33, %v10634_v3 }
 0x576   :  { %10980 = vst [vmem:[#allocation11 + $0x1f0] sm:$0xff] %v10916_v1  ;;  %10979 = vst [vmem:[#allocation11 + $0x1e8] sm:$0xff] %v10915_v54 }
 0x577   :  { %10981 = vst [vmem:[#allocation11 + $0x1f8] sm:$0xff] %v10917_v37 }
 0x578   :  { %14065 = shalt.err (!%p14062_p2)
}
 0x579   :  { %s14066_s30 = scalar_lea.hbm %s15513_s5, 8192 }
 0x57a   :  { %p14067_p3 = scmp.ne.s32.totalorder %s15513_s5, %s14066_s30  ;;  %p14070_p4 = scmp.lt.u32.totalorder %s14066_s30, %s15513_s5 }
 0x57c   :  { %p14072_p5 = pnand %p14070_p4, %p14067_p3 }
 0x57e   :  { %14075 = shalt.err (!%p14072_p5)
}
 0x57f   :  { %s14094_s11 = smov 512   ;;  %s14095_s12 = smov 32  }
 0x580   :  { %10993 = dma.vmem_to_hbm [thread:$0]  %s10988_s27, 8192, %s15513_s5, [#allocation4], %s14094_s11, %s14094_s11, %s14095_s12  }
 0x581   :  { %14082 = dma.done.wait [#allocation4], 8192  }
 0x582   :  { %14083 = vsyncadd [#allocation4], 4294959104 }
 0x583   :  { %10997 = vsyncpa [#allocation3], 1 }
 0x584   :  { %10998 = vsyncpa [#allocation6], 1 }
 0x585   :  { %10999 = vsyncpa [#allocation9], 1 }
 0x586   :  { %11000 = vsyncpa [#allocation4], 1 }

</bundles_post_ra>
